<compile_context>
chip_gen: v5e
topology: v5e:2x2
jax: 0.10.0
libtpu: 0.0.40
codegen_flags: <defaults>
</compile_context>

<pallas_src>
import jax
import jax.numpy as jnp
from jax import lax
from jax.experimental import pallas as pl
from jax.experimental.pallas import tpu as pltpu

# ----------------------------- model constants ------------------------------ #
IN_CH = 3            # in_channels
CIN_PAD = 8          # first-conv input channels padded for aligned tap stacking
HID = 32             # hidden_size (== GroupNorm num_groups)
SLOT = 64            # slot_size
NSLOT = 6            # num_slots
NBLOCK = 2           # num_blocks
H = W = 16           # input spatial size
HW = H * W           # 256 tokens before downsample
H2, W2 = H // 2, W // 2
HW2 = H2 * W2        # 64 tokens after downsample
SA_ITERS = 3
GN_EPS = 1e-5        # nn.GroupNorm default (taming ResnetBlock variant uses 1e-6)
LN_EPS = 1e-5

# Token-axis shifts for the 3x3 taps (t = dy*3 + dx), baked in as Python ints.
DELTA1 = tuple((dy - 1) * W + (dx - 1) for dy in range(3) for dx in range(3))  # pad=1
DELTA2 = tuple(dy * W + dx for dy in range(3) for dx in range(3))              # pad (0,1,0,1)


# --------------------------------------------------------------------------- #
# Constant builders (run once at setup, plain XLA).
# --------------------------------------------------------------------------- #
def build_grid(resolution):
    ranges = [jnp.linspace(0.0, 1.0, num=r) for r in resolution]
    gy, gx = jnp.meshgrid(*ranges, indexing="ij")
    grid = jnp.stack([gy, gx], axis=-1)                        # (H, W, 2)
    return jnp.concatenate([grid, 1.0 - grid], axis=-1).astype(jnp.float32)


def _build_conv_masks():
    """Per-tap validity masks on the 256-token plane (1 row per tap)."""
    y = jnp.arange(H).reshape(H, 1)
    x = jnp.arange(W).reshape(1, W)
    m1, m2 = [], []
    for dy in range(3):
        for dx in range(3):
            v1 = ((y + dy - 1 >= 0) & (y + dy - 1 < H) &
                  (x + dx - 1 >= 0) & (x + dx - 1 < W))        # pad=1 conv
            v2 = (y + dy < H) & (x + dx < W)                   # pad (0,1,0,1) conv
            m1.append(v1.reshape(-1))
            m2.append(v2.reshape(-1))
    return (jnp.stack(m1, 0).astype(jnp.float32),              # (9, 256)
            jnp.stack(m2, 0).astype(jnp.float32))              # (9, 256)


def _build_downsample_select():
    """0/1 matrix (256, 64) picking token (2*yo, 2*xo) for stride-2 output (yo, xo)."""
    yo = jnp.arange(H2).reshape(H2, 1)
    xo = jnp.arange(W2).reshape(1, W2)
    src = (2 * yo * W + 2 * xo).reshape(1, HW2)
    return (jnp.arange(HW).reshape(HW, 1) == src).astype(jnp.float32)


# --------------------------------------------------------------------------- #
# Parameter init (same structure/semantics as the previous accepted version).
# --------------------------------------------------------------------------- #
def init_params(key):
    keys = iter(jax.random.split(key, 64))

    def w(shape, scale=0.08):
        return jax.random.normal(next(keys), shape, jnp.float32) * scale

    ones = lambda n: jnp.ones((n,), jnp.float32)
    zeros = lambda n: jnp.zeros((n,), jnp.float32)

    p = {
        "hidden": HID,
        "first_w": w((HID, IN_CH, 3, 3)), "first_b": zeros(HID),
        "resnet": [],
        "down_w": w((HID, HID, 3, 3)), "down_b": zeros(HID),
        "pos_w": w((4, HID)), "pos_b": zeros(HID),
        "ln_g": ones(HID), "ln_b": zeros(HID),
        "mlp_w1": w((HID, HID)), "mlp_b1": zeros(HID),
        "mlp_w2": w((HID, SLOT)), "mlp_b2": zeros(SLOT),
    }
    for _ in range(NBLOCK):
        p["resnet"].append({
            "n1_g": ones(HID), "n1_b": zeros(HID),
            "c1_w": w((HID, HID, 3, 3)), "c1_b": zeros(HID),
            "n2_g": ones(HID), "n2_b": zeros(HID),
            "c2_w": w((HID, HID, 3, 3)), "c2_b": zeros(HID),
        })
    d = SLOT
    p["sa"] = {
        "mu": w((1, 1, d), 1.0), "logsigma": w((1, 1, d), 0.1),
        "ln_in_g": ones(d), "ln_in_b": zeros(d),
        "wq": w((d, d)), "wk": w((d, d)), "wv": w((d, d)),
        "ln_s_g": ones(d), "ln_s_b": zeros(d),
        "w_ir": w((d, d)), "w_iz": w((d, d)), "w_in": w((d, d)),
        "w_hr": w((d, d)), "w_hz": w((d, d)), "w_hn": w((d, d)),
        "b_r": zeros(d), "b_z": zeros(d), "b_in": zeros(d), "b_hn": zeros(d),
        "ln_ff_g": ones(d), "ln_ff_b": zeros(d),
        "mw1": w((d, 2 * d)), "mb1": zeros(2 * d),
        "mw2": w((2 * d, d)), "mb2": zeros(d),
    }
    return p


# --------------------------------------------------------------------------- #
# Pack parameters into the VMEM-friendly layout consumed by the fused kernel.
# --------------------------------------------------------------------------- #
def pack_params(p):
    assert p["hidden"] == HID == 32, "GroupNorm kernel requires hidden == num_groups"
    bf, f32 = jnp.bfloat16, jnp.float32
    col = lambda v: v.reshape(-1, 1).astype(f32)     # per-channel column (C, 1)
    row = lambda v: v.reshape(1, -1).astype(f32)     # per-feature row   (1, D)

    def conv_pack(wc):   # (Cout, Cin, 3, 3) -> (Cout, 9*Cin), tap-major / cin-minor
        co, ci = wc.shape[0], wc.shape[1]
        return jnp.transpose(wc, (0, 2, 3, 1)).reshape(co, 9 * ci)

    # First conv with input channels padded 3 -> CIN_PAD (matching padded x).
    wf = jnp.transpose(p["first_w"], (0, 2, 3, 1))                     # (32, 3, 3, 3)
    wf = jnp.pad(wf, ((0, 0), (0, 0), (0, 0), (0, CIN_PAD - IN_CH)))   # (32, 3, 3, 8)
    wf = wf.reshape(HID, 9 * CIN_PAD)                                  # (32, 72)

    conv_w, col32, gn_g, gn_b = [], [col(p["first_b"])], [], []
    for blk in p["resnet"]:
        conv_w += [conv_pack(blk["c1_w"]), conv_pack(blk["c2_w"])]
        col32 += [col(blk["c1_b"]), col(blk["c2_b"])]
        gn_g += [col(blk["n1_g"]), col(blk["n2_g"])]
        gn_b += [col(blk["n1_b"]), col(blk["n2_b"])]
    conv_w.append(conv_pack(p["down_w"]))
    col32.append(col(p["down_b"]))
    col32 += gn_g + gn_b                                               # idx 6..13
    col32 += [col(p["ln_g"]), col(p["ln_b"]), col(p["mlp_b1"])]        # idx 14..16

    # Positional embedding, precomputed in channels-major layout (32, 64).
    grid = build_grid((H2, W2)).reshape(HW2, 4)
    pos_cm = (grid @ p["pos_w"] + p["pos_b"][None, :]).T.astype(f32)

    mask1, mask2 = _build_conv_masks()

    sa = p["sa"]
    col64 = jnp.stack([col(p["mlp_b2"]), col(sa["ln_in_g"]), col(sa["ln_in_b"])], 0)
    row64 = jnp.stack([row(sa["ln_s_g"]), row(sa["ln_s_b"]),
                       row(sa["ln_ff_g"]), row(sa["ln_ff_b"]),
                       row(sa["b_r"]), row(sa["b_z"]),
                       row(sa["b_in"]), row(sa["b_hn"]), row(sa["mb2"])], 0)

    return dict(
        wf=wf.astype(bf),                                              # (32, 72)
        conv_w=jnp.stack(conv_w, 0).astype(bf),                        # (5, 32, 288)
        col32=jnp.stack(col32, 0),                                     # (17, 32, 1) f32
        col64=col64,                                                   # (3, 64, 1)  f32
        row64=row64,                                                   # (9, 1, 64)  f32
        mask1=mask1, mask2=mask2,                                      # (9, 256)    f32
        sel=_build_downsample_select().astype(bf),                     # (256, 64)
        pos=pos_cm,                                                    # (32, 64)
        mb1=row(sa["mb1"]),                                            # (1, 128)
        head_w1=p["mlp_w1"].T.astype(bf),                              # (32, 32)
        head_w2=p["mlp_w2"].T.astype(bf),                              # (64, 32)
        wq=sa["wq"].astype(bf),                                        # (64, 64)
        wkvT=jnp.concatenate([sa["wk"].T, sa["wv"].T], 0).astype(bf),  # (128, 64)
        gru_wi=jnp.concatenate([sa["w_ir"], sa["w_iz"], sa["w_in"]], 1).astype(bf),
        gru_wh=jnp.concatenate([sa["w_hr"], sa["w_hz"], sa["w_hn"]], 1).astype(bf),
        sa_mw1=sa["mw1"].astype(bf),                                   # (64, 128)
        sa_mw2=sa["mw2"].astype(bf),                                   # (128, 64)
        mu=sa["mu"].astype(f32), logsigma=sa["logsigma"].astype(f32),
    )


# --------------------------------------------------------------------------- #
# The fused kernel: one grid step == Bt images (batch packed on the lane axis).
# --------------------------------------------------------------------------- #
def _oc_encoder_kernel(x_ref, s0_ref, masks_ref, wf_ref, cw_ref, c32_ref, c64_ref,
                       sel_ref, pos_ref, r64_ref, mb1_ref, hw1_ref, hw2_ref,
                       wq_ref, wkvT_ref, wi_ref, wh_ref, mw1_ref, mw2_ref, o_ref):
    f32, bf16 = jnp.float32, jnp.bfloat16
    N = x_ref.shape[-1]                      # Bt * 256 tokens on the lane axis
    Bt = N // HW

    def mm(a, b):                            # bf16 MXU matmul, f32 accumulate
        return jnp.dot(a.astype(bf16), b.astype(bf16), preferred_element_type=f32)

    def sigmoid(x):                          # exact sigmoid, single EUP tanh
        return 0.5 * (jnp.tanh(0.5 * x) + 1.0)

    def ln_lanes(h, g, b):                   # LayerNorm over the last axis (slots)
        m = jnp.mean(h, axis=-1, keepdims=True)
        v = jnp.mean((h - m) * (h - m), axis=-1, keepdims=True)
        return (h - m) * lax.rsqrt(v + LN_EPS) * g + b

    def ln_sublanes(h, g_col, b_col):        # LayerNorm over channels (axis 0)
        m = jnp.mean(h, axis=0, keepdims=True)
        v = jnp.mean((h - m) * (h - m), axis=0, keepdims=True)
        return (h - m) * lax.rsqrt(v + LN_EPS) * g_col + b_col

    def conv3x3(x_cm, w_packed, bias_col, deltas, mask_off):
        # x_cm: (Cin, N) f32.  w_packed: (32, 9*Cin).  Taps realised as XLU rolls
        # on the token axis + 0/1 boundary masks, stacked along K for ONE matmul.
        taps = []
        for t in range(9):
            sh = (-deltas[t]) % N
            r = x_cm if sh == 0 else pltpu.roll(x_cm, shift=sh, axis=1)
            taps.append(r * masks_ref[mask_off + t])
        stack = jnp.concatenate(taps, axis=0)               # (9*Cin, N)
        return mm(w_packed, stack) + bias_col               # (32, N)

    def gn_silu(h, idx):
        # GroupNorm(32 groups, 32 ch): per-(image, channel) stats over 256 tokens.
        parts = []
        for b in range(Bt):
            hb = h[:, b * HW:(b + 1) * HW]
            m = jnp.mean(hb, axis=-1, keepdims=True)
            v = jnp.mean((hb - m) * (hb - m), axis=-1, keepdims=True)
            parts.append((hb - m) * lax.rsqrt(v + GN_EPS))
        y = parts[0] if Bt == 1 else jnp.concatenate(parts, axis=-1)
        y = y * c32_ref[6 + idx] + c32_ref[10 + idx]
        return y * sigmoid(y)

    # ------------------------ conv encoder (channels-major) ----------------- #
    h = conv3x3(x_ref[0], wf_ref[...], c32_ref[0], DELTA1, 0)          # (32, Bt*256)
    for blk in range(NBLOCK):
        t1 = gn_silu(h, 2 * blk)
        t1 = conv3x3(t1, cw_ref[2 * blk], c32_ref[1 + 2 * blk], DELTA1, 0)
        t1 = gn_silu(t1, 2 * blk + 1)
        # dropout -> identity; conv2 + residual
        h = conv3x3(t1, cw_ref[2 * blk + 1], c32_ref[2 + 2 * blk], DELTA1, 0) + h

    # Downsample: pad(0,1,0,1) 3x3 stride-2 conv == full-res conv + even-token select.
    hf = conv3x3(h, cw_ref[4], c32_ref[5], DELTA2, 9)                   # (32, Bt*256)
    parts = [mm(hf[:, b * HW:(b + 1) * HW], sel_ref[...]) for b in range(Bt)]
    h = parts[0] if Bt == 1 else jnp.concatenate(parts, axis=-1)        # (32, Bt*64)

    # ------------------ pos-embed + LayerNorm + MLP head -------------------- #
    h = h + pos_ref[...]
    h = ln_sublanes(h, c32_ref[14], c32_ref[15])
    h = jnp.maximum(mm(hw1_ref[...], h) + c32_ref[16], 0.0)
    emb = mm(hw2_ref[...], h) + c64_ref[0]                              # (64, Bt*64)

    # ---------------- slot attention (3 iters, GRU, residual MLP) ----------- #
    x_in = ln_sublanes(emb, c64_ref[1], c64_ref[2])
    kv = mm(wkvT_ref[...], x_in)                                        # (128, Bt*64)
    scale = SLOT ** -0.5
    for b in range(Bt):
        kb = kv[:SLOT, b * HW2:(b + 1) * HW2]                           # (64, 64) = k^T
        vb = kv[SLOT:, b * HW2:(b + 1) * HW2]                           # (64, 64) = v^T
        slots = s0_ref[0, b]                                            # (6, 64)
        for _ in range(SA_ITERS):
            prev = slots
            q = mm(ln_lanes(slots, r64_ref[0], r64_ref[1]), wq_ref[...])
            dots = mm(q, kb) * scale                                    # (S, Nin)
            dots = dots - jnp.max(dots, axis=0, keepdims=True)
            e = jnp.exp(dots)
            attn = e * pl.reciprocal(jnp.sum(e, axis=0, keepdims=True), approx=True)
            attn = attn + 1e-8
            attn = attn * pl.reciprocal(jnp.sum(attn, axis=-1, keepdims=True), approx=True)
            upd = lax.dot_general(attn.astype(bf16), vb.astype(bf16),
                                  (((1,), (1,)), ((), ())),
                                  preferred_element_type=f32)           # (S, D)
            # GRUCell(upd, prev) with packed [r|z|n] bf16 weights.
            gx = mm(upd, wi_ref[...])                                   # (S, 3D)
            gh = mm(prev, wh_ref[...])                                  # (S, 3D)
            r = sigmoid(gx[:, :SLOT] + gh[:, :SLOT] + r64_ref[4])
            z = sigmoid(gx[:, SLOT:2 * SLOT] + gh[:, SLOT:2 * SLOT] + r64_ref[5])
            n = jnp.tanh(gx[:, 2 * SLOT:] + r64_ref[6] + r * (gh[:, 2 * SLOT:] + r64_ref[7]))
            slots = (1.0 - z) * n + z * prev
            # residual MLP: slots + Linear(ReLU(Linear(LN(slots))))
            hm = ln_lanes(slots, r64_ref[2], r64_ref[3])
            hm = jnp.maximum(mm(hm, mw1_ref[...]) + mb1_ref[...], 0.0)  # (S, 2D)
            slots = slots + mm(hm, mw2_ref[...]) + r64_ref[8]
        o_ref[0, b] = slots


def _const_spec(a):
    zeros = (0,) * a.ndim
    return pl.BlockSpec(a.shape, lambda i, _z=zeros: _z)


def _pick_block_b(B):
    # Prefer >= 2 grid steps (v7x megacore) with the largest Bt <= 8 that divides B.
    for bt in (8, 4, 2, 1):
        if B % bt == 0 and B // bt >= 2:
            return bt
    for bt in (8, 4, 2, 1):
        if B % bt == 0:
            return bt
    return 1


# --------------------------------------------------------------------------- #
# Forward pass (4-D input branch of OC_ConvEncoder.forward) -- ONE pallas_call.
# --------------------------------------------------------------------------- #
def oc_conv_encoder_forward(x_nchw, packed, noise_key, block_b=None):
    f32 = jnp.float32
    B = x_nchw.shape[0]
    Bt = _pick_block_b(B) if block_b is None else block_b
    assert B % Bt == 0
    nstep = B // Bt
    N = Bt * HW

    # Channels-major, lane-dense input: (nstep, CIN_PAD, Bt*HW), batch packed on lanes.
    x = x_nchw.reshape(nstep, Bt, IN_CH, HW).astype(f32)
    x = jnp.transpose(x, (0, 2, 1, 3)).reshape(nstep, IN_CH, N)
    x = jnp.pad(x, ((0, 0), (0, CIN_PAD - IN_CH), (0, 0)))

    noise = jax.random.normal(noise_key, (B, NSLOT, SLOT), f32)
    slots0 = (packed["mu"] + jnp.exp(packed["logsigma"]) * noise).astype(f32)
    slots0 = slots0.reshape(nstep, Bt, NSLOT, SLOT)

    # Per-tap masks / pos-embed tiled for the Bt-wide token axis (Bt is static).
    masks = jnp.concatenate([packed["mask1"], packed["mask2"]], axis=0)   # (18, 256)
    masks = jnp.tile(masks, (1, Bt)).reshape(18, 1, N)
    pos = jnp.tile(packed["pos"], (1, Bt))                                # (32, Bt*64)

    consts = [masks, packed["wf"], packed["conv_w"], packed["col32"], packed["col64"],
              packed["sel"], pos, packed["row64"], packed["mb1"],
              packed["head_w1"], packed["head_w2"], packed["wq"], packed["wkvT"],
              packed["gru_wi"], packed["gru_wh"], packed["sa_mw1"], packed["sa_mw2"]]

    in_specs = ([pl.BlockSpec((1, CIN_PAD, N), lambda i: (i, 0, 0)),
                 pl.BlockSpec((1, Bt, NSLOT, SLOT), lambda i: (i, 0, 0, 0))]
                + [_const_spec(a) for a in consts])

    out = pl.pallas_call(
        _oc_encoder_kernel,
        out_shape=jax.ShapeDtypeStruct((nstep, Bt, NSLOT, SLOT), f32),
        grid=(nstep,),
        in_specs=in_specs,
        out_specs=pl.BlockSpec((1, Bt, NSLOT, SLOT), lambda i: (i, 0, 0, 0)),
        compiler_params=pltpu.CompilerParams(dimension_semantics=("parallel",)),
    )(x, slots0, *consts)
    return out.reshape(B, NSLOT, SLOT)


forward = jax.jit(oc_conv_encoder_forward, static_argnames=("block_b",))


if __name__ == "__main__":
    key = jax.random.PRNGKey(0)
    k_param, k_x, k_noise = jax.random.split(key, 3)

    B = 2
    x = jax.random.normal(k_x, (B, IN_CH, H, W), jnp.float32)   # NCHW like PyTorch

    params = init_params(k_param)
    packed = pack_params(params)

    slots = forward(x, packed, k_noise)
    slots = jax.block_until_ready(slots)

    assert slots.shape == (B, NSLOT, SLOT), slots.shape
    assert bool(jnp.all(jnp.isfinite(slots)))
    print("KERNEL_OK")
</pallas_src>

<mosaic_0001>
module attributes {stable_mosaic.version = 11 : i64} {
  func.func @_oc_encoder_kernel(%arg0: i32, %arg1: memref<1x8x256xf32, #tpu.memory_space<vmem>>, %arg2: memref<1x1x6x64xf32, #tpu.memory_space<vmem>>, %arg3: memref<18x1x256xf32, #tpu.memory_space<vmem>>, %arg4: memref<32x72xbf16, #tpu.memory_space<vmem>>, %arg5: memref<5x32x288xbf16, #tpu.memory_space<vmem>>, %arg6: memref<17x32x1xf32, #tpu.memory_space<vmem>>, %arg7: memref<3x64x1xf32, #tpu.memory_space<vmem>>, %arg8: memref<256x64xbf16, #tpu.memory_space<vmem>>, %arg9: memref<32x64xf32, #tpu.memory_space<vmem>>, %arg10: memref<9x1x64xf32, #tpu.memory_space<vmem>>, %arg11: memref<1x128xf32, #tpu.memory_space<vmem>>, %arg12: memref<32x32xbf16, #tpu.memory_space<vmem>>, %arg13: memref<64x32xbf16, #tpu.memory_space<vmem>>, %arg14: memref<64x64xbf16, #tpu.memory_space<vmem>>, %arg15: memref<128x64xbf16, #tpu.memory_space<vmem>>, %arg16: memref<64x192xbf16, #tpu.memory_space<vmem>>, %arg17: memref<64x192xbf16, #tpu.memory_space<vmem>>, %arg18: memref<64x128xbf16, #tpu.memory_space<vmem>>, %arg19: memref<128x64xbf16, #tpu.memory_space<vmem>>, %arg20: memref<1x1x6x64xf32, #tpu.memory_space<vmem>>) attributes {dimension_semantics = [#tpu.dimension_semantics<parallel>], iteration_bounds = array<i64: 2>, scalar_prefetch = 0 : i64, scratch_operands = 0 : i64, tpu.core_type = #tpu.core_type<tc>, window_params = [{transform_indices = @transform_0, window_bounds = array<i64: 1, 8, 256>}, {transform_indices = @transform_1, window_bounds = array<i64: 1, 1, 6, 64>}, {pipeline_mode = #tpu.pipeline_mode<synchronous>, transform_indices = @transform_2, window_bounds = array<i64: 18, 1, 256>}, {pipeline_mode = #tpu.pipeline_mode<synchronous>, transform_indices = @transform_3, window_bounds = array<i64: 32, 72>}, {pipeline_mode = #tpu.pipeline_mode<synchronous>, transform_indices = @transform_4, window_bounds = array<i64: 5, 32, 288>}, {pipeline_mode = #tpu.pipeline_mode<synchronous>, transform_indices = @transform_5, window_bounds = array<i64: 17, 32, 1>}, {pipeline_mode = #tpu.pipeline_mode<synchronous>, transform_indices = @transform_6, window_bounds = array<i64: 3, 64, 1>}, {pipeline_mode = #tpu.pipeline_mode<synchronous>, transform_indices = @transform_7, window_bounds = array<i64: 256, 64>}, {pipeline_mode = #tpu.pipeline_mode<synchronous>, transform_indices = @transform_8, window_bounds = array<i64: 32, 64>}, {pipeline_mode = #tpu.pipeline_mode<synchronous>, transform_indices = @transform_9, window_bounds = array<i64: 9, 1, 64>}, {pipeline_mode = #tpu.pipeline_mode<synchronous>, transform_indices = @transform_10, window_bounds = array<i64: 1, 128>}, {pipeline_mode = #tpu.pipeline_mode<synchronous>, transform_indices = @transform_11, window_bounds = array<i64: 32, 32>}, {pipeline_mode = #tpu.pipeline_mode<synchronous>, transform_indices = @transform_12, window_bounds = array<i64: 64, 32>}, {pipeline_mode = #tpu.pipeline_mode<synchronous>, transform_indices = @transform_13, window_bounds = array<i64: 64, 64>}, {pipeline_mode = #tpu.pipeline_mode<synchronous>, transform_indices = @transform_14, window_bounds = array<i64: 128, 64>}, {pipeline_mode = #tpu.pipeline_mode<synchronous>, transform_indices = @transform_15, window_bounds = array<i64: 64, 192>}, {pipeline_mode = #tpu.pipeline_mode<synchronous>, transform_indices = @transform_16, window_bounds = array<i64: 64, 192>}, {pipeline_mode = #tpu.pipeline_mode<synchronous>, transform_indices = @transform_17, window_bounds = array<i64: 64, 128>}, {pipeline_mode = #tpu.pipeline_mode<synchronous>, transform_indices = @transform_18, window_bounds = array<i64: 128, 64>}, {transform_indices = @transform_19, window_bounds = array<i64: 1, 1, 6, 64>}]} {
    %c0 = arith.constant 0 : index
    %c0_0 = arith.constant 0 : index
    %c0_1 = arith.constant 0 : index
    %0 = vector.load %arg1[%c0, %c0_0, %c0_1] : memref<1x8x256xf32, #tpu.memory_space<vmem>>, vector<1x8x256xf32>
    %1 = vector.shape_cast %0 : vector<1x8x256xf32> to vector<8x256xf32>
    %c0_2 = arith.constant 0 : index
    %c0_3 = arith.constant 0 : index
    %2 = vector.load %arg4[%c0_2, %c0_3] : memref<32x72xbf16, #tpu.memory_space<vmem>>, vector<32x72xbf16>
    %c0_4 = arith.constant 0 : index
    %c0_5 = arith.constant 0 : index
    %c0_6 = arith.constant 0 : index
    %3 = vector.load %arg6[%c0_4, %c0_5, %c0_6] : memref<17x32x1xf32, #tpu.memory_space<vmem>>, vector<1x32x1xf32>
    %4 = vector.shape_cast %3 : vector<1x32x1xf32> to vector<32x1xf32>
    %c17_i32 = arith.constant 17 : i32
    %5 = tpu.dynamic_rotate %1 by %c17_i32 dim 1 : vector<8x256xf32>, i32 -> vector<8x256xf32>
    %c0_7 = arith.constant 0 : index
    %c0_8 = arith.constant 0 : index
    %c0_9 = arith.constant 0 : index
    %6 = vector.load %arg3[%c0_7, %c0_8, %c0_9] : memref<18x1x256xf32, #tpu.memory_space<vmem>>, vector<1x1x256xf32>
    %7 = vector.shape_cast %6 : vector<1x1x256xf32> to vector<1x256xf32>
    %8 = vector.broadcast %7 : vector<1x256xf32> to vector<8x256xf32>
    %9 = arith.mulf %5, %8 : vector<8x256xf32>
    %c16_i32 = arith.constant 16 : i32
    %10 = tpu.dynamic_rotate %1 by %c16_i32 dim 1 : vector<8x256xf32>, i32 -> vector<8x256xf32>
    %c1 = arith.constant 1 : index
    %c0_10 = arith.constant 0 : index
    %c0_11 = arith.constant 0 : index
    %11 = vector.load %arg3[%c1, %c0_10, %c0_11] : memref<18x1x256xf32, #tpu.memory_space<vmem>>, vector<1x1x256xf32>
    %12 = vector.shape_cast %11 : vector<1x1x256xf32> to vector<1x256xf32>
    %13 = vector.broadcast %12 : vector<1x256xf32> to vector<8x256xf32>
    %14 = arith.mulf %10, %13 : vector<8x256xf32>
    %c15_i32 = arith.constant 15 : i32
    %15 = tpu.dynamic_rotate %1 by %c15_i32 dim 1 : vector<8x256xf32>, i32 -> vector<8x256xf32>
    %c2 = arith.constant 2 : index
    %c0_12 = arith.constant 0 : index
    %c0_13 = arith.constant 0 : index
    %16 = vector.load %arg3[%c2, %c0_12, %c0_13] : memref<18x1x256xf32, #tpu.memory_space<vmem>>, vector<1x1x256xf32>
    %17 = vector.shape_cast %16 : vector<1x1x256xf32> to vector<1x256xf32>
    %18 = vector.broadcast %17 : vector<1x256xf32> to vector<8x256xf32>
    %19 = arith.mulf %15, %18 : vector<8x256xf32>
    %c1_i32 = arith.constant 1 : i32
    %20 = tpu.dynamic_rotate %1 by %c1_i32 dim 1 : vector<8x256xf32>, i32 -> vector<8x256xf32>
    %c3 = arith.constant 3 : index
    %c0_14 = arith.constant 0 : index
    %c0_15 = arith.constant 0 : index
    %21 = vector.load %arg3[%c3, %c0_14, %c0_15] : memref<18x1x256xf32, #tpu.memory_space<vmem>>, vector<1x1x256xf32>
    %22 = vector.shape_cast %21 : vector<1x1x256xf32> to vector<1x256xf32>
    %23 = vector.broadcast %22 : vector<1x256xf32> to vector<8x256xf32>
    %24 = arith.mulf %20, %23 : vector<8x256xf32>
    %c4 = arith.constant 4 : index
    %c0_16 = arith.constant 0 : index
    %c0_17 = arith.constant 0 : index
    %25 = vector.load %arg3[%c4, %c0_16, %c0_17] : memref<18x1x256xf32, #tpu.memory_space<vmem>>, vector<1x1x256xf32>
    %26 = vector.shape_cast %25 : vector<1x1x256xf32> to vector<1x256xf32>
    %27 = vector.broadcast %26 : vector<1x256xf32> to vector<8x256xf32>
    %28 = arith.mulf %1, %27 : vector<8x256xf32>
    %c255_i32 = arith.constant 255 : i32
    %29 = tpu.dynamic_rotate %1 by %c255_i32 dim 1 : vector<8x256xf32>, i32 -> vector<8x256xf32>
    %c5 = arith.constant 5 : index
    %c0_18 = arith.constant 0 : index
    %c0_19 = arith.constant 0 : index
    %30 = vector.load %arg3[%c5, %c0_18, %c0_19] : memref<18x1x256xf32, #tpu.memory_space<vmem>>, vector<1x1x256xf32>
    %31 = vector.shape_cast %30 : vector<1x1x256xf32> to vector<1x256xf32>
    %32 = vector.broadcast %31 : vector<1x256xf32> to vector<8x256xf32>
    %33 = arith.mulf %29, %32 : vector<8x256xf32>
    %c241_i32 = arith.constant 241 : i32
    %34 = tpu.dynamic_rotate %1 by %c241_i32 dim 1 : vector<8x256xf32>, i32 -> vector<8x256xf32>
    %c6 = arith.constant 6 : index
    %c0_20 = arith.constant 0 : index
    %c0_21 = arith.constant 0 : index
    %35 = vector.load %arg3[%c6, %c0_20, %c0_21] : memref<18x1x256xf32, #tpu.memory_space<vmem>>, vector<1x1x256xf32>
    %36 = vector.shape_cast %35 : vector<1x1x256xf32> to vector<1x256xf32>
    %37 = vector.broadcast %36 : vector<1x256xf32> to vector<8x256xf32>
    %38 = arith.mulf %34, %37 : vector<8x256xf32>
    %c240_i32 = arith.constant 240 : i32
    %39 = tpu.dynamic_rotate %1 by %c240_i32 dim 1 : vector<8x256xf32>, i32 -> vector<8x256xf32>
    %c7 = arith.constant 7 : index
    %c0_22 = arith.constant 0 : index
    %c0_23 = arith.constant 0 : index
    %40 = vector.load %arg3[%c7, %c0_22, %c0_23] : memref<18x1x256xf32, #tpu.memory_space<vmem>>, vector<1x1x256xf32>
    %41 = vector.shape_cast %40 : vector<1x1x256xf32> to vector<1x256xf32>
    %42 = vector.broadcast %41 : vector<1x256xf32> to vector<8x256xf32>
    %43 = arith.mulf %39, %42 : vector<8x256xf32>
    %c239_i32 = arith.constant 239 : i32
    %44 = tpu.dynamic_rotate %1 by %c239_i32 dim 1 : vector<8x256xf32>, i32 -> vector<8x256xf32>
    %c8 = arith.constant 8 : index
    %c0_24 = arith.constant 0 : index
    %c0_25 = arith.constant 0 : index
    %45 = vector.load %arg3[%c8, %c0_24, %c0_25] : memref<18x1x256xf32, #tpu.memory_space<vmem>>, vector<1x1x256xf32>
    %46 = vector.shape_cast %45 : vector<1x1x256xf32> to vector<1x256xf32>
    %47 = vector.broadcast %46 : vector<1x256xf32> to vector<8x256xf32>
    %48 = arith.mulf %44, %47 : vector<8x256xf32>
    %49 = tpu.concatenate %9, %14, %19, %24, %28, %33, %38, %43, %48 in 0 : vector<8x256xf32>, vector<8x256xf32>, vector<8x256xf32>, vector<8x256xf32>, vector<8x256xf32>, vector<8x256xf32>, vector<8x256xf32>, vector<8x256xf32>, vector<8x256xf32> -> vector<72x256xf32>
    %50 = arith.truncf %49 : vector<72x256xf32> to vector<72x256xbf16>
    %cst = arith.constant dense<0.000000e+00> : vector<32x256xf32>
    %51 = tpu.matmul %2, %50, %cst {dimension_numbers = #tpu.dot_dimension_numbers<[1], [0], [0], [1], [0, 0, 1, 1], [], []>} : vector<32x72xbf16>, vector<72x256xbf16>, vector<32x256xf32> -> vector<32x256xf32>
    %52 = vector.broadcast %4 : vector<32x1xf32> to vector<32x256xf32>
    %53 = arith.addf %51, %52 : vector<32x256xf32>
    %cst_26 = arith.constant dense<0.000000e+00> : vector<32xf32>
    %54 = vector.multi_reduction <add>, %53, %cst_26 [1] : vector<32x256xf32> to vector<32xf32>
    %55 = vector.shape_cast %54 : vector<32xf32> to vector<32x1xf32>
    %cst_27 = arith.constant 2.560000e+02 : f32
    %56 = vector.broadcast %cst_27 : f32 to vector<32x1xf32>
    %57 = arith.divf %55, %56 : vector<32x1xf32>
    %58 = vector.broadcast %57 : vector<32x1xf32> to vector<32x256xf32>
    %59 = arith.subf %53, %58 : vector<32x256xf32>
    %60 = vector.broadcast %57 : vector<32x1xf32> to vector<32x256xf32>
    %61 = arith.subf %53, %60 : vector<32x256xf32>
    %62 = arith.mulf %59, %61 : vector<32x256xf32>
    %cst_28 = arith.constant dense<0.000000e+00> : vector<32xf32>
    %63 = vector.multi_reduction <add>, %62, %cst_28 [1] : vector<32x256xf32> to vector<32xf32>
    %64 = vector.shape_cast %63 : vector<32xf32> to vector<32x1xf32>
    %cst_29 = arith.constant 2.560000e+02 : f32
    %65 = vector.broadcast %cst_29 : f32 to vector<32x1xf32>
    %66 = arith.divf %64, %65 : vector<32x1xf32>
    %67 = vector.broadcast %57 : vector<32x1xf32> to vector<32x256xf32>
    %68 = arith.subf %53, %67 : vector<32x256xf32>
    %cst_30 = arith.constant 9.99999974E-6 : f32
    %69 = vector.broadcast %cst_30 : f32 to vector<32x1xf32>
    %70 = arith.addf %66, %69 : vector<32x1xf32>
    %71 = math.rsqrt %70 : vector<32x1xf32>
    %72 = vector.broadcast %71 : vector<32x1xf32> to vector<32x256xf32>
    %73 = arith.mulf %68, %72 : vector<32x256xf32>
    %c6_31 = arith.constant 6 : index
    %c0_32 = arith.constant 0 : index
    %c0_33 = arith.constant 0 : index
    %74 = vector.load %arg6[%c6_31, %c0_32, %c0_33] : memref<17x32x1xf32, #tpu.memory_space<vmem>>, vector<1x32x1xf32>
    %75 = vector.shape_cast %74 : vector<1x32x1xf32> to vector<32x1xf32>
    %76 = vector.broadcast %75 : vector<32x1xf32> to vector<32x256xf32>
    %77 = arith.mulf %73, %76 : vector<32x256xf32>
    %c10 = arith.constant 10 : index
    %c0_34 = arith.constant 0 : index
    %c0_35 = arith.constant 0 : index
    %78 = vector.load %arg6[%c10, %c0_34, %c0_35] : memref<17x32x1xf32, #tpu.memory_space<vmem>>, vector<1x32x1xf32>
    %79 = vector.shape_cast %78 : vector<1x32x1xf32> to vector<32x1xf32>
    %80 = vector.broadcast %79 : vector<32x1xf32> to vector<32x256xf32>
    %81 = arith.addf %77, %80 : vector<32x256xf32>
    %cst_36 = arith.constant 5.000000e-01 : f32
    %82 = vector.broadcast %cst_36 : f32 to vector<32x256xf32>
    %83 = arith.mulf %82, %81 : vector<32x256xf32>
    %84 = math.tanh %83 : vector<32x256xf32>
    %cst_37 = arith.constant 1.000000e+00 : f32
    %85 = vector.broadcast %cst_37 : f32 to vector<32x256xf32>
    %86 = arith.addf %84, %85 : vector<32x256xf32>
    %cst_38 = arith.constant 5.000000e-01 : f32
    %87 = vector.broadcast %cst_38 : f32 to vector<32x256xf32>
    %88 = arith.mulf %87, %86 : vector<32x256xf32>
    %89 = arith.mulf %81, %88 : vector<32x256xf32>
    %c0_39 = arith.constant 0 : index
    %c0_40 = arith.constant 0 : index
    %c0_41 = arith.constant 0 : index
    %90 = vector.load %arg5[%c0_39, %c0_40, %c0_41] : memref<5x32x288xbf16, #tpu.memory_space<vmem>>, vector<1x32x288xbf16>
    %91 = vector.shape_cast %90 : vector<1x32x288xbf16> to vector<32x288xbf16>
    %c1_42 = arith.constant 1 : index
    %c0_43 = arith.constant 0 : index
    %c0_44 = arith.constant 0 : index
    %92 = vector.load %arg6[%c1_42, %c0_43, %c0_44] : memref<17x32x1xf32, #tpu.memory_space<vmem>>, vector<1x32x1xf32>
    %93 = vector.shape_cast %92 : vector<1x32x1xf32> to vector<32x1xf32>
    %c17_i32_45 = arith.constant 17 : i32
    %94 = tpu.dynamic_rotate %89 by %c17_i32_45 dim 1 : vector<32x256xf32>, i32 -> vector<32x256xf32>
    %c0_46 = arith.constant 0 : index
    %c0_47 = arith.constant 0 : index
    %c0_48 = arith.constant 0 : index
    %95 = vector.load %arg3[%c0_46, %c0_47, %c0_48] : memref<18x1x256xf32, #tpu.memory_space<vmem>>, vector<1x1x256xf32>
    %96 = vector.shape_cast %95 : vector<1x1x256xf32> to vector<1x256xf32>
    %97 = vector.broadcast %96 : vector<1x256xf32> to vector<32x256xf32>
    %98 = arith.mulf %94, %97 : vector<32x256xf32>
    %c16_i32_49 = arith.constant 16 : i32
    %99 = tpu.dynamic_rotate %89 by %c16_i32_49 dim 1 : vector<32x256xf32>, i32 -> vector<32x256xf32>
    %c1_50 = arith.constant 1 : index
    %c0_51 = arith.constant 0 : index
    %c0_52 = arith.constant 0 : index
    %100 = vector.load %arg3[%c1_50, %c0_51, %c0_52] : memref<18x1x256xf32, #tpu.memory_space<vmem>>, vector<1x1x256xf32>
    %101 = vector.shape_cast %100 : vector<1x1x256xf32> to vector<1x256xf32>
    %102 = vector.broadcast %101 : vector<1x256xf32> to vector<32x256xf32>
    %103 = arith.mulf %99, %102 : vector<32x256xf32>
    %c15_i32_53 = arith.constant 15 : i32
    %104 = tpu.dynamic_rotate %89 by %c15_i32_53 dim 1 : vector<32x256xf32>, i32 -> vector<32x256xf32>
    %c2_54 = arith.constant 2 : index
    %c0_55 = arith.constant 0 : index
    %c0_56 = arith.constant 0 : index
    %105 = vector.load %arg3[%c2_54, %c0_55, %c0_56] : memref<18x1x256xf32, #tpu.memory_space<vmem>>, vector<1x1x256xf32>
    %106 = vector.shape_cast %105 : vector<1x1x256xf32> to vector<1x256xf32>
    %107 = vector.broadcast %106 : vector<1x256xf32> to vector<32x256xf32>
    %108 = arith.mulf %104, %107 : vector<32x256xf32>
    %c1_i32_57 = arith.constant 1 : i32
    %109 = tpu.dynamic_rotate %89 by %c1_i32_57 dim 1 : vector<32x256xf32>, i32 -> vector<32x256xf32>
    %c3_58 = arith.constant 3 : index
    %c0_59 = arith.constant 0 : index
    %c0_60 = arith.constant 0 : index
    %110 = vector.load %arg3[%c3_58, %c0_59, %c0_60] : memref<18x1x256xf32, #tpu.memory_space<vmem>>, vector<1x1x256xf32>
    %111 = vector.shape_cast %110 : vector<1x1x256xf32> to vector<1x256xf32>
    %112 = vector.broadcast %111 : vector<1x256xf32> to vector<32x256xf32>
    %113 = arith.mulf %109, %112 : vector<32x256xf32>
    %c4_61 = arith.constant 4 : index
    %c0_62 = arith.constant 0 : index
    %c0_63 = arith.constant 0 : index
    %114 = vector.load %arg3[%c4_61, %c0_62, %c0_63] : memref<18x1x256xf32, #tpu.memory_space<vmem>>, vector<1x1x256xf32>
    %115 = vector.shape_cast %114 : vector<1x1x256xf32> to vector<1x256xf32>
    %116 = vector.broadcast %115 : vector<1x256xf32> to vector<32x256xf32>
    %117 = arith.mulf %89, %116 : vector<32x256xf32>
    %c255_i32_64 = arith.constant 255 : i32
    %118 = tpu.dynamic_rotate %89 by %c255_i32_64 dim 1 : vector<32x256xf32>, i32 -> vector<32x256xf32>
    %c5_65 = arith.constant 5 : index
    %c0_66 = arith.constant 0 : index
    %c0_67 = arith.constant 0 : index
    %119 = vector.load %arg3[%c5_65, %c0_66, %c0_67] : memref<18x1x256xf32, #tpu.memory_space<vmem>>, vector<1x1x256xf32>
    %120 = vector.shape_cast %119 : vector<1x1x256xf32> to vector<1x256xf32>
    %121 = vector.broadcast %120 : vector<1x256xf32> to vector<32x256xf32>
    %122 = arith.mulf %118, %121 : vector<32x256xf32>
    %c241_i32_68 = arith.constant 241 : i32
    %123 = tpu.dynamic_rotate %89 by %c241_i32_68 dim 1 : vector<32x256xf32>, i32 -> vector<32x256xf32>
    %c6_69 = arith.constant 6 : index
    %c0_70 = arith.constant 0 : index
    %c0_71 = arith.constant 0 : index
    %124 = vector.load %arg3[%c6_69, %c0_70, %c0_71] : memref<18x1x256xf32, #tpu.memory_space<vmem>>, vector<1x1x256xf32>
    %125 = vector.shape_cast %124 : vector<1x1x256xf32> to vector<1x256xf32>
    %126 = vector.broadcast %125 : vector<1x256xf32> to vector<32x256xf32>
    %127 = arith.mulf %123, %126 : vector<32x256xf32>
    %c240_i32_72 = arith.constant 240 : i32
    %128 = tpu.dynamic_rotate %89 by %c240_i32_72 dim 1 : vector<32x256xf32>, i32 -> vector<32x256xf32>
    %c7_73 = arith.constant 7 : index
    %c0_74 = arith.constant 0 : index
    %c0_75 = arith.constant 0 : index
    %129 = vector.load %arg3[%c7_73, %c0_74, %c0_75] : memref<18x1x256xf32, #tpu.memory_space<vmem>>, vector<1x1x256xf32>
    %130 = vector.shape_cast %129 : vector<1x1x256xf32> to vector<1x256xf32>
    %131 = vector.broadcast %130 : vector<1x256xf32> to vector<32x256xf32>
    %132 = arith.mulf %128, %131 : vector<32x256xf32>
    %c239_i32_76 = arith.constant 239 : i32
    %133 = tpu.dynamic_rotate %89 by %c239_i32_76 dim 1 : vector<32x256xf32>, i32 -> vector<32x256xf32>
    %c8_77 = arith.constant 8 : index
    %c0_78 = arith.constant 0 : index
    %c0_79 = arith.constant 0 : index
    %134 = vector.load %arg3[%c8_77, %c0_78, %c0_79] : memref<18x1x256xf32, #tpu.memory_space<vmem>>, vector<1x1x256xf32>
    %135 = vector.shape_cast %134 : vector<1x1x256xf32> to vector<1x256xf32>
    %136 = vector.broadcast %135 : vector<1x256xf32> to vector<32x256xf32>
    %137 = arith.mulf %133, %136 : vector<32x256xf32>
    %138 = tpu.concatenate %98, %103, %108, %113, %117, %122, %127, %132, %137 in 0 : vector<32x256xf32>, vector<32x256xf32>, vector<32x256xf32>, vector<32x256xf32>, vector<32x256xf32>, vector<32x256xf32>, vector<32x256xf32>, vector<32x256xf32>, vector<32x256xf32> -> vector<288x256xf32>
    %139 = arith.truncf %138 : vector<288x256xf32> to vector<288x256xbf16>
    %cst_80 = arith.constant dense<0.000000e+00> : vector<32x256xf32>
    %140 = tpu.matmul %91, %139, %cst_80 {dimension_numbers = #tpu.dot_dimension_numbers<[1], [0], [0], [1], [0, 0, 1, 1], [], []>} : vector<32x288xbf16>, vector<288x256xbf16>, vector<32x256xf32> -> vector<32x256xf32>
    %141 = vector.broadcast %93 : vector<32x1xf32> to vector<32x256xf32>
    %142 = arith.addf %140, %141 : vector<32x256xf32>
    %cst_81 = arith.constant dense<0.000000e+00> : vector<32xf32>
    %143 = vector.multi_reduction <add>, %142, %cst_81 [1] : vector<32x256xf32> to vector<32xf32>
    %144 = vector.shape_cast %143 : vector<32xf32> to vector<32x1xf32>
    %cst_82 = arith.constant 2.560000e+02 : f32
    %145 = vector.broadcast %cst_82 : f32 to vector<32x1xf32>
    %146 = arith.divf %144, %145 : vector<32x1xf32>
    %147 = vector.broadcast %146 : vector<32x1xf32> to vector<32x256xf32>
    %148 = arith.subf %142, %147 : vector<32x256xf32>
    %149 = vector.broadcast %146 : vector<32x1xf32> to vector<32x256xf32>
    %150 = arith.subf %142, %149 : vector<32x256xf32>
    %151 = arith.mulf %148, %150 : vector<32x256xf32>
    %cst_83 = arith.constant dense<0.000000e+00> : vector<32xf32>
    %152 = vector.multi_reduction <add>, %151, %cst_83 [1] : vector<32x256xf32> to vector<32xf32>
    %153 = vector.shape_cast %152 : vector<32xf32> to vector<32x1xf32>
    %cst_84 = arith.constant 2.560000e+02 : f32
    %154 = vector.broadcast %cst_84 : f32 to vector<32x1xf32>
    %155 = arith.divf %153, %154 : vector<32x1xf32>
    %156 = vector.broadcast %146 : vector<32x1xf32> to vector<32x256xf32>
    %157 = arith.subf %142, %156 : vector<32x256xf32>
    %cst_85 = arith.constant 9.99999974E-6 : f32
    %158 = vector.broadcast %cst_85 : f32 to vector<32x1xf32>
    %159 = arith.addf %155, %158 : vector<32x1xf32>
    %160 = math.rsqrt %159 : vector<32x1xf32>
    %161 = vector.broadcast %160 : vector<32x1xf32> to vector<32x256xf32>
    %162 = arith.mulf %157, %161 : vector<32x256xf32>
    %c7_86 = arith.constant 7 : index
    %c0_87 = arith.constant 0 : index
    %c0_88 = arith.constant 0 : index
    %163 = vector.load %arg6[%c7_86, %c0_87, %c0_88] : memref<17x32x1xf32, #tpu.memory_space<vmem>>, vector<1x32x1xf32>
    %164 = vector.shape_cast %163 : vector<1x32x1xf32> to vector<32x1xf32>
    %165 = vector.broadcast %164 : vector<32x1xf32> to vector<32x256xf32>
    %166 = arith.mulf %162, %165 : vector<32x256xf32>
    %c11 = arith.constant 11 : index
    %c0_89 = arith.constant 0 : index
    %c0_90 = arith.constant 0 : index
    %167 = vector.load %arg6[%c11, %c0_89, %c0_90] : memref<17x32x1xf32, #tpu.memory_space<vmem>>, vector<1x32x1xf32>
    %168 = vector.shape_cast %167 : vector<1x32x1xf32> to vector<32x1xf32>
    %169 = vector.broadcast %168 : vector<32x1xf32> to vector<32x256xf32>
    %170 = arith.addf %166, %169 : vector<32x256xf32>
    %cst_91 = arith.constant 5.000000e-01 : f32
    %171 = vector.broadcast %cst_91 : f32 to vector<32x256xf32>
    %172 = arith.mulf %171, %170 : vector<32x256xf32>
    %173 = math.tanh %172 : vector<32x256xf32>
    %cst_92 = arith.constant 1.000000e+00 : f32
    %174 = vector.broadcast %cst_92 : f32 to vector<32x256xf32>
    %175 = arith.addf %173, %174 : vector<32x256xf32>
    %cst_93 = arith.constant 5.000000e-01 : f32
    %176 = vector.broadcast %cst_93 : f32 to vector<32x256xf32>
    %177 = arith.mulf %176, %175 : vector<32x256xf32>
    %178 = arith.mulf %170, %177 : vector<32x256xf32>
    %c1_94 = arith.constant 1 : index
    %c0_95 = arith.constant 0 : index
    %c0_96 = arith.constant 0 : index
    %179 = vector.load %arg5[%c1_94, %c0_95, %c0_96] : memref<5x32x288xbf16, #tpu.memory_space<vmem>>, vector<1x32x288xbf16>
    %180 = vector.shape_cast %179 : vector<1x32x288xbf16> to vector<32x288xbf16>
    %c2_97 = arith.constant 2 : index
    %c0_98 = arith.constant 0 : index
    %c0_99 = arith.constant 0 : index
    %181 = vector.load %arg6[%c2_97, %c0_98, %c0_99] : memref<17x32x1xf32, #tpu.memory_space<vmem>>, vector<1x32x1xf32>
    %182 = vector.shape_cast %181 : vector<1x32x1xf32> to vector<32x1xf32>
    %c17_i32_100 = arith.constant 17 : i32
    %183 = tpu.dynamic_rotate %178 by %c17_i32_100 dim 1 : vector<32x256xf32>, i32 -> vector<32x256xf32>
    %c0_101 = arith.constant 0 : index
    %c0_102 = arith.constant 0 : index
    %c0_103 = arith.constant 0 : index
    %184 = vector.load %arg3[%c0_101, %c0_102, %c0_103] : memref<18x1x256xf32, #tpu.memory_space<vmem>>, vector<1x1x256xf32>
    %185 = vector.shape_cast %184 : vector<1x1x256xf32> to vector<1x256xf32>
    %186 = vector.broadcast %185 : vector<1x256xf32> to vector<32x256xf32>
    %187 = arith.mulf %183, %186 : vector<32x256xf32>
    %c16_i32_104 = arith.constant 16 : i32
    %188 = tpu.dynamic_rotate %178 by %c16_i32_104 dim 1 : vector<32x256xf32>, i32 -> vector<32x256xf32>
    %c1_105 = arith.constant 1 : index
    %c0_106 = arith.constant 0 : index
    %c0_107 = arith.constant 0 : index
    %189 = vector.load %arg3[%c1_105, %c0_106, %c0_107] : memref<18x1x256xf32, #tpu.memory_space<vmem>>, vector<1x1x256xf32>
    %190 = vector.shape_cast %189 : vector<1x1x256xf32> to vector<1x256xf32>
    %191 = vector.broadcast %190 : vector<1x256xf32> to vector<32x256xf32>
    %192 = arith.mulf %188, %191 : vector<32x256xf32>
    %c15_i32_108 = arith.constant 15 : i32
    %193 = tpu.dynamic_rotate %178 by %c15_i32_108 dim 1 : vector<32x256xf32>, i32 -> vector<32x256xf32>
    %c2_109 = arith.constant 2 : index
    %c0_110 = arith.constant 0 : index
    %c0_111 = arith.constant 0 : index
    %194 = vector.load %arg3[%c2_109, %c0_110, %c0_111] : memref<18x1x256xf32, #tpu.memory_space<vmem>>, vector<1x1x256xf32>
    %195 = vector.shape_cast %194 : vector<1x1x256xf32> to vector<1x256xf32>
    %196 = vector.broadcast %195 : vector<1x256xf32> to vector<32x256xf32>
    %197 = arith.mulf %193, %196 : vector<32x256xf32>
    %c1_i32_112 = arith.constant 1 : i32
    %198 = tpu.dynamic_rotate %178 by %c1_i32_112 dim 1 : vector<32x256xf32>, i32 -> vector<32x256xf32>
    %c3_113 = arith.constant 3 : index
    %c0_114 = arith.constant 0 : index
    %c0_115 = arith.constant 0 : index
    %199 = vector.load %arg3[%c3_113, %c0_114, %c0_115] : memref<18x1x256xf32, #tpu.memory_space<vmem>>, vector<1x1x256xf32>
    %200 = vector.shape_cast %199 : vector<1x1x256xf32> to vector<1x256xf32>
    %201 = vector.broadcast %200 : vector<1x256xf32> to vector<32x256xf32>
    %202 = arith.mulf %198, %201 : vector<32x256xf32>
    %c4_116 = arith.constant 4 : index
    %c0_117 = arith.constant 0 : index
    %c0_118 = arith.constant 0 : index
    %203 = vector.load %arg3[%c4_116, %c0_117, %c0_118] : memref<18x1x256xf32, #tpu.memory_space<vmem>>, vector<1x1x256xf32>
    %204 = vector.shape_cast %203 : vector<1x1x256xf32> to vector<1x256xf32>
    %205 = vector.broadcast %204 : vector<1x256xf32> to vector<32x256xf32>
    %206 = arith.mulf %178, %205 : vector<32x256xf32>
    %c255_i32_119 = arith.constant 255 : i32
    %207 = tpu.dynamic_rotate %178 by %c255_i32_119 dim 1 : vector<32x256xf32>, i32 -> vector<32x256xf32>
    %c5_120 = arith.constant 5 : index
    %c0_121 = arith.constant 0 : index
    %c0_122 = arith.constant 0 : index
    %208 = vector.load %arg3[%c5_120, %c0_121, %c0_122] : memref<18x1x256xf32, #tpu.memory_space<vmem>>, vector<1x1x256xf32>
    %209 = vector.shape_cast %208 : vector<1x1x256xf32> to vector<1x256xf32>
    %210 = vector.broadcast %209 : vector<1x256xf32> to vector<32x256xf32>
    %211 = arith.mulf %207, %210 : vector<32x256xf32>
    %c241_i32_123 = arith.constant 241 : i32
    %212 = tpu.dynamic_rotate %178 by %c241_i32_123 dim 1 : vector<32x256xf32>, i32 -> vector<32x256xf32>
    %c6_124 = arith.constant 6 : index
    %c0_125 = arith.constant 0 : index
    %c0_126 = arith.constant 0 : index
    %213 = vector.load %arg3[%c6_124, %c0_125, %c0_126] : memref<18x1x256xf32, #tpu.memory_space<vmem>>, vector<1x1x256xf32>
    %214 = vector.shape_cast %213 : vector<1x1x256xf32> to vector<1x256xf32>
    %215 = vector.broadcast %214 : vector<1x256xf32> to vector<32x256xf32>
    %216 = arith.mulf %212, %215 : vector<32x256xf32>
    %c240_i32_127 = arith.constant 240 : i32
    %217 = tpu.dynamic_rotate %178 by %c240_i32_127 dim 1 : vector<32x256xf32>, i32 -> vector<32x256xf32>
    %c7_128 = arith.constant 7 : index
    %c0_129 = arith.constant 0 : index
    %c0_130 = arith.constant 0 : index
    %218 = vector.load %arg3[%c7_128, %c0_129, %c0_130] : memref<18x1x256xf32, #tpu.memory_space<vmem>>, vector<1x1x256xf32>
    %219 = vector.shape_cast %218 : vector<1x1x256xf32> to vector<1x256xf32>
    %220 = vector.broadcast %219 : vector<1x256xf32> to vector<32x256xf32>
    %221 = arith.mulf %217, %220 : vector<32x256xf32>
    %c239_i32_131 = arith.constant 239 : i32
    %222 = tpu.dynamic_rotate %178 by %c239_i32_131 dim 1 : vector<32x256xf32>, i32 -> vector<32x256xf32>
    %c8_132 = arith.constant 8 : index
    %c0_133 = arith.constant 0 : index
    %c0_134 = arith.constant 0 : index
    %223 = vector.load %arg3[%c8_132, %c0_133, %c0_134] : memref<18x1x256xf32, #tpu.memory_space<vmem>>, vector<1x1x256xf32>
    %224 = vector.shape_cast %223 : vector<1x1x256xf32> to vector<1x256xf32>
    %225 = vector.broadcast %224 : vector<1x256xf32> to vector<32x256xf32>
    %226 = arith.mulf %222, %225 : vector<32x256xf32>
    %227 = tpu.concatenate %187, %192, %197, %202, %206, %211, %216, %221, %226 in 0 : vector<32x256xf32>, vector<32x256xf32>, vector<32x256xf32>, vector<32x256xf32>, vector<32x256xf32>, vector<32x256xf32>, vector<32x256xf32>, vector<32x256xf32>, vector<32x256xf32> -> vector<288x256xf32>
    %228 = arith.truncf %227 : vector<288x256xf32> to vector<288x256xbf16>
    %cst_135 = arith.constant dense<0.000000e+00> : vector<32x256xf32>
    %229 = tpu.matmul %180, %228, %cst_135 {dimension_numbers = #tpu.dot_dimension_numbers<[1], [0], [0], [1], [0, 0, 1, 1], [], []>} : vector<32x288xbf16>, vector<288x256xbf16>, vector<32x256xf32> -> vector<32x256xf32>
    %230 = vector.broadcast %182 : vector<32x1xf32> to vector<32x256xf32>
    %231 = arith.addf %229, %230 : vector<32x256xf32>
    %232 = arith.addf %231, %53 : vector<32x256xf32>
    %cst_136 = arith.constant dense<0.000000e+00> : vector<32xf32>
    %233 = vector.multi_reduction <add>, %232, %cst_136 [1] : vector<32x256xf32> to vector<32xf32>
    %234 = vector.shape_cast %233 : vector<32xf32> to vector<32x1xf32>
    %cst_137 = arith.constant 2.560000e+02 : f32
    %235 = vector.broadcast %cst_137 : f32 to vector<32x1xf32>
    %236 = arith.divf %234, %235 : vector<32x1xf32>
    %237 = vector.broadcast %236 : vector<32x1xf32> to vector<32x256xf32>
    %238 = arith.subf %232, %237 : vector<32x256xf32>
    %239 = vector.broadcast %236 : vector<32x1xf32> to vector<32x256xf32>
    %240 = arith.subf %232, %239 : vector<32x256xf32>
    %241 = arith.mulf %238, %240 : vector<32x256xf32>
    %cst_138 = arith.constant dense<0.000000e+00> : vector<32xf32>
    %242 = vector.multi_reduction <add>, %241, %cst_138 [1] : vector<32x256xf32> to vector<32xf32>
    %243 = vector.shape_cast %242 : vector<32xf32> to vector<32x1xf32>
    %cst_139 = arith.constant 2.560000e+02 : f32
    %244 = vector.broadcast %cst_139 : f32 to vector<32x1xf32>
    %245 = arith.divf %243, %244 : vector<32x1xf32>
    %246 = vector.broadcast %236 : vector<32x1xf32> to vector<32x256xf32>
    %247 = arith.subf %232, %246 : vector<32x256xf32>
    %cst_140 = arith.constant 9.99999974E-6 : f32
    %248 = vector.broadcast %cst_140 : f32 to vector<32x1xf32>
    %249 = arith.addf %245, %248 : vector<32x1xf32>
    %250 = math.rsqrt %249 : vector<32x1xf32>
    %251 = vector.broadcast %250 : vector<32x1xf32> to vector<32x256xf32>
    %252 = arith.mulf %247, %251 : vector<32x256xf32>
    %c8_141 = arith.constant 8 : index
    %c0_142 = arith.constant 0 : index
    %c0_143 = arith.constant 0 : index
    %253 = vector.load %arg6[%c8_141, %c0_142, %c0_143] : memref<17x32x1xf32, #tpu.memory_space<vmem>>, vector<1x32x1xf32>
    %254 = vector.shape_cast %253 : vector<1x32x1xf32> to vector<32x1xf32>
    %255 = vector.broadcast %254 : vector<32x1xf32> to vector<32x256xf32>
    %256 = arith.mulf %252, %255 : vector<32x256xf32>
    %c12 = arith.constant 12 : index
    %c0_144 = arith.constant 0 : index
    %c0_145 = arith.constant 0 : index
    %257 = vector.load %arg6[%c12, %c0_144, %c0_145] : memref<17x32x1xf32, #tpu.memory_space<vmem>>, vector<1x32x1xf32>
    %258 = vector.shape_cast %257 : vector<1x32x1xf32> to vector<32x1xf32>
    %259 = vector.broadcast %258 : vector<32x1xf32> to vector<32x256xf32>
    %260 = arith.addf %256, %259 : vector<32x256xf32>
    %cst_146 = arith.constant 5.000000e-01 : f32
    %261 = vector.broadcast %cst_146 : f32 to vector<32x256xf32>
    %262 = arith.mulf %261, %260 : vector<32x256xf32>
    %263 = math.tanh %262 : vector<32x256xf32>
    %cst_147 = arith.constant 1.000000e+00 : f32
    %264 = vector.broadcast %cst_147 : f32 to vector<32x256xf32>
    %265 = arith.addf %263, %264 : vector<32x256xf32>
    %cst_148 = arith.constant 5.000000e-01 : f32
    %266 = vector.broadcast %cst_148 : f32 to vector<32x256xf32>
    %267 = arith.mulf %266, %265 : vector<32x256xf32>
    %268 = arith.mulf %260, %267 : vector<32x256xf32>
    %c2_149 = arith.constant 2 : index
    %c0_150 = arith.constant 0 : index
    %c0_151 = arith.constant 0 : index
    %269 = vector.load %arg5[%c2_149, %c0_150, %c0_151] : memref<5x32x288xbf16, #tpu.memory_space<vmem>>, vector<1x32x288xbf16>
    %270 = vector.shape_cast %269 : vector<1x32x288xbf16> to vector<32x288xbf16>
    %c3_152 = arith.constant 3 : index
    %c0_153 = arith.constant 0 : index
    %c0_154 = arith.constant 0 : index
    %271 = vector.load %arg6[%c3_152, %c0_153, %c0_154] : memref<17x32x1xf32, #tpu.memory_space<vmem>>, vector<1x32x1xf32>
    %272 = vector.shape_cast %271 : vector<1x32x1xf32> to vector<32x1xf32>
    %c17_i32_155 = arith.constant 17 : i32
    %273 = tpu.dynamic_rotate %268 by %c17_i32_155 dim 1 : vector<32x256xf32>, i32 -> vector<32x256xf32>
    %c0_156 = arith.constant 0 : index
    %c0_157 = arith.constant 0 : index
    %c0_158 = arith.constant 0 : index
    %274 = vector.load %arg3[%c0_156, %c0_157, %c0_158] : memref<18x1x256xf32, #tpu.memory_space<vmem>>, vector<1x1x256xf32>
    %275 = vector.shape_cast %274 : vector<1x1x256xf32> to vector<1x256xf32>
    %276 = vector.broadcast %275 : vector<1x256xf32> to vector<32x256xf32>
    %277 = arith.mulf %273, %276 : vector<32x256xf32>
    %c16_i32_159 = arith.constant 16 : i32
    %278 = tpu.dynamic_rotate %268 by %c16_i32_159 dim 1 : vector<32x256xf32>, i32 -> vector<32x256xf32>
    %c1_160 = arith.constant 1 : index
    %c0_161 = arith.constant 0 : index
    %c0_162 = arith.constant 0 : index
    %279 = vector.load %arg3[%c1_160, %c0_161, %c0_162] : memref<18x1x256xf32, #tpu.memory_space<vmem>>, vector<1x1x256xf32>
    %280 = vector.shape_cast %279 : vector<1x1x256xf32> to vector<1x256xf32>
    %281 = vector.broadcast %280 : vector<1x256xf32> to vector<32x256xf32>
    %282 = arith.mulf %278, %281 : vector<32x256xf32>
    %c15_i32_163 = arith.constant 15 : i32
    %283 = tpu.dynamic_rotate %268 by %c15_i32_163 dim 1 : vector<32x256xf32>, i32 -> vector<32x256xf32>
    %c2_164 = arith.constant 2 : index
    %c0_165 = arith.constant 0 : index
    %c0_166 = arith.constant 0 : index
    %284 = vector.load %arg3[%c2_164, %c0_165, %c0_166] : memref<18x1x256xf32, #tpu.memory_space<vmem>>, vector<1x1x256xf32>
    %285 = vector.shape_cast %284 : vector<1x1x256xf32> to vector<1x256xf32>
    %286 = vector.broadcast %285 : vector<1x256xf32> to vector<32x256xf32>
    %287 = arith.mulf %283, %286 : vector<32x256xf32>
    %c1_i32_167 = arith.constant 1 : i32
    %288 = tpu.dynamic_rotate %268 by %c1_i32_167 dim 1 : vector<32x256xf32>, i32 -> vector<32x256xf32>
    %c3_168 = arith.constant 3 : index
    %c0_169 = arith.constant 0 : index
    %c0_170 = arith.constant 0 : index
    %289 = vector.load %arg3[%c3_168, %c0_169, %c0_170] : memref<18x1x256xf32, #tpu.memory_space<vmem>>, vector<1x1x256xf32>
    %290 = vector.shape_cast %289 : vector<1x1x256xf32> to vector<1x256xf32>
    %291 = vector.broadcast %290 : vector<1x256xf32> to vector<32x256xf32>
    %292 = arith.mulf %288, %291 : vector<32x256xf32>
    %c4_171 = arith.constant 4 : index
    %c0_172 = arith.constant 0 : index
    %c0_173 = arith.constant 0 : index
    %293 = vector.load %arg3[%c4_171, %c0_172, %c0_173] : memref<18x1x256xf32, #tpu.memory_space<vmem>>, vector<1x1x256xf32>
    %294 = vector.shape_cast %293 : vector<1x1x256xf32> to vector<1x256xf32>
    %295 = vector.broadcast %294 : vector<1x256xf32> to vector<32x256xf32>
    %296 = arith.mulf %268, %295 : vector<32x256xf32>
    %c255_i32_174 = arith.constant 255 : i32
    %297 = tpu.dynamic_rotate %268 by %c255_i32_174 dim 1 : vector<32x256xf32>, i32 -> vector<32x256xf32>
    %c5_175 = arith.constant 5 : index
    %c0_176 = arith.constant 0 : index
    %c0_177 = arith.constant 0 : index
    %298 = vector.load %arg3[%c5_175, %c0_176, %c0_177] : memref<18x1x256xf32, #tpu.memory_space<vmem>>, vector<1x1x256xf32>
    %299 = vector.shape_cast %298 : vector<1x1x256xf32> to vector<1x256xf32>
    %300 = vector.broadcast %299 : vector<1x256xf32> to vector<32x256xf32>
    %301 = arith.mulf %297, %300 : vector<32x256xf32>
    %c241_i32_178 = arith.constant 241 : i32
    %302 = tpu.dynamic_rotate %268 by %c241_i32_178 dim 1 : vector<32x256xf32>, i32 -> vector<32x256xf32>
    %c6_179 = arith.constant 6 : index
    %c0_180 = arith.constant 0 : index
    %c0_181 = arith.constant 0 : index
    %303 = vector.load %arg3[%c6_179, %c0_180, %c0_181] : memref<18x1x256xf32, #tpu.memory_space<vmem>>, vector<1x1x256xf32>
    %304 = vector.shape_cast %303 : vector<1x1x256xf32> to vector<1x256xf32>
    %305 = vector.broadcast %304 : vector<1x256xf32> to vector<32x256xf32>
    %306 = arith.mulf %302, %305 : vector<32x256xf32>
    %c240_i32_182 = arith.constant 240 : i32
    %307 = tpu.dynamic_rotate %268 by %c240_i32_182 dim 1 : vector<32x256xf32>, i32 -> vector<32x256xf32>
    %c7_183 = arith.constant 7 : index
    %c0_184 = arith.constant 0 : index
    %c0_185 = arith.constant 0 : index
    %308 = vector.load %arg3[%c7_183, %c0_184, %c0_185] : memref<18x1x256xf32, #tpu.memory_space<vmem>>, vector<1x1x256xf32>
    %309 = vector.shape_cast %308 : vector<1x1x256xf32> to vector<1x256xf32>
    %310 = vector.broadcast %309 : vector<1x256xf32> to vector<32x256xf32>
    %311 = arith.mulf %307, %310 : vector<32x256xf32>
    %c239_i32_186 = arith.constant 239 : i32
    %312 = tpu.dynamic_rotate %268 by %c239_i32_186 dim 1 : vector<32x256xf32>, i32 -> vector<32x256xf32>
    %c8_187 = arith.constant 8 : index
    %c0_188 = arith.constant 0 : index
    %c0_189 = arith.constant 0 : index
    %313 = vector.load %arg3[%c8_187, %c0_188, %c0_189] : memref<18x1x256xf32, #tpu.memory_space<vmem>>, vector<1x1x256xf32>
    %314 = vector.shape_cast %313 : vector<1x1x256xf32> to vector<1x256xf32>
    %315 = vector.broadcast %314 : vector<1x256xf32> to vector<32x256xf32>
    %316 = arith.mulf %312, %315 : vector<32x256xf32>
    %317 = tpu.concatenate %277, %282, %287, %292, %296, %301, %306, %311, %316 in 0 : vector<32x256xf32>, vector<32x256xf32>, vector<32x256xf32>, vector<32x256xf32>, vector<32x256xf32>, vector<32x256xf32>, vector<32x256xf32>, vector<32x256xf32>, vector<32x256xf32> -> vector<288x256xf32>
    %318 = arith.truncf %317 : vector<288x256xf32> to vector<288x256xbf16>
    %cst_190 = arith.constant dense<0.000000e+00> : vector<32x256xf32>
    %319 = tpu.matmul %270, %318, %cst_190 {dimension_numbers = #tpu.dot_dimension_numbers<[1], [0], [0], [1], [0, 0, 1, 1], [], []>} : vector<32x288xbf16>, vector<288x256xbf16>, vector<32x256xf32> -> vector<32x256xf32>
    %320 = vector.broadcast %272 : vector<32x1xf32> to vector<32x256xf32>
    %321 = arith.addf %319, %320 : vector<32x256xf32>
    %cst_191 = arith.constant dense<0.000000e+00> : vector<32xf32>
    %322 = vector.multi_reduction <add>, %321, %cst_191 [1] : vector<32x256xf32> to vector<32xf32>
    %323 = vector.shape_cast %322 : vector<32xf32> to vector<32x1xf32>
    %cst_192 = arith.constant 2.560000e+02 : f32
    %324 = vector.broadcast %cst_192 : f32 to vector<32x1xf32>
    %325 = arith.divf %323, %324 : vector<32x1xf32>
    %326 = vector.broadcast %325 : vector<32x1xf32> to vector<32x256xf32>
    %327 = arith.subf %321, %326 : vector<32x256xf32>
    %328 = vector.broadcast %325 : vector<32x1xf32> to vector<32x256xf32>
    %329 = arith.subf %321, %328 : vector<32x256xf32>
    %330 = arith.mulf %327, %329 : vector<32x256xf32>
    %cst_193 = arith.constant dense<0.000000e+00> : vector<32xf32>
    %331 = vector.multi_reduction <add>, %330, %cst_193 [1] : vector<32x256xf32> to vector<32xf32>
    %332 = vector.shape_cast %331 : vector<32xf32> to vector<32x1xf32>
    %cst_194 = arith.constant 2.560000e+02 : f32
    %333 = vector.broadcast %cst_194 : f32 to vector<32x1xf32>
    %334 = arith.divf %332, %333 : vector<32x1xf32>
    %335 = vector.broadcast %325 : vector<32x1xf32> to vector<32x256xf32>
    %336 = arith.subf %321, %335 : vector<32x256xf32>
    %cst_195 = arith.constant 9.99999974E-6 : f32
    %337 = vector.broadcast %cst_195 : f32 to vector<32x1xf32>
    %338 = arith.addf %334, %337 : vector<32x1xf32>
    %339 = math.rsqrt %338 : vector<32x1xf32>
    %340 = vector.broadcast %339 : vector<32x1xf32> to vector<32x256xf32>
    %341 = arith.mulf %336, %340 : vector<32x256xf32>
    %c9 = arith.constant 9 : index
    %c0_196 = arith.constant 0 : index
    %c0_197 = arith.constant 0 : index
    %342 = vector.load %arg6[%c9, %c0_196, %c0_197] : memref<17x32x1xf32, #tpu.memory_space<vmem>>, vector<1x32x1xf32>
    %343 = vector.shape_cast %342 : vector<1x32x1xf32> to vector<32x1xf32>
    %344 = vector.broadcast %343 : vector<32x1xf32> to vector<32x256xf32>
    %345 = arith.mulf %341, %344 : vector<32x256xf32>
    %c13 = arith.constant 13 : index
    %c0_198 = arith.constant 0 : index
    %c0_199 = arith.constant 0 : index
    %346 = vector.load %arg6[%c13, %c0_198, %c0_199] : memref<17x32x1xf32, #tpu.memory_space<vmem>>, vector<1x32x1xf32>
    %347 = vector.shape_cast %346 : vector<1x32x1xf32> to vector<32x1xf32>
    %348 = vector.broadcast %347 : vector<32x1xf32> to vector<32x256xf32>
    %349 = arith.addf %345, %348 : vector<32x256xf32>
    %cst_200 = arith.constant 5.000000e-01 : f32
    %350 = vector.broadcast %cst_200 : f32 to vector<32x256xf32>
    %351 = arith.mulf %350, %349 : vector<32x256xf32>
    %352 = math.tanh %351 : vector<32x256xf32>
    %cst_201 = arith.constant 1.000000e+00 : f32
    %353 = vector.broadcast %cst_201 : f32 to vector<32x256xf32>
    %354 = arith.addf %352, %353 : vector<32x256xf32>
    %cst_202 = arith.constant 5.000000e-01 : f32
    %355 = vector.broadcast %cst_202 : f32 to vector<32x256xf32>
    %356 = arith.mulf %355, %354 : vector<32x256xf32>
    %357 = arith.mulf %349, %356 : vector<32x256xf32>
    %c3_203 = arith.constant 3 : index
    %c0_204 = arith.constant 0 : index
    %c0_205 = arith.constant 0 : index
    %358 = vector.load %arg5[%c3_203, %c0_204, %c0_205] : memref<5x32x288xbf16, #tpu.memory_space<vmem>>, vector<1x32x288xbf16>
    %359 = vector.shape_cast %358 : vector<1x32x288xbf16> to vector<32x288xbf16>
    %c4_206 = arith.constant 4 : index
    %c0_207 = arith.constant 0 : index
    %c0_208 = arith.constant 0 : index
    %360 = vector.load %arg6[%c4_206, %c0_207, %c0_208] : memref<17x32x1xf32, #tpu.memory_space<vmem>>, vector<1x32x1xf32>
    %361 = vector.shape_cast %360 : vector<1x32x1xf32> to vector<32x1xf32>
    %c17_i32_209 = arith.constant 17 : i32
    %362 = tpu.dynamic_rotate %357 by %c17_i32_209 dim 1 : vector<32x256xf32>, i32 -> vector<32x256xf32>
    %c0_210 = arith.constant 0 : index
    %c0_211 = arith.constant 0 : index
    %c0_212 = arith.constant 0 : index
    %363 = vector.load %arg3[%c0_210, %c0_211, %c0_212] : memref<18x1x256xf32, #tpu.memory_space<vmem>>, vector<1x1x256xf32>
    %364 = vector.shape_cast %363 : vector<1x1x256xf32> to vector<1x256xf32>
    %365 = vector.broadcast %364 : vector<1x256xf32> to vector<32x256xf32>
    %366 = arith.mulf %362, %365 : vector<32x256xf32>
    %c16_i32_213 = arith.constant 16 : i32
    %367 = tpu.dynamic_rotate %357 by %c16_i32_213 dim 1 : vector<32x256xf32>, i32 -> vector<32x256xf32>
    %c1_214 = arith.constant 1 : index
    %c0_215 = arith.constant 0 : index
    %c0_216 = arith.constant 0 : index
    %368 = vector.load %arg3[%c1_214, %c0_215, %c0_216] : memref<18x1x256xf32, #tpu.memory_space<vmem>>, vector<1x1x256xf32>
    %369 = vector.shape_cast %368 : vector<1x1x256xf32> to vector<1x256xf32>
    %370 = vector.broadcast %369 : vector<1x256xf32> to vector<32x256xf32>
    %371 = arith.mulf %367, %370 : vector<32x256xf32>
    %c15_i32_217 = arith.constant 15 : i32
    %372 = tpu.dynamic_rotate %357 by %c15_i32_217 dim 1 : vector<32x256xf32>, i32 -> vector<32x256xf32>
    %c2_218 = arith.constant 2 : index
    %c0_219 = arith.constant 0 : index
    %c0_220 = arith.constant 0 : index
    %373 = vector.load %arg3[%c2_218, %c0_219, %c0_220] : memref<18x1x256xf32, #tpu.memory_space<vmem>>, vector<1x1x256xf32>
    %374 = vector.shape_cast %373 : vector<1x1x256xf32> to vector<1x256xf32>
    %375 = vector.broadcast %374 : vector<1x256xf32> to vector<32x256xf32>
    %376 = arith.mulf %372, %375 : vector<32x256xf32>
    %c1_i32_221 = arith.constant 1 : i32
    %377 = tpu.dynamic_rotate %357 by %c1_i32_221 dim 1 : vector<32x256xf32>, i32 -> vector<32x256xf32>
    %c3_222 = arith.constant 3 : index
    %c0_223 = arith.constant 0 : index
    %c0_224 = arith.constant 0 : index
    %378 = vector.load %arg3[%c3_222, %c0_223, %c0_224] : memref<18x1x256xf32, #tpu.memory_space<vmem>>, vector<1x1x256xf32>
    %379 = vector.shape_cast %378 : vector<1x1x256xf32> to vector<1x256xf32>
    %380 = vector.broadcast %379 : vector<1x256xf32> to vector<32x256xf32>
    %381 = arith.mulf %377, %380 : vector<32x256xf32>
    %c4_225 = arith.constant 4 : index
    %c0_226 = arith.constant 0 : index
    %c0_227 = arith.constant 0 : index
    %382 = vector.load %arg3[%c4_225, %c0_226, %c0_227] : memref<18x1x256xf32, #tpu.memory_space<vmem>>, vector<1x1x256xf32>
    %383 = vector.shape_cast %382 : vector<1x1x256xf32> to vector<1x256xf32>
    %384 = vector.broadcast %383 : vector<1x256xf32> to vector<32x256xf32>
    %385 = arith.mulf %357, %384 : vector<32x256xf32>
    %c255_i32_228 = arith.constant 255 : i32
    %386 = tpu.dynamic_rotate %357 by %c255_i32_228 dim 1 : vector<32x256xf32>, i32 -> vector<32x256xf32>
    %c5_229 = arith.constant 5 : index
    %c0_230 = arith.constant 0 : index
    %c0_231 = arith.constant 0 : index
    %387 = vector.load %arg3[%c5_229, %c0_230, %c0_231] : memref<18x1x256xf32, #tpu.memory_space<vmem>>, vector<1x1x256xf32>
    %388 = vector.shape_cast %387 : vector<1x1x256xf32> to vector<1x256xf32>
    %389 = vector.broadcast %388 : vector<1x256xf32> to vector<32x256xf32>
    %390 = arith.mulf %386, %389 : vector<32x256xf32>
    %c241_i32_232 = arith.constant 241 : i32
    %391 = tpu.dynamic_rotate %357 by %c241_i32_232 dim 1 : vector<32x256xf32>, i32 -> vector<32x256xf32>
    %c6_233 = arith.constant 6 : index
    %c0_234 = arith.constant 0 : index
    %c0_235 = arith.constant 0 : index
    %392 = vector.load %arg3[%c6_233, %c0_234, %c0_235] : memref<18x1x256xf32, #tpu.memory_space<vmem>>, vector<1x1x256xf32>
    %393 = vector.shape_cast %392 : vector<1x1x256xf32> to vector<1x256xf32>
    %394 = vector.broadcast %393 : vector<1x256xf32> to vector<32x256xf32>
    %395 = arith.mulf %391, %394 : vector<32x256xf32>
    %c240_i32_236 = arith.constant 240 : i32
    %396 = tpu.dynamic_rotate %357 by %c240_i32_236 dim 1 : vector<32x256xf32>, i32 -> vector<32x256xf32>
    %c7_237 = arith.constant 7 : index
    %c0_238 = arith.constant 0 : index
    %c0_239 = arith.constant 0 : index
    %397 = vector.load %arg3[%c7_237, %c0_238, %c0_239] : memref<18x1x256xf32, #tpu.memory_space<vmem>>, vector<1x1x256xf32>
    %398 = vector.shape_cast %397 : vector<1x1x256xf32> to vector<1x256xf32>
    %399 = vector.broadcast %398 : vector<1x256xf32> to vector<32x256xf32>
    %400 = arith.mulf %396, %399 : vector<32x256xf32>
    %c239_i32_240 = arith.constant 239 : i32
    %401 = tpu.dynamic_rotate %357 by %c239_i32_240 dim 1 : vector<32x256xf32>, i32 -> vector<32x256xf32>
    %c8_241 = arith.constant 8 : index
    %c0_242 = arith.constant 0 : index
    %c0_243 = arith.constant 0 : index
    %402 = vector.load %arg3[%c8_241, %c0_242, %c0_243] : memref<18x1x256xf32, #tpu.memory_space<vmem>>, vector<1x1x256xf32>
    %403 = vector.shape_cast %402 : vector<1x1x256xf32> to vector<1x256xf32>
    %404 = vector.broadcast %403 : vector<1x256xf32> to vector<32x256xf32>
    %405 = arith.mulf %401, %404 : vector<32x256xf32>
    %406 = tpu.concatenate %366, %371, %376, %381, %385, %390, %395, %400, %405 in 0 : vector<32x256xf32>, vector<32x256xf32>, vector<32x256xf32>, vector<32x256xf32>, vector<32x256xf32>, vector<32x256xf32>, vector<32x256xf32>, vector<32x256xf32>, vector<32x256xf32> -> vector<288x256xf32>
    %407 = arith.truncf %406 : vector<288x256xf32> to vector<288x256xbf16>
    %cst_244 = arith.constant dense<0.000000e+00> : vector<32x256xf32>
    %408 = tpu.matmul %359, %407, %cst_244 {dimension_numbers = #tpu.dot_dimension_numbers<[1], [0], [0], [1], [0, 0, 1, 1], [], []>} : vector<32x288xbf16>, vector<288x256xbf16>, vector<32x256xf32> -> vector<32x256xf32>
    %409 = vector.broadcast %361 : vector<32x1xf32> to vector<32x256xf32>
    %410 = arith.addf %408, %409 : vector<32x256xf32>
    %411 = arith.addf %410, %232 : vector<32x256xf32>
    %c4_245 = arith.constant 4 : index
    %c0_246 = arith.constant 0 : index
    %c0_247 = arith.constant 0 : index
    %412 = vector.load %arg5[%c4_245, %c0_246, %c0_247] : memref<5x32x288xbf16, #tpu.memory_space<vmem>>, vector<1x32x288xbf16>
    %413 = vector.shape_cast %412 : vector<1x32x288xbf16> to vector<32x288xbf16>
    %c5_248 = arith.constant 5 : index
    %c0_249 = arith.constant 0 : index
    %c0_250 = arith.constant 0 : index
    %414 = vector.load %arg6[%c5_248, %c0_249, %c0_250] : memref<17x32x1xf32, #tpu.memory_space<vmem>>, vector<1x32x1xf32>
    %415 = vector.shape_cast %414 : vector<1x32x1xf32> to vector<32x1xf32>
    %c9_251 = arith.constant 9 : index
    %c0_252 = arith.constant 0 : index
    %c0_253 = arith.constant 0 : index
    %416 = vector.load %arg3[%c9_251, %c0_252, %c0_253] : memref<18x1x256xf32, #tpu.memory_space<vmem>>, vector<1x1x256xf32>
    %417 = vector.shape_cast %416 : vector<1x1x256xf32> to vector<1x256xf32>
    %418 = vector.broadcast %417 : vector<1x256xf32> to vector<32x256xf32>
    %419 = arith.mulf %411, %418 : vector<32x256xf32>
    %c255_i32_254 = arith.constant 255 : i32
    %420 = tpu.dynamic_rotate %411 by %c255_i32_254 dim 1 : vector<32x256xf32>, i32 -> vector<32x256xf32>
    %c10_255 = arith.constant 10 : index
    %c0_256 = arith.constant 0 : index
    %c0_257 = arith.constant 0 : index
    %421 = vector.load %arg3[%c10_255, %c0_256, %c0_257] : memref<18x1x256xf32, #tpu.memory_space<vmem>>, vector<1x1x256xf32>
    %422 = vector.shape_cast %421 : vector<1x1x256xf32> to vector<1x256xf32>
    %423 = vector.broadcast %422 : vector<1x256xf32> to vector<32x256xf32>
    %424 = arith.mulf %420, %423 : vector<32x256xf32>
    %c254_i32 = arith.constant 254 : i32
    %425 = tpu.dynamic_rotate %411 by %c254_i32 dim 1 : vector<32x256xf32>, i32 -> vector<32x256xf32>
    %c11_258 = arith.constant 11 : index
    %c0_259 = arith.constant 0 : index
    %c0_260 = arith.constant 0 : index
    %426 = vector.load %arg3[%c11_258, %c0_259, %c0_260] : memref<18x1x256xf32, #tpu.memory_space<vmem>>, vector<1x1x256xf32>
    %427 = vector.shape_cast %426 : vector<1x1x256xf32> to vector<1x256xf32>
    %428 = vector.broadcast %427 : vector<1x256xf32> to vector<32x256xf32>
    %429 = arith.mulf %425, %428 : vector<32x256xf32>
    %c240_i32_261 = arith.constant 240 : i32
    %430 = tpu.dynamic_rotate %411 by %c240_i32_261 dim 1 : vector<32x256xf32>, i32 -> vector<32x256xf32>
    %c12_262 = arith.constant 12 : index
    %c0_263 = arith.constant 0 : index
    %c0_264 = arith.constant 0 : index
    %431 = vector.load %arg3[%c12_262, %c0_263, %c0_264] : memref<18x1x256xf32, #tpu.memory_space<vmem>>, vector<1x1x256xf32>
    %432 = vector.shape_cast %431 : vector<1x1x256xf32> to vector<1x256xf32>
    %433 = vector.broadcast %432 : vector<1x256xf32> to vector<32x256xf32>
    %434 = arith.mulf %430, %433 : vector<32x256xf32>
    %c239_i32_265 = arith.constant 239 : i32
    %435 = tpu.dynamic_rotate %411 by %c239_i32_265 dim 1 : vector<32x256xf32>, i32 -> vector<32x256xf32>
    %c13_266 = arith.constant 13 : index
    %c0_267 = arith.constant 0 : index
    %c0_268 = arith.constant 0 : index
    %436 = vector.load %arg3[%c13_266, %c0_267, %c0_268] : memref<18x1x256xf32, #tpu.memory_space<vmem>>, vector<1x1x256xf32>
    %437 = vector.shape_cast %436 : vector<1x1x256xf32> to vector<1x256xf32>
    %438 = vector.broadcast %437 : vector<1x256xf32> to vector<32x256xf32>
    %439 = arith.mulf %435, %438 : vector<32x256xf32>
    %c238_i32 = arith.constant 238 : i32
    %440 = tpu.dynamic_rotate %411 by %c238_i32 dim 1 : vector<32x256xf32>, i32 -> vector<32x256xf32>
    %c14 = arith.constant 14 : index
    %c0_269 = arith.constant 0 : index
    %c0_270 = arith.constant 0 : index
    %441 = vector.load %arg3[%c14, %c0_269, %c0_270] : memref<18x1x256xf32, #tpu.memory_space<vmem>>, vector<1x1x256xf32>
    %442 = vector.shape_cast %441 : vector<1x1x256xf32> to vector<1x256xf32>
    %443 = vector.broadcast %442 : vector<1x256xf32> to vector<32x256xf32>
    %444 = arith.mulf %440, %443 : vector<32x256xf32>
    %c224_i32 = arith.constant 224 : i32
    %445 = tpu.dynamic_rotate %411 by %c224_i32 dim 1 : vector<32x256xf32>, i32 -> vector<32x256xf32>
    %c15 = arith.constant 15 : index
    %c0_271 = arith.constant 0 : index
    %c0_272 = arith.constant 0 : index
    %446 = vector.load %arg3[%c15, %c0_271, %c0_272] : memref<18x1x256xf32, #tpu.memory_space<vmem>>, vector<1x1x256xf32>
    %447 = vector.shape_cast %446 : vector<1x1x256xf32> to vector<1x256xf32>
    %448 = vector.broadcast %447 : vector<1x256xf32> to vector<32x256xf32>
    %449 = arith.mulf %445, %448 : vector<32x256xf32>
    %c223_i32 = arith.constant 223 : i32
    %450 = tpu.dynamic_rotate %411 by %c223_i32 dim 1 : vector<32x256xf32>, i32 -> vector<32x256xf32>
    %c16 = arith.constant 16 : index
    %c0_273 = arith.constant 0 : index
    %c0_274 = arith.constant 0 : index
    %451 = vector.load %arg3[%c16, %c0_273, %c0_274] : memref<18x1x256xf32, #tpu.memory_space<vmem>>, vector<1x1x256xf32>
    %452 = vector.shape_cast %451 : vector<1x1x256xf32> to vector<1x256xf32>
    %453 = vector.broadcast %452 : vector<1x256xf32> to vector<32x256xf32>
    %454 = arith.mulf %450, %453 : vector<32x256xf32>
    %c222_i32 = arith.constant 222 : i32
    %455 = tpu.dynamic_rotate %411 by %c222_i32 dim 1 : vector<32x256xf32>, i32 -> vector<32x256xf32>
    %c17 = arith.constant 17 : index
    %c0_275 = arith.constant 0 : index
    %c0_276 = arith.constant 0 : index
    %456 = vector.load %arg3[%c17, %c0_275, %c0_276] : memref<18x1x256xf32, #tpu.memory_space<vmem>>, vector<1x1x256xf32>
    %457 = vector.shape_cast %456 : vector<1x1x256xf32> to vector<1x256xf32>
    %458 = vector.broadcast %457 : vector<1x256xf32> to vector<32x256xf32>
    %459 = arith.mulf %455, %458 : vector<32x256xf32>
    %460 = tpu.concatenate %419, %424, %429, %434, %439, %444, %449, %454, %459 in 0 : vector<32x256xf32>, vector<32x256xf32>, vector<32x256xf32>, vector<32x256xf32>, vector<32x256xf32>, vector<32x256xf32>, vector<32x256xf32>, vector<32x256xf32>, vector<32x256xf32> -> vector<288x256xf32>
    %461 = arith.truncf %460 : vector<288x256xf32> to vector<288x256xbf16>
    %cst_277 = arith.constant dense<0.000000e+00> : vector<32x256xf32>
    %462 = tpu.matmul %413, %461, %cst_277 {dimension_numbers = #tpu.dot_dimension_numbers<[1], [0], [0], [1], [0, 0, 1, 1], [], []>} : vector<32x288xbf16>, vector<288x256xbf16>, vector<32x256xf32> -> vector<32x256xf32>
    %463 = vector.broadcast %415 : vector<32x1xf32> to vector<32x256xf32>
    %464 = arith.addf %462, %463 : vector<32x256xf32>
    %c0_278 = arith.constant 0 : index
    %c0_279 = arith.constant 0 : index
    %465 = vector.load %arg8[%c0_278, %c0_279] : memref<256x64xbf16, #tpu.memory_space<vmem>>, vector<256x64xbf16>
    %466 = arith.truncf %464 : vector<32x256xf32> to vector<32x256xbf16>
    %cst_280 = arith.constant dense<0.000000e+00> : vector<32x64xf32>
    %467 = tpu.matmul %466, %465, %cst_280 {dimension_numbers = #tpu.dot_dimension_numbers<[1], [0], [0], [1], [0, 0, 1, 1], [], []>} : vector<32x256xbf16>, vector<256x64xbf16>, vector<32x64xf32> -> vector<32x64xf32>
    %c0_281 = arith.constant 0 : index
    %c0_282 = arith.constant 0 : index
    %468 = vector.load %arg9[%c0_281, %c0_282] : memref<32x64xf32, #tpu.memory_space<vmem>>, vector<32x64xf32>
    %469 = arith.addf %467, %468 : vector<32x64xf32>
    %c14_283 = arith.constant 14 : index
    %c0_284 = arith.constant 0 : index
    %c0_285 = arith.constant 0 : index
    %470 = vector.load %arg6[%c14_283, %c0_284, %c0_285] : memref<17x32x1xf32, #tpu.memory_space<vmem>>, vector<1x32x1xf32>
    %471 = vector.shape_cast %470 : vector<1x32x1xf32> to vector<32x1xf32>
    %c15_286 = arith.constant 15 : index
    %c0_287 = arith.constant 0 : index
    %c0_288 = arith.constant 0 : index
    %472 = vector.load %arg6[%c15_286, %c0_287, %c0_288] : memref<17x32x1xf32, #tpu.memory_space<vmem>>, vector<1x32x1xf32>
    %473 = vector.shape_cast %472 : vector<1x32x1xf32> to vector<32x1xf32>
    %cst_289 = arith.constant dense<0.000000e+00> : vector<64xf32>
    %474 = vector.multi_reduction <add>, %469, %cst_289 [0] : vector<32x64xf32> to vector<64xf32>
    %475 = vector.shape_cast %474 : vector<64xf32> to vector<1x64xf32>
    %cst_290 = arith.constant 3.200000e+01 : f32
    %476 = vector.broadcast %cst_290 : f32 to vector<1x64xf32>
    %477 = arith.divf %475, %476 : vector<1x64xf32>
    %478 = vector.broadcast %477 : vector<1x64xf32> to vector<32x64xf32>
    %479 = arith.subf %469, %478 : vector<32x64xf32>
    %480 = vector.broadcast %477 : vector<1x64xf32> to vector<32x64xf32>
    %481 = arith.subf %469, %480 : vector<32x64xf32>
    %482 = arith.mulf %479, %481 : vector<32x64xf32>
    %cst_291 = arith.constant dense<0.000000e+00> : vector<64xf32>
    %483 = vector.multi_reduction <add>, %482, %cst_291 [0] : vector<32x64xf32> to vector<64xf32>
    %484 = vector.shape_cast %483 : vector<64xf32> to vector<1x64xf32>
    %cst_292 = arith.constant 3.200000e+01 : f32
    %485 = vector.broadcast %cst_292 : f32 to vector<1x64xf32>
    %486 = arith.divf %484, %485 : vector<1x64xf32>
    %487 = vector.broadcast %477 : vector<1x64xf32> to vector<32x64xf32>
    %488 = arith.subf %469, %487 : vector<32x64xf32>
    %cst_293 = arith.constant 9.99999974E-6 : f32
    %489 = vector.broadcast %cst_293 : f32 to vector<1x64xf32>
    %490 = arith.addf %486, %489 : vector<1x64xf32>
    %491 = math.rsqrt %490 : vector<1x64xf32>
    %492 = vector.broadcast %491 : vector<1x64xf32> to vector<32x64xf32>
    %493 = arith.mulf %488, %492 : vector<32x64xf32>
    %494 = vector.broadcast %471 : vector<32x1xf32> to vector<32x64xf32>
    %495 = arith.mulf %493, %494 : vector<32x64xf32>
    %496 = vector.broadcast %473 : vector<32x1xf32> to vector<32x64xf32>
    %497 = arith.addf %495, %496 : vector<32x64xf32>
    %c0_294 = arith.constant 0 : index
    %c0_295 = arith.constant 0 : index
    %498 = vector.load %arg12[%c0_294, %c0_295] : memref<32x32xbf16, #tpu.memory_space<vmem>>, vector<32x32xbf16>
    %499 = arith.truncf %497 : vector<32x64xf32> to vector<32x64xbf16>
    %cst_296 = arith.constant dense<0.000000e+00> : vector<32x64xf32>
    %500 = tpu.matmul %498, %499, %cst_296 {dimension_numbers = #tpu.dot_dimension_numbers<[1], [0], [0], [1], [0, 0, 1, 1], [], []>} : vector<32x32xbf16>, vector<32x64xbf16>, vector<32x64xf32> -> vector<32x64xf32>
    %c16_297 = arith.constant 16 : index
    %c0_298 = arith.constant 0 : index
    %c0_299 = arith.constant 0 : index
    %501 = vector.load %arg6[%c16_297, %c0_298, %c0_299] : memref<17x32x1xf32, #tpu.memory_space<vmem>>, vector<1x32x1xf32>
    %502 = vector.shape_cast %501 : vector<1x32x1xf32> to vector<32x1xf32>
    %503 = vector.broadcast %502 : vector<32x1xf32> to vector<32x64xf32>
    %504 = arith.addf %500, %503 : vector<32x64xf32>
    %cst_300 = arith.constant 0.000000e+00 : f32
    %505 = vector.broadcast %cst_300 : f32 to vector<32x64xf32>
    %506 = arith.maximumf %504, %505 : vector<32x64xf32>
    %c0_301 = arith.constant 0 : index
    %c0_302 = arith.constant 0 : index
    %507 = vector.load %arg13[%c0_301, %c0_302] : memref<64x32xbf16, #tpu.memory_space<vmem>>, vector<64x32xbf16>
    %508 = arith.truncf %506 : vector<32x64xf32> to vector<32x64xbf16>
    %cst_303 = arith.constant dense<0.000000e+00> : vector<64x64xf32>
    %509 = tpu.matmul %507, %508, %cst_303 {dimension_numbers = #tpu.dot_dimension_numbers<[1], [0], [0], [1], [0, 0, 1, 1], [], []>} : vector<64x32xbf16>, vector<32x64xbf16>, vector<64x64xf32> -> vector<64x64xf32>
    %c0_304 = arith.constant 0 : index
    %c0_305 = arith.constant 0 : index
    %c0_306 = arith.constant 0 : index
    %510 = vector.load %arg7[%c0_304, %c0_305, %c0_306] : memref<3x64x1xf32, #tpu.memory_space<vmem>>, vector<1x64x1xf32>
    %511 = vector.shape_cast %510 : vector<1x64x1xf32> to vector<64x1xf32>
    %512 = vector.broadcast %511 : vector<64x1xf32> to vector<64x64xf32>
    %513 = arith.addf %509, %512 : vector<64x64xf32>
    %c1_307 = arith.constant 1 : index
    %c0_308 = arith.constant 0 : index
    %c0_309 = arith.constant 0 : index
    %514 = vector.load %arg7[%c1_307, %c0_308, %c0_309] : memref<3x64x1xf32, #tpu.memory_space<vmem>>, vector<1x64x1xf32>
    %515 = vector.shape_cast %514 : vector<1x64x1xf32> to vector<64x1xf32>
    %c2_310 = arith.constant 2 : index
    %c0_311 = arith.constant 0 : index
    %c0_312 = arith.constant 0 : index
    %516 = vector.load %arg7[%c2_310, %c0_311, %c0_312] : memref<3x64x1xf32, #tpu.memory_space<vmem>>, vector<1x64x1xf32>
    %517 = vector.shape_cast %516 : vector<1x64x1xf32> to vector<64x1xf32>
    %cst_313 = arith.constant dense<0.000000e+00> : vector<64xf32>
    %518 = vector.multi_reduction <add>, %513, %cst_313 [0] : vector<64x64xf32> to vector<64xf32>
    %519 = vector.shape_cast %518 : vector<64xf32> to vector<1x64xf32>
    %cst_314 = arith.constant 6.400000e+01 : f32
    %520 = vector.broadcast %cst_314 : f32 to vector<1x64xf32>
    %521 = arith.divf %519, %520 : vector<1x64xf32>
    %522 = vector.broadcast %521 : vector<1x64xf32> to vector<64x64xf32>
    %523 = arith.subf %513, %522 : vector<64x64xf32>
    %524 = vector.broadcast %521 : vector<1x64xf32> to vector<64x64xf32>
    %525 = arith.subf %513, %524 : vector<64x64xf32>
    %526 = arith.mulf %523, %525 : vector<64x64xf32>
    %cst_315 = arith.constant dense<0.000000e+00> : vector<64xf32>
    %527 = vector.multi_reduction <add>, %526, %cst_315 [0] : vector<64x64xf32> to vector<64xf32>
    %528 = vector.shape_cast %527 : vector<64xf32> to vector<1x64xf32>
    %cst_316 = arith.constant 6.400000e+01 : f32
    %529 = vector.broadcast %cst_316 : f32 to vector<1x64xf32>
    %530 = arith.divf %528, %529 : vector<1x64xf32>
    %531 = vector.broadcast %521 : vector<1x64xf32> to vector<64x64xf32>
    %532 = arith.subf %513, %531 : vector<64x64xf32>
    %cst_317 = arith.constant 9.99999974E-6 : f32
    %533 = vector.broadcast %cst_317 : f32 to vector<1x64xf32>
    %534 = arith.addf %530, %533 : vector<1x64xf32>
    %535 = math.rsqrt %534 : vector<1x64xf32>
    %536 = vector.broadcast %535 : vector<1x64xf32> to vector<64x64xf32>
    %537 = arith.mulf %532, %536 : vector<64x64xf32>
    %538 = vector.broadcast %515 : vector<64x1xf32> to vector<64x64xf32>
    %539 = arith.mulf %537, %538 : vector<64x64xf32>
    %540 = vector.broadcast %517 : vector<64x1xf32> to vector<64x64xf32>
    %541 = arith.addf %539, %540 : vector<64x64xf32>
    %c0_318 = arith.constant 0 : index
    %c0_319 = arith.constant 0 : index
    %542 = vector.load %arg15[%c0_318, %c0_319] : memref<128x64xbf16, #tpu.memory_space<vmem>>, vector<128x64xbf16>
    %543 = arith.truncf %541 : vector<64x64xf32> to vector<64x64xbf16>
    %cst_320 = arith.constant dense<0.000000e+00> : vector<128x64xf32>
    %544 = tpu.matmul %542, %543, %cst_320 {dimension_numbers = #tpu.dot_dimension_numbers<[1], [0], [0], [1], [0, 0, 1, 1], [], []>} : vector<128x64xbf16>, vector<64x64xbf16>, vector<128x64xf32> -> vector<128x64xf32>
    %545 = vector.extract_strided_slice %544 {offsets = [0, 0], sizes = [64, 64], strides = [1, 1]} : vector<128x64xf32> to vector<64x64xf32>
    %546 = vector.extract_strided_slice %544 {offsets = [64, 0], sizes = [64, 64], strides = [1, 1]} : vector<128x64xf32> to vector<64x64xf32>
    %c0_321 = arith.constant 0 : index
    %c0_322 = arith.constant 0 : index
    %c0_323 = arith.constant 0 : index
    %c0_324 = arith.constant 0 : index
    %547 = vector.load %arg2[%c0_321, %c0_322, %c0_323, %c0_324] : memref<1x1x6x64xf32, #tpu.memory_space<vmem>>, vector<1x1x6x64xf32>
    %548 = vector.shape_cast %547 : vector<1x1x6x64xf32> to vector<6x64xf32>
    %c0_325 = arith.constant 0 : index
    %c0_326 = arith.constant 0 : index
    %c0_327 = arith.constant 0 : index
    %549 = vector.load %arg10[%c0_325, %c0_326, %c0_327] : memref<9x1x64xf32, #tpu.memory_space<vmem>>, vector<1x1x64xf32>
    %550 = vector.shape_cast %549 : vector<1x1x64xf32> to vector<1x64xf32>
    %c1_328 = arith.constant 1 : index
    %c0_329 = arith.constant 0 : index
    %c0_330 = arith.constant 0 : index
    %551 = vector.load %arg10[%c1_328, %c0_329, %c0_330] : memref<9x1x64xf32, #tpu.memory_space<vmem>>, vector<1x1x64xf32>
    %552 = vector.shape_cast %551 : vector<1x1x64xf32> to vector<1x64xf32>
    %cst_331 = arith.constant dense<0.000000e+00> : vector<6xf32>
    %553 = vector.multi_reduction <add>, %548, %cst_331 [1] : vector<6x64xf32> to vector<6xf32>
    %554 = vector.shape_cast %553 : vector<6xf32> to vector<6x1xf32>
    %cst_332 = arith.constant 6.400000e+01 : f32
    %555 = vector.broadcast %cst_332 : f32 to vector<6x1xf32>
    %556 = arith.divf %554, %555 : vector<6x1xf32>
    %557 = vector.broadcast %556 : vector<6x1xf32> to vector<6x64xf32>
    %558 = arith.subf %548, %557 : vector<6x64xf32>
    %559 = vector.broadcast %556 : vector<6x1xf32> to vector<6x64xf32>
    %560 = arith.subf %548, %559 : vector<6x64xf32>
    %561 = arith.mulf %558, %560 : vector<6x64xf32>
    %cst_333 = arith.constant dense<0.000000e+00> : vector<6xf32>
    %562 = vector.multi_reduction <add>, %561, %cst_333 [1] : vector<6x64xf32> to vector<6xf32>
    %563 = vector.shape_cast %562 : vector<6xf32> to vector<6x1xf32>
    %cst_334 = arith.constant 6.400000e+01 : f32
    %564 = vector.broadcast %cst_334 : f32 to vector<6x1xf32>
    %565 = arith.divf %563, %564 : vector<6x1xf32>
    %566 = vector.broadcast %556 : vector<6x1xf32> to vector<6x64xf32>
    %567 = arith.subf %548, %566 : vector<6x64xf32>
    %cst_335 = arith.constant 9.99999974E-6 : f32
    %568 = vector.broadcast %cst_335 : f32 to vector<6x1xf32>
    %569 = arith.addf %565, %568 : vector<6x1xf32>
    %570 = math.rsqrt %569 : vector<6x1xf32>
    %571 = vector.broadcast %570 : vector<6x1xf32> to vector<6x64xf32>
    %572 = arith.mulf %567, %571 : vector<6x64xf32>
    %573 = vector.broadcast %550 : vector<1x64xf32> to vector<6x64xf32>
    %574 = arith.mulf %572, %573 : vector<6x64xf32>
    %575 = vector.broadcast %552 : vector<1x64xf32> to vector<6x64xf32>
    %576 = arith.addf %574, %575 : vector<6x64xf32>
    %c0_336 = arith.constant 0 : index
    %c0_337 = arith.constant 0 : index
    %577 = vector.load %arg14[%c0_336, %c0_337] : memref<64x64xbf16, #tpu.memory_space<vmem>>, vector<64x64xbf16>
    %578 = arith.truncf %576 : vector<6x64xf32> to vector<6x64xbf16>
    %cst_338 = arith.constant dense<0.000000e+00> : vector<6x64xf32>
    %579 = tpu.matmul %578, %577, %cst_338 {dimension_numbers = #tpu.dot_dimension_numbers<[1], [0], [0], [1], [0, 0, 1, 1], [], []>} : vector<6x64xbf16>, vector<64x64xbf16>, vector<6x64xf32> -> vector<6x64xf32>
    %580 = arith.truncf %579 : vector<6x64xf32> to vector<6x64xbf16>
    %581 = arith.truncf %545 : vector<64x64xf32> to vector<64x64xbf16>
    %cst_339 = arith.constant dense<0.000000e+00> : vector<6x64xf32>
    %582 = tpu.matmul %580, %581, %cst_339 {dimension_numbers = #tpu.dot_dimension_numbers<[1], [0], [0], [1], [0, 0, 1, 1], [], []>} : vector<6x64xbf16>, vector<64x64xbf16>, vector<6x64xf32> -> vector<6x64xf32>
    %cst_340 = arith.constant 1.250000e-01 : f32
    %583 = vector.broadcast %cst_340 : f32 to vector<6x64xf32>
    %584 = arith.mulf %582, %583 : vector<6x64xf32>
    %cst_341 = arith.constant dense<0xFF800000> : vector<64xf32>
    %585 = vector.multi_reduction <maximumf>, %584, %cst_341 [0] : vector<6x64xf32> to vector<64xf32>
    %586 = vector.shape_cast %585 : vector<64xf32> to vector<1x64xf32>
    %587 = vector.broadcast %586 : vector<1x64xf32> to vector<6x64xf32>
    %588 = arith.subf %584, %587 : vector<6x64xf32>
    %589 = math.exp %588 : vector<6x64xf32>
    %cst_342 = arith.constant dense<0.000000e+00> : vector<64xf32>
    %590 = vector.multi_reduction <add>, %589, %cst_342 [0] : vector<6x64xf32> to vector<64xf32>
    %591 = vector.shape_cast %590 : vector<64xf32> to vector<1x64xf32>
    %592 = tpu.reciprocal %591 {approx = true} : vector<1x64xf32> -> vector<1x64xf32>
    %593 = vector.broadcast %592 : vector<1x64xf32> to vector<6x64xf32>
    %594 = arith.mulf %589, %593 : vector<6x64xf32>
    %cst_343 = arith.constant 9.99999993E-9 : f32
    %595 = vector.broadcast %cst_343 : f32 to vector<6x64xf32>
    %596 = arith.addf %594, %595 : vector<6x64xf32>
    %cst_344 = arith.constant dense<0.000000e+00> : vector<6xf32>
    %597 = vector.multi_reduction <add>, %596, %cst_344 [1] : vector<6x64xf32> to vector<6xf32>
    %598 = vector.shape_cast %597 : vector<6xf32> to vector<6x1xf32>
    %599 = tpu.reciprocal %598 {approx = true} : vector<6x1xf32> -> vector<6x1xf32>
    %600 = vector.broadcast %599 : vector<6x1xf32> to vector<6x64xf32>
    %601 = arith.mulf %596, %600 : vector<6x64xf32>
    %602 = arith.truncf %601 : vector<6x64xf32> to vector<6x64xbf16>
    %603 = arith.truncf %546 : vector<64x64xf32> to vector<64x64xbf16>
    %cst_345 = arith.constant dense<0.000000e+00> : vector<6x64xf32>
    %604 = tpu.matmul %602, %603, %cst_345 {dimension_numbers = #tpu.dot_dimension_numbers<[1], [1], [0], [0], [0, 0, 1, 0], [], []>} : vector<6x64xbf16>, vector<64x64xbf16>, vector<6x64xf32> -> vector<6x64xf32>
    %c0_346 = arith.constant 0 : index
    %c0_347 = arith.constant 0 : index
    %605 = vector.load %arg16[%c0_346, %c0_347] : memref<64x192xbf16, #tpu.memory_space<vmem>>, vector<64x192xbf16>
    %606 = arith.truncf %604 : vector<6x64xf32> to vector<6x64xbf16>
    %cst_348 = arith.constant dense<0.000000e+00> : vector<6x192xf32>
    %607 = tpu.matmul %606, %605, %cst_348 {dimension_numbers = #tpu.dot_dimension_numbers<[1], [0], [0], [1], [0, 0, 1, 1], [], []>} : vector<6x64xbf16>, vector<64x192xbf16>, vector<6x192xf32> -> vector<6x192xf32>
    %c0_349 = arith.constant 0 : index
    %c0_350 = arith.constant 0 : index
    %608 = vector.load %arg17[%c0_349, %c0_350] : memref<64x192xbf16, #tpu.memory_space<vmem>>, vector<64x192xbf16>
    %609 = arith.truncf %548 : vector<6x64xf32> to vector<6x64xbf16>
    %cst_351 = arith.constant dense<0.000000e+00> : vector<6x192xf32>
    %610 = tpu.matmul %609, %608, %cst_351 {dimension_numbers = #tpu.dot_dimension_numbers<[1], [0], [0], [1], [0, 0, 1, 1], [], []>} : vector<6x64xbf16>, vector<64x192xbf16>, vector<6x192xf32> -> vector<6x192xf32>
    %611 = vector.extract_strided_slice %607 {offsets = [0, 0], sizes = [6, 64], strides = [1, 1]} : vector<6x192xf32> to vector<6x64xf32>
    %612 = vector.extract_strided_slice %610 {offsets = [0, 0], sizes = [6, 64], strides = [1, 1]} : vector<6x192xf32> to vector<6x64xf32>
    %613 = arith.addf %611, %612 : vector<6x64xf32>
    %c4_352 = arith.constant 4 : index
    %c0_353 = arith.constant 0 : index
    %c0_354 = arith.constant 0 : index
    %614 = vector.load %arg10[%c4_352, %c0_353, %c0_354] : memref<9x1x64xf32, #tpu.memory_space<vmem>>, vector<1x1x64xf32>
    %615 = vector.shape_cast %614 : vector<1x1x64xf32> to vector<1x64xf32>
    %616 = vector.broadcast %615 : vector<1x64xf32> to vector<6x64xf32>
    %617 = arith.addf %613, %616 : vector<6x64xf32>
    %cst_355 = arith.constant 5.000000e-01 : f32
    %618 = vector.broadcast %cst_355 : f32 to vector<6x64xf32>
    %619 = arith.mulf %618, %617 : vector<6x64xf32>
    %620 = math.tanh %619 : vector<6x64xf32>
    %cst_356 = arith.constant 1.000000e+00 : f32
    %621 = vector.broadcast %cst_356 : f32 to vector<6x64xf32>
    %622 = arith.addf %620, %621 : vector<6x64xf32>
    %cst_357 = arith.constant 5.000000e-01 : f32
    %623 = vector.broadcast %cst_357 : f32 to vector<6x64xf32>
    %624 = arith.mulf %623, %622 : vector<6x64xf32>
    %625 = vector.extract_strided_slice %607 {offsets = [0, 64], sizes = [6, 64], strides = [1, 1]} : vector<6x192xf32> to vector<6x64xf32>
    %626 = vector.extract_strided_slice %610 {offsets = [0, 64], sizes = [6, 64], strides = [1, 1]} : vector<6x192xf32> to vector<6x64xf32>
    %627 = arith.addf %625, %626 : vector<6x64xf32>
    %c5_358 = arith.constant 5 : index
    %c0_359 = arith.constant 0 : index
    %c0_360 = arith.constant 0 : index
    %628 = vector.load %arg10[%c5_358, %c0_359, %c0_360] : memref<9x1x64xf32, #tpu.memory_space<vmem>>, vector<1x1x64xf32>
    %629 = vector.shape_cast %628 : vector<1x1x64xf32> to vector<1x64xf32>
    %630 = vector.broadcast %629 : vector<1x64xf32> to vector<6x64xf32>
    %631 = arith.addf %627, %630 : vector<6x64xf32>
    %cst_361 = arith.constant 5.000000e-01 : f32
    %632 = vector.broadcast %cst_361 : f32 to vector<6x64xf32>
    %633 = arith.mulf %632, %631 : vector<6x64xf32>
    %634 = math.tanh %633 : vector<6x64xf32>
    %cst_362 = arith.constant 1.000000e+00 : f32
    %635 = vector.broadcast %cst_362 : f32 to vector<6x64xf32>
    %636 = arith.addf %634, %635 : vector<6x64xf32>
    %cst_363 = arith.constant 5.000000e-01 : f32
    %637 = vector.broadcast %cst_363 : f32 to vector<6x64xf32>
    %638 = arith.mulf %637, %636 : vector<6x64xf32>
    %639 = vector.extract_strided_slice %607 {offsets = [0, 128], sizes = [6, 64], strides = [1, 1]} : vector<6x192xf32> to vector<6x64xf32>
    %c6_364 = arith.constant 6 : index
    %c0_365 = arith.constant 0 : index
    %c0_366 = arith.constant 0 : index
    %640 = vector.load %arg10[%c6_364, %c0_365, %c0_366] : memref<9x1x64xf32, #tpu.memory_space<vmem>>, vector<1x1x64xf32>
    %641 = vector.shape_cast %640 : vector<1x1x64xf32> to vector<1x64xf32>
    %642 = vector.broadcast %641 : vector<1x64xf32> to vector<6x64xf32>
    %643 = arith.addf %639, %642 : vector<6x64xf32>
    %644 = vector.extract_strided_slice %610 {offsets = [0, 128], sizes = [6, 64], strides = [1, 1]} : vector<6x192xf32> to vector<6x64xf32>
    %c7_367 = arith.constant 7 : index
    %c0_368 = arith.constant 0 : index
    %c0_369 = arith.constant 0 : index
    %645 = vector.load %arg10[%c7_367, %c0_368, %c0_369] : memref<9x1x64xf32, #tpu.memory_space<vmem>>, vector<1x1x64xf32>
    %646 = vector.shape_cast %645 : vector<1x1x64xf32> to vector<1x64xf32>
    %647 = vector.broadcast %646 : vector<1x64xf32> to vector<6x64xf32>
    %648 = arith.addf %644, %647 : vector<6x64xf32>
    %649 = arith.mulf %624, %648 : vector<6x64xf32>
    %650 = arith.addf %643, %649 : vector<6x64xf32>
    %651 = math.tanh %650 : vector<6x64xf32>
    %cst_370 = arith.constant 1.000000e+00 : f32
    %652 = vector.broadcast %cst_370 : f32 to vector<6x64xf32>
    %653 = arith.subf %652, %638 : vector<6x64xf32>
    %654 = arith.mulf %653, %651 : vector<6x64xf32>
    %655 = arith.mulf %638, %548 : vector<6x64xf32>
    %656 = arith.addf %654, %655 : vector<6x64xf32>
    %c2_371 = arith.constant 2 : index
    %c0_372 = arith.constant 0 : index
    %c0_373 = arith.constant 0 : index
    %657 = vector.load %arg10[%c2_371, %c0_372, %c0_373] : memref<9x1x64xf32, #tpu.memory_space<vmem>>, vector<1x1x64xf32>
    %658 = vector.shape_cast %657 : vector<1x1x64xf32> to vector<1x64xf32>
    %c3_374 = arith.constant 3 : index
    %c0_375 = arith.constant 0 : index
    %c0_376 = arith.constant 0 : index
    %659 = vector.load %arg10[%c3_374, %c0_375, %c0_376] : memref<9x1x64xf32, #tpu.memory_space<vmem>>, vector<1x1x64xf32>
    %660 = vector.shape_cast %659 : vector<1x1x64xf32> to vector<1x64xf32>
    %cst_377 = arith.constant dense<0.000000e+00> : vector<6xf32>
    %661 = vector.multi_reduction <add>, %656, %cst_377 [1] : vector<6x64xf32> to vector<6xf32>
    %662 = vector.shape_cast %661 : vector<6xf32> to vector<6x1xf32>
    %cst_378 = arith.constant 6.400000e+01 : f32
    %663 = vector.broadcast %cst_378 : f32 to vector<6x1xf32>
    %664 = arith.divf %662, %663 : vector<6x1xf32>
    %665 = vector.broadcast %664 : vector<6x1xf32> to vector<6x64xf32>
    %666 = arith.subf %656, %665 : vector<6x64xf32>
    %667 = vector.broadcast %664 : vector<6x1xf32> to vector<6x64xf32>
    %668 = arith.subf %656, %667 : vector<6x64xf32>
    %669 = arith.mulf %666, %668 : vector<6x64xf32>
    %cst_379 = arith.constant dense<0.000000e+00> : vector<6xf32>
    %670 = vector.multi_reduction <add>, %669, %cst_379 [1] : vector<6x64xf32> to vector<6xf32>
    %671 = vector.shape_cast %670 : vector<6xf32> to vector<6x1xf32>
    %cst_380 = arith.constant 6.400000e+01 : f32
    %672 = vector.broadcast %cst_380 : f32 to vector<6x1xf32>
    %673 = arith.divf %671, %672 : vector<6x1xf32>
    %674 = vector.broadcast %664 : vector<6x1xf32> to vector<6x64xf32>
    %675 = arith.subf %656, %674 : vector<6x64xf32>
    %cst_381 = arith.constant 9.99999974E-6 : f32
    %676 = vector.broadcast %cst_381 : f32 to vector<6x1xf32>
    %677 = arith.addf %673, %676 : vector<6x1xf32>
    %678 = math.rsqrt %677 : vector<6x1xf32>
    %679 = vector.broadcast %678 : vector<6x1xf32> to vector<6x64xf32>
    %680 = arith.mulf %675, %679 : vector<6x64xf32>
    %681 = vector.broadcast %658 : vector<1x64xf32> to vector<6x64xf32>
    %682 = arith.mulf %680, %681 : vector<6x64xf32>
    %683 = vector.broadcast %660 : vector<1x64xf32> to vector<6x64xf32>
    %684 = arith.addf %682, %683 : vector<6x64xf32>
    %c0_382 = arith.constant 0 : index
    %c0_383 = arith.constant 0 : index
    %685 = vector.load %arg18[%c0_382, %c0_383] : memref<64x128xbf16, #tpu.memory_space<vmem>>, vector<64x128xbf16>
    %686 = arith.truncf %684 : vector<6x64xf32> to vector<6x64xbf16>
    %cst_384 = arith.constant dense<0.000000e+00> : vector<6x128xf32>
    %687 = tpu.matmul %686, %685, %cst_384 {dimension_numbers = #tpu.dot_dimension_numbers<[1], [0], [0], [1], [0, 0, 1, 1], [], []>} : vector<6x64xbf16>, vector<64x128xbf16>, vector<6x128xf32> -> vector<6x128xf32>
    %c0_385 = arith.constant 0 : index
    %c0_386 = arith.constant 0 : index
    %688 = vector.load %arg11[%c0_385, %c0_386] : memref<1x128xf32, #tpu.memory_space<vmem>>, vector<1x128xf32>
    %689 = vector.broadcast %688 : vector<1x128xf32> to vector<6x128xf32>
    %690 = arith.addf %687, %689 : vector<6x128xf32>
    %cst_387 = arith.constant 0.000000e+00 : f32
    %691 = vector.broadcast %cst_387 : f32 to vector<6x128xf32>
    %692 = arith.maximumf %690, %691 : vector<6x128xf32>
    %c0_388 = arith.constant 0 : index
    %c0_389 = arith.constant 0 : index
    %693 = vector.load %arg19[%c0_388, %c0_389] : memref<128x64xbf16, #tpu.memory_space<vmem>>, vector<128x64xbf16>
    %694 = arith.truncf %692 : vector<6x128xf32> to vector<6x128xbf16>
    %cst_390 = arith.constant dense<0.000000e+00> : vector<6x64xf32>
    %695 = tpu.matmul %694, %693, %cst_390 {dimension_numbers = #tpu.dot_dimension_numbers<[1], [0], [0], [1], [0, 0, 1, 1], [], []>} : vector<6x128xbf16>, vector<128x64xbf16>, vector<6x64xf32> -> vector<6x64xf32>
    %696 = arith.addf %656, %695 : vector<6x64xf32>
    %c8_391 = arith.constant 8 : index
    %c0_392 = arith.constant 0 : index
    %c0_393 = arith.constant 0 : index
    %697 = vector.load %arg10[%c8_391, %c0_392, %c0_393] : memref<9x1x64xf32, #tpu.memory_space<vmem>>, vector<1x1x64xf32>
    %698 = vector.shape_cast %697 : vector<1x1x64xf32> to vector<1x64xf32>
    %699 = vector.broadcast %698 : vector<1x64xf32> to vector<6x64xf32>
    %700 = arith.addf %696, %699 : vector<6x64xf32>
    %c0_394 = arith.constant 0 : index
    %c0_395 = arith.constant 0 : index
    %c0_396 = arith.constant 0 : index
    %701 = vector.load %arg10[%c0_394, %c0_395, %c0_396] : memref<9x1x64xf32, #tpu.memory_space<vmem>>, vector<1x1x64xf32>
    %702 = vector.shape_cast %701 : vector<1x1x64xf32> to vector<1x64xf32>
    %c1_397 = arith.constant 1 : index
    %c0_398 = arith.constant 0 : index
    %c0_399 = arith.constant 0 : index
    %703 = vector.load %arg10[%c1_397, %c0_398, %c0_399] : memref<9x1x64xf32, #tpu.memory_space<vmem>>, vector<1x1x64xf32>
    %704 = vector.shape_cast %703 : vector<1x1x64xf32> to vector<1x64xf32>
    %cst_400 = arith.constant dense<0.000000e+00> : vector<6xf32>
    %705 = vector.multi_reduction <add>, %700, %cst_400 [1] : vector<6x64xf32> to vector<6xf32>
    %706 = vector.shape_cast %705 : vector<6xf32> to vector<6x1xf32>
    %cst_401 = arith.constant 6.400000e+01 : f32
    %707 = vector.broadcast %cst_401 : f32 to vector<6x1xf32>
    %708 = arith.divf %706, %707 : vector<6x1xf32>
    %709 = vector.broadcast %708 : vector<6x1xf32> to vector<6x64xf32>
    %710 = arith.subf %700, %709 : vector<6x64xf32>
    %711 = vector.broadcast %708 : vector<6x1xf32> to vector<6x64xf32>
    %712 = arith.subf %700, %711 : vector<6x64xf32>
    %713 = arith.mulf %710, %712 : vector<6x64xf32>
    %cst_402 = arith.constant dense<0.000000e+00> : vector<6xf32>
    %714 = vector.multi_reduction <add>, %713, %cst_402 [1] : vector<6x64xf32> to vector<6xf32>
    %715 = vector.shape_cast %714 : vector<6xf32> to vector<6x1xf32>
    %cst_403 = arith.constant 6.400000e+01 : f32
    %716 = vector.broadcast %cst_403 : f32 to vector<6x1xf32>
    %717 = arith.divf %715, %716 : vector<6x1xf32>
    %718 = vector.broadcast %708 : vector<6x1xf32> to vector<6x64xf32>
    %719 = arith.subf %700, %718 : vector<6x64xf32>
    %cst_404 = arith.constant 9.99999974E-6 : f32
    %720 = vector.broadcast %cst_404 : f32 to vector<6x1xf32>
    %721 = arith.addf %717, %720 : vector<6x1xf32>
    %722 = math.rsqrt %721 : vector<6x1xf32>
    %723 = vector.broadcast %722 : vector<6x1xf32> to vector<6x64xf32>
    %724 = arith.mulf %719, %723 : vector<6x64xf32>
    %725 = vector.broadcast %702 : vector<1x64xf32> to vector<6x64xf32>
    %726 = arith.mulf %724, %725 : vector<6x64xf32>
    %727 = vector.broadcast %704 : vector<1x64xf32> to vector<6x64xf32>
    %728 = arith.addf %726, %727 : vector<6x64xf32>
    %c0_405 = arith.constant 0 : index
    %c0_406 = arith.constant 0 : index
    %729 = vector.load %arg14[%c0_405, %c0_406] : memref<64x64xbf16, #tpu.memory_space<vmem>>, vector<64x64xbf16>
    %730 = arith.truncf %728 : vector<6x64xf32> to vector<6x64xbf16>
    %cst_407 = arith.constant dense<0.000000e+00> : vector<6x64xf32>
    %731 = tpu.matmul %730, %729, %cst_407 {dimension_numbers = #tpu.dot_dimension_numbers<[1], [0], [0], [1], [0, 0, 1, 1], [], []>} : vector<6x64xbf16>, vector<64x64xbf16>, vector<6x64xf32> -> vector<6x64xf32>
    %732 = arith.truncf %731 : vector<6x64xf32> to vector<6x64xbf16>
    %733 = arith.truncf %545 : vector<64x64xf32> to vector<64x64xbf16>
    %cst_408 = arith.constant dense<0.000000e+00> : vector<6x64xf32>
    %734 = tpu.matmul %732, %733, %cst_408 {dimension_numbers = #tpu.dot_dimension_numbers<[1], [0], [0], [1], [0, 0, 1, 1], [], []>} : vector<6x64xbf16>, vector<64x64xbf16>, vector<6x64xf32> -> vector<6x64xf32>
    %cst_409 = arith.constant 1.250000e-01 : f32
    %735 = vector.broadcast %cst_409 : f32 to vector<6x64xf32>
    %736 = arith.mulf %734, %735 : vector<6x64xf32>
    %cst_410 = arith.constant dense<0xFF800000> : vector<64xf32>
    %737 = vector.multi_reduction <maximumf>, %736, %cst_410 [0] : vector<6x64xf32> to vector<64xf32>
    %738 = vector.shape_cast %737 : vector<64xf32> to vector<1x64xf32>
    %739 = vector.broadcast %738 : vector<1x64xf32> to vector<6x64xf32>
    %740 = arith.subf %736, %739 : vector<6x64xf32>
    %741 = math.exp %740 : vector<6x64xf32>
    %cst_411 = arith.constant dense<0.000000e+00> : vector<64xf32>
    %742 = vector.multi_reduction <add>, %741, %cst_411 [0] : vector<6x64xf32> to vector<64xf32>
    %743 = vector.shape_cast %742 : vector<64xf32> to vector<1x64xf32>
    %744 = tpu.reciprocal %743 {approx = true} : vector<1x64xf32> -> vector<1x64xf32>
    %745 = vector.broadcast %744 : vector<1x64xf32> to vector<6x64xf32>
    %746 = arith.mulf %741, %745 : vector<6x64xf32>
    %cst_412 = arith.constant 9.99999993E-9 : f32
    %747 = vector.broadcast %cst_412 : f32 to vector<6x64xf32>
    %748 = arith.addf %746, %747 : vector<6x64xf32>
    %cst_413 = arith.constant dense<0.000000e+00> : vector<6xf32>
    %749 = vector.multi_reduction <add>, %748, %cst_413 [1] : vector<6x64xf32> to vector<6xf32>
    %750 = vector.shape_cast %749 : vector<6xf32> to vector<6x1xf32>
    %751 = tpu.reciprocal %750 {approx = true} : vector<6x1xf32> -> vector<6x1xf32>
    %752 = vector.broadcast %751 : vector<6x1xf32> to vector<6x64xf32>
    %753 = arith.mulf %748, %752 : vector<6x64xf32>
    %754 = arith.truncf %753 : vector<6x64xf32> to vector<6x64xbf16>
    %755 = arith.truncf %546 : vector<64x64xf32> to vector<64x64xbf16>
    %cst_414 = arith.constant dense<0.000000e+00> : vector<6x64xf32>
    %756 = tpu.matmul %754, %755, %cst_414 {dimension_numbers = #tpu.dot_dimension_numbers<[1], [1], [0], [0], [0, 0, 1, 0], [], []>} : vector<6x64xbf16>, vector<64x64xbf16>, vector<6x64xf32> -> vector<6x64xf32>
    %c0_415 = arith.constant 0 : index
    %c0_416 = arith.constant 0 : index
    %757 = vector.load %arg16[%c0_415, %c0_416] : memref<64x192xbf16, #tpu.memory_space<vmem>>, vector<64x192xbf16>
    %758 = arith.truncf %756 : vector<6x64xf32> to vector<6x64xbf16>
    %cst_417 = arith.constant dense<0.000000e+00> : vector<6x192xf32>
    %759 = tpu.matmul %758, %757, %cst_417 {dimension_numbers = #tpu.dot_dimension_numbers<[1], [0], [0], [1], [0, 0, 1, 1], [], []>} : vector<6x64xbf16>, vector<64x192xbf16>, vector<6x192xf32> -> vector<6x192xf32>
    %c0_418 = arith.constant 0 : index
    %c0_419 = arith.constant 0 : index
    %760 = vector.load %arg17[%c0_418, %c0_419] : memref<64x192xbf16, #tpu.memory_space<vmem>>, vector<64x192xbf16>
    %761 = arith.truncf %700 : vector<6x64xf32> to vector<6x64xbf16>
    %cst_420 = arith.constant dense<0.000000e+00> : vector<6x192xf32>
    %762 = tpu.matmul %761, %760, %cst_420 {dimension_numbers = #tpu.dot_dimension_numbers<[1], [0], [0], [1], [0, 0, 1, 1], [], []>} : vector<6x64xbf16>, vector<64x192xbf16>, vector<6x192xf32> -> vector<6x192xf32>
    %763 = vector.extract_strided_slice %759 {offsets = [0, 0], sizes = [6, 64], strides = [1, 1]} : vector<6x192xf32> to vector<6x64xf32>
    %764 = vector.extract_strided_slice %762 {offsets = [0, 0], sizes = [6, 64], strides = [1, 1]} : vector<6x192xf32> to vector<6x64xf32>
    %765 = arith.addf %763, %764 : vector<6x64xf32>
    %c4_421 = arith.constant 4 : index
    %c0_422 = arith.constant 0 : index
    %c0_423 = arith.constant 0 : index
    %766 = vector.load %arg10[%c4_421, %c0_422, %c0_423] : memref<9x1x64xf32, #tpu.memory_space<vmem>>, vector<1x1x64xf32>
    %767 = vector.shape_cast %766 : vector<1x1x64xf32> to vector<1x64xf32>
    %768 = vector.broadcast %767 : vector<1x64xf32> to vector<6x64xf32>
    %769 = arith.addf %765, %768 : vector<6x64xf32>
    %cst_424 = arith.constant 5.000000e-01 : f32
    %770 = vector.broadcast %cst_424 : f32 to vector<6x64xf32>
    %771 = arith.mulf %770, %769 : vector<6x64xf32>
    %772 = math.tanh %771 : vector<6x64xf32>
    %cst_425 = arith.constant 1.000000e+00 : f32
    %773 = vector.broadcast %cst_425 : f32 to vector<6x64xf32>
    %774 = arith.addf %772, %773 : vector<6x64xf32>
    %cst_426 = arith.constant 5.000000e-01 : f32
    %775 = vector.broadcast %cst_426 : f32 to vector<6x64xf32>
    %776 = arith.mulf %775, %774 : vector<6x64xf32>
    %777 = vector.extract_strided_slice %759 {offsets = [0, 64], sizes = [6, 64], strides = [1, 1]} : vector<6x192xf32> to vector<6x64xf32>
    %778 = vector.extract_strided_slice %762 {offsets = [0, 64], sizes = [6, 64], strides = [1, 1]} : vector<6x192xf32> to vector<6x64xf32>
    %779 = arith.addf %777, %778 : vector<6x64xf32>
    %c5_427 = arith.constant 5 : index
    %c0_428 = arith.constant 0 : index
    %c0_429 = arith.constant 0 : index
    %780 = vector.load %arg10[%c5_427, %c0_428, %c0_429] : memref<9x1x64xf32, #tpu.memory_space<vmem>>, vector<1x1x64xf32>
    %781 = vector.shape_cast %780 : vector<1x1x64xf32> to vector<1x64xf32>
    %782 = vector.broadcast %781 : vector<1x64xf32> to vector<6x64xf32>
    %783 = arith.addf %779, %782 : vector<6x64xf32>
    %cst_430 = arith.constant 5.000000e-01 : f32
    %784 = vector.broadcast %cst_430 : f32 to vector<6x64xf32>
    %785 = arith.mulf %784, %783 : vector<6x64xf32>
    %786 = math.tanh %785 : vector<6x64xf32>
    %cst_431 = arith.constant 1.000000e+00 : f32
    %787 = vector.broadcast %cst_431 : f32 to vector<6x64xf32>
    %788 = arith.addf %786, %787 : vector<6x64xf32>
    %cst_432 = arith.constant 5.000000e-01 : f32
    %789 = vector.broadcast %cst_432 : f32 to vector<6x64xf32>
    %790 = arith.mulf %789, %788 : vector<6x64xf32>
    %791 = vector.extract_strided_slice %759 {offsets = [0, 128], sizes = [6, 64], strides = [1, 1]} : vector<6x192xf32> to vector<6x64xf32>
    %c6_433 = arith.constant 6 : index
    %c0_434 = arith.constant 0 : index
    %c0_435 = arith.constant 0 : index
    %792 = vector.load %arg10[%c6_433, %c0_434, %c0_435] : memref<9x1x64xf32, #tpu.memory_space<vmem>>, vector<1x1x64xf32>
    %793 = vector.shape_cast %792 : vector<1x1x64xf32> to vector<1x64xf32>
    %794 = vector.broadcast %793 : vector<1x64xf32> to vector<6x64xf32>
    %795 = arith.addf %791, %794 : vector<6x64xf32>
    %796 = vector.extract_strided_slice %762 {offsets = [0, 128], sizes = [6, 64], strides = [1, 1]} : vector<6x192xf32> to vector<6x64xf32>
    %c7_436 = arith.constant 7 : index
    %c0_437 = arith.constant 0 : index
    %c0_438 = arith.constant 0 : index
    %797 = vector.load %arg10[%c7_436, %c0_437, %c0_438] : memref<9x1x64xf32, #tpu.memory_space<vmem>>, vector<1x1x64xf32>
    %798 = vector.shape_cast %797 : vector<1x1x64xf32> to vector<1x64xf32>
    %799 = vector.broadcast %798 : vector<1x64xf32> to vector<6x64xf32>
    %800 = arith.addf %796, %799 : vector<6x64xf32>
    %801 = arith.mulf %776, %800 : vector<6x64xf32>
    %802 = arith.addf %795, %801 : vector<6x64xf32>
    %803 = math.tanh %802 : vector<6x64xf32>
    %cst_439 = arith.constant 1.000000e+00 : f32
    %804 = vector.broadcast %cst_439 : f32 to vector<6x64xf32>
    %805 = arith.subf %804, %790 : vector<6x64xf32>
    %806 = arith.mulf %805, %803 : vector<6x64xf32>
    %807 = arith.mulf %790, %700 : vector<6x64xf32>
    %808 = arith.addf %806, %807 : vector<6x64xf32>
    %c2_440 = arith.constant 2 : index
    %c0_441 = arith.constant 0 : index
    %c0_442 = arith.constant 0 : index
    %809 = vector.load %arg10[%c2_440, %c0_441, %c0_442] : memref<9x1x64xf32, #tpu.memory_space<vmem>>, vector<1x1x64xf32>
    %810 = vector.shape_cast %809 : vector<1x1x64xf32> to vector<1x64xf32>
    %c3_443 = arith.constant 3 : index
    %c0_444 = arith.constant 0 : index
    %c0_445 = arith.constant 0 : index
    %811 = vector.load %arg10[%c3_443, %c0_444, %c0_445] : memref<9x1x64xf32, #tpu.memory_space<vmem>>, vector<1x1x64xf32>
    %812 = vector.shape_cast %811 : vector<1x1x64xf32> to vector<1x64xf32>
    %cst_446 = arith.constant dense<0.000000e+00> : vector<6xf32>
    %813 = vector.multi_reduction <add>, %808, %cst_446 [1] : vector<6x64xf32> to vector<6xf32>
    %814 = vector.shape_cast %813 : vector<6xf32> to vector<6x1xf32>
    %cst_447 = arith.constant 6.400000e+01 : f32
    %815 = vector.broadcast %cst_447 : f32 to vector<6x1xf32>
    %816 = arith.divf %814, %815 : vector<6x1xf32>
    %817 = vector.broadcast %816 : vector<6x1xf32> to vector<6x64xf32>
    %818 = arith.subf %808, %817 : vector<6x64xf32>
    %819 = vector.broadcast %816 : vector<6x1xf32> to vector<6x64xf32>
    %820 = arith.subf %808, %819 : vector<6x64xf32>
    %821 = arith.mulf %818, %820 : vector<6x64xf32>
    %cst_448 = arith.constant dense<0.000000e+00> : vector<6xf32>
    %822 = vector.multi_reduction <add>, %821, %cst_448 [1] : vector<6x64xf32> to vector<6xf32>
    %823 = vector.shape_cast %822 : vector<6xf32> to vector<6x1xf32>
    %cst_449 = arith.constant 6.400000e+01 : f32
    %824 = vector.broadcast %cst_449 : f32 to vector<6x1xf32>
    %825 = arith.divf %823, %824 : vector<6x1xf32>
    %826 = vector.broadcast %816 : vector<6x1xf32> to vector<6x64xf32>
    %827 = arith.subf %808, %826 : vector<6x64xf32>
    %cst_450 = arith.constant 9.99999974E-6 : f32
    %828 = vector.broadcast %cst_450 : f32 to vector<6x1xf32>
    %829 = arith.addf %825, %828 : vector<6x1xf32>
    %830 = math.rsqrt %829 : vector<6x1xf32>
    %831 = vector.broadcast %830 : vector<6x1xf32> to vector<6x64xf32>
    %832 = arith.mulf %827, %831 : vector<6x64xf32>
    %833 = vector.broadcast %810 : vector<1x64xf32> to vector<6x64xf32>
    %834 = arith.mulf %832, %833 : vector<6x64xf32>
    %835 = vector.broadcast %812 : vector<1x64xf32> to vector<6x64xf32>
    %836 = arith.addf %834, %835 : vector<6x64xf32>
    %c0_451 = arith.constant 0 : index
    %c0_452 = arith.constant 0 : index
    %837 = vector.load %arg18[%c0_451, %c0_452] : memref<64x128xbf16, #tpu.memory_space<vmem>>, vector<64x128xbf16>
    %838 = arith.truncf %836 : vector<6x64xf32> to vector<6x64xbf16>
    %cst_453 = arith.constant dense<0.000000e+00> : vector<6x128xf32>
    %839 = tpu.matmul %838, %837, %cst_453 {dimension_numbers = #tpu.dot_dimension_numbers<[1], [0], [0], [1], [0, 0, 1, 1], [], []>} : vector<6x64xbf16>, vector<64x128xbf16>, vector<6x128xf32> -> vector<6x128xf32>
    %c0_454 = arith.constant 0 : index
    %c0_455 = arith.constant 0 : index
    %840 = vector.load %arg11[%c0_454, %c0_455] : memref<1x128xf32, #tpu.memory_space<vmem>>, vector<1x128xf32>
    %841 = vector.broadcast %840 : vector<1x128xf32> to vector<6x128xf32>
    %842 = arith.addf %839, %841 : vector<6x128xf32>
    %cst_456 = arith.constant 0.000000e+00 : f32
    %843 = vector.broadcast %cst_456 : f32 to vector<6x128xf32>
    %844 = arith.maximumf %842, %843 : vector<6x128xf32>
    %c0_457 = arith.constant 0 : index
    %c0_458 = arith.constant 0 : index
    %845 = vector.load %arg19[%c0_457, %c0_458] : memref<128x64xbf16, #tpu.memory_space<vmem>>, vector<128x64xbf16>
    %846 = arith.truncf %844 : vector<6x128xf32> to vector<6x128xbf16>
    %cst_459 = arith.constant dense<0.000000e+00> : vector<6x64xf32>
    %847 = tpu.matmul %846, %845, %cst_459 {dimension_numbers = #tpu.dot_dimension_numbers<[1], [0], [0], [1], [0, 0, 1, 1], [], []>} : vector<6x128xbf16>, vector<128x64xbf16>, vector<6x64xf32> -> vector<6x64xf32>
    %848 = arith.addf %808, %847 : vector<6x64xf32>
    %c8_460 = arith.constant 8 : index
    %c0_461 = arith.constant 0 : index
    %c0_462 = arith.constant 0 : index
    %849 = vector.load %arg10[%c8_460, %c0_461, %c0_462] : memref<9x1x64xf32, #tpu.memory_space<vmem>>, vector<1x1x64xf32>
    %850 = vector.shape_cast %849 : vector<1x1x64xf32> to vector<1x64xf32>
    %851 = vector.broadcast %850 : vector<1x64xf32> to vector<6x64xf32>
    %852 = arith.addf %848, %851 : vector<6x64xf32>
    %c0_463 = arith.constant 0 : index
    %c0_464 = arith.constant 0 : index
    %c0_465 = arith.constant 0 : index
    %853 = vector.load %arg10[%c0_463, %c0_464, %c0_465] : memref<9x1x64xf32, #tpu.memory_space<vmem>>, vector<1x1x64xf32>
    %854 = vector.shape_cast %853 : vector<1x1x64xf32> to vector<1x64xf32>
    %c1_466 = arith.constant 1 : index
    %c0_467 = arith.constant 0 : index
    %c0_468 = arith.constant 0 : index
    %855 = vector.load %arg10[%c1_466, %c0_467, %c0_468] : memref<9x1x64xf32, #tpu.memory_space<vmem>>, vector<1x1x64xf32>
    %856 = vector.shape_cast %855 : vector<1x1x64xf32> to vector<1x64xf32>
    %cst_469 = arith.constant dense<0.000000e+00> : vector<6xf32>
    %857 = vector.multi_reduction <add>, %852, %cst_469 [1] : vector<6x64xf32> to vector<6xf32>
    %858 = vector.shape_cast %857 : vector<6xf32> to vector<6x1xf32>
    %cst_470 = arith.constant 6.400000e+01 : f32
    %859 = vector.broadcast %cst_470 : f32 to vector<6x1xf32>
    %860 = arith.divf %858, %859 : vector<6x1xf32>
    %861 = vector.broadcast %860 : vector<6x1xf32> to vector<6x64xf32>
    %862 = arith.subf %852, %861 : vector<6x64xf32>
    %863 = vector.broadcast %860 : vector<6x1xf32> to vector<6x64xf32>
    %864 = arith.subf %852, %863 : vector<6x64xf32>
    %865 = arith.mulf %862, %864 : vector<6x64xf32>
    %cst_471 = arith.constant dense<0.000000e+00> : vector<6xf32>
    %866 = vector.multi_reduction <add>, %865, %cst_471 [1] : vector<6x64xf32> to vector<6xf32>
    %867 = vector.shape_cast %866 : vector<6xf32> to vector<6x1xf32>
    %cst_472 = arith.constant 6.400000e+01 : f32
    %868 = vector.broadcast %cst_472 : f32 to vector<6x1xf32>
    %869 = arith.divf %867, %868 : vector<6x1xf32>
    %870 = vector.broadcast %860 : vector<6x1xf32> to vector<6x64xf32>
    %871 = arith.subf %852, %870 : vector<6x64xf32>
    %cst_473 = arith.constant 9.99999974E-6 : f32
    %872 = vector.broadcast %cst_473 : f32 to vector<6x1xf32>
    %873 = arith.addf %869, %872 : vector<6x1xf32>
    %874 = math.rsqrt %873 : vector<6x1xf32>
    %875 = vector.broadcast %874 : vector<6x1xf32> to vector<6x64xf32>
    %876 = arith.mulf %871, %875 : vector<6x64xf32>
    %877 = vector.broadcast %854 : vector<1x64xf32> to vector<6x64xf32>
    %878 = arith.mulf %876, %877 : vector<6x64xf32>
    %879 = vector.broadcast %856 : vector<1x64xf32> to vector<6x64xf32>
    %880 = arith.addf %878, %879 : vector<6x64xf32>
    %c0_474 = arith.constant 0 : index
    %c0_475 = arith.constant 0 : index
    %881 = vector.load %arg14[%c0_474, %c0_475] : memref<64x64xbf16, #tpu.memory_space<vmem>>, vector<64x64xbf16>
    %882 = arith.truncf %880 : vector<6x64xf32> to vector<6x64xbf16>
    %cst_476 = arith.constant dense<0.000000e+00> : vector<6x64xf32>
    %883 = tpu.matmul %882, %881, %cst_476 {dimension_numbers = #tpu.dot_dimension_numbers<[1], [0], [0], [1], [0, 0, 1, 1], [], []>} : vector<6x64xbf16>, vector<64x64xbf16>, vector<6x64xf32> -> vector<6x64xf32>
    %884 = arith.truncf %883 : vector<6x64xf32> to vector<6x64xbf16>
    %885 = arith.truncf %545 : vector<64x64xf32> to vector<64x64xbf16>
    %cst_477 = arith.constant dense<0.000000e+00> : vector<6x64xf32>
    %886 = tpu.matmul %884, %885, %cst_477 {dimension_numbers = #tpu.dot_dimension_numbers<[1], [0], [0], [1], [0, 0, 1, 1], [], []>} : vector<6x64xbf16>, vector<64x64xbf16>, vector<6x64xf32> -> vector<6x64xf32>
    %cst_478 = arith.constant 1.250000e-01 : f32
    %887 = vector.broadcast %cst_478 : f32 to vector<6x64xf32>
    %888 = arith.mulf %886, %887 : vector<6x64xf32>
    %cst_479 = arith.constant dense<0xFF800000> : vector<64xf32>
    %889 = vector.multi_reduction <maximumf>, %888, %cst_479 [0] : vector<6x64xf32> to vector<64xf32>
    %890 = vector.shape_cast %889 : vector<64xf32> to vector<1x64xf32>
    %891 = vector.broadcast %890 : vector<1x64xf32> to vector<6x64xf32>
    %892 = arith.subf %888, %891 : vector<6x64xf32>
    %893 = math.exp %892 : vector<6x64xf32>
    %cst_480 = arith.constant dense<0.000000e+00> : vector<64xf32>
    %894 = vector.multi_reduction <add>, %893, %cst_480 [0] : vector<6x64xf32> to vector<64xf32>
    %895 = vector.shape_cast %894 : vector<64xf32> to vector<1x64xf32>
    %896 = tpu.reciprocal %895 {approx = true} : vector<1x64xf32> -> vector<1x64xf32>
    %897 = vector.broadcast %896 : vector<1x64xf32> to vector<6x64xf32>
    %898 = arith.mulf %893, %897 : vector<6x64xf32>
    %cst_481 = arith.constant 9.99999993E-9 : f32
    %899 = vector.broadcast %cst_481 : f32 to vector<6x64xf32>
    %900 = arith.addf %898, %899 : vector<6x64xf32>
    %cst_482 = arith.constant dense<0.000000e+00> : vector<6xf32>
    %901 = vector.multi_reduction <add>, %900, %cst_482 [1] : vector<6x64xf32> to vector<6xf32>
    %902 = vector.shape_cast %901 : vector<6xf32> to vector<6x1xf32>
    %903 = tpu.reciprocal %902 {approx = true} : vector<6x1xf32> -> vector<6x1xf32>
    %904 = vector.broadcast %903 : vector<6x1xf32> to vector<6x64xf32>
    %905 = arith.mulf %900, %904 : vector<6x64xf32>
    %906 = arith.truncf %905 : vector<6x64xf32> to vector<6x64xbf16>
    %907 = arith.truncf %546 : vector<64x64xf32> to vector<64x64xbf16>
    %cst_483 = arith.constant dense<0.000000e+00> : vector<6x64xf32>
    %908 = tpu.matmul %906, %907, %cst_483 {dimension_numbers = #tpu.dot_dimension_numbers<[1], [1], [0], [0], [0, 0, 1, 0], [], []>} : vector<6x64xbf16>, vector<64x64xbf16>, vector<6x64xf32> -> vector<6x64xf32>
    %c0_484 = arith.constant 0 : index
    %c0_485 = arith.constant 0 : index
    %909 = vector.load %arg16[%c0_484, %c0_485] : memref<64x192xbf16, #tpu.memory_space<vmem>>, vector<64x192xbf16>
    %910 = arith.truncf %908 : vector<6x64xf32> to vector<6x64xbf16>
    %cst_486 = arith.constant dense<0.000000e+00> : vector<6x192xf32>
    %911 = tpu.matmul %910, %909, %cst_486 {dimension_numbers = #tpu.dot_dimension_numbers<[1], [0], [0], [1], [0, 0, 1, 1], [], []>} : vector<6x64xbf16>, vector<64x192xbf16>, vector<6x192xf32> -> vector<6x192xf32>
    %c0_487 = arith.constant 0 : index
    %c0_488 = arith.constant 0 : index
    %912 = vector.load %arg17[%c0_487, %c0_488] : memref<64x192xbf16, #tpu.memory_space<vmem>>, vector<64x192xbf16>
    %913 = arith.truncf %852 : vector<6x64xf32> to vector<6x64xbf16>
    %cst_489 = arith.constant dense<0.000000e+00> : vector<6x192xf32>
    %914 = tpu.matmul %913, %912, %cst_489 {dimension_numbers = #tpu.dot_dimension_numbers<[1], [0], [0], [1], [0, 0, 1, 1], [], []>} : vector<6x64xbf16>, vector<64x192xbf16>, vector<6x192xf32> -> vector<6x192xf32>
    %915 = vector.extract_strided_slice %911 {offsets = [0, 0], sizes = [6, 64], strides = [1, 1]} : vector<6x192xf32> to vector<6x64xf32>
    %916 = vector.extract_strided_slice %914 {offsets = [0, 0], sizes = [6, 64], strides = [1, 1]} : vector<6x192xf32> to vector<6x64xf32>
    %917 = arith.addf %915, %916 : vector<6x64xf32>
    %c4_490 = arith.constant 4 : index
    %c0_491 = arith.constant 0 : index
    %c0_492 = arith.constant 0 : index
    %918 = vector.load %arg10[%c4_490, %c0_491, %c0_492] : memref<9x1x64xf32, #tpu.memory_space<vmem>>, vector<1x1x64xf32>
    %919 = vector.shape_cast %918 : vector<1x1x64xf32> to vector<1x64xf32>
    %920 = vector.broadcast %919 : vector<1x64xf32> to vector<6x64xf32>
    %921 = arith.addf %917, %920 : vector<6x64xf32>
    %cst_493 = arith.constant 5.000000e-01 : f32
    %922 = vector.broadcast %cst_493 : f32 to vector<6x64xf32>
    %923 = arith.mulf %922, %921 : vector<6x64xf32>
    %924 = math.tanh %923 : vector<6x64xf32>
    %cst_494 = arith.constant 1.000000e+00 : f32
    %925 = vector.broadcast %cst_494 : f32 to vector<6x64xf32>
    %926 = arith.addf %924, %925 : vector<6x64xf32>
    %cst_495 = arith.constant 5.000000e-01 : f32
    %927 = vector.broadcast %cst_495 : f32 to vector<6x64xf32>
    %928 = arith.mulf %927, %926 : vector<6x64xf32>
    %929 = vector.extract_strided_slice %911 {offsets = [0, 64], sizes = [6, 64], strides = [1, 1]} : vector<6x192xf32> to vector<6x64xf32>
    %930 = vector.extract_strided_slice %914 {offsets = [0, 64], sizes = [6, 64], strides = [1, 1]} : vector<6x192xf32> to vector<6x64xf32>
    %931 = arith.addf %929, %930 : vector<6x64xf32>
    %c5_496 = arith.constant 5 : index
    %c0_497 = arith.constant 0 : index
    %c0_498 = arith.constant 0 : index
    %932 = vector.load %arg10[%c5_496, %c0_497, %c0_498] : memref<9x1x64xf32, #tpu.memory_space<vmem>>, vector<1x1x64xf32>
    %933 = vector.shape_cast %932 : vector<1x1x64xf32> to vector<1x64xf32>
    %934 = vector.broadcast %933 : vector<1x64xf32> to vector<6x64xf32>
    %935 = arith.addf %931, %934 : vector<6x64xf32>
    %cst_499 = arith.constant 5.000000e-01 : f32
    %936 = vector.broadcast %cst_499 : f32 to vector<6x64xf32>
    %937 = arith.mulf %936, %935 : vector<6x64xf32>
    %938 = math.tanh %937 : vector<6x64xf32>
    %cst_500 = arith.constant 1.000000e+00 : f32
    %939 = vector.broadcast %cst_500 : f32 to vector<6x64xf32>
    %940 = arith.addf %938, %939 : vector<6x64xf32>
    %cst_501 = arith.constant 5.000000e-01 : f32
    %941 = vector.broadcast %cst_501 : f32 to vector<6x64xf32>
    %942 = arith.mulf %941, %940 : vector<6x64xf32>
    %943 = vector.extract_strided_slice %911 {offsets = [0, 128], sizes = [6, 64], strides = [1, 1]} : vector<6x192xf32> to vector<6x64xf32>
    %c6_502 = arith.constant 6 : index
    %c0_503 = arith.constant 0 : index
    %c0_504 = arith.constant 0 : index
    %944 = vector.load %arg10[%c6_502, %c0_503, %c0_504] : memref<9x1x64xf32, #tpu.memory_space<vmem>>, vector<1x1x64xf32>
    %945 = vector.shape_cast %944 : vector<1x1x64xf32> to vector<1x64xf32>
    %946 = vector.broadcast %945 : vector<1x64xf32> to vector<6x64xf32>
    %947 = arith.addf %943, %946 : vector<6x64xf32>
    %948 = vector.extract_strided_slice %914 {offsets = [0, 128], sizes = [6, 64], strides = [1, 1]} : vector<6x192xf32> to vector<6x64xf32>
    %c7_505 = arith.constant 7 : index
    %c0_506 = arith.constant 0 : index
    %c0_507 = arith.constant 0 : index
    %949 = vector.load %arg10[%c7_505, %c0_506, %c0_507] : memref<9x1x64xf32, #tpu.memory_space<vmem>>, vector<1x1x64xf32>
    %950 = vector.shape_cast %949 : vector<1x1x64xf32> to vector<1x64xf32>
    %951 = vector.broadcast %950 : vector<1x64xf32> to vector<6x64xf32>
    %952 = arith.addf %948, %951 : vector<6x64xf32>
    %953 = arith.mulf %928, %952 : vector<6x64xf32>
    %954 = arith.addf %947, %953 : vector<6x64xf32>
    %955 = math.tanh %954 : vector<6x64xf32>
    %cst_508 = arith.constant 1.000000e+00 : f32
    %956 = vector.broadcast %cst_508 : f32 to vector<6x64xf32>
    %957 = arith.subf %956, %942 : vector<6x64xf32>
    %958 = arith.mulf %957, %955 : vector<6x64xf32>
    %959 = arith.mulf %942, %852 : vector<6x64xf32>
    %960 = arith.addf %958, %959 : vector<6x64xf32>
    %c2_509 = arith.constant 2 : index
    %c0_510 = arith.constant 0 : index
    %c0_511 = arith.constant 0 : index
    %961 = vector.load %arg10[%c2_509, %c0_510, %c0_511] : memref<9x1x64xf32, #tpu.memory_space<vmem>>, vector<1x1x64xf32>
    %962 = vector.shape_cast %961 : vector<1x1x64xf32> to vector<1x64xf32>
    %c3_512 = arith.constant 3 : index
    %c0_513 = arith.constant 0 : index
    %c0_514 = arith.constant 0 : index
    %963 = vector.load %arg10[%c3_512, %c0_513, %c0_514] : memref<9x1x64xf32, #tpu.memory_space<vmem>>, vector<1x1x64xf32>
    %964 = vector.shape_cast %963 : vector<1x1x64xf32> to vector<1x64xf32>
    %cst_515 = arith.constant dense<0.000000e+00> : vector<6xf32>
    %965 = vector.multi_reduction <add>, %960, %cst_515 [1] : vector<6x64xf32> to vector<6xf32>
    %966 = vector.shape_cast %965 : vector<6xf32> to vector<6x1xf32>
    %cst_516 = arith.constant 6.400000e+01 : f32
    %967 = vector.broadcast %cst_516 : f32 to vector<6x1xf32>
    %968 = arith.divf %966, %967 : vector<6x1xf32>
    %969 = vector.broadcast %968 : vector<6x1xf32> to vector<6x64xf32>
    %970 = arith.subf %960, %969 : vector<6x64xf32>
    %971 = vector.broadcast %968 : vector<6x1xf32> to vector<6x64xf32>
    %972 = arith.subf %960, %971 : vector<6x64xf32>
    %973 = arith.mulf %970, %972 : vector<6x64xf32>
    %cst_517 = arith.constant dense<0.000000e+00> : vector<6xf32>
    %974 = vector.multi_reduction <add>, %973, %cst_517 [1] : vector<6x64xf32> to vector<6xf32>
    %975 = vector.shape_cast %974 : vector<6xf32> to vector<6x1xf32>
    %cst_518 = arith.constant 6.400000e+01 : f32
    %976 = vector.broadcast %cst_518 : f32 to vector<6x1xf32>
    %977 = arith.divf %975, %976 : vector<6x1xf32>
    %978 = vector.broadcast %968 : vector<6x1xf32> to vector<6x64xf32>
    %979 = arith.subf %960, %978 : vector<6x64xf32>
    %cst_519 = arith.constant 9.99999974E-6 : f32
    %980 = vector.broadcast %cst_519 : f32 to vector<6x1xf32>
    %981 = arith.addf %977, %980 : vector<6x1xf32>
    %982 = math.rsqrt %981 : vector<6x1xf32>
    %983 = vector.broadcast %982 : vector<6x1xf32> to vector<6x64xf32>
    %984 = arith.mulf %979, %983 : vector<6x64xf32>
    %985 = vector.broadcast %962 : vector<1x64xf32> to vector<6x64xf32>
    %986 = arith.mulf %984, %985 : vector<6x64xf32>
    %987 = vector.broadcast %964 : vector<1x64xf32> to vector<6x64xf32>
    %988 = arith.addf %986, %987 : vector<6x64xf32>
    %c0_520 = arith.constant 0 : index
    %c0_521 = arith.constant 0 : index
    %989 = vector.load %arg18[%c0_520, %c0_521] : memref<64x128xbf16, #tpu.memory_space<vmem>>, vector<64x128xbf16>
    %990 = arith.truncf %988 : vector<6x64xf32> to vector<6x64xbf16>
    %cst_522 = arith.constant dense<0.000000e+00> : vector<6x128xf32>
    %991 = tpu.matmul %990, %989, %cst_522 {dimension_numbers = #tpu.dot_dimension_numbers<[1], [0], [0], [1], [0, 0, 1, 1], [], []>} : vector<6x64xbf16>, vector<64x128xbf16>, vector<6x128xf32> -> vector<6x128xf32>
    %c0_523 = arith.constant 0 : index
    %c0_524 = arith.constant 0 : index
    %992 = vector.load %arg11[%c0_523, %c0_524] : memref<1x128xf32, #tpu.memory_space<vmem>>, vector<1x128xf32>
    %993 = vector.broadcast %992 : vector<1x128xf32> to vector<6x128xf32>
    %994 = arith.addf %991, %993 : vector<6x128xf32>
    %cst_525 = arith.constant 0.000000e+00 : f32
    %995 = vector.broadcast %cst_525 : f32 to vector<6x128xf32>
    %996 = arith.maximumf %994, %995 : vector<6x128xf32>
    %c0_526 = arith.constant 0 : index
    %c0_527 = arith.constant 0 : index
    %997 = vector.load %arg19[%c0_526, %c0_527] : memref<128x64xbf16, #tpu.memory_space<vmem>>, vector<128x64xbf16>
    %998 = arith.truncf %996 : vector<6x128xf32> to vector<6x128xbf16>
    %cst_528 = arith.constant dense<0.000000e+00> : vector<6x64xf32>
    %999 = tpu.matmul %998, %997, %cst_528 {dimension_numbers = #tpu.dot_dimension_numbers<[1], [0], [0], [1], [0, 0, 1, 1], [], []>} : vector<6x128xbf16>, vector<128x64xbf16>, vector<6x64xf32> -> vector<6x64xf32>
    %1000 = arith.addf %960, %999 : vector<6x64xf32>
    %c8_529 = arith.constant 8 : index
    %c0_530 = arith.constant 0 : index
    %c0_531 = arith.constant 0 : index
    %1001 = vector.load %arg10[%c8_529, %c0_530, %c0_531] : memref<9x1x64xf32, #tpu.memory_space<vmem>>, vector<1x1x64xf32>
    %1002 = vector.shape_cast %1001 : vector<1x1x64xf32> to vector<1x64xf32>
    %1003 = vector.broadcast %1002 : vector<1x64xf32> to vector<6x64xf32>
    %1004 = arith.addf %1000, %1003 : vector<6x64xf32>
    %c0_532 = arith.constant 0 : index
    %c0_533 = arith.constant 0 : index
    %c0_534 = arith.constant 0 : index
    %c0_535 = arith.constant 0 : index
    %1005 = vector.load %arg20[%c0_532, %c0_533, %c0_534, %c0_535] : memref<1x1x6x64xf32, #tpu.memory_space<vmem>>, vector<1x1x6x64xf32>
    %1006 = vector.shape_cast %1005 : vector<1x1x6x64xf32> to vector<6x64xf32>
    %1007 = vector.shape_cast %1004 : vector<6x64xf32> to vector<1x1x6x64xf32>
    tpu.vector_store %arg20[%c0_532, %c0_533, %c0_534, %c0_535], %1007 {strides = array<i32>} : memref<1x1x6x64xf32, #tpu.memory_space<vmem>>, vector<1x1x6x64xf32>,
    return
  }
  func.func @transform_0(%arg0: i32) -> (i32, i32, i32) {
    %c0_i32 = arith.constant 0 : i32
    %c0_i32_0 = arith.constant 0 : i32
    %c0_i32_1 = arith.constant 0 : i32
    return %arg0, %c0_i32, %c0_i32_0 : i32, i32, i32
  }
  func.func @transform_1(%arg0: i32) -> (i32, i32, i32, i32) {
    %c0_i32 = arith.constant 0 : i32
    %c0_i32_0 = arith.constant 0 : i32
    %c0_i32_1 = arith.constant 0 : i32
    %c0_i32_2 = arith.constant 0 : i32
    return %arg0, %c0_i32, %c0_i32_0, %c0_i32_1 : i32, i32, i32, i32
  }
  func.func @transform_2(%arg0: i32) -> (i32, i32, i32) {
    %c0_i32 = arith.constant 0 : i32
    %c0_i32_0 = arith.constant 0 : i32
    %c0_i32_1 = arith.constant 0 : i32
    %c0_i32_2 = arith.constant 0 : i32
    return %c0_i32, %c0_i32_0, %c0_i32_1 : i32, i32, i32
  }
  func.func @transform_3(%arg0: i32) -> (i32, i32) {
    %c0_i32 = arith.constant 0 : i32
    %c0_i32_0 = arith.constant 0 : i32
    %c0_i32_1 = arith.constant 0 : i32
    return %c0_i32, %c0_i32_0 : i32, i32
  }
  func.func @transform_4(%arg0: i32) -> (i32, i32, i32) {
    %c0_i32 = arith.constant 0 : i32
    %c0_i32_0 = arith.constant 0 : i32
    %c0_i32_1 = arith.constant 0 : i32
    %c0_i32_2 = arith.constant 0 : i32
    return %c0_i32, %c0_i32_0, %c0_i32_1 : i32, i32, i32
  }
  func.func @transform_5(%arg0: i32) -> (i32, i32, i32) {
    %c0_i32 = arith.constant 0 : i32
    %c0_i32_0 = arith.constant 0 : i32
    %c0_i32_1 = arith.constant 0 : i32
    %c0_i32_2 = arith.constant 0 : i32
    return %c0_i32, %c0_i32_0, %c0_i32_1 : i32, i32, i32
  }
  func.func @transform_6(%arg0: i32) -> (i32, i32, i32) {
    %c0_i32 = arith.constant 0 : i32
    %c0_i32_0 = arith.constant 0 : i32
    %c0_i32_1 = arith.constant 0 : i32
    %c0_i32_2 = arith.constant 0 : i32
    return %c0_i32, %c0_i32_0, %c0_i32_1 : i32, i32, i32
  }
  func.func @transform_7(%arg0: i32) -> (i32, i32) {
    %c0_i32 = arith.constant 0 : i32
    %c0_i32_0 = arith.constant 0 : i32
    %c0_i32_1 = arith.constant 0 : i32
    return %c0_i32, %c0_i32_0 : i32, i32
  }
  func.func @transform_8(%arg0: i32) -> (i32, i32) {
    %c0_i32 = arith.constant 0 : i32
    %c0_i32_0 = arith.constant 0 : i32
    %c0_i32_1 = arith.constant 0 : i32
    return %c0_i32, %c0_i32_0 : i32, i32
  }
  func.func @transform_9(%arg0: i32) -> (i32, i32, i32) {
    %c0_i32 = arith.constant 0 : i32
    %c0_i32_0 = arith.constant 0 : i32
    %c0_i32_1 = arith.constant 0 : i32
    %c0_i32_2 = arith.constant 0 : i32
    return %c0_i32, %c0_i32_0, %c0_i32_1 : i32, i32, i32
  }
  func.func @transform_10(%arg0: i32) -> (i32, i32) {
    %c0_i32 = arith.constant 0 : i32
    %c0_i32_0 = arith.constant 0 : i32
    %c0_i32_1 = arith.constant 0 : i32
    return %c0_i32, %c0_i32_0 : i32, i32
  }
  func.func @transform_11(%arg0: i32) -> (i32, i32) {
    %c0_i32 = arith.constant 0 : i32
    %c0_i32_0 = arith.constant 0 : i32
    %c0_i32_1 = arith.constant 0 : i32
    return %c0_i32, %c0_i32_0 : i32, i32
  }
  func.func @transform_12(%arg0: i32) -> (i32, i32) {
    %c0_i32 = arith.constant 0 : i32
    %c0_i32_0 = arith.constant 0 : i32
    %c0_i32_1 = arith.constant 0 : i32
    return %c0_i32, %c0_i32_0 : i32, i32
  }
  func.func @transform_13(%arg0: i32) -> (i32, i32) {
    %c0_i32 = arith.constant 0 : i32
    %c0_i32_0 = arith.constant 0 : i32
    %c0_i32_1 = arith.constant 0 : i32
    return %c0_i32, %c0_i32_0 : i32, i32
  }
  func.func @transform_14(%arg0: i32) -> (i32, i32) {
    %c0_i32 = arith.constant 0 : i32
    %c0_i32_0 = arith.constant 0 : i32
    %c0_i32_1 = arith.constant 0 : i32
    return %c0_i32, %c0_i32_0 : i32, i32
  }
  func.func @transform_15(%arg0: i32) -> (i32, i32) {
    %c0_i32 = arith.constant 0 : i32
    %c0_i32_0 = arith.constant 0 : i32
    %c0_i32_1 = arith.constant 0 : i32
    return %c0_i32, %c0_i32_0 : i32, i32
  }
  func.func @transform_16(%arg0: i32) -> (i32, i32) {
    %c0_i32 = arith.constant 0 : i32
    %c0_i32_0 = arith.constant 0 : i32
    %c0_i32_1 = arith.constant 0 : i32
    return %c0_i32, %c0_i32_0 : i32, i32
  }
  func.func @transform_17(%arg0: i32) -> (i32, i32) {
    %c0_i32 = arith.constant 0 : i32
    %c0_i32_0 = arith.constant 0 : i32
    %c0_i32_1 = arith.constant 0 : i32
    return %c0_i32, %c0_i32_0 : i32, i32
  }
  func.func @transform_18(%arg0: i32) -> (i32, i32) {
    %c0_i32 = arith.constant 0 : i32
    %c0_i32_0 = arith.constant 0 : i32
    %c0_i32_1 = arith.constant 0 : i32
    return %c0_i32, %c0_i32_0 : i32, i32
  }
  func.func @transform_19(%arg0: i32) -> (i32, i32, i32, i32) {
    %c0_i32 = arith.constant 0 : i32
    %c0_i32_0 = arith.constant 0 : i32
    %c0_i32_1 = arith.constant 0 : i32
    %c0_i32_2 = arith.constant 0 : i32
    return %arg0, %c0_i32, %c0_i32_0, %c0_i32_1 : i32, i32, i32, i32
  }
}

</mosaic_0001>

<bundles_post_ra>
// kernel: tile.1
= control target key start
LH: loop header
LB: loop body
LE: loop exit
PB: predicated region body
PF: predicated region fallthrough
CT: control target
= control target key end

     0   :  { %s488_s0 = inlined_call_operand.vmem [shape: f32[18,256], index: 0, kind: input, shape index: {}]   ;;  %s489_s1 = inlined_call_operand.vmem [shape: f32[18,1,256], index: 1, kind: output, shape index: {}]  }
   0x1   :  { %v4_v0 = vld [vmem:[%s488_s0] ss:$0 sm:$0xff]  ;;  %v192_v1 = vld [vmem:[%s488_s0 + $0x1] ss:$0 sm:$0xff]  ;;  %v194_v2 = vld [vmem:[%s488_s0 + $0x2] ss:$0 sm:$0xff] }
   0x2   :  { %5 = vst [vmem:[%s489_s1] sm:$0x1] %v4_v0  ;;  %v196_v3 = vld [vmem:[%s488_s0 + $0x3] ss:$0 sm:$0xff]  ;;  %v198_v4 = vld [vmem:[%s488_s0 + $0x4] ss:$0 sm:$0xff] }
   0x3   :  { %193 = vst [vmem:[%s489_s1 + $0x2] sm:$0x1] %v192_v1  ;;  %v200_v5 = vld [vmem:[%s488_s0 + $0x5] ss:$0 sm:$0xff]  ;;  %v202_v6 = vld [vmem:[%s488_s0 + $0x6] ss:$0 sm:$0xff] }
   0x4   :  { %195 = vst [vmem:[%s489_s1 + $0x4] sm:$0x1] %v194_v2  ;;  %v204_v7 = vld [vmem:[%s488_s0 + $0x7] ss:$0 sm:$0xff]  ;;  %v206_v8 = vld [vmem:[%s488_s0 + $0x10] ss:$0 sm:$0xff] }
   0x5   :  { %197 = vst [vmem:[%s489_s1 + $0x6] sm:$0x1] %v196_v3  ;;  %v208_v9 = vld [vmem:[%s488_s0 + $0x11] ss:$0 sm:$0xff]  ;;  %v210_v10 = vld [vmem:[%s488_s0 + $0x12] ss:$0 sm:$0xff] }
   0x6   :  { %199 = vst [vmem:[%s489_s1 + $0x8] sm:$0x1] %v198_v4  ;;  %v212_v11 = vld [vmem:[%s488_s0 + $0x13] ss:$0 sm:$0xff]  ;;  %v214_v12 = vld [vmem:[%s488_s0 + $0x14] ss:$0 sm:$0xff] }
   0x7   :  { %201 = vst [vmem:[%s489_s1 + $0xa] sm:$0x1] %v200_v5  ;;  %v216_v13 = vld [vmem:[%s488_s0 + $0x15] ss:$0 sm:$0xff]  ;;  %v218_v14 = vld [vmem:[%s488_s0 + $0x16] ss:$0 sm:$0xff] }
   0x8   :  { %203 = vst [vmem:[%s489_s1 + $0xc] sm:$0x1] %v202_v6  ;;  %v220_v15 = vld [vmem:[%s488_s0 + $0x17] ss:$0 sm:$0xff]  ;;  %v222_v16 = vld [vmem:[%s488_s0 + $0x20] ss:$0 sm:$0xff] }
   0x9   :  { %205 = vst [vmem:[%s489_s1 + $0xe] sm:$0x1] %v204_v7  ;;  %v224_v17 = vld [vmem:[%s488_s0 + $0x21] ss:$0 sm:$0xff]  ;;  %v226_v18 = vld [vmem:[%s488_s0 + $0x8] ss:$0 sm:$0xff] }
   0xa   :  { %207 = vst [vmem:[%s489_s1 + $0x10] sm:$0x1] %v206_v8  ;;  %v228_v19 = vld [vmem:[%s488_s0 + $0x9] ss:$0 sm:$0xff]  ;;  %v230_v20 = vld [vmem:[%s488_s0 + $0xa] ss:$0 sm:$0xff] }
   0xb   :  { %209 = vst [vmem:[%s489_s1 + $0x12] sm:$0x1] %v208_v9  ;;  %v232_v21 = vld [vmem:[%s488_s0 + $0xb] ss:$0 sm:$0xff]  ;;  %v234_v22 = vld [vmem:[%s488_s0 + $0xc] ss:$0 sm:$0xff] }
   0xc   :  { %211 = vst [vmem:[%s489_s1 + $0x14] sm:$0x1] %v210_v10  ;;  %v236_v23 = vld [vmem:[%s488_s0 + $0xd] ss:$0 sm:$0xff]  ;;  %v238_v24 = vld [vmem:[%s488_s0 + $0xe] ss:$0 sm:$0xff] }
   0xd   :  { %213 = vst [vmem:[%s489_s1 + $0x16] sm:$0x1] %v212_v11  ;;  %v240_v25 = vld [vmem:[%s488_s0 + $0xf] ss:$0 sm:$0xff]  ;;  %v242_v26 = vld [vmem:[%s488_s0 + $0x18] ss:$0 sm:$0xff] }
   0xe   :  { %215 = vst [vmem:[%s489_s1 + $0x18] sm:$0x1] %v214_v12  ;;  %v244_v27 = vld [vmem:[%s488_s0 + $0x19] ss:$0 sm:$0xff]  ;;  %v246_v28 = vld [vmem:[%s488_s0 + $0x1a] ss:$0 sm:$0xff] }
   0xf   :  { %217 = vst [vmem:[%s489_s1 + $0x1a] sm:$0x1] %v216_v13  ;;  %v248_v29 = vld [vmem:[%s488_s0 + $0x1b] ss:$0 sm:$0xff]  ;;  %v250_v30 = vld [vmem:[%s488_s0 + $0x1c] ss:$0 sm:$0xff] }
  0x10   :  { %219 = vst [vmem:[%s489_s1 + $0x1c] sm:$0x1] %v218_v14  ;;  %v252_v31 = vld [vmem:[%s488_s0 + $0x1d] ss:$0 sm:$0xff]  ;;  %v254_v32 = vld [vmem:[%s488_s0 + $0x1e] ss:$0 sm:$0xff] }
  0x11   :  { %221 = vst [vmem:[%s489_s1 + $0x1e] sm:$0x1] %v220_v15  ;;  %v256_v33 = vld [vmem:[%s488_s0 + $0x1f] ss:$0 sm:$0xff]  ;;  %v258_v34 = vld [vmem:[%s488_s0 + $0x28] ss:$0 sm:$0xff] }
  0x12   :  { %223 = vst [vmem:[%s489_s1 + $0x20] sm:$0x1] %v222_v16  ;;  %v260_v35 = vld [vmem:[%s488_s0 + $0x29] ss:$0 sm:$0xff] }
  0x13   :  { %225 = vst [vmem:[%s489_s1 + $0x22] sm:$0x1] %v224_v17 }
  0x14   :  { %227 = vst [vmem:[%s489_s1 + $0x1] sm:$0x1] %v226_v18 }
  0x15   :  { %229 = vst [vmem:[%s489_s1 + $0x3] sm:$0x1] %v228_v19 }
  0x16   :  { %231 = vst [vmem:[%s489_s1 + $0x5] sm:$0x1] %v230_v20 }
  0x17   :  { %233 = vst [vmem:[%s489_s1 + $0x7] sm:$0x1] %v232_v21 }
  0x18   :  { %235 = vst [vmem:[%s489_s1 + $0x9] sm:$0x1] %v234_v22 }
  0x19   :  { %237 = vst [vmem:[%s489_s1 + $0xb] sm:$0x1] %v236_v23 }
  0x1a   :  { %239 = vst [vmem:[%s489_s1 + $0xd] sm:$0x1] %v238_v24 }
  0x1b   :  { %241 = vst [vmem:[%s489_s1 + $0xf] sm:$0x1] %v240_v25 }
  0x1c   :  { %243 = vst [vmem:[%s489_s1 + $0x11] sm:$0x1] %v242_v26 }
  0x1d   :  { %245 = vst [vmem:[%s489_s1 + $0x13] sm:$0x1] %v244_v27 }
  0x1e   :  { %247 = vst [vmem:[%s489_s1 + $0x15] sm:$0x1] %v246_v28 }
  0x1f   :  { %249 = vst [vmem:[%s489_s1 + $0x17] sm:$0x1] %v248_v29 }
  0x20   :  { %251 = vst [vmem:[%s489_s1 + $0x19] sm:$0x1] %v250_v30 }
  0x21   :  { %253 = vst [vmem:[%s489_s1 + $0x1b] sm:$0x1] %v252_v31 }
  0x22   :  { %255 = vst [vmem:[%s489_s1 + $0x1d] sm:$0x1] %v254_v32 }
  0x23   :  { %257 = vst [vmem:[%s489_s1 + $0x1f] sm:$0x1] %v256_v33 }
  0x24   :  { %259 = vst [vmem:[%s489_s1 + $0x21] sm:$0x1] %v258_v34 }
  0x25   :  { %261 = vst [vmem:[%s489_s1 + $0x23] sm:$0x1] %v260_v35 }

// kernel: oc_conv_encoder_forward.1
= control target key start
LH: loop header
LB: loop body
LE: loop exit
PB: predicated region body
PF: predicated region fallthrough
CT: control target
= control target key end

     0   :  { %s11731_s0 = inlined_call_operand.vmem [shape: f32[2,8,256], index: 0, kind: input, shape index: {}]   ;;  %s11732_s1 = inlined_call_operand.vmem [shape: f32[2,1,6,64], index: 1, kind: input, shape index: {}]   ;;  %s11733_s2 = inlined_call_operand.vmem [shape: f32[18,1,256], index: 2, kind: input, shape index: {}]   ;;  %s11734_s3 = inlined_call_operand.vmem [shape: bf16[32,72], index: 3, kind: input, shape index: {}]   ;;  %s11735_s4 = inlined_call_operand.vmem [shape: bf16[5,32,288], index: 4, kind: input, shape index: {}]   ;;  %s11736_s5 = inlined_call_operand.vmem [shape: f32[17,32,1], index: 5, kind: input, shape index: {}]   ;;  %s11737_s6 = inlined_call_operand.vmem [shape: f32[3,64,1], index: 6, kind: input, shape index: {}]   ;;  %s11738_s7 = inlined_call_operand.vmem [shape: bf16[256,64], index: 7, kind: input, shape index: {}]   ;;  %s11739_s8 = inlined_call_operand.vmem [shape: f32[32,64], index: 8, kind: input, shape index: {}]   ;;  %s11740_s9 = inlined_call_operand.vmem [shape: f32[9,1,64], index: 9, kind: input, shape index: {}]   ;;  %s11741_s10 = inlined_call_operand.vmem [shape: f32[1,128], index: 10, kind: input, shape index: {}]   ;;  %s11742_s11 = inlined_call_operand.vmem [shape: bf16[32,32], index: 11, kind: input, shape index: {}]   ;;  %s11743_s12 = inlined_call_operand.vmem [shape: bf16[64,32], index: 12, kind: input, shape index: {}]   ;;  %s11744_s13 = inlined_call_operand.vmem [shape: bf16[64,64], index: 13, kind: input, shape index: {}]   ;;  %s11745_s14 = inlined_call_operand.vmem [shape: bf16[128,64], index: 14, kind: input, shape index: {}]   ;;  %s11746_s15 = inlined_call_operand.vmem [shape: bf16[64,192], index: 15, kind: input, shape index: {}]   ;;  %s11747_s16 = inlined_call_operand.vmem [shape: bf16[64,192], index: 16, kind: input, shape index: {}]   ;;  %s11748_s17 = inlined_call_operand.vmem [shape: bf16[64,128], index: 17, kind: input, shape index: {}]   ;;  %s11749_s18 = inlined_call_operand.vmem [shape: bf16[128,64], index: 18, kind: input, shape index: {}]   ;;  %s11750_s19 = inlined_call_operand.vmem [shape: f32[2,1,6,64], index: 19, kind: output, shape index: {}]  }
   0x1   :  { %11894 = sst [smem:[#allocation35_spill]] %s11731_s0  ;;  %s7203_s0 = smov 0  }
   0x2   :  { %11895 = sst [smem:[#allocation36_spill]] %s11732_s1 }
   0x3   :  { %11896 = sst [smem:[#allocation37_spill]] %s11733_s2 }
   0x4   :  { %11897 = sst [smem:[#allocation38_spill]] %s11734_s3 }
   0x5   :  { %11898 = sst [smem:[#allocation39_spill]] %s11741_s10 }
   0x6   :  { %11899 = sst [smem:[#allocation40_spill]] %s11749_s18 }
   0x7   :  { %11900 = sst [smem:[#allocation41_spill]] %s11750_s19 }
   0x8 LB: > { %11901 = sst [smem:[#allocation2_spill]] %s7083_s0  ;;  %s6191_s30 = sadd.s32 4294967295, %s7083_s0   ;;  %s7083_s0 = sphi %s7203_s0, %s29_s0  }
   0x9   : > { %p6195_p0 = scmp.ge.s32.totalorder %s7083_s0, 1  ;;  %p546_p1 = scmp.lt.s32.totalorder %s7083_s0, 3 }
   0xb   : > { %p547_p2 = pnand %p6195_p0, %p546_p1 }
   0xd   : > { %550 = sbr.rel (%p547_p2) target bundleno = 10951 (0x2ac7), region = 96 }
  0x12   : > { %p605_p3 = scmp.lt.s32.totalorder %s6191_s30, 1  ;;  %s11902_s22 = sld [smem:[#allocation35_spill]]  ;;  %v633_v3 = vlaneseq  ;;  %v625_v6 = vld [vmem:[%s11736_s5] sm:$0xff]  ;;  %v7093_v9 = vmov 0   ;;  %v6226_v26 = vld [vmem:[%s11736_s5 + $0x150] sm:$0xff]  ;;  %vm814_vm3 = vcmask 1043456  }
  0x13   : > { %s11761_s23 = smov 113   ;;  %s11753_s24 = smov 111   ;;  %6908 = vset.pattern.permute.xlu0 %v7093_v9  ;;  %6906 = vset.pattern.permute.xlu1 %v7093_v9  ;;  %v627_v53 = vld [vmem:[%s11736_s5 + $0x10] sm:$0xff]  ;;  %v6220_v54 = vld [vmem:[%s11736_s5 + $0xc0] sm:$0xff]  ;;  %vm807_vm9 = vcmask 588800  }
  0x14   : > { %s12115_s30 = smov (!%p605_p3, %s6191_s30), 1  ;;  %s11768_s25 = smov 112   ;;  %v7256_v7 = vand.u32 127, %v633_v3  ;;  %6907 = vset.pattern.permute.xlu2 %v7093_v9 }
  0x15   : > { %s6777_s20 = sshll.u32 %s12115_s30, 4  ;;  %s11757_s3 = smov 127  }
  0x16   : > { %s11763_s26 = smov 15   ;;  %s11766_s27 = smov 1   ;;  %vm739_vm0 = vcmp.lt.s32.totalorder %v7256_v7, 112  ;;  %vm755_vm1 = vcmp.lt.s32.totalorder %v7256_v7, 111  ;;  %vm723_vm2 = vcmp.lt.s32.totalorder %v7256_v7, 113  ;;  %vm707_vm4 = vcmp.lt.s32.totalorder %v7256_v7, 127 }
  0x17   : > { %s11755_s28 = smov 17   ;;  %s11759_s29 = smov 16   ;;  %vm682_vm5 = vcmp.lt.s32.totalorder %v7256_v7, 1  ;;  %vm666_vm6 = vcmp.lt.s32.totalorder %v7256_v7, 15  ;;  %vm635_vm7 = vcmp.lt.s32.totalorder %v7256_v7, 17  ;;  %vm650_vm8 = vcmp.lt.s32.totalorder %v7256_v7, 16 }
  0x18   : > { %s609_s2 = scalar_lea.vmem %s11902_s22, %s6777_s20  ;;  %s11930_s1 = smov 16  }
  0x19   : > { %v7217_v0 = vld [vmem:[%s609_s2] sm:$0xff]  ;;  %v7225_v1 = vld [vmem:[%s609_s2 + $0x8] sm:$0xff]  ;;  %s11903_s2 = sld [smem:[#allocation37_spill]]  ;;  %s11931_s22 = smov 127  }
  0x1a   : > { %719 = vrot.lane.b32.xlu1 %v7217_v0, %s11761_s23  ;;  %751 = vrot.lane.b32.xlu0 %v7217_v0, %s11753_s24  ;;  %s11955_s21 = smov 1   ;;  %s11956_s0 = smov 15  }
  0x1b   : > { %735 = vrot.lane.b32.xlu2 %v7217_v0, %s11768_s25  ;;  %s7096_s10 = smov 95   ;;  %s7097_s19 = smov 126  }
  0x1c   : > { %s7098_s20 = smov 110  }
  0x1f   : > { %v6207_v10 = vld [vmem:[%s11903_s2 + $0x10] sm:$0x3]  ;;  %v6205_v11 = vld [vmem:[%s11903_s2 + $0xc] sm:$0x3]  ;;  %v6206_v12 = vld [vmem:[%s11903_s2 + $0xe] sm:$0x3] }
  0x20   : > { %v7269_v13 = vperm.slane %v6207_v10, 0  ;;  %v7271_v14 = vperm.slane %v6207_v10, 1  ;;  %v7274_v17 = vperm.slane %v6205_v11, 0  ;;  %v7276_v18 = vperm.slane %v6206_v12, 0  ;;  %v6203_v25 = vld [vmem:[%s11903_s2 + $0x8] sm:$0x3] }
  0x21   : > { %v7278_v19 = vperm.slane %v6205_v11, 1  ;;  %v7280_v20 = vperm.slane %v6206_v12, 1  ;;  %v6204_v31 = vld [vmem:[%s11903_s2 + $0xa] sm:$0x3]  ;;  %v7306_v35 = vperm.slane %v6203_v25, 0  ;;  %v7308_v36 = vperm.slane %v6203_v25, 1 }
  0x22   : > { %721 = vrot.lane.b32.xlu1 %v7225_v1, %s11761_s23  ;;  %753 = vrot.lane.b32.xlu0 %v7225_v1, %s11753_s24  ;;  %11904 = vst [vmem:[#allocation3_spill] sm:$0xff] %v7269_v13  ;;  %v7314_v43 = vperm.slane %v6204_v31, 0  ;;  %v7316_v44 = vperm.slane %v6204_v31, 1  ;;  %v6201_v57 = vld [vmem:[%s11903_s2 + $0x4] sm:$0x3]  ;;  %v6225_v10 = vld [vmem:[%s11736_s5 + $0x148] sm:$0xff] }
  0x23   : > { %737 = vrot.lane.b32.xlu2 %v7225_v1, %s11768_s25  ;;  %11905 = vst [vmem:[#allocation4_spill] sm:$0xff] %v7271_v14  ;;  %v701_v47 = vmul.f32 %v7306_v35, %v7217_v0  ;;  %v702_v48 = vmul.f32 %v7308_v36, %v7225_v1  ;;  %v6202_v58 = vld [vmem:[%s11903_s2 + $0x6] sm:$0x3]  ;;  %v7342_v62 = vperm.slane %v6201_v57, 0  ;;  %v638_v25 = vld [vmem:[%s11903_s2] sm:$0x3] }
  0x24   : > { %11906 = vst [vmem:[#allocation5_spill] sm:$0xff] %v7274_v17  ;;  %v7344_v63 = vperm.slane %v6202_v58, 0  ;;  %s11917_s24 = sld [smem:[#allocation38_spill]]  ;;  %s11929_s23 = smov 113  }
  0x25   : > { %11907 = vst [vmem:[#allocation6_spill] sm:$0xff] %v7276_v18 }
  0x26   : > { %11908 = vst [vmem:[#allocation7_spill] sm:$0xff] %v7278_v19 }
  0x27   : > { %11909 = vst [vmem:[#allocation8_spill] sm:$0xff] %v7280_v20 }
  0x28   : > { %11910 = vst [vmem:[#allocation9_spill] sm:$0xff] %v7308_v36 }
  0x29   : > { %11911 = vst [vmem:[#allocation10_spill] sm:$0xff] %v7316_v44 }
  0x2a   : > { %705 = vrot.lane.b32.xlu1 %v7225_v1, %s11757_s3  ;;  %703 = vrot.lane.b32.xlu0 %v7217_v0, %s11757_s3  ;;  %11912 = vst [vmem:[#allocation11_spill] sm:$0xff] %v7344_v63  ;;  %s11935_s3 = smov 17  }
  0x2b   : > { %662 = vrot.lane.b32.xlu2 %v7217_v0, %s11763_s26 }
  0x32   : > { %678 = vrot.lane.b32.xlu1 %v7217_v0, %s11766_s27  ;;  %664 = vrot.lane.b32.xlu0 %v7225_v1, %s11763_s26 }
  0x33   : > { %680 = vrot.lane.b32.xlu2 %v7225_v1, %s11766_s27 }
  0x3a   : > { %631 = vrot.lane.b32.xlu1 %v7225_v1, %s11755_s28  ;;  %629 = vrot.lane.b32.xlu0 %v7217_v0, %s11755_s28  ;;  %s11937_s28 = smov 111  }
  0x3b   : > { %646 = vrot.lane.b32.xlu2 %v7217_v0, %s11759_s29  ;;  %v7346_v0 = vperm.slane %v6201_v57, 1 }
  0x42   : > { %648 = vrot.lane.b32.xlu0 %v7225_v1, %s11759_s29  ;;  %789 = vperm.xlu1 %6906, %v627_v53   ;;  %v7348_v1 = vperm.slane %v6202_v58, 1  ;;  %v6221_v53 = vld [vmem:[%s11736_s5 + $0xc8] sm:$0xff]  ;;  %s7095_s29 = smov 96  }
  0x44   : > { %11913 = vst [vmem:[#allocation12_spill] sm:$0xff] %v7348_v1 }
  0x4a   : > { %779 = vperm.xlu0 %6908, %v625_v6  }
  0x52   : > { %1016 = vperm.xlu0 %6908, %v6226_v26   ;;  %v628_v26 = vld [vmem:[%s11736_s5 + $0x18] sm:$0xff] }
  0x53   : > { %794 = vperm.xlu2 %6907, %v628_v26  }
  0x5a   : > { %973 = vperm.xlu0 %6908, %v6220_v54   ;;  %v6779_v54 = vld [vmem:[%s11917_s24 + $0x8] sm:$0xff] }
  0x62   : > { %1011 = vperm.xlu0 %6908, %v6225_v10  }
  0x75   : > { %v736_v2 = vpop.permute.xlu2 %735 }
  0x7d   : > { %v738_v8 = vpop.permute.xlu2 %737 }
  0x7e   : > { %v740_v21 = vsel %vm739_vm0, %v736_v2, %v738_v8  ;;  %v741_v22 = vsel %vm739_vm0, %v738_v8, %v736_v2  ;;  %v626_v2 = vld [vmem:[%s11736_s5 + $0x8] sm:$0xff] }
  0x7f   : > { %v749_v38 = vmul.f32 %v7276_v18, %v740_v21  ;;  %v750_v40 = vmul.f32 %v7280_v20, %v741_v22  ;;  %784 = vperm.xlu1 %6906, %v626_v2  }
  0x85   : > { %v663_v34 = vpop.permute.xlu2 %662 }
  0x8c   : > { %v720_v4 = vpop.permute.xlu1 %719  ;;  %v752_v5 = vpop.permute.xlu0 %751 }
  0x8d   : > { %v681_v61 = vpop.permute.xlu2 %680 }
  0x94   : > { %v722_v15 = vpop.permute.xlu1 %721  ;;  %v754_v16 = vpop.permute.xlu0 %753 }
  0x95   : > { %v756_v23 = vsel %vm755_vm1, %v752_v5, %v754_v16  ;;  %v757_v24 = vsel %vm755_vm1, %v754_v16, %v752_v5  ;;  %v724_v27 = vsel %vm723_vm2, %v720_v4, %v722_v15  ;;  %v725_v28 = vsel %vm723_vm2, %v722_v15, %v720_v4 }
  0x96   : > { %v765_v29 = vmul.f32 %v7269_v13, %v756_v23  ;;  %v766_v30 = vmul.f32 %v7271_v14, %v757_v24  ;;  %v733_v37 = vmul.f32 %v7274_v17, %v724_v27  ;;  %v734_v39 = vmul.f32 %v7278_v19, %v725_v28  ;;  %v6222_v24 = vld [vmem:[%s11736_s5 + $0xd0] sm:$0xff]  ;;  %v6200_v27 = vld [vmem:[%s11903_s2 + $0x2] sm:$0x3] }
  0x97   : > { %983 = vperm.xlu1 %6906, %v6222_v24   ;;  %v7384_v31 = vperm.slane %v6200_v27, 0 }
  0x98   : > { %v775_v32 = vpack.c.bf16 %v765_v29, %v765_v29  ;;  %v776_v33 = vpack.c.bf16 %v766_v30, %v766_v30  ;;  %v773_v51 = vpack.c.bf16 %v749_v38, %v733_v37  ;;  %v774_v52 = vpack.c.bf16 %v750_v40, %v734_v39  ;;  %v647_v30 = vpop.permute.xlu2 %646  ;;  %v6227_v38 = vld [vmem:[%s11736_s5 + $0x158] sm:$0xff] }
  0x99   : > { %v7381_v29 = vperm.slane %v638_v25, 0  ;;  %v6223_v40 = vld [vmem:[%s11736_s5 + $0xd8] sm:$0xff] }
  0x9a   : > { %v816_v41 = vsel %vm814_vm3, %v775_v32, 0  ;;  %v819_v42 = vsel %vm814_vm3, %v776_v33, 0  ;;  %v7386_v32 = vperm.slane %v638_v25, 1  ;;  %v7388_v33 = vperm.slane %v6200_v27, 1  ;;  %988 = vperm.xlu2 %6907, %v6223_v40  }
  0x9b   : > { %824 = vmatpush.bf16.msra.mxu0 %v816_v41  ;;  %843 = vmatpush.bf16.msra.mxu1 %v819_v42  ;;  %11914 = vst [vmem:[#allocation13_spill] sm:$0xff] %v7381_v29  ;;  %v7094_v27 = vmov 256.0  }
  0x9c   : > { %v706_v45 = vpop.permute.xlu1 %705  ;;  %v704_v46 = vpop.permute.xlu0 %703  ;;  %11915 = vst [vmem:[#allocation14_spill] sm:$0xff] %v7386_v32  ;;  %6919 = vrcp.f32 %v7094_v27 }
  0x9d   : > { %v708_v49 = vsel %vm707_vm4, %v704_v46, %v706_v45  ;;  %v709_v50 = vsel %vm707_vm4, %v706_v45, %v704_v46  ;;  %11916 = vst [vmem:[#allocation15_spill] sm:$0xff] %v7388_v33 }
  0x9e   : > { %v717_v55 = vmul.f32 %v7314_v43, %v708_v49  ;;  %v718_v56 = vmul.f32 %v7316_v44, %v709_v50 }
  0x9f   : > { %825 = vmatpush.bf16.msra.mxu0 %v773_v51  ;;  %844 = vmatpush.bf16.msra.mxu1 %v774_v52  ;;  %v6778_v51 = vld [vmem:[%s11917_s24] sm:$0xff]  ;;  %s6198_s24 = sshll.u32 %s12115_s30, 3 }
  0xa0   : > { %v771_v59 = vpack.c.bf16 %v717_v55, %v701_v47  ;;  %v772_v60 = vpack.c.bf16 %v718_v56, %v702_v48  ;;  %1021 = vperm.xlu1 %6906, %v6227_v38   ;;  %v6224_v52 = vld [vmem:[%s11736_s5 + $0x140] sm:$0xff] }
  0xa2   : > { %978 = vperm.xlu2 %6907, %v6221_v53  }
  0xa3   : > { %826 = vmatpush.bf16.msra.mxu0 %v771_v59  ;;  %845 = vmatpush.bf16.msra.mxu1 %v772_v60 }
  0xa4   : > { %v679_v3 = vpop.permute.xlu1 %678  ;;  %v665_v4 = vpop.permute.xlu0 %664 }
  0xa5   : > { %v683_v5 = vsel %vm682_vm5, %v679_v3, %v681_v61  ;;  %v684_v6 = vsel %vm682_vm5, %v681_v61, %v679_v3  ;;  %v667_v8 = vsel %vm666_vm6, %v663_v34, %v665_v4  ;;  %v668_v9 = vsel %vm666_vm6, %v665_v4, %v663_v34 }
  0xa6   : > { %v676_v11 = vmul.f32 %v7342_v62, %v668_v9  ;;  %v692_v12 = vmul.f32 %v7344_v63, %v684_v6  ;;  %v677_v15 = vmul.f32 %v7346_v0, %v667_v8  ;;  %v693_v16 = vmul.f32 %v7348_v1, %v683_v5 }
  0xa8   : > { %v769_v21 = vpack.c.bf16 %v692_v12, %v676_v11  ;;  %v770_v22 = vpack.c.bf16 %v693_v16, %v677_v15  ;;  %1006 = vperm.xlu1 %6906, %v6224_v52  }
  0xaa   : > { %827 = vmatpush.bf16.msra.mxu0 %v769_v21  ;;  %846 = vmatpush.bf16.msra.mxu1 %v770_v22 }
  0xac   : > { %v630_v23 = vpop.permute.xlu0 %629  ;;  %v632_v28 = vpop.permute.xlu1 %631 }
  0xad   : > { %v636_v34 = vsel %vm635_vm7, %v630_v23, %v632_v28  ;;  %v637_v37 = vsel %vm635_vm7, %v632_v28, %v630_v23  ;;  %v795_v16 = vpop.permute.xlu2 %794  ;;  %v6920_v28 = vpop.eup %6919 }
  0xae   : > { %v644_v45 = vmul.f32 %v7381_v29, %v637_v37  ;;  %v645_v47 = vmul.f32 %v7386_v32, %v636_v34  ;;  %v872_v34 = vmul.f32 256.0, %v6920_v28  ;;  %vm876_vm10 = vweird.f32 %v6920_v28 }
  0xb0   : > { %v873_v37 = vsub.f32 1.0, %v872_v34 }
  0xb4   : > { %v649_v39 = vpop.permute.xlu0 %648  ;;  %v790_v55 = vpop.permute.xlu1 %789 }
  0xb5   : > { %v651_v41 = vsel %vm650_vm8, %v647_v30, %v649_v39  ;;  %v652_v42 = vsel %vm650_vm8, %v649_v39, %v647_v30  ;;  %v874_v39 = vmul.f32 %v6920_v28, %v873_v37 }
  0xb6   : > { %v660_v46 = vmul.f32 %v7384_v31, %v652_v42  ;;  %v661_v48 = vmul.f32 %v7388_v33, %v651_v41 }
  0xb7   : > { %v875_v41 = vadd.f32 %v6920_v28, %v874_v39 }
  0xb8   : > { %v767_v49 = vpack.c.bf16 %v660_v46, %v644_v45  ;;  %v768_v50 = vpack.c.bf16 %v661_v48, %v645_v47 }
  0xb9   : > { %v7454_v45 = vsel %vm876_vm10, %v6920_v28, %v875_v41 }
  0xba   : > { %828 = vmatpush.bf16.msra.mxu0 %v767_v49  ;;  %847 = vmatpush.bf16.msra.mxu1 %v768_v50  ;;  %11926 = vst [vmem:[#allocation24_spill] sm:$0xff] %v7454_v45 }
  0xbc   : > { %v780_v56 = vpop.permute.xlu0 %779 }
  0xbd   : > { %6216 = vmatmul.msk.bf16.vlgmr.msra.gmra.mxu0 %vm807_vm9, %v6778_v51  ;;  %6218 = vmatmul.msk.bf16.vlgmr.msra.gmra.mxu1 %vm807_vm9, %v6778_v51 }
  0xc4   : > { %v7444_v26 = vpop.permute.xlu0 %1016 }
  0xcc   : > { %v7446_v30 = vpop.permute.xlu0 %973 }
  0xcd   : > { %6217 = vmatmul.msk.bf16.gmra.mxu0 %vm807_vm9, %v6779_v54  ;;  %6219 = vmatmul.msk.bf16.gmra.mxu1 %vm807_vm9, %v6779_v54 }
  0xd4   : > { %v7450_v40 = vpop.permute.xlu0 %1011 }
  0xf1   : > { %v785_v2 = vpop.permute.xlu1 %784 }
  0xf4   : > { %v7448_v38 = vpop.permute.xlu2 %988 }
  0xfc   : > { %v7456_v46 = vpop.permute.xlu2 %978 }
 0x109   : > { %v7452_v42 = vpop.permute.xlu1 %983 }
 0x112   : > { %v7461_v53 = vpop.permute.xlu1 %1021 }
 0x13a   : > { %v849_v57 = vpop.f32.mrf.mxu1  ;;  %v830_v58 = vpop.f32.mrf.mxu0 }
 0x13b   : > { %v7420_v59 = vadd.f32 %v849_v57, %v780_v56  ;;  %v7422_v60 = vadd.f32 %v830_v58, %v780_v56 }
 0x13d   : > { %11918 = vst [vmem:[#allocation16_spill] sm:$0xff] %v7420_v59  ;;  %v859_v61 = vadd.f32 %v7420_v59, %v7422_v60 }
 0x13e   : > { %11919 = vst [vmem:[#allocation17_spill] sm:$0xff] %v7422_v60 }
 0x13f   : > { %860 = vadd.xlane.f32.xlu0 %v859_v61 }
 0x142   : > { %v832_v3 = vpop.f32.mrf.mxu0  ;;  %v851_v4 = vpop.f32.mrf.mxu1 }
 0x143   : > { %v7426_v5 = vadd.f32 %v832_v3, %v785_v2  ;;  %v7428_v6 = vadd.f32 %v851_v4, %v785_v2  ;;  %v1007_v4 = vpop.permute.xlu1 %1006 }
 0x145   : > { %11920 = vst [vmem:[#allocation18_spill] sm:$0xff] %v7426_v5  ;;  %v862_v8 = vadd.f32 %v7428_v6, %v7426_v5 }
 0x146   : > { %11921 = vst [vmem:[#allocation19_spill] sm:$0xff] %v7428_v6 }
 0x147   : > { %863 = vadd.xlane.f32.xlu2 %v862_v8 }
 0x14a   : > { %v835_v9 = vpop.f32.mrf.mxu0  ;;  %v854_v10 = vpop.f32.mrf.mxu1 }
 0x14b   : > { %v7432_v11 = vadd.f32 %v835_v9, %v790_v55  ;;  %v7434_v12 = vadd.f32 %v854_v10, %v790_v55 }
 0x14d   : > { %11922 = vst [vmem:[#allocation20_spill] sm:$0xff] %v7432_v11  ;;  %v865_v15 = vadd.f32 %v7434_v12, %v7432_v11 }
 0x14e   : > { %11923 = vst [vmem:[#allocation21_spill] sm:$0xff] %v7434_v12 }
 0x14f   : > { %866 = vadd.xlane.f32.xlu2 %v865_v15 }
 0x152   : > { %v837_v21 = vpop.f32.mrf.mxu0  ;;  %v856_v22 = vpop.f32.mrf.mxu1 }
 0x153   : > { %v7438_v23 = vadd.f32 %v837_v21, %v795_v16  ;;  %v7440_v24 = vadd.f32 %v856_v22, %v795_v16 }
 0x155   : > { %11924 = vst [vmem:[#allocation22_spill] sm:$0xff] %v7438_v23  ;;  %v868_v25 = vadd.f32 %v7440_v24, %v7438_v23 }
 0x156   : > { %11925 = vst [vmem:[#allocation23_spill] sm:$0xff] %v7440_v24 }
 0x157   : > { %869 = vadd.xlane.f32.xlu1 %v868_v25 }
 0x1b2   : > { %v861_v47 = vpop.xlane.xlu0 %860 }
 0x1b3   : > { %v878_v48 = vmul.f32 %v7454_v45, %v861_v47 }
 0x1b5   : > { %v882_v49 = vsub.f32 %v7422_v60, %v878_v48  ;;  %v883_v50 = vsub.f32 %v7420_v59, %v878_v48  ;;  %v6266_v59 = vld [vmem:[%s11736_s5 + $0x170] sm:$0xff] }
 0x1b6   : > { %v6262_v60 = vld [vmem:[%s11736_s5 + $0xf0] sm:$0xff] }
 0x1b7   : > { %v890_v51 = vmul.f32 %v882_v49, %v882_v49  ;;  %v891_v52 = vmul.f32 %v883_v50, %v883_v50 }
 0x1b9   : > { %v898_v54 = vadd.f32 %v891_v52, %v890_v51 }
 0x1ba   : > { %v864_v55 = vpop.xlane.xlu2 %863 }
 0x1bb   : > { %v879_v56 = vmul.f32 %v7454_v45, %v864_v55  ;;  %899 = vadd.xlane.f32.xlu2 %v898_v54 }
 0x1bd   : > { %v7465_v57 = vsub.f32 %v7426_v5, %v879_v56  ;;  %v7468_v58 = vsub.f32 %v7428_v6, %v879_v56  ;;  %v6267_v5 = vld [vmem:[%s11736_s5 + $0x178] sm:$0xff] }
 0x1bf   : > { %v892_v61 = vmul.f32 %v7465_v57, %v7465_v57  ;;  %v893_v2 = vmul.f32 %v7468_v58, %v7468_v58 }
 0x1c1   : > { %v901_v3 = vadd.f32 %v893_v2, %v892_v61 }
 0x1c2   : > { %v867_v8 = vpop.xlane.xlu2 %866 }
 0x1c3   : > { %v880_v9 = vmul.f32 %v7454_v45, %v867_v8  ;;  %902 = vadd.xlane.f32.xlu0 %v901_v3 }
 0x1c5   : > { %v7476_v10 = vsub.f32 %v7432_v11, %v880_v9  ;;  %v7479_v15 = vsub.f32 %v7434_v12, %v880_v9  ;;  %v6263_v11 = vld [vmem:[%s11736_s5 + $0xf8] sm:$0xff] }
 0x1c7   : > { %v894_v16 = vmul.f32 %v7476_v10, %v7476_v10  ;;  %v895_v21 = vmul.f32 %v7479_v15, %v7479_v15 }
 0x1c9   : > { %v904_v22 = vadd.f32 %v895_v21, %v894_v16 }
 0x1ca   : > { %v870_v25 = vpop.xlane.xlu1 %869 }
 0x1cb   : > { %v881_v27 = vmul.f32 %v7454_v45, %v870_v25  ;;  %905 = vadd.xlane.f32.xlu2 %v904_v22 }
 0x1cd   : > { %v7487_v28 = vsub.f32 %v7438_v23, %v881_v27  ;;  %v7490_v34 = vsub.f32 %v7440_v24, %v881_v27  ;;  %v6228_v23 = vld [vmem:[%s11736_s5 + $0x20] sm:$0xff] }
 0x1cf   : > { %v896_v37 = vmul.f32 %v7487_v28, %v7487_v28  ;;  %v897_v39 = vmul.f32 %v7490_v34, %v7490_v34 }
 0x1d1   : > { %v907_v41 = vadd.f32 %v897_v39, %v896_v37 }
 0x1d3   : > { %908 = vadd.xlane.f32.xlu1 %v907_v41 }
 0x22e   : > { %v900_v47 = vpop.xlane.xlu2 %899 }
 0x22f   : > { %v910_v48 = vmul.f32 %v900_v47, %v7454_v45 }
 0x231   : > { %v914_v51 = vadd.f32 1e-05, %v910_v48 }
 0x233   : > { %6921 = vrsqrt.f32 %v914_v51  ;;  %vm924_vm12 = vweird.f32 %v914_v51 }
 0x236   : > { %v903_v52 = vpop.xlane.xlu0 %902 }
 0x237   : > { %v911_v54 = vmul.f32 %v903_v52, %v7454_v45 }
 0x239   : > { %v6922_v55 = vpop.eup %6921  ;;  %v915_v56 = vadd.f32 1e-05, %v911_v54 }
 0x23a   : > { %v919_v61 = vmul.f32 %v6922_v55, %v914_v51  ;;  %vm925_vm11 = vweird.f32 %v6922_v55 }
 0x23b   : > { %6923 = vrsqrt.f32 %v915_v56  ;;  %vm926_vm13 = vmor %vm924_vm12, %vm925_vm11  ;;  %vm934_vm15 = vweird.f32 %v915_v56 }
 0x23c   : > { %v920_v2 = vmul.f32 %v6922_v55, %v919_v61 }
 0x23e   : > { %v921_v3 = vmul.f32 0.5, %v920_v2 }
 0x240   : > { %v922_v8 = vsub.f32 1.5, %v921_v3  ;;  %v906_v3 = vpop.xlane.xlu2 %905 }
 0x241   : > { %v6924_v9 = vpop.eup %6923  ;;  %v912_v51 = vmul.f32 %v906_v3, %v7454_v45 }
 0x242   : > { %v923_v16 = vmul.f32 %v6922_v55, %v922_v8  ;;  %v929_v21 = vmul.f32 %v6924_v9, %v915_v56  ;;  %vm935_vm14 = vweird.f32 %v6924_v9 }
 0x243   : > { %vm936_vm3 = vmor %vm934_vm15, %vm935_vm14  ;;  %vm1435_vm15 = vcmask 261120  }
 0x244   : > { %v927_v22 = vsel %vm926_vm13, %v6922_v55, %v923_v16  ;;  %v930_v25 = vmul.f32 %v6924_v9, %v929_v21 }
 0x245   : > { %v958_v27 = vmul.f32 %v927_v22, %v882_v49  ;;  %v959_v37 = vmul.f32 %v927_v22, %v883_v50  ;;  %v916_v49 = vadd.f32 1e-05, %v912_v51 }
 0x246   : > { %v931_v47 = vmul.f32 0.5, %v930_v25 }
 0x247   : > { %v991_v39 = vmul.f32 %v7446_v30, %v958_v27  ;;  %v992_v41 = vmul.f32 %v7446_v30, %v959_v37  ;;  %vm944_vm10 = vweird.f32 %v916_v49 }
 0x248   : > { %v932_v2 = vsub.f32 1.5, %v931_v47 }
 0x249   : > { %v1024_v48 = vadd.f32 %v1007_v4, %v991_v39  ;;  %v1025_v52 = vadd.f32 %v1007_v4, %v992_v41 }
 0x24a   : > { %v933_v8 = vmul.f32 %v6924_v9, %v932_v2  ;;  %v909_v2 = vpop.xlane.xlu1 %908 }
 0x24b   : > { %v1032_v54 = vmul.f32 0.5, %v1024_v48  ;;  %v1033_v61 = vmul.f32 0.5, %v1025_v52 }
 0x24c   : > { %v937_v55 = vsel %vm936_vm3, %v6924_v9, %v933_v8  ;;  %v913_v8 = vmul.f32 %v909_v2, %v7454_v45  ;;  %v6264_v45 = vld [vmem:[%s11736_s5 + $0x160] sm:$0xff] }
 0x24d   : > { %6925 = vtanh.f32 %v1032_v54  ;;  %v960_v4 = vmul.f32 %v937_v55, %v7465_v57  ;;  %v961_v27 = vmul.f32 %v937_v55, %v7468_v58 }
 0x24e   : > { %6927 = vtanh.f32 %v1033_v61 }
 0x24f   : > { %6929 = vrsqrt.f32 %v916_v49  ;;  %v993_v56 = vmul.f32 %v7456_v46, %v960_v4  ;;  %v994_v9 = vmul.f32 %v7456_v46, %v961_v27 }
 0x251   : > { %v1026_v58 = vadd.f32 %v7450_v40, %v993_v56  ;;  %v1027_v41 = vadd.f32 %v7450_v40, %v994_v9 }
 0x253   : > { %v6926_v50 = vpop.eup %6925 }
 0x254   : > { %v6928_v16 = vpop.eup %6927  ;;  %v1048_v30 = vadd.f32 1.0, %v6926_v50 }
 0x255   : > { %v1049_v21 = vadd.f32 1.0, %v6928_v16  ;;  %v6930_v57 = vpop.eup %6929 }
 0x256   : > { %v1056_v22 = vmul.f32 0.5, %v1048_v30  ;;  %v939_v47 = vmul.f32 %v6930_v57, %v916_v49  ;;  %vm945_vm9 = vweird.f32 %v6930_v57  ;;  %v917_v30 = vadd.f32 1e-05, %v913_v8 }
 0x257   : > { %v1057_v25 = vmul.f32 0.5, %v1049_v21  ;;  %vm946_vm11 = vmor %vm944_vm10, %vm945_vm9 }
 0x258   : > { %v7503_v37 = vmul.f32 %v1056_v22, %v1024_v48  ;;  %v1034_v48 = vmul.f32 0.5, %v1026_v58  ;;  %v940_v54 = vmul.f32 %v6930_v57, %v939_v47  ;;  %vm954_vm13 = vweird.f32 %v917_v30 }
 0x259   : > { %v7505_v39 = vmul.f32 %v1057_v25, %v1025_v52  ;;  %v1035_v52 = vmul.f32 0.5, %v1027_v41 }
 0x25a   : > { %11927 = vst [vmem:[#allocation25_spill] sm:$0xff] %v7503_v37  ;;  %1285 = vrot.lane.b32.xlu2 %v7503_v37, %s11768_s25  ;;  %1181 = vrot.lane.b32.xlu0 %v7503_v37, %s11766_s27  ;;  %6931 = vtanh.f32 %v1034_v48  ;;  %v941_v46 = vmul.f32 0.5, %v940_v54 }
 0x25b   : > { %11928 = vst [vmem:[#allocation26_spill] sm:$0xff] %v7505_v39  ;;  %1189 = vrot.lane.b32.xlu1 %v7505_v39, %s11766_s27  ;;  %6933 = vtanh.f32 %v1035_v52 }
 0x25c   : > { %v942_v40 = vsub.f32 1.5, %v941_v46  ;;  %6935 = vrsqrt.f32 %v917_v30 }
 0x25e   : > { %v943_v51 = vmul.f32 %v6930_v57, %v942_v40 }
 0x260   : > { %v6932_v61 = vpop.eup %6931  ;;  %v947_v16 = vsel %vm946_vm11, %v6930_v57, %v943_v51 }
 0x261   : > { %v6934_v3 = vpop.eup %6933  ;;  %v1050_v50 = vadd.f32 1.0, %v6932_v61  ;;  %v962_v4 = vmul.f32 %v947_v16, %v7476_v10  ;;  %v963_v25 = vmul.f32 %v947_v16, %v7479_v15 }
 0x262   : > { %1149 = vrot.lane.b32.xlu2 %v7503_v37, %s11763_s26  ;;  %1293 = vrot.lane.b32.xlu0 %v7505_v39, %s11768_s25  ;;  %v1051_v55 = vadd.f32 1.0, %v6934_v3  ;;  %v6936_v10 = vpop.eup %6935 }
 0x263   : > { %1253 = vrot.lane.b32.xlu1 %v7503_v37, %s11929_s23  ;;  %v1058_v21 = vmul.f32 0.5, %v1050_v50  ;;  %v995_v56 = vmul.f32 %v7452_v42, %v962_v4  ;;  %v996_v9 = vmul.f32 %v7452_v42, %v963_v25  ;;  %vm955_vm12 = vweird.f32 %v6936_v10 }
 0x264   : > { %v1059_v22 = vmul.f32 0.5, %v1051_v55  ;;  %vm956_vm14 = vmor %vm954_vm13, %vm955_vm12 }
 0x265   : > { %v7538_v49 = vmul.f32 %v1058_v21, %v1026_v58  ;;  %v1028_v15 = vadd.f32 %v7444_v26, %v995_v56  ;;  %v1029_v57 = vadd.f32 %v7444_v26, %v996_v9  ;;  %v949_v58 = vmul.f32 %v6936_v10, %v917_v30 }
 0x266   : > { %v7540_v27 = vmul.f32 %v1059_v22, %v1027_v41 }
 0x267   : > { %11932 = vst [vmem:[#allocation27_spill] sm:$0xff] %v7538_v49  ;;  %v1036_v41 = vmul.f32 0.5, %v1028_v15  ;;  %v1037_v47 = vmul.f32 0.5, %v1029_v57  ;;  %v950_v42 = vmul.f32 %v6936_v10, %v949_v58 }
 0x268   : > { %11933 = vst [vmem:[#allocation28_spill] sm:$0xff] %v7540_v27 }
 0x269   : > { %6937 = vtanh.f32 %v1036_v41  ;;  %v951_v48 = vmul.f32 0.5, %v950_v42 }
 0x26a   : > { %1261 = vrot.lane.b32.xlu2 %v7505_v39, %s11929_s23  ;;  %1157 = vrot.lane.b32.xlu0 %v7505_v39, %s11763_s26  ;;  %6939 = vtanh.f32 %v1037_v47 }
 0x26b   : > { %1117 = vrot.lane.b32.xlu1 %v7503_v37, %s11930_s1  ;;  %v952_v52 = vsub.f32 1.5, %v951_v48 }
 0x26d   : > { %v953_v61 = vmul.f32 %v6936_v10, %v952_v52 }
 0x26f   : > { %v6938_v26 = vpop.eup %6937  ;;  %v957_v51 = vsel %vm956_vm14, %v6936_v10, %v953_v61 }
 0x270   : > { %v6940_v54 = vpop.eup %6939  ;;  %v1052_v46 = vadd.f32 1.0, %v6938_v26  ;;  %v964_v8 = vmul.f32 %v957_v51, %v7487_v28  ;;  %v965_v30 = vmul.f32 %v957_v51, %v7490_v34 }
 0x271   : > { %v1053_v40 = vadd.f32 1.0, %v6940_v54 }
 0x272   : > { %1125 = vrot.lane.b32.xlu2 %v7505_v39, %s11930_s1  ;;  %1221 = vrot.lane.b32.xlu0 %v7503_v37, %s11931_s22  ;;  %v1060_v2 = vmul.f32 0.5, %v1052_v46  ;;  %v997_v16 = vmul.f32 %v7448_v38, %v964_v8  ;;  %v998_v28 = vmul.f32 %v7448_v38, %v965_v30 }
 0x273   : > { %1229 = vrot.lane.b32.xlu1 %v7505_v39, %s11931_s22  ;;  %v1061_v3 = vmul.f32 0.5, %v1053_v40 }
 0x274   : > { %v7571_v50 = vmul.f32 %v1060_v2, %v1028_v15  ;;  %v1030_v21 = vadd.f32 %v7461_v53, %v997_v16  ;;  %v1031_v4 = vadd.f32 %v7461_v53, %v998_v28 }
 0x275   : > { %v7573_v55 = vmul.f32 %v1061_v3, %v1029_v57 }
 0x276   : > { %v1038_v22 = vmul.f32 0.5, %v1030_v21  ;;  %v1039_v34 = vmul.f32 0.5, %v1031_v4 }
 0x277   : > { %11934 = vst [vmem:[#allocation29_spill] sm:$0xff] %v7573_v55 }
 0x278   : > { %6941 = vtanh.f32 %v1038_v22 }
 0x279   : > { %6943 = vtanh.f32 %v1039_v34 }
 0x27a   : > { %1191 = vrot.lane.b32.xlu0 %v7540_v27, %s11766_s27  ;;  %1183 = vrot.lane.b32.xlu2 %v7538_v49, %s11766_s27 }
 0x27b   : > { %1287 = vrot.lane.b32.xlu1 %v7538_v49, %s11768_s25 }
 0x27e   : > { %v6942_v25 = vpop.eup %6941 }
 0x27f   : > { %v1054_v38 = vadd.f32 1.0, %v6942_v25  ;;  %v6944_v9 = vpop.eup %6943 }
 0x280   : > { %v1055_v10 = vadd.f32 1.0, %v6944_v9  ;;  %v6230_v9 = vld [vmem:[%s11736_s5 + $0x30] sm:$0xff] }
 0x281   : > { %v1062_v53 = vmul.f32 0.5, %v1054_v38 }
 0x282   : > { %1255 = vrot.lane.b32.xlu0 %v7538_v49, %s11929_s23  ;;  %1295 = vrot.lane.b32.xlu2 %v7540_v27, %s11768_s25  ;;  %v1063_v57 = vmul.f32 0.5, %v1055_v10 }
 0x283   : > { %1151 = vrot.lane.b32.xlu1 %v7538_v49, %s11763_s26  ;;  %v7606_v15 = vmul.f32 %v1062_v53, %v1030_v21  ;;  %v6231_v53 = vld [vmem:[%s11736_s5 + $0x38] sm:$0xff] }
 0x284   : > { %v7616_v41 = vmul.f32 %v1063_v57, %v1031_v4 }
 0x286   : > { %11936 = vst [vmem:[#allocation30_spill] sm:$0xff] %v7616_v41 }
 0x28a   : > { %1119 = vrot.lane.b32.xlu0 %v7538_v49, %s11930_s1  ;;  %1159 = vrot.lane.b32.xlu2 %v7540_v27, %s11763_s26 }
 0x28b   : > { %1263 = vrot.lane.b32.xlu1 %v7540_v27, %s11929_s23 }
 0x292   : > { %1231 = vrot.lane.b32.xlu0 %v7540_v27, %s11931_s22  ;;  %1223 = vrot.lane.b32.xlu2 %v7538_v49, %s11931_s22 }
 0x293   : > { %1127 = vrot.lane.b32.xlu1 %v7540_v27, %s11930_s1 }
 0x29a   : > { %1193 = vrot.lane.b32.xlu0 %v7573_v55, %s11766_s27  ;;  %1185 = vrot.lane.b32.xlu2 %v7571_v50, %s11766_s27 }
 0x29b   : > { %1289 = vrot.lane.b32.xlu1 %v7571_v50, %s11768_s25 }
 0x2a2   : > { %1257 = vrot.lane.b32.xlu0 %v7571_v50, %s11929_s23  ;;  %1297 = vrot.lane.b32.xlu2 %v7573_v55, %s11768_s25 }
 0x2a3   : > { %1153 = vrot.lane.b32.xlu1 %v7571_v50, %s11763_s26 }
 0x2aa   : > { %1121 = vrot.lane.b32.xlu0 %v7571_v50, %s11930_s1  ;;  %1161 = vrot.lane.b32.xlu2 %v7573_v55, %s11763_s26 }
 0x2ab   : > { %1265 = vrot.lane.b32.xlu1 %v7573_v55, %s11929_s23 }
 0x2b2   : > { %1233 = vrot.lane.b32.xlu0 %v7573_v55, %s11931_s22  ;;  %1225 = vrot.lane.b32.xlu2 %v7571_v50, %s11931_s22 }
 0x2b3   : > { %1129 = vrot.lane.b32.xlu1 %v7573_v55, %s11930_s1 }
 0x2b4   : > { %v7604_v56 = vpop.permute.xlu2 %1285 }
 0x2ba   : > { %1291 = vrot.lane.b32.xlu0 %v7606_v15, %s11768_s25  ;;  %1089 = vrot.lane.b32.xlu2 %v7571_v50, %s11935_s3 }
 0x2bb   : > { %1187 = vrot.lane.b32.xlu1 %v7606_v15, %s11766_s27 }
 0x2bc   : > { %v7614_v58 = vpop.permute.xlu2 %1149 }
 0x2c2   : > { %1155 = vrot.lane.b32.xlu0 %v7606_v15, %s11763_s26  ;;  %1195 = vrot.lane.b32.xlu2 %v7616_v41, %s11766_s27 }
 0x2c3   : > { %1299 = vrot.lane.b32.xlu1 %v7616_v41, %s11768_s25 }
 0x2c4   : > { %v7624_v47 = vpop.permute.xlu2 %1261 }
 0x2ca   : > { %1267 = vrot.lane.b32.xlu0 %v7616_v41, %s11929_s23  ;;  %1259 = vrot.lane.b32.xlu2 %v7606_v15, %s11929_s23 }
 0x2cb   : > { %1163 = vrot.lane.b32.xlu1 %v7616_v41, %s11763_s26  ;;  %s11954_s26 = smov 112  }
 0x2cc   : > { %v7632_v42 = vpop.permute.xlu2 %1125  ;;  %v7634_v48 = vpop.permute.xlu0 %1181 }
 0x2cd   : > { %v7636_v26 = vpop.permute.xlu1 %1189 }
 0x2ce   : > { %v1197_v32 = vsel %vm682_vm5, %v7634_v48, %v7636_v26 }
 0x2d2   : > { %1131 = vrot.lane.b32.xlu0 %v7616_v41, %s11930_s1  ;;  %1123 = vrot.lane.b32.xlu2 %v7606_v15, %s11930_s1 }
 0x2d3   : > { %1085 = vrot.lane.b32.xlu1 %v7503_v37, %s11935_s3 }
 0x2d4   : > { %v7644_v52 = vpop.permute.xlu2 %1183  ;;  %v7646_v54 = vpop.permute.xlu0 %1293 }
 0x2d5   : > { %v7648_v46 = vpop.permute.xlu1 %1253 }
 0x2da   : > { %1097 = vrot.lane.b32.xlu0 %v7573_v55, %s11935_s3  ;;  %1235 = vrot.lane.b32.xlu2 %v7616_v41, %s11931_s22 }
 0x2db   : > { %1227 = vrot.lane.b32.xlu1 %v7606_v15, %s11931_s22 }
 0x2dc   : > { %v7656_v40 = vpop.permute.xlu2 %1295  ;;  %v7658_v61 = vpop.permute.xlu0 %1157 }
 0x2dd   : > { %v7660_v2 = vpop.permute.xlu1 %1117 }
 0x2e2   : > { %1087 = vrot.lane.b32.xlu0 %v7538_v49, %s11935_s3  ;;  %1099 = vrot.lane.b32.xlu2 %v7616_v41, %s11935_s3 }
 0x2e3   : > { %1091 = vrot.lane.b32.xlu1 %v7606_v15, %s11935_s3 }
 0x2e4   : > { %v7668_v3 = vpop.permute.xlu2 %1159  ;;  %v7670_v51 = vpop.permute.xlu0 %1221 }
 0x2e5   : > { %v7672_v8 = vpop.permute.xlu1 %1229 }
 0x2ea   : > { %1321 = vrot.lane.b32.xlu0 %v7571_v50, %s11937_s28  ;;  %1093 = vrot.lane.b32.xlu2 %v7505_v39, %s11935_s3 }
 0x2eb   : > { %1095 = vrot.lane.b32.xlu1 %v7540_v27, %s11935_s3 }
 0x2ec   : > { %v7680_v16 = vpop.permute.xlu2 %1223  ;;  %v1192_v30 = vpop.permute.xlu0 %1191 }
 0x2ed   : > { %v7682_v21 = vpop.permute.xlu1 %1287  ;;  %v1198_v13 = vsel %vm682_vm5, %v7644_v52, %v1192_v30 }
 0x2f2   : > { %1331 = vrot.lane.b32.xlu0 %v7616_v41, %s11937_s28  ;;  %1317 = vrot.lane.b32.xlu2 %v7503_v37, %s11937_s28 }
 0x2f3   : > { %1329 = vrot.lane.b32.xlu1 %v7573_v55, %s11937_s28  ;;  %v6265_v55 = vld [vmem:[%s11736_s5 + $0x168] sm:$0xff] }
 0x2f4   : > { %v1186_v28 = vpop.permute.xlu2 %1185  ;;  %v7690_v22 = vpop.permute.xlu0 %1255 }
 0x2f5   : > { %v7692_v4 = vpop.permute.xlu1 %1151 }
 0x2fa   : > { %1325 = vrot.lane.b32.xlu0 %v7505_v39, %s11937_s28  ;;  %1323 = vrot.lane.b32.xlu2 %v7606_v15, %s11937_s28  ;;  %v6261_v39 = vld [vmem:[%s11736_s5 + $0xe8] sm:$0xff] }
 0x2fb   : > { %1319 = vrot.lane.b32.xlu1 %v7538_v49, %s11937_s28 }
 0x2fc   : > { %v7700_v34 = vpop.permute.xlu2 %1297  ;;  %v7702_v25 = vpop.permute.xlu0 %1119 }
 0x2fd   : > { %v7704_v38 = vpop.permute.xlu1 %1263 }
 0x302   : > { %1402 = vperm.xlu0 %6908, %v6231_v53   ;;  %1327 = vrot.lane.b32.xlu2 %v7540_v27, %s11937_s28  ;;  %v6229_v53 = vld [vmem:[%s11736_s5 + $0x28] sm:$0xff]  ;;  %v6260_v27 = vld [vmem:[%s11736_s5 + $0xe0] sm:$0xff] }
 0x303   : > { %1397 = vperm.xlu1 %6906, %v6230_v9  }
 0x304   : > { %v7714_v10 = vpop.permute.xlu2 %1161  ;;  %v7716_v57 = vpop.permute.xlu0 %1231 }
 0x305   : > { %v7718_v12 = vpop.permute.xlu1 %1127 }
 0x30a   : > { %1678 = vperm.xlu0 %6908, %v6263_v11   ;;  %1387 = vperm.xlu2 %6907, %v6228_v23  }
 0x30b   : > { %1392 = vperm.xlu1 %6906, %v6229_v53  }
 0x30c   : > { %v7729_v9 = vpop.permute.xlu2 %1225  ;;  %v1194_v24 = vpop.permute.xlu0 %1193 }
 0x30d   : > { %v7731_v6 = vpop.permute.xlu1 %1289 }
 0x312   : > { %1711 = vperm.xlu0 %6908, %v6267_v5   ;;  %1706 = vperm.xlu2 %6907, %v6266_v59  }
 0x313   : > { %1673 = vperm.xlu1 %6906, %v6262_v60  }
 0x314   : > { %v7742_v11 = vpop.permute.xlu2 %1089  ;;  %v7744_v23 = vpop.permute.xlu0 %1257 }
 0x315   : > { %v1154_v53 = vpop.permute.xlu1 %1153 }
 0x31a   : > { %1696 = vperm.xlu0 %6908, %v6264_v45   ;;  %1668 = vperm.xlu2 %6907, %v6261_v39   ;;  %v1199_v45 = vsel %vm682_vm5, %v1186_v28, %v1194_v24 }
 0x31b   : > { %1663 = vperm.xlu1 %6906, %v6260_v27   ;;  %v1203_v27 = vsel %vm682_vm5, %v1194_v24, %v1186_v28  ;;  %v1210_v24 = vmul.f32 %v1199_v45, %v7348_v1  ;;  %v1208_v45 = vmul.f32 %v1198_v13, %v7348_v1 }
 0x31c   : > { %v7755_v59 = vpop.permute.xlu0 %1121  ;;  %v1196_v5 = vpop.permute.xlu2 %1195  ;;  %v1209_v37 = vmul.f32 %v1203_v27, %v7344_v63  ;;  %v1206_v27 = vmul.f32 %v1197_v32, %v7348_v1 }
 0x31d   : > { %v7757_v60 = vpop.permute.xlu1 %1265 }
 0x323   : > { %1701 = vperm.xlu1 %6906, %v6265_v55   ;;  %v1202_v55 = vsel %vm682_vm5, %v1192_v30, %v7644_v52  ;;  %v1201_v52 = vsel %vm682_vm5, %v7636_v26, %v7634_v48  ;;  %v1303_v48 = vsel %vm739_vm0, %v7731_v6, %v7700_v34  ;;  %v1362_v26 = vpack.c.bf16 %v1208_v45, %v1206_v27 }
 0x324   : > { %v7762_v41 = vpop.permute.xlu0 %1233  ;;  %v7766_v44 = vpop.permute.xlu2 %1259  ;;  %v1271_v45 = vsel %vm723_vm2, %v7744_v23, %v7757_v60  ;;  %v1169_v27 = vsel %vm666_vm6, %v7658_v61, %v7614_v58 }
 0x325   : > { %v7764_v36 = vpop.permute.xlu1 %1129 }
 0x32c   : > { %v7770_v39 = vpop.permute.xlu0 %1291  ;;  %v7796_v30 = vpop.permute.xlu2 %1123 }
 0x32d   : > { %v1188_v14 = vpop.permute.xlu1 %1187 }
 0x32e   : > { %v1200_v19 = vsel %vm682_vm5, %v1188_v14, %v1196_v5  ;;  %v1204_v20 = vsel %vm682_vm5, %v1196_v5, %v1188_v14 }
 0x32f   : > { %v1211_v49 = vmul.f32 %v1204_v20, %v7344_v63  ;;  %v1212_v28 = vmul.f32 %v1200_v19, %v7348_v1  ;;  %v1207_v20 = vmul.f32 %v1202_v55, %v7344_v63  ;;  %v1205_v19 = vmul.f32 %v1201_v52, %v7344_v63 }
 0x330   : > { %v1301_v55 = vsel %vm739_vm0, %v7604_v56, %v7646_v54  ;;  %v1269_v1 = vsel %vm723_vm2, %v7648_v46, %v7624_v47 }
 0x331   : > { %v1363_v14 = vpack.c.bf16 %v1211_v49, %v1209_v37  ;;  %v1364_v5 = vpack.c.bf16 %v1212_v28, %v1210_v24  ;;  %v1302_v37 = vsel %vm739_vm0, %v7682_v21, %v7656_v40  ;;  %v1361_v13 = vpack.c.bf16 %v1207_v20, %v1205_v19 }
 0x332   : > { %v1313_v24 = vmul.f32 %v1303_v48, %v7276_v18  ;;  %v1311_v52 = vmul.f32 %v1302_v37, %v7276_v18  ;;  %v1165_v20 = vsel %vm666_vm6, %v7614_v58, %v7658_v61  ;;  %v1167_v48 = vsel %vm666_vm6, %v1154_v53, %v7714_v10 }
 0x333   : > { %1442 = vmatpush.bf16.msra.mxu2 %v1363_v14  ;;  %1499 = vmatpush.bf16.msrb.mxu1 %v1364_v5  ;;  %v1309_v5 = vmul.f32 %v1301_v55, %v7276_v18  ;;  %v1171_v37 = vsel %vm666_vm6, %v7714_v10, %v1154_v53  ;;  %v1170_v58 = vsel %vm666_vm6, %v7668_v3, %v7692_v4 }
 0x334   : > { %v1156_v29 = vpop.permute.xlu0 %1155  ;;  %v7832_v19 = vpop.permute.xlu2 %1235  ;;  %v1270_v61 = vsel %vm723_vm2, %v7690_v22, %v7704_v38 }
 0x335   : > { %v7810_v49 = vpop.permute.xlu1 %1299 }
 0x336   : > { %v1304_v32 = vsel %vm739_vm0, %v7770_v39, %v7810_v49 }
 0x337   : > { %1443 = vmatpush.bf16.msra.mxu2 %v1361_v13  ;;  %1500 = vmatpush.bf16.msrb.mxu1 %v1362_v26  ;;  %v1315_v28 = vmul.f32 %v1304_v32, %v7276_v18  ;;  %v1377_v26 = vpack.c.bf16 %v1311_v52, %v1309_v5  ;;  %v1166_v32 = vsel %vm666_vm6, %v7692_v4, %v7668_v3 }
 0x338   : > { %v1177_v4 = vmul.f32 %v1171_v37, %v7342_v62  ;;  %v1279_v37 = vmul.f32 %v1270_v61, %v7274_v17 }
 0x339   : > { %v1379_v14 = vpack.c.bf16 %v1315_v28, %v1313_v24  ;;  %v1281_v28 = vmul.f32 %v1271_v45, %v7274_v17  ;;  %v1176_v45 = vmul.f32 %v1166_v32, %v7346_v0  ;;  %v1277_v32 = vmul.f32 %v1269_v1, %v7274_v17 }
 0x33b   : > { %1461 = vmatpush.bf16.msra.mxu3 %v1379_v14  ;;  %v1178_v14 = vmul.f32 %v1167_v48, %v7346_v0  ;;  %v1174_v48 = vmul.f32 %v1165_v20, %v7346_v0  ;;  %v1138_v20 = vsel %vm650_vm8, %v7718_v12, %v7702_v25  ;;  %v1373_v1 = vpack.c.bf16 %v1279_v37, %v1277_v32 }
 0x33c   : > { %v7844_v13 = vpop.permute.xlu0 %1267 }
 0x33d   : > { %v1164_v55 = vpop.permute.xlu1 %1163  ;;  %v1272_v10 = vsel %vm723_vm2, %v7766_v44, %v7844_v13 }
 0x33e   : > { %v1168_v53 = vsel %vm666_vm6, %v1156_v29, %v1164_v55  ;;  %v1172_v24 = vsel %vm666_vm6, %v1164_v55, %v1156_v29  ;;  %v1283_v3 = vmul.f32 %v1272_v10, %v7274_v17  ;;  %v1175_v29 = vmul.f32 %v1170_v58, %v7342_v62 }
 0x33f   : > { %1462 = vmatpush.bf16.msra.mxu3 %v1377_v26  ;;  %v1179_v52 = vmul.f32 %v1172_v24, %v7342_v62  ;;  %v1180_v5 = vmul.f32 %v1168_v53, %v7346_v0  ;;  %v1173_v10 = vmul.f32 %v1169_v27, %v7342_v62  ;;  %v1135_v53 = vsel %vm650_vm8, %v7755_v59, %v7764_v36 }
 0x340   : > { %v1375_v63 = vpack.c.bf16 %v1283_v3, %v1281_v28  ;;  %v1139_v58 = vsel %vm650_vm8, %v7764_v36, %v7755_v59  ;;  %v1358_v27 = vpack.c.bf16 %v1176_v45, %v1174_v48  ;;  %v1100_v28 = vpop.permute.xlu2 %1099 }
 0x341   : > { %v1359_v55 = vpack.c.bf16 %v1179_v52, %v1177_v4  ;;  %v1360_v26 = vpack.c.bf16 %v1180_v5, %v1178_v14  ;;  %v1357_v24 = vpack.c.bf16 %v1175_v29, %v1173_v10  ;;  %v1145_v59 = vmul.f32 %v1139_v58, %v7384_v31 }
 0x342   : > { %v1146_v52 = vmul.f32 %v1135_v53, %v7388_v33  ;;  %v1134_v5 = vsel %vm650_vm8, %v7702_v25, %v7718_v12  ;;  %v1239_v25 = vsel %vm707_vm4, %v7729_v9, %v7762_v41 }
 0x343   : > { %1444 = vmatpush.bf16.msra.mxu2 %v1359_v55  ;;  %1463 = vmatpush.bf16.msra.mxu3 %v1375_v63  ;;  %v1133_v55 = vsel %vm650_vm8, %v7660_v2, %v7632_v42  ;;  %v1144_v37 = vmul.f32 %v1134_v5, %v7388_v33 }
 0x344   : > { %1501 = vmatpush.bf16.msrb.mxu1 %v1360_v26  ;;  %v1132_v61 = vpop.permute.xlu0 %1131  ;;  %v1143_v26 = vmul.f32 %v1138_v20, %v7384_v31  ;;  %v1142_v48 = vmul.f32 %v1133_v55, %v7388_v33  ;;  %v1237_v20 = vsel %vm707_vm4, %v7670_v51, %v7672_v8  ;;  %v1217_v55 = vmul.f32 %v7571_v50, %v7306_v35 }
 0x345   : > { %v7894_v3 = vpop.permute.xlu1 %1085  ;;  %v1136_v36 = vsel %vm650_vm8, %v7796_v30, %v1132_v61  ;;  %v1140_v63 = vsel %vm650_vm8, %v1132_v61, %v7796_v30  ;;  %v1137_v30 = vsel %vm650_vm8, %v7632_v42, %v7660_v2  ;;  %v1238_v42 = vsel %vm707_vm4, %v7680_v16, %v7716_v57 }
 0x346   : > { %v1147_v4 = vmul.f32 %v1140_v63, %v7384_v31  ;;  %v1148_v14 = vmul.f32 %v1136_v36, %v7388_v33  ;;  %v1141_v12 = vmul.f32 %v1137_v30, %v7384_v31  ;;  %v1354_v32 = vpack.c.bf16 %v1144_v37, %v1142_v48 }
 0x347   : > { %1445 = vmatpush.bf16.msra.mxu2 %v1357_v24  ;;  %1464 = vmatpush.bf16.msra.mxu3 %v1373_v1  ;;  %v1249_v24 = vmul.f32 %v1239_v25, %v7314_v43  ;;  %v1247_v63 = vmul.f32 %v1238_v42, %v7314_v43  ;;  %v1245_v1 = vmul.f32 %v1237_v20, %v7314_v43  ;;  %v6236_v20 = vld [vmem:[%s11735_s4 + $0xc] sm:$0xf0] }
 0x348   : > { %1502 = vmatpush.bf16.msrb.mxu1 %v1358_v27  ;;  %v1355_v29 = vpack.c.bf16 %v1147_v4, %v1145_v59  ;;  %v1356_v45 = vpack.c.bf16 %v1148_v14, %v1146_v52  ;;  %v1353_v58 = vpack.c.bf16 %v1143_v26, %v1141_v12  ;;  %v1094_v61 = vpop.permute.xlu2 %1093  ;;  %v1219_v30 = vmul.f32 %v7606_v15, %v7306_v35  ;;  %v11938_v26 = vld [vmem:[#allocation13_spill] sm:$0xff]  ;;  %v11939_v12 = vld [vmem:[#allocation14_spill] sm:$0xff] }
 0x349   : > { %v1369_v5 = vpack.c.bf16 %v1247_v63, %v1245_v1  ;;  %v1308_v50 = vsel %vm739_vm0, %v7810_v49, %v7770_v39  ;;  %v1105_v39 = vsel %vm635_vm7, %v1094_v61, %v7894_v3  ;;  %v1305_v63 = vsel %vm739_vm0, %v7646_v54, %v7604_v56  ;;  %v11942_v56 = vld [vmem:[#allocation8_spill] sm:$0xff] }
 0x34a   : > { %v1306_v1 = vsel %vm739_vm0, %v7656_v40, %v7682_v21  ;;  %v1316_v54 = vmul.f32 %v1308_v50, %v11942_v56  ;;  %v1109_v40 = vmul.f32 %v1105_v39, %v11938_v26  ;;  %v11945_v39 = vld [vmem:[#allocation4_spill] sm:$0xff] }
 0x34b   : > { %1446 = vmatpush.bf16.msra.mxu2 %v1355_v29 }
 0x34c   : > { %1503 = vmatpush.bf16.msrb.mxu1 %v1356_v45  ;;  %v1098_v10 = vpop.permute.xlu0 %1097 }
 0x34d   : > { %v7926_v53 = vpop.permute.xlu1 %1227  ;;  %v1103_v59 = vsel %vm635_vm7, %v7742_v11, %v1098_v10  ;;  %v1107_v4 = vsel %vm635_vm7, %v1098_v10, %v7742_v11 }
 0x34e   : > { %v1240_v2 = vsel %vm707_vm4, %v7926_v53, %v7832_v19  ;;  %v1113_v37 = vmul.f32 %v1107_v4, %v11938_v26  ;;  %v1114_v25 = vmul.f32 %v1103_v59, %v11939_v12  ;;  %v1307_v59 = vsel %vm739_vm0, %v7700_v34, %v7731_v6  ;;  %v6234_v34 = vld [vmem:[%s11735_s4] sm:$0xf] }
 0x34f   : > { %1447 = vmatpush.bf16.msra.mxu2 %v1353_v58  ;;  %v1251_v27 = vmul.f32 %v1240_v2, %v7314_v43  ;;  %v1367_v58 = vpack.c.bf16 %v1219_v30, %v1217_v55  ;;  %v11940_v2 = vld [vmem:[#allocation27_spill] sm:$0xff] }
 0x350   : > { %1504 = vmatpush.bf16.msrb.mxu1 %v1354_v32  ;;  %v7962_v48 = vpop.permute.xlu2 %1317  ;;  %v11941_v32 = vld [vmem:[#allocation25_spill] sm:$0xff] }
 0x351   : > { %v1371_v36 = vpack.c.bf16 %v1251_v27, %v1249_v24  ;;  %v1213_v24 = vmul.f32 %v11941_v32, %v7306_v35  ;;  %v6780_v27 = vld [vmem:[%s11735_s4 + $0x4] sm:$0xf] }
 0x353   : > { %1465 = vmatpush.bf16.msra.mxu3 %v1371_v36  ;;  %v1101_v36 = vsel %vm635_vm7, %v7894_v3, %v1094_v61 }
 0x354   : > { %v1088_v52 = vpop.permute.xlu0 %1087  ;;  %v1110_v30 = vmul.f32 %v1101_v36, %v11939_v12 }
 0x355   : > { %v1092_v14 = vpop.permute.xlu1 %1091 }
 0x356   : > { %v1104_v29 = vsel %vm635_vm7, %v1092_v14, %v1100_v28  ;;  %v1108_v45 = vsel %vm635_vm7, %v1100_v28, %v1092_v14  ;;  %v1215_v28 = vmul.f32 %v11940_v2, %v7306_v35 }
 0x357   : > { %1466 = vmatpush.bf16.msra.mxu3 %v1369_v5  ;;  %v1115_v11 = vmul.f32 %v1108_v45, %v11938_v26  ;;  %v1116_v10 = vmul.f32 %v1104_v29, %v11939_v12  ;;  %v8000_v5 = vor.u32 %v6780_v27, %v6236_v20  ;;  %v1314_v29 = vmul.f32 %v1307_v59, %v11942_v56  ;;  %v11944_v20 = vld [vmem:[#allocation3_spill] sm:$0xff] }
 0x358   : > { %v1365_v14 = vpack.c.bf16 %v1215_v28, %v1213_v24  ;;  %v1312_v45 = vmul.f32 %v1306_v1, %v11942_v56  ;;  %v11943_v24 = vld [vmem:[#allocation7_spill] sm:$0xff] }
 0x359   : > { %v1351_v15 = vpack.c.bf16 %v1115_v11, %v1113_v37  ;;  %v1352_v42 = vpack.c.bf16 %v1116_v10, %v1114_v25  ;;  %v1276_v11 = vsel %vm723_vm2, %v7844_v13, %v7766_v44  ;;  %v1380_v25 = vpack.c.bf16 %v1316_v54, %v1314_v29  ;;  %v6248_v54 = vld [vmem:[%s11735_s4 + $0x24] sm:$0xf0]  ;;  %v11946_v29 = vld [vmem:[#allocation10_spill] sm:$0xff] }
 0x35a   : > { %v1275_v44 = vsel %vm723_vm2, %v7757_v60, %v7744_v23  ;;  %v1284_v27 = vmul.f32 %v1276_v11, %v11943_v24  ;;  %v1273_v23 = vsel %vm723_vm2, %v7624_v47, %v7648_v46  ;;  %v6783_v46 = vld [vmem:[%s11735_s4 + $0x1c] sm:$0xf]  ;;  %v6246_v11 = vld [vmem:[%s11735_s4 + $0x18] sm:$0xf] }
 0x35b   : > { %1448 = vmatpush.bf16.msra.mxu2 %v1351_v15  ;;  %1467 = vmatpush.bf16.msra.mxu3 %v1367_v58  ;;  %v1310_v15 = vmul.f32 %v1305_v63, %v11942_v56  ;;  %v1324_v58 = vpop.permute.xlu2 %1323  ;;  %v1282_v59 = vmul.f32 %v1275_v44, %v11943_v24  ;;  %v1278_v47 = vmul.f32 %v1273_v23, %v11943_v24 }
 0x35c   : > { %1505 = vmatpush.bf16.msrb.mxu1 %v1352_v42  ;;  %v1322_v49 = vpop.permute.xlu0 %1321  ;;  %v1274_v42 = vsel %vm723_vm2, %v7704_v38, %v7690_v22 }
 0x35d   : > { %v1096_v4 = vpop.permute.xlu1 %1095  ;;  %v1378_v28 = vpack.c.bf16 %v1312_v45, %v1310_v15  ;;  %v6784_v15 = vld [vmem:[%s11735_s4 + $0x20] sm:$0xf0] }
 0x35e   : > { %v1102_v3 = vsel %vm635_vm7, %v1088_v52, %v1096_v4  ;;  %v1106_v61 = vsel %vm635_vm7, %v1096_v4, %v1088_v52  ;;  %v6781_v52 = vld [vmem:[%s11735_s4 + $0x8] sm:$0xf0] }
 0x35f   : > { %1468 = vmatpush.bf16.msra.mxu3 %v1365_v14  ;;  %v1111_v21 = vmul.f32 %v1106_v61, %v11938_v26  ;;  %v1112_v6 = vmul.f32 %v1102_v3, %v11939_v12  ;;  %v6235_v10 = vor.u32 %v6781_v52, %v6234_v34  ;;  %v1244_v3 = vsel %vm707_vm4, %v7832_v19, %v7926_v53 }
 0x360   : > { %v1376_v61 = vpack.c.bf16 %v1284_v27, %v1282_v59  ;;  %v6251_v52 = vor.u32 %v6783_v46, %v6248_v54  ;;  %v1252_v45 = vmul.f32 %v1244_v3, %v11946_v29  ;;  %v11951_v59 = vld [vmem:[#allocation26_spill] sm:$0xff]  ;;  %v6785_v3 = vld [vmem:[%s11735_s4 + $0x28] sm:$0xf0] }
 0x361   : > { %v1349_v55 = vpack.c.bf16 %v1111_v21, %v1109_v40  ;;  %v1350_v37 = vpack.c.bf16 %v1112_v6, %v1110_v30  ;;  %v1243_v40 = vsel %vm707_vm4, %v7762_v41, %v7729_v9 }
 0x362   : > { %1469 = vmatmul.bf16.vlgmr.msra.gmra.mxu3 %v8000_v5 }
 0x363   : > { %1449 = vmatpush.bf16.msra.mxu2 %v1349_v55  ;;  %1506 = vmatpush.bf16.msrb.mxu1 %v1350_v37  ;;  %v1328_v21 = vpop.permute.xlu2 %1327 }
 0x364   : > { %v1332_v2 = vpop.permute.xlu0 %1331 }
 0x365   : > { %v1330_v13 = vpop.permute.xlu1 %1329  ;;  %v1336_v50 = vsel %vm755_vm1, %v1324_v58, %v1332_v2  ;;  %v1340_v32 = vsel %vm755_vm1, %v1332_v2, %v1324_v58  ;;  %v6242_v58 = vld [vmem:[%s11735_s4 + $0x8] sm:$0xf]  ;;  %v1250_v2 = vmul.f32 %v1243_v40, %v11946_v29 }
 0x366   : > { %v1335_v22 = vsel %vm755_vm1, %v1322_v49, %v1330_v13  ;;  %v1339_v38 = vsel %vm755_vm1, %v1330_v13, %v1322_v49  ;;  %1450 = vmatmul.bf16.vlgmr.msra.gmra.mxu2 %v6235_v10  ;;  %1507 = vmatmul.bf16.vlgmr.msrb.gmra.mxu1 %v6235_v10  ;;  %v1347_v36 = vmul.f32 %v1336_v50, %v11944_v20 }
 0x367   : > { %1518 = vmatpush.bf16.msrb.mxu2 %v1380_v25  ;;  %v1345_v60 = vmul.f32 %v1335_v22, %v11944_v20  ;;  %v1346_v63 = vmul.f32 %v1339_v38, %v11945_v39  ;;  %v1348_v1 = vmul.f32 %v1340_v32, %v11945_v39  ;;  %v1280_v49 = vmul.f32 %v1274_v42, %v11943_v24  ;;  %v6782_v42 = vld [vmem:[%s11735_s4 + $0x10] sm:$0xf0] }
 0x368   : > { %v1372_v44 = vpack.c.bf16 %v1252_v45, %v1250_v2  ;;  %v6247_v13 = vor.u32 %v6784_v15, %v6246_v11  ;;  %v6243_v50 = vor.u32 %v6782_v42, %v6242_v58  ;;  %v11947_v38 = vld [vmem:[#allocation9_spill] sm:$0xff] }
 0x369   : > { %v1383_v4 = vpack.c.bf16 %v1347_v36, %v1345_v60  ;;  %v1384_v14 = vpack.c.bf16 %v1348_v1, %v1346_v63  ;;  %v1374_v53 = vpack.c.bf16 %v1280_v49, %v1278_v47  ;;  %v11949_v36 = vld [vmem:[#allocation29_spill] sm:$0xff]  ;;  %v11950_v63 = vld [vmem:[#allocation28_spill] sm:$0xff]  ;;  %v1214_v49 = vmul.f32 %v11951_v59, %v11947_v38 }
 0x36a   : > { %v1218_v23 = vmul.f32 %v11949_v36, %v11947_v38  ;;  %v1216_v1 = vmul.f32 %v11950_v63, %v11947_v38 }
 0x36b   : > { %1519 = vmatpush.bf16.msrb.mxu2 %v1378_v28  ;;  %1486 = vmatpush.bf16.msrb.mxu0 %v1383_v4 }
 0x36c   : > { %1543 = vmatpush.bf16.msrb.mxu3 %v1384_v14  ;;  %v1326_v19 = vpop.permute.xlu0 %1325  ;;  %v1366_v4 = vpack.c.bf16 %v1216_v1, %v1214_v49  ;;  %v6254_v14 = vld [vmem:[%s11735_s4 + $0x20] sm:$0xf] }
 0x36d   : > { %v1320_v30 = vpop.permute.xlu1 %1319  ;;  %v1333_v6 = vsel %vm755_vm1, %v7962_v48, %v1326_v19  ;;  %v1337_v34 = vsel %vm755_vm1, %v1326_v19, %v7962_v48  ;;  %v1242_v48 = vsel %vm707_vm4, %v7716_v57, %v7680_v16  ;;  %v1241_v16 = vsel %vm707_vm4, %v7672_v8, %v7670_v51  ;;  %v11948_v51 = vld [vmem:[#allocation30_spill] sm:$0xff] }
 0x36e   : > { %v1334_v55 = vsel %vm755_vm1, %v1320_v30, %v1328_v21  ;;  %v1338_v41 = vsel %vm755_vm1, %v1328_v21, %v1320_v30  ;;  %v1341_v9 = vmul.f32 %v1333_v6, %v11944_v20  ;;  %v1342_v37 = vmul.f32 %v1337_v34, %v11945_v39 }
 0x36f   : > { %1520 = vmatpush.bf16.msrb.mxu2 %v1376_v61  ;;  %v1343_v25 = vmul.f32 %v1334_v55, %v11944_v20  ;;  %v1344_v10 = vmul.f32 %v1338_v41, %v11945_v39  ;;  %v1248_v32 = vmul.f32 %v1242_v48, %v11946_v29  ;;  %v1246_v27 = vmul.f32 %v1241_v16, %v11946_v29  ;;  %v1388_v55 = vpop.permute.xlu2 %1387  ;;  %v6309_v39 = vld [vmem:[%s11736_s5 + $0x108] sm:$0xff] }
 0x370   : > { %v1220_v8 = vmul.f32 %v11948_v51, %v11947_v38  ;;  %v6255_v61 = vor.u32 %v6785_v3, %v6254_v14 }
 0x371   : > { %v1381_v57 = vpack.c.bf16 %v1343_v25, %v1341_v9  ;;  %v1382_v28 = vpack.c.bf16 %v1344_v10, %v1342_v37  ;;  %v1370_v22 = vpack.c.bf16 %v1248_v32, %v1246_v27 }
 0x372   : > { %1474 = vmatmul.bf16.gmra.mxu3 %v6251_v52  ;;  %v1368_v60 = vpack.c.bf16 %v1220_v8, %v1218_v23 }
 0x373   : > { %1521 = vmatpush.bf16.msrb.mxu2 %v1374_v53  ;;  %1487 = vmatpush.bf16.msrb.mxu0 %v1381_v57 }
 0x374   : > { %1544 = vmatpush.bf16.msrb.mxu3 %v1382_v28 }
 0x375   : > { %v1398_v45 = vpop.permute.xlu1 %1397 }
 0x376   : > { %1455 = vmatmul.bf16.gmra.mxu2 %v6247_v13  ;;  %6256 = vmatmul.msk.bf16.vlgmr.msrb.gmra.mxu0 %vm1435_vm15, %v6243_v50 }
 0x377   : > { %1522 = vmatpush.bf16.msrb.mxu2 %v1372_v44  ;;  %1512 = vmatmul.bf16.gmra.mxu1 %v6247_v13 }
 0x37b   : > { %1523 = vmatpush.bf16.msrb.mxu2 %v1370_v22 }
 0x37d   : > { %v1393_v58 = vpop.permute.xlu1 %1392 }
 0x37f   : > { %1524 = vmatpush.bf16.msrb.mxu2 %v1368_v60 }
 0x382   : > { %6258 = vmatmul.msk.bf16.vlgmr.msrb.gmra.mxu3 %vm1435_vm15, %v6243_v50 }
 0x383   : > { %1525 = vmatpush.bf16.msrb.mxu2 %v1366_v4  ;;  %v1403_v4 = vpop.permute.xlu0 %1402 }
 0x386   : > { %6257 = vmatmul.msk.bf16.gmra.mxu0 %vm1435_vm15, %v6255_v61  ;;  %1526 = vmatmul.bf16.vlgmr.msrb.gmra.mxu2 %v8000_v5 }
 0x392   : > { %6259 = vmatmul.msk.bf16.gmra.mxu3 %vm1435_vm15, %v6255_v61 }
 0x396   : > { %1531 = vmatmul.bf16.gmra.mxu2 %v6251_v52 }
 0x3e3   : > { %v1508_v30 = vpop.f32.mrf.mxu1 }
 0x3e4   : > { %v1509_v37 = vadd.f32 %v1508_v30, %v1388_v55 }
 0x3e5   : > { %v1470_v47 = vpop.f32.mrf.mxu3 }
 0x3e9   : > { %v1451_v46 = vpop.f32.mrf.mxu2 }
 0x3ea   : > { %v1452_v9 = vadd.f32 %v1451_v46, %v1388_v55 }
 0x3eb   : > { %v1510_v11 = vpop.f32.mrf.mxu1 }
 0x3ec   : > { %v1471_v48 = vadd.f32 %v1470_v47, %v1452_v9  ;;  %v1511_v57 = vadd.f32 %v1510_v11, %v1393_v58 }
 0x3ed   : > { %v1472_v54 = vpop.f32.mrf.mxu3 }
 0x3f1   : > { %v1453_v40 = vpop.f32.mrf.mxu2 }
 0x3f2   : > { %v1454_v42 = vadd.f32 %v1453_v40, %v1393_v58 }
 0x3f3   : > { %v1489_v34 = vpop.f32.mrf.mxu0 }
 0x3f4   : > { %v1490_v52 = vadd.f32 %v1489_v34, %v1471_v48  ;;  %v1473_v44 = vadd.f32 %v1472_v54, %v1454_v42  ;;  %v1513_v50 = vpop.f32.mrf.mxu1  ;;  %v11952_v48 = vld [vmem:[#allocation24_spill] sm:$0xff] }
 0x3f5   : > { %v1475_v19 = vpop.f32.mrf.mxu3  ;;  %v1514_v23 = vadd.f32 %v1513_v50, %v1398_v45 }
 0x3f9   : > { %v1456_v53 = vpop.f32.mrf.mxu2 }
 0x3fa   : > { %v1457_v22 = vadd.f32 %v1456_v53, %v1398_v45 }
 0x3fb   : > { %v1491_v10 = vpop.f32.mrf.mxu0 }
 0x3fc   : > { %v1492_v32 = vadd.f32 %v1491_v10, %v1473_v44  ;;  %v1476_v63 = vadd.f32 %v1475_v19, %v1457_v22  ;;  %v1515_v14 = vpop.f32.mrf.mxu1  ;;  %v8122_v19 = vpop.permute.xlu0 %1678 }
 0x3fd   : > { %v1477_v21 = vpop.f32.mrf.mxu3  ;;  %v1516_v47 = vadd.f32 %v1515_v14, %v1403_v4 }
 0x401   : > { %v1458_v6 = vpop.f32.mrf.mxu2 }
 0x402   : > { %v1459_v3 = vadd.f32 %v1458_v6, %v1403_v4 }
 0x403   : > { %v1494_v51 = vpop.f32.mrf.mxu0 }
 0x404   : > { %v1495_v59 = vadd.f32 %v1494_v51, %v1476_v63  ;;  %v1478_v53 = vadd.f32 %v1477_v21, %v1459_v3 }
 0x405   : > { %v1546_v41 = vpop.f32.mrf.mxu3 }
 0x409   : > { %v1527_v5 = vpop.f32.mrf.mxu2 }
 0x40a   : > { %v1528_v25 = vadd.f32 %v1527_v5, %v1509_v37  ;;  %v8126_v37 = vpop.permute.xlu0 %1711 }
 0x40b   : > { %v1496_v46 = vpop.f32.mrf.mxu0 }
 0x40c   : > { %v1547_v15 = vadd.f32 %v1546_v41, %v1528_v25  ;;  %v1497_v34 = vadd.f32 %v1496_v46, %v1478_v53  ;;  %v8120_v41 = vpop.permute.xlu1 %1673 }
 0x40d   : > { %v1548_v16 = vpop.f32.mrf.mxu3 }
 0x40e   : > { %v1556_v2 = vadd.f32 %v1547_v15, %v1490_v52 }
 0x410   : > { %1557 = vadd.xlane.f32.xlu1 %v1556_v2  ;;  %v8133_v2 = vpop.permute.xlu2 %1706 }
 0x411   : > { %v1529_v28 = vpop.f32.mrf.mxu2 }
 0x412   : > { %v1530_v13 = vadd.f32 %v1529_v28, %v1511_v57  ;;  %v8130_v11 = vpop.permute.xlu0 %1696 }
 0x414   : > { %v1549_v27 = vadd.f32 %v1548_v16, %v1530_v13  ;;  %v8124_v9 = vpop.permute.xlu1 %1663 }
 0x415   : > { %v1551_v36 = vpop.f32.mrf.mxu3 }
 0x416   : > { %v1559_v8 = vadd.f32 %v1549_v27, %v1492_v32 }
 0x418   : > { %1560 = vadd.xlane.f32.xlu0 %v1559_v8  ;;  %v8144_v22 = vpop.permute.xlu2 %1668 }
 0x419   : > { %v1532_v60 = vpop.f32.mrf.mxu2 }
 0x41a   : > { %v1533_v1 = vadd.f32 %v1532_v60, %v1514_v23 }
 0x41c   : > { %v1552_v49 = vadd.f32 %v1551_v36, %v1533_v1  ;;  %v8128_v6 = vpop.permute.xlu1 %1701 }
 0x41d   : > { %v1553_v40 = vpop.f32.mrf.mxu3 }
 0x41e   : > { %v1562_v61 = vadd.f32 %v1552_v49, %v1495_v59 }
 0x420   : > { %1563 = vadd.xlane.f32.xlu0 %v1562_v61 }
 0x421   : > { %v1534_v54 = vpop.f32.mrf.mxu2 }
 0x422   : > { %v1535_v30 = vadd.f32 %v1534_v54, %v1516_v47 }
 0x424   : > { %v1554_v55 = vadd.f32 %v1553_v40, %v1535_v30 }
 0x426   : > { %v1565_v45 = vadd.f32 %v1554_v55, %v1497_v34 }
 0x428   : > { %1566 = vadd.xlane.f32.xlu2 %v1565_v45 }
 0x483   : > { %v1558_v5 = vpop.xlane.xlu1 %1557 }
 0x484   : > { %v1568_v21 = vmul.f32 %v1558_v5, %v11952_v48 }
 0x486   : > { %v1572_v25 = vsub.f32 %v1490_v52, %v1568_v21  ;;  %v1573_v10 = vsub.f32 %v1547_v15, %v1568_v21 }
 0x488   : > { %v1580_v58 = vmul.f32 %v1572_v25, %v1572_v25  ;;  %v1581_v42 = vmul.f32 %v1573_v10, %v1573_v10 }
 0x48a   : > { %v1588_v16 = vadd.f32 %v1581_v42, %v1580_v58 }
 0x48b   : > { %v1561_v57 = vpop.xlane.xlu0 %1560 }
 0x48c   : > { %v1569_v28 = vmul.f32 %v1561_v57, %v11952_v48  ;;  %1589 = vadd.xlane.f32.xlu0 %v1588_v16 }
 0x48e   : > { %v8136_v44 = vsub.f32 %v1492_v32, %v1569_v28  ;;  %v8138_v13 = vsub.f32 %v1549_v27, %v1569_v28 }
 0x490   : > { %v1582_v50 = vmul.f32 %v8136_v44, %v8136_v44  ;;  %v1583_v52 = vmul.f32 %v8138_v13, %v8138_v13 }
 0x492   : > { %v1591_v15 = vadd.f32 %v1583_v52, %v1582_v50 }
 0x493   : > { %v1564_v51 = vpop.xlane.xlu0 %1563 }
 0x494   : > { %v1570_v8 = vmul.f32 %v1564_v51, %v11952_v48  ;;  %1592 = vadd.xlane.f32.xlu2 %v1591_v15 }
 0x496   : > { %v8147_v36 = vsub.f32 %v1495_v59, %v1570_v8  ;;  %v8149_v23 = vsub.f32 %v1552_v49, %v1570_v8 }
 0x498   : > { %v1584_v32 = vmul.f32 %v8147_v36, %v8147_v36  ;;  %v1585_v27 = vmul.f32 %v8149_v23, %v8149_v23 }
 0x49a   : > { %v1594_v60 = vadd.f32 %v1585_v27, %v1584_v32 }
 0x49b   : > { %v1567_v63 = vpop.xlane.xlu2 %1566 }
 0x49c   : > { %v1571_v1 = vmul.f32 %v1567_v63, %v11952_v48  ;;  %1595 = vadd.xlane.f32.xlu2 %v1594_v60 }
 0x49e   : > { %v8156_v4 = vsub.f32 %v1497_v34, %v1571_v1  ;;  %v8158_v14 = vsub.f32 %v1554_v55, %v1571_v1 }
 0x4a0   : > { %v1586_v59 = vmul.f32 %v8156_v4, %v8156_v4  ;;  %v1587_v49 = vmul.f32 %v8158_v14, %v8158_v14 }
 0x4a2   : > { %v1597_v3 = vadd.f32 %v1587_v49, %v1586_v59 }
 0x4a4   : > { %1598 = vadd.xlane.f32.xlu1 %v1597_v3 }
 0x4ff   : > { %v1590_v61 = vpop.xlane.xlu0 %1589 }
 0x500   : > { %v1600_v47 = vmul.f32 %v1590_v61, %v11952_v48 }
 0x502   : > { %v1604_v46 = vadd.f32 1e-05, %v1600_v47 }
 0x504   : > { %6945 = vrsqrt.f32 %v1604_v46  ;;  %vm1614_vm9 = vweird.f32 %v1604_v46 }
 0x507   : > { %v1593_v54 = vpop.xlane.xlu2 %1592 }
 0x508   : > { %v1601_v40 = vmul.f32 %v1593_v54, %v11952_v48 }
 0x50a   : > { %v6946_v53 = vpop.eup %6945  ;;  %v1605_v30 = vadd.f32 1e-05, %v1601_v40 }
 0x50b   : > { %v1609_v34 = vmul.f32 %v6946_v53, %v1604_v46  ;;  %vm1615_vm3 = vweird.f32 %v6946_v53 }
 0x50c   : > { %6947 = vrsqrt.f32 %v1605_v30  ;;  %vm1616_vm10 = vmor %vm1614_vm9, %vm1615_vm3  ;;  %vm1624_vm12 = vweird.f32 %v1605_v30 }
 0x50d   : > { %v1610_v55 = vmul.f32 %v6946_v53, %v1609_v34 }
 0x50f   : > { %v1611_v45 = vmul.f32 0.5, %v1610_v55  ;;  %v1596_v28 = vpop.xlane.xlu2 %1595 }
 0x510   : > { %v1602_v32 = vmul.f32 %v1596_v28, %v11952_v48 }
 0x511   : > { %v1612_v5 = vsub.f32 1.5, %v1611_v45 }
 0x512   : > { %v6948_v21 = vpop.eup %6947 }
 0x513   : > { %v1613_v58 = vmul.f32 %v6946_v53, %v1612_v5  ;;  %v1619_v42 = vmul.f32 %v6948_v21, %v1605_v30  ;;  %vm1625_vm11 = vweird.f32 %v6948_v21 }
 0x514   : > { %vm1626_vm13 = vmor %vm1624_vm12, %vm1625_vm11 }
 0x515   : > { %v1617_v16 = vsel %vm1616_vm10, %v6946_v53, %v1613_v58  ;;  %v1620_v57 = vmul.f32 %v6948_v21, %v1619_v42 }
 0x516   : > { %v1648_v50 = vmul.f32 %v1617_v16, %v1572_v25  ;;  %v1649_v52 = vmul.f32 %v1617_v16, %v1573_v10  ;;  %v1606_v25 = vadd.f32 1e-05, %v1602_v32 }
 0x517   : > { %v1621_v15 = vmul.f32 0.5, %v1620_v57  ;;  %v1599_v57 = vpop.xlane.xlu1 %1598 }
 0x518   : > { %v1681_v51 = vmul.f32 %v8124_v9, %v1648_v50  ;;  %v1682_v8 = vmul.f32 %v8124_v9, %v1649_v52  ;;  %v1603_v50 = vmul.f32 %v1599_v57, %v11952_v48  ;;  %vm1634_vm3 = vweird.f32 %v1606_v25  ;;  %v6312_v48 = vld [vmem:[%s11736_s5 + $0x180] sm:$0xff] }
 0x519   : > { %v1622_v27 = vsub.f32 1.5, %v1621_v15 }
 0x51a   : > { %v1714_v60 = vadd.f32 %v8130_v11, %v1681_v51  ;;  %v1715_v63 = vadd.f32 %v8130_v11, %v1682_v8  ;;  %v1607_v15 = vadd.f32 1e-05, %v1603_v50 }
 0x51b   : > { %v1623_v1 = vmul.f32 %v6948_v21, %v1622_v27 }
 0x51c   : > { %v1722_v59 = vmul.f32 0.5, %v1714_v60  ;;  %v1723_v49 = vmul.f32 0.5, %v1715_v63  ;;  %vm1644_vm11 = vweird.f32 %v1607_v15 }
 0x51d   : > { %v1627_v10 = vsel %vm1626_vm13, %v6948_v21, %v1623_v1 }
 0x51e   : > { %6949 = vtanh.f32 %v1722_v59  ;;  %v1651_v3 = vmul.f32 %v1627_v10, %v8138_v13  ;;  %v1650_v30 = vmul.f32 %v1627_v10, %v8136_v44 }
 0x51f   : > { %6951 = vtanh.f32 %v1723_v49 }
 0x520   : > { %6953 = vrsqrt.f32 %v1606_v25  ;;  %v1684_v61 = vmul.f32 %v8144_v22, %v1651_v3  ;;  %v1683_v13 = vmul.f32 %v8144_v22, %v1650_v30 }
 0x522   : > { %v1717_v34 = vadd.f32 %v8128_v6, %v1684_v61  ;;  %v1716_v58 = vadd.f32 %v8128_v6, %v1683_v13 }
 0x524   : > { %v6950_v9 = vpop.eup %6949  ;;  %v1725_v21 = vmul.f32 0.5, %v1717_v34  ;;  %v1724_v16 = vmul.f32 0.5, %v1716_v58 }
 0x525   : > { %v6952_v47 = vpop.eup %6951  ;;  %v1738_v46 = vadd.f32 1.0, %v6950_v9 }
 0x526   : > { %v6954_v54 = vpop.eup %6953  ;;  %v1739_v40 = vadd.f32 1.0, %v6952_v47  ;;  %6955 = vtanh.f32 %v1725_v21 }
 0x527   : > { %v1746_v11 = vmul.f32 0.5, %v1738_v46  ;;  %v1629_v45 = vmul.f32 %v6954_v54, %v1606_v25  ;;  %6957 = vtanh.f32 %v1724_v16  ;;  %vm1635_vm14 = vweird.f32 %v6954_v54 }
 0x528   : > { %v1747_v53 = vmul.f32 0.5, %v1739_v40  ;;  %vm1636_vm9 = vmor %vm1634_vm3, %vm1635_vm14  ;;  %6959 = vrsqrt.f32 %v1607_v15 }
 0x529   : > { %v8175_v55 = vmul.f32 %v1746_v11, %v1714_v60  ;;  %v1630_v44 = vmul.f32 %v6954_v54, %v1629_v45 }
 0x52a   : > { %v8177_v5 = vmul.f32 %v1747_v53, %v1715_v63 }
 0x52b   : > { %1976 = vrot.lane.b32.xlu0 %v8175_v55, %s11954_s26  ;;  %v1631_v42 = vmul.f32 0.5, %v1630_v44 }
 0x52c   : > { %11953 = vst [vmem:[#allocation27_spill] sm:$0xff] %v8177_v5  ;;  %1952 = vrot.lane.b32.xlu1 %v8177_v5, %s11929_s23  ;;  %1984 = vrot.lane.b32.xlu2 %v8177_v5, %s11954_s26  ;;  %v6956_v28 = vpop.eup %6955 }
 0x52d   : > { %v1632_v22 = vsub.f32 1.5, %v1631_v42  ;;  %v1741_v52 = vadd.f32 1.0, %v6956_v28  ;;  %v6958_v32 = vpop.eup %6957 }
 0x52e   : > { %v1740_v60 = vadd.f32 1.0, %v6958_v32  ;;  %v6960_v49 = vpop.eup %6959 }
 0x52f   : > { %v1633_v6 = vmul.f32 %v6954_v54, %v1632_v22  ;;  %v1749_v51 = vmul.f32 0.5, %v1741_v52  ;;  %v1639_v3 = vmul.f32 %v6960_v49, %v1607_v15  ;;  %vm1645_vm10 = vweird.f32 %v6960_v49 }
 0x530   : > { %v1748_v59 = vmul.f32 0.5, %v1740_v60  ;;  %vm1646_vm12 = vmor %vm1644_vm11, %vm1645_vm10 }
 0x531   : > { %v1637_v8 = vsel %vm1636_vm9, %v6954_v54, %v1633_v6  ;;  %v8201_v63 = vmul.f32 %v1749_v51, %v1717_v34  ;;  %v1640_v47 = vmul.f32 %v6960_v49, %v1639_v3 }
 0x532   : > { %v1653_v27 = vmul.f32 %v1637_v8, %v8149_v23  ;;  %v1652_v25 = vmul.f32 %v1637_v8, %v8147_v36  ;;  %v8212_v10 = vmul.f32 %v1748_v59, %v1716_v58 }
 0x533   : > { %1920 = vrot.lane.b32.xlu0 %v8177_v5, %s11931_s22  ;;  %11957 = vst [vmem:[#allocation25_spill] sm:$0xff] %v8201_v63  ;;  %v1641_v46 = vmul.f32 0.5, %v1640_v47 }
 0x534   : > { %1912 = vrot.lane.b32.xlu1 %v8175_v55, %s11931_s22  ;;  %1944 = vrot.lane.b32.xlu2 %v8175_v55, %s11929_s23  ;;  %v1686_v1 = vmul.f32 %v8120_v41, %v1653_v27  ;;  %v1685_v9 = vmul.f32 %v8120_v41, %v1652_v25 }
 0x535   : > { %v1642_v41 = vsub.f32 1.5, %v1641_v46 }
 0x536   : > { %v1719_v23 = vadd.f32 %v8133_v2, %v1686_v1  ;;  %v1718_v36 = vadd.f32 %v8133_v2, %v1685_v9 }
 0x537   : > { %v1643_v53 = vmul.f32 %v6960_v49, %v1642_v41 }
 0x538   : > { %v1727_v61 = vmul.f32 0.5, %v1719_v23  ;;  %v1726_v54 = vmul.f32 0.5, %v1718_v36 }
 0x539   : > { %v1647_v30 = vsel %vm1646_vm12, %v6960_v49, %v1643_v53 }
 0x53a   : > { %6961 = vtanh.f32 %v1727_v61  ;;  %v1654_v45 = vmul.f32 %v1647_v30, %v8156_v4  ;;  %v1655_v4 = vmul.f32 %v1647_v30, %v8158_v14 }
 0x53b   : > { %1872 = vrot.lane.b32.xlu0 %v8175_v55, %s11955_s21  ;;  %6963 = vtanh.f32 %v1726_v54 }
 0x53c   : > { %1848 = vrot.lane.b32.xlu1 %v8177_v5, %s11956_s0  ;;  %1880 = vrot.lane.b32.xlu2 %v8177_v5, %s11955_s21  ;;  %v1687_v44 = vmul.f32 %v8122_v19, %v1654_v45  ;;  %v1688_v57 = vmul.f32 %v8122_v19, %v1655_v4 }
 0x53e   : > { %v1720_v42 = vadd.f32 %v8126_v37, %v1687_v44  ;;  %v1721_v28 = vadd.f32 %v8126_v37, %v1688_v57  ;;  %v6278_v44 = vld [vmem:[%s11736_s5 + $0x50] sm:$0xff]  ;;  %v6277_v57 = vld [vmem:[%s11736_s5 + $0x48] sm:$0xff] }
 0x540   : > { %v6962_v40 = vpop.eup %6961  ;;  %v1728_v22 = vmul.f32 0.5, %v1720_v42  ;;  %v1729_v14 = vmul.f32 0.5, %v1721_v28 }
 0x541   : > { %v1743_v11 = vadd.f32 1.0, %v6962_v40  ;;  %v6964_v34 = vpop.eup %6963 }
 0x542   : > { %v1742_v13 = vadd.f32 1.0, %v6964_v34  ;;  %6965 = vtanh.f32 %v1728_v22 }
 0x543   : > { %1986 = vrot.lane.b32.xlu0 %v8201_v63, %s11954_s26  ;;  %v1751_v2 = vmul.f32 0.5, %v1743_v11  ;;  %6967 = vtanh.f32 %v1729_v14  ;;  %v6276_v14 = vld [vmem:[%s11736_s5 + $0x40] sm:$0xff] }
 0x544   : > { %1808 = vrot.lane.b32.xlu1 %v8175_v55, %s11930_s1  ;;  %1840 = vrot.lane.b32.xlu2 %v8175_v55, %s11956_s0  ;;  %v1750_v58 = vmul.f32 0.5, %v1742_v13 }
 0x545   : > { %v8235_v21 = vmul.f32 %v1751_v2, %v1719_v23 }
 0x546   : > { %v8245_v16 = vmul.f32 %v1750_v58, %v1718_v36  ;;  %v6279_v58 = vld [vmem:[%s11736_s5 + $0x58] sm:$0xff] }
 0x547   : > { %11958 = vst [vmem:[#allocation30_spill] sm:$0xff] %v8235_v21 }
 0x548   : > { %v6966_v50 = vpop.eup %6965 }
 0x549   : > { %v1744_v52 = vadd.f32 1.0, %v6966_v50  ;;  %v6968_v37 = vpop.eup %6967 }
 0x54a   : > { %v1745_v15 = vadd.f32 1.0, %v6968_v37  ;;  %v6310_v37 = vld [vmem:[%s11736_s5 + $0x110] sm:$0xff] }
 0x54b   : > { %1946 = vrot.lane.b32.xlu0 %v8212_v10, %s11929_s23  ;;  %v1752_v19 = vmul.f32 0.5, %v1744_v52 }
 0x54c   : > { %1978 = vrot.lane.b32.xlu1 %v8212_v10, %s11954_s26  ;;  %1954 = vrot.lane.b32.xlu2 %v8201_v63, %s11929_s23  ;;  %v1753_v51 = vmul.f32 0.5, %v1745_v15  ;;  %v6308_v15 = vld [vmem:[%s11736_s5 + $0x100] sm:$0xff] }
 0x54d   : > { %v8268_v6 = vmul.f32 %v1752_v19, %v1720_v42 }
 0x54e   : > { %v8278_v32 = vmul.f32 %v1753_v51, %v1721_v28  ;;  %v6311_v28 = vld [vmem:[%s11736_s5 + $0x118] sm:$0xff]  ;;  %v6314_v51 = vld [vmem:[%s11736_s5 + $0x190] sm:$0xff] }
 0x550   : > { %11959 = vst [vmem:[#allocation29_spill] sm:$0xff] %v8278_v32 }
 0x553   : > { %1882 = vrot.lane.b32.xlu0 %v8201_v63, %s11955_s21 }
 0x554   : > { %1922 = vrot.lane.b32.xlu1 %v8201_v63, %s11931_s22  ;;  %1914 = vrot.lane.b32.xlu2 %v8212_v10, %s11931_s22 }
 0x55b   : > { %1842 = vrot.lane.b32.xlu0 %v8212_v10, %s11956_s0 }
 0x55c   : > { %1874 = vrot.lane.b32.xlu1 %v8212_v10, %s11955_s21  ;;  %1850 = vrot.lane.b32.xlu2 %v8201_v63, %s11956_s0 }
 0x563   : > { %1956 = vrot.lane.b32.xlu0 %v8235_v21, %s11929_s23 }
 0x564   : > { %1988 = vrot.lane.b32.xlu1 %v8235_v21, %s11954_s26  ;;  %1810 = vrot.lane.b32.xlu2 %v8212_v10, %s11930_s1 }
 0x56b   : > { %1916 = vrot.lane.b32.xlu0 %v8245_v16, %s11931_s22 }
 0x56c   : > { %1948 = vrot.lane.b32.xlu1 %v8245_v16, %s11929_s23  ;;  %1980 = vrot.lane.b32.xlu2 %v8245_v16, %s11954_s26 }
 0x573   : > { %1852 = vrot.lane.b32.xlu0 %v8235_v21, %s11956_s0 }
 0x574   : > { %1884 = vrot.lane.b32.xlu1 %v8235_v21, %s11955_s21  ;;  %1924 = vrot.lane.b32.xlu2 %v8235_v21, %s11931_s22 }
 0x57b   : > { %1812 = vrot.lane.b32.xlu0 %v8245_v16, %s11930_s1 }
 0x57c   : > { %1844 = vrot.lane.b32.xlu1 %v8245_v16, %s11956_s0  ;;  %1876 = vrot.lane.b32.xlu2 %v8245_v16, %s11955_s21 }
 0x583   : > { %1982 = vrot.lane.b32.xlu0 %v8268_v6, %s11954_s26 }
 0x584   : > { %1818 = vrot.lane.b32.xlu1 %v8201_v63, %s11930_s1  ;;  %1820 = vrot.lane.b32.xlu2 %v8235_v21, %s11930_s1 }
 0x586   : > { %v8276_v8 = vpop.permute.xlu2 %1984 }
 0x58b   : > { %1816 = vrot.lane.b32.xlu0 %v8177_v5, %s11930_s1 }
 0x58c   : > { %1958 = vrot.lane.b32.xlu1 %v8278_v32, %s11929_s23  ;;  %1990 = vrot.lane.b32.xlu2 %v8278_v32, %s11954_s26 }
 0x58e   : > { %v8286_v27 = vpop.permute.xlu2 %1944 }
 0x593   : > { %1926 = vrot.lane.b32.xlu0 %v8278_v32, %s11931_s22 }
 0x594   : > { %1918 = vrot.lane.b32.xlu1 %v8268_v6, %s11931_s22  ;;  %1950 = vrot.lane.b32.xlu2 %v8268_v6, %s11929_s23 }
 0x596   : > { %v8294_v60 = vpop.permute.xlu2 %1880 }
 0x59b   : > { %1776 = vrot.lane.b32.xlu0 %v8175_v55, %s11935_s3 }
 0x59c   : > { %1788 = vrot.lane.b32.xlu1 %v8235_v21, %s11935_s3  ;;  %1780 = vrot.lane.b32.xlu2 %v8245_v16, %s11935_s3 }
 0x59d   : > { %v8302_v1 = vpop.permute.xlu0 %1976 }
 0x59e   : > { %v8304_v59 = vpop.permute.xlu1 %1952  ;;  %v8306_v49 = vpop.permute.xlu2 %1840 }
 0x5a3   : > { %1878 = vrot.lane.b32.xlu0 %v8268_v6, %s11955_s21 }
 0x5a4   : > { %1778 = vrot.lane.b32.xlu1 %v8212_v10, %s11935_s3  ;;  %1784 = vrot.lane.b32.xlu2 %v8177_v5, %s11935_s3 }
 0x5a5   : > { %v8314_v25 = vpop.permute.xlu0 %1920 }
 0x5a6   : > { %v8316_v23 = vpop.permute.xlu1 %1912  ;;  %v8318_v3 = vpop.permute.xlu2 %1954 }
 0x5ab   : > { %1786 = vrot.lane.b32.xlu0 %v8201_v63, %s11935_s3 }
 0x5ac   : > { %1854 = vrot.lane.b32.xlu1 %v8278_v32, %s11956_s0  ;;  %1886 = vrot.lane.b32.xlu2 %v8278_v32, %s11955_s21 }
 0x5ad   : > { %v8326_v9 = vpop.permute.xlu0 %1872 }
 0x5ae   : > { %v8328_v61 = vpop.permute.xlu1 %1848  ;;  %v8330_v47 = vpop.permute.xlu2 %1914 }
 0x5b3   : > { %1822 = vrot.lane.b32.xlu0 %v8278_v32, %s11930_s1 }
 0x5b4   : > { %1814 = vrot.lane.b32.xlu1 %v8268_v6, %s11930_s1  ;;  %1846 = vrot.lane.b32.xlu2 %v8268_v6, %s11956_s0 }
 0x5b5   : > { %v8338_v36 = vpop.permute.xlu0 %1986 }
 0x5b6   : > { %v8340_v46 = vpop.permute.xlu1 %1808  ;;  %v8342_v54 = vpop.permute.xlu2 %1850 }
 0x5b7   : > { %11960 = vst [vmem:[#allocation28_spill] sm:$0xff] %v8340_v46 }
 0x5bb   : > { %1782 = vrot.lane.b32.xlu0 %v8268_v6, %s11935_s3 }
 0x5bc   : > { %2012 = vrot.lane.b32.xlu1 %v8245_v16, %s11937_s28  ;;  %2008 = vrot.lane.b32.xlu2 %v8175_v55, %s11937_s28 }
 0x5bd   : > { %v8350_v41 = vpop.permute.xlu0 %1946 }
 0x5be   : > { %v8352_v40 = vpop.permute.xlu1 %1978  ;;  %v8354_v11 = vpop.permute.xlu2 %1810 }
 0x5bf   : > { %11961 = vst [vmem:[#allocation26_spill] sm:$0xff] %v8354_v11  ;;  %v1961_v11 = vsel %vm723_vm2, %v8350_v41, %v8318_v3 }
 0x5c3   : > { %2020 = vrot.lane.b32.xlu0 %v8235_v21, %s11937_s28 }
 0x5c4   : > { %2022 = vrot.lane.b32.xlu1 %v8278_v32, %s11937_s28  ;;  %1790 = vrot.lane.b32.xlu2 %v8278_v32, %s11935_s3 }
 0x5c5   : > { %v8362_v53 = vpop.permute.xlu0 %1882 }
 0x5c6   : > { %v8364_v2 = vpop.permute.xlu1 %1922  ;;  %v8366_v30 = vpop.permute.xlu2 %1980 }
 0x5cb   : > { %2010 = vrot.lane.b32.xlu0 %v8212_v10, %s11937_s28 }
 0x5cc   : > { %2016 = vrot.lane.b32.xlu1 %v8177_v5, %s11937_s28  ;;  %2014 = vrot.lane.b32.xlu2 %v8268_v6, %s11937_s28 }
 0x5cd   : > { %v8374_v34 = vpop.permute.xlu0 %1842 }
 0x5ce   : > { %v8376_v45 = vpop.permute.xlu1 %1874  ;;  %v8378_v13 = vpop.permute.xlu2 %1924 }
 0x5d3   : > { %2088 = vperm.xlu0 %6908, %v6278_v44  }
 0x5d4   : > { %2093 = vperm.xlu1 %6906, %v6279_v58   ;;  %2018 = vrot.lane.b32.xlu2 %v8201_v63, %s11937_s28  ;;  %v1992_v63 = vsel %vm739_vm0, %v8302_v1, %v8276_v8 }
 0x5d5   : > { %v8388_v42 = vpop.permute.xlu0 %1956  ;;  %v2000_v38 = vmul.f32 %v1992_v63, %v7276_v18 }
 0x5d6   : > { %v8390_v4 = vpop.permute.xlu1 %1988  ;;  %v8392_v22 = vpop.permute.xlu2 %1876 }
 0x5d7   : > { %v1994_v20 = vsel %vm739_vm0, %v8366_v30, %v8390_v4 }
 0x5d8   : > { %v2004_v12 = vmul.f32 %v1994_v20, %v7276_v18 }
 0x5db   : > { %2083 = vperm.xlu0 %6908, %v6277_v57  }
 0x5dc   : > { %2376 = vperm.xlu1 %6906, %v6311_v28   ;;  %2078 = vperm.xlu2 %6907, %v6276_v14   ;;  %v6315_v28 = vld [vmem:[%s11736_s5 + $0x198] sm:$0xff]  ;;  %v6313_v14 = vld [vmem:[%s11736_s5 + $0x188] sm:$0xff] }
 0x5dd   : > { %v8403_v50 = vpop.permute.xlu0 %1916 }
 0x5de   : > { %v8405_v52 = vpop.permute.xlu1 %1948  ;;  %v8407_v19 = vpop.permute.xlu2 %1820 }
 0x5df   : > { %v1962_v20 = vsel %vm723_vm2, %v8405_v52, %v8388_v42 }
 0x5e0   : > { %v1972_v63 = vmul.f32 %v1962_v20, %v7274_v17 }
 0x5e3   : > { %2371 = vperm.xlu0 %6908, %v6310_v37  }
 0x5e4   : > { %2361 = vperm.xlu1 %6906, %v6308_v15   ;;  %2404 = vperm.xlu2 %6907, %v6314_v51  }
 0x5e5   : > { %v8418_v44 = vpop.permute.xlu0 %1852 }
 0x5e6   : > { %v8420_v58 = vpop.permute.xlu1 %1884  ;;  %v1991_v57 = vpop.permute.xlu2 %1990 }
 0x5eb   : > { %2409 = vperm.xlu0 %6908, %v6315_v28  }
 0x5ec   : > { %2399 = vperm.xlu1 %6906, %v6313_v14   ;;  %2394 = vperm.xlu2 %6907, %v6312_v48   ;;  %v1993_v48 = vsel %vm739_vm0, %v8352_v40, %v8338_v36 }
 0x5ed   : > { %v8431_v37 = vpop.permute.xlu0 %1812  ;;  %v2002_v21 = vmul.f32 %v1993_v48, %v7276_v18  ;;  %v1970_v48 = vmul.f32 %v1961_v11, %v7274_v17 }
 0x5ee   : > { %v8433_v15 = vpop.permute.xlu1 %1844  ;;  %v8435_v51 = vpop.permute.xlu2 %1950 }
 0x5f3   : > { %2366 = vperm.xlu0 %6908, %v6309_v39  }
 0x5f5   : > { %v1983_v5 = vpop.permute.xlu0 %1982 }
 0x5f6   : > { %v8448_v28 = vpop.permute.xlu1 %1818  ;;  %v1995_v14 = vsel %vm739_vm0, %v1983_v5, %v1991_v57  ;;  %v8453_v26 = vpop.permute.xlu2 %1780 }
 0x5f7   : > { %11962 = vst [vmem:[#allocation31_spill] sm:$0xff] %v8448_v28  ;;  %v2006_v39 = vmul.f32 %v1995_v14, %v7276_v18 }
 0x5f8   : > { %11963 = vst [vmem:[#allocation32_spill] sm:$0xff] %v8453_v26  ;;  %v2068_v26 = vpack.c.bf16 %v2002_v21, %v2000_v38  ;;  %v1960_v38 = vsel %vm723_vm2, %v8286_v27, %v8304_v59 }
 0x5f9   : > { %v2070_v32 = vpack.c.bf16 %v2006_v39, %v2004_v12  ;;  %v1968_v18 = vmul.f32 %v1960_v38, %v7274_v17 }
 0x5fb   : > { %2151 = vmatpush.bf16.msra.mxu1 %v2070_v32 }
 0x5fd   : > { %v8466_v46 = vpop.permute.xlu0 %1816 }
 0x5fe   : > { %11964 = vst [vmem:[#allocation33_spill] sm:$0xff] %v8466_v46  ;;  %v8468_v14 = vpop.permute.xlu1 %1958  ;;  %v8484_v21 = vpop.permute.xlu2 %1784  ;;  %v2064_v46 = vpack.c.bf16 %v1970_v48, %v1968_v18  ;;  %v1928_v18 = vsel %vm707_vm4, %v8316_v23, %v8314_v25 }
 0x5ff   : > { %v1963_v12 = vsel %vm723_vm2, %v8435_v51, %v8468_v14  ;;  %2152 = vmatpush.bf16.msra.mxu1 %v2068_v26  ;;  %11965 = vst [vmem:[#allocation34_spill] sm:$0xff] %v8484_v21  ;;  %v1930_v26 = vsel %vm707_vm4, %v8403_v50, %v8378_v13  ;;  %v1929_v21 = vsel %vm707_vm4, %v8330_v47, %v8364_v2 }
 0x600   : > { %v1974_v32 = vmul.f32 %v1963_v12, %v7274_v17  ;;  %v1938_v38 = vmul.f32 %v1929_v21, %v7314_v43  ;;  %v1936_v17 = vmul.f32 %v1928_v18, %v7314_v43  ;;  %v1908_v21 = vmul.f32 %v8245_v16, %v7306_v35 }
 0x601   : > { %v1890_v16 = vsel %vm682_vm5, %v8392_v22, %v8420_v58 }
 0x602   : > { %v2066_v39 = vpack.c.bf16 %v1974_v32, %v1972_v63  ;;  %v1940_v63 = vmul.f32 %v1930_v26, %v7314_v43  ;;  %v2060_v26 = vpack.c.bf16 %v1938_v38, %v1936_v17  ;;  %v1998_v17 = vsel %vm739_vm0, %v8390_v4, %v8366_v30  ;;  %v11966_v38 = vld [vmem:[#allocation11_spill] sm:$0xff] }
 0x603   : > { %v1892_v30 = vsel %vm682_vm5, %v8294_v60, %v8326_v9 }
 0x604   : > { %2153 = vmatpush.bf16.msra.mxu1 %v2066_v39 }
 0x605   : > { %v8492_v20 = vpop.permute.xlu0 %1926 }
 0x606   : > { %v8494_v12 = vpop.permute.xlu1 %1918  ;;  %v1887_v39 = vpop.permute.xlu2 %1886 }
 0x607   : > { %v1931_v11 = vsel %vm707_vm4, %v8494_v12, %v8492_v20 }
 0x608   : > { %v1942_v32 = vmul.f32 %v1931_v11, %v7314_v43  ;;  %2154 = vmatpush.bf16.msra.mxu1 %v2064_v46  ;;  %v1910_v46 = vmul.f32 %v8268_v6, %v7306_v35  ;;  %v1999_v11 = vsel %vm739_vm0, %v1991_v57, %v1983_v5  ;;  %v1904_v5 = vmul.f32 %v8175_v55, %v7306_v35 }
 0x609   : > { %v1996_v55 = vsel %vm739_vm0, %v8276_v8, %v8302_v1  ;;  %v1889_v8 = vsel %vm682_vm5, %v8376_v45, %v8362_v53  ;;  %v1893_v1 = vsel %vm682_vm5, %v8362_v53, %v8376_v45 }
 0x60a   : > { %v2062_v48 = vpack.c.bf16 %v1942_v32, %v1940_v63  ;;  %v1906_v63 = vmul.f32 %v8212_v10, %v7306_v35  ;;  %v1997_v32 = vsel %vm739_vm0, %v8338_v36, %v8352_v40  ;;  %v2058_v6 = vpack.c.bf16 %v1910_v46, %v1908_v21 }
 0x60b   : > { %v1894_v10 = vsel %vm682_vm5, %v8420_v58, %v8392_v22  ;;  %v2007_v36 = vmul.f32 %v1999_v11, %v11942_v56  ;;  %v1964_v40 = vsel %vm723_vm2, %v8304_v59, %v8286_v27  ;;  %v6786_v22 = vld [vmem:[%s11735_s4 + $0x34] sm:$0xf]  ;;  %v6284_v27 = vld [vmem:[%s11735_s4 + $0x3c] sm:$0xf0]  ;;  %v2003_v59 = vmul.f32 %v1997_v32, %v11942_v56 }
 0x60c   : > { %2155 = vmatpush.bf16.msra.mxu1 %v2062_v48  ;;  %v2056_v4 = vpack.c.bf16 %v1906_v63, %v1904_v5  ;;  %v2005_v58 = vmul.f32 %v1998_v17, %v11942_v56  ;;  %v1900_v48 = vmul.f32 %v1894_v10, %v11966_v38  ;;  %v8583_v17 = vor.u32 %v6786_v22, %v6284_v27 }
 0x60d   : > { %v8512_v28 = vpop.permute.xlu0 %1776  ;;  %v1967_v5 = vsel %vm723_vm2, %v8468_v14, %v8435_v51  ;;  %v1969_v22 = vmul.f32 %v1964_v40, %v11943_v24  ;;  %v1966_v51 = vsel %vm723_vm2, %v8388_v42, %v8405_v52  ;;  %v1932_v40 = vsel %vm707_vm4, %v8314_v25, %v8316_v23 }
 0x60e   : > { %v8514_v33 = vpop.permute.xlu1 %1788  ;;  %v1847_v57 = vpop.permute.xlu2 %1846  ;;  %v8579_v32 = vpack.c.bf16 %v2007_v36, %v2005_v58  ;;  %v1856_v42 = vsel %vm666_vm6, %v8306_v49, %v8328_v61  ;;  %v1973_v25 = vmul.f32 %v1966_v51, %v11943_v24  ;;  %v1858_v23 = vsel %vm666_vm6, %v8433_v15, %v8418_v44  ;;  %v11968_v51 = vld [vmem:[#allocation15_spill] sm:$0xff] }
 0x610   : > { %2156 = vmatpush.bf16.msra.mxu1 %v2060_v26  ;;  %v11967_v26 = vld [vmem:[#allocation12_spill] sm:$0xff] }
 0x611   : > { %v1901_v46 = vmul.f32 %v1890_v16, %v11967_v26  ;;  %v1898_v16 = vmul.f32 %v1893_v1, %v11966_v38  ;;  %v1899_v27 = vmul.f32 %v1889_v8, %v11967_v26  ;;  %v1857_v8 = vsel %vm666_vm6, %v8374_v34, %v8342_v54 }
 0x614   : > { %2157 = vmatpush.bf16.msra.mxu1 %v2058_v6  ;;  %v2001_v6 = vmul.f32 %v1996_v55, %v11942_v56  ;;  %v1896_v55 = vmul.f32 %v1892_v30, %v11966_v38 }
 0x615   : > { %v1879_v18 = vpop.permute.xlu0 %1878 }
 0x616   : > { %v8573_v11 = vpop.permute.xlu1 %1778  ;;  %v1891_v21 = vsel %vm682_vm5, %v1879_v18, %v1887_v39  ;;  %v1895_v63 = vsel %vm682_vm5, %v1887_v39, %v1879_v18  ;;  %v1888_v39 = vsel %vm682_vm5, %v8326_v9, %v8294_v60  ;;  %v1965_v60 = vsel %vm723_vm2, %v8318_v3, %v8350_v41 }
 0x617   : > { %v1902_v53 = vmul.f32 %v1895_v63, %v11966_v38  ;;  %v1903_v45 = vmul.f32 %v1891_v21, %v11967_v26  ;;  %v1975_v9 = vmul.f32 %v1967_v5, %v11943_v24  ;;  %v8609_v14 = vpack.c.bf16 %v2003_v59, %v2001_v6 }
 0x618   : > { %2158 = vmatpush.bf16.msra.mxu1 %v2056_v4  ;;  %v1897_v52 = vmul.f32 %v1888_v39, %v11967_v26  ;;  %v1862_v3 = vsel %vm666_vm6, %v8418_v44, %v8433_v15  ;;  %v1860_v41 = vsel %vm666_vm6, %v8328_v61, %v8306_v49  ;;  %v2052_v4 = vpack.c.bf16 %v1898_v16, %v1896_v55  ;;  %v8646_v15 = vpop.permute.xlu2 %2008 }
 0x619   : > { %v2054_v10 = vpack.c.bf16 %v1902_v53, %v1900_v48  ;;  %v2055_v36 = vpack.c.bf16 %v1903_v45, %v1901_v46  ;;  %v1971_v59 = vmul.f32 %v1965_v60, %v11943_v24  ;;  %v1861_v49 = vsel %vm666_vm6, %v8342_v54, %v8374_v34 }
 0x61a   : > { %v2053_v1 = vpack.c.bf16 %v1899_v27, %v1897_v52  ;;  %v1868_v44 = vmul.f32 %v1862_v3, %v7342_v62  ;;  %v8652_v48 = vpack.c.bf16 %v1975_v9, %v1973_v25  ;;  %v1869_v46 = vmul.f32 %v1858_v23, %v7346_v0  ;;  %v11969_v9 = vld [vmem:[#allocation31_spill] sm:$0xff]  ;;  %v11971_v52 = vld [vmem:[#allocation33_spill] sm:$0xff]  ;;  %v11972_v3 = vld [vmem:[#allocation28_spill] sm:$0xff] }
 0x61b   : > { %2159 = vmatmul.bf16.vlgmr.msra.gmra.mxu1 %v8583_v17  ;;  %2132 = vmatpush.bf16.msra.mxu0 %v2054_v10  ;;  %v1935_v54 = vsel %vm707_vm4, %v8492_v20, %v8494_v12  ;;  %v1864_v63 = vmul.f32 %v1860_v41, %v7342_v62  ;;  %v1866_v53 = vmul.f32 %v1861_v49, %v7342_v62  ;;  %v6789_v10 = vld [vmem:[%s11735_s4 + $0x4c] sm:$0xf] }
 0x61c   : > { %6872 = vmatpush.bf16.msrb.mxu1 %v8579_v32  ;;  %2189 = vmatpush.bf16.msra.mxu3 %v2055_v36  ;;  %v1867_v45 = vmul.f32 %v1857_v8, %v7346_v0  ;;  %v1934_v20 = vsel %vm707_vm4, %v8378_v13, %v8403_v50  ;;  %v1830_v12 = vsel %vm650_vm8, %v8407_v19, %v8431_v37  ;;  %v6296_v36 = vld [vmem:[%s11735_s4 + $0x54] sm:$0xf0] }
 0x61d   : > { %v8634_v30 = vpop.permute.xlu0 %1786  ;;  %v1943_v39 = vmul.f32 %v1935_v54, %v11946_v29  ;;  %v8683_v16 = vpack.c.bf16 %v1971_v59, %v1969_v22  ;;  %v1937_v13 = vmul.f32 %v1932_v40, %v11946_v29  ;;  %v2048_v55 = vpack.c.bf16 %v1866_v53, %v1864_v63  ;;  %v11970_v40 = vld [vmem:[#allocation26_spill] sm:$0xff]  ;;  %v11973_v54 = vld [vmem:[#allocation9_spill] sm:$0xff] }
 0x61e   : > { %v1855_v61 = vpop.permute.xlu1 %1854  ;;  %v1824_v41 = vsel %vm650_vm8, %v11972_v3, %v11971_v52  ;;  %v1828_v25 = vsel %vm650_vm8, %v11971_v52, %v11972_v3  ;;  %v8715_v49 = vor.u32 %v6789_v10, %v6296_v36  ;;  %v11977_v36 = vld [vmem:[#allocation25_spill] sm:$0xff] }
 0x61f   : > { %v1859_v58 = vsel %vm666_vm6, %v1847_v57, %v1855_v61  ;;  %v1863_v18 = vsel %vm666_vm6, %v1855_v61, %v1847_v57  ;;  %2133 = vmatpush.bf16.msra.mxu0 %v2052_v4  ;;  %v1933_v57 = vsel %vm707_vm4, %v8364_v2, %v8330_v47  ;;  %v1865_v47 = vmul.f32 %v1856_v42, %v7346_v0 }
 0x620   : > { %6873 = vmatpush.bf16.msrb.mxu1 %v8609_v14  ;;  %v1870_v34 = vmul.f32 %v1863_v18, %v7342_v62  ;;  %v1871_v21 = vmul.f32 %v1859_v58, %v7346_v0  ;;  %2190 = vmatpush.bf16.msra.mxu3 %v2053_v1  ;;  %v1826_v2 = vsel %vm650_vm8, %v8431_v37, %v8407_v19 }
 0x621   : > { %v1939_v50 = vmul.f32 %v1933_v57, %v11946_v29  ;;  %v1941_v19 = vmul.f32 %v1934_v20, %v11946_v29  ;;  %v1836_v37 = vmul.f32 %v1830_v12, %v7384_v31  ;;  %v2049_v27 = vpack.c.bf16 %v1867_v45, %v1865_v47  ;;  %v11975_v45 = vld [vmem:[#allocation30_spill] sm:$0xff] }
 0x622   : > { %v2050_v6 = vpack.c.bf16 %v1870_v34, %v1868_v44  ;;  %v2051_v5 = vpack.c.bf16 %v1871_v21, %v1869_v46  ;;  %v1837_v60 = vmul.f32 %v1826_v2, %v11968_v51  ;;  %v1825_v42 = vsel %vm650_vm8, %v11970_v40, %v11969_v9  ;;  %v1791_v46 = vpop.permute.xlu2 %1790  ;;  %v11974_v34 = vld [vmem:[#allocation29_spill] sm:$0xff] }
 0x623   : > { %v8713_v8 = vpack.c.bf16 %v1943_v39, %v1941_v19  ;;  %v1829_v61 = vsel %vm650_vm8, %v11969_v9, %v11970_v40  ;;  %v1832_v58 = vmul.f32 %v1828_v25, %v7384_v31  ;;  %v1833_v18 = vmul.f32 %v1824_v41, %v11968_v51  ;;  %v11980_v41 = vld [vmem:[#allocation27_spill] sm:$0xff] }
 0x624   : > { %6874 = vmatpush.bf16.msrb.mxu1 %v8652_v48  ;;  %2134 = vmatpush.bf16.msra.mxu0 %v2050_v6  ;;  %v1911_v21 = vmul.f32 %v11974_v34, %v11973_v54  ;;  %v8728_v53 = vpack.c.bf16 %v1939_v50, %v1937_v13  ;;  %v1909_v20 = vmul.f32 %v11975_v45, %v11973_v54 }
 0x625   : > { %2191 = vmatpush.bf16.msra.mxu3 %v2051_v5  ;;  %v1823_v22 = vpop.permute.xlu0 %1822  ;;  %v1834_v12 = vmul.f32 %v1829_v61, %v7384_v31  ;;  %v1835_v6 = vmul.f32 %v1825_v42, %v11968_v51  ;;  %v11976_v5 = vld [vmem:[#allocation32_spill] sm:$0xff]  ;;  %v1907_v19 = vmul.f32 %v11977_v36, %v11973_v54  ;;  %v1793_v40 = vsel %vm635_vm7, %v8573_v11, %v8634_v30 }
 0x626   : > { %v1815_v23 = vpop.permute.xlu1 %1814  ;;  %v1794_v47 = vsel %vm635_vm7, %v11976_v5, %v8514_v33  ;;  %v1798_v2 = vsel %vm635_vm7, %v8514_v33, %v11976_v5  ;;  %v8744_v10 = vpack.c.bf16 %v1911_v21, %v1909_v20  ;;  %v1797_v42 = vsel %vm635_vm7, %v8634_v30, %v8573_v11 }
 0x627   : > { %v1827_v4 = vsel %vm650_vm8, %v1815_v23, %v1823_v22  ;;  %v1831_v59 = vsel %vm650_vm8, %v1823_v22, %v1815_v23  ;;  %v2044_v13 = vpack.c.bf16 %v1834_v12, %v1832_v58  ;;  %v2045_v50 = vpack.c.bf16 %v1835_v6, %v1833_v18  ;;  %v11981_v23 = vld [vmem:[#allocation34_spill] sm:$0xff] }
 0x628   : > { %6875 = vmatpush.bf16.msrb.mxu1 %v8683_v16  ;;  %v1838_v1 = vmul.f32 %v1831_v59, %v7384_v31  ;;  %v1839_v44 = vmul.f32 %v1827_v4, %v11968_v51  ;;  %2135 = vmatpush.bf16.msra.mxu0 %v2048_v55  ;;  %v11979_v55 = vld [vmem:[#allocation14_spill] sm:$0xff]  ;;  %v1905_v25 = vmul.f32 %v11980_v41, %v11973_v54 }
 0x629   : > { %2192 = vmatpush.bf16.msra.mxu3 %v2049_v27  ;;  %v1805_v27 = vmul.f32 %v1794_v47, %v11979_v55  ;;  %v1792_v4 = vsel %vm635_vm7, %v8512_v28, %v11981_v23  ;;  %v1796_v59 = vsel %vm635_vm7, %v11981_v23, %v8512_v28  ;;  %v6787_v58 = vld [vmem:[%s11735_s4 + $0x38] sm:$0xf0]  ;;  %v6788_v23 = vld [vmem:[%s11735_s4 + $0x40] sm:$0xf0] }
 0x62a   : > { %v2046_v63 = vpack.c.bf16 %v1838_v1, %v1836_v37  ;;  %v2047_v57 = vpack.c.bf16 %v1839_v44, %v1837_v60  ;;  %v11978_v37 = vld [vmem:[#allocation13_spill] sm:$0xff]  ;;  %v1803_v1 = vmul.f32 %v1793_v40, %v11979_v55  ;;  %v2015_v18 = vpop.permute.xlu2 %2014  ;;  %v1801_v34 = vmul.f32 %v1792_v4, %v11979_v55  ;;  %v12011_v54 = vld [vmem:[#allocation6_spill] sm:$0xff] }
 0x62b   : > { %2164 = vmatmul.bf16.gmra.mxu1 %v8715_v49  ;;  %v1804_v22 = vmul.f32 %v1798_v2, %v11978_v37  ;;  %v1802_v61 = vmul.f32 %v1797_v42, %v11978_v37  ;;  %v6282_v44 = vld [vmem:[%s11735_s4 + $0x30] sm:$0xf]  ;;  %v1800_v28 = vmul.f32 %v1796_v59, %v11978_v37  ;;  %v11982_v2 = vld [vmem:[#allocation3_spill] sm:$0xff] }
 0x62c   : > { %6876 = vmatpush.bf16.msrb.mxu1 %v8713_v8  ;;  %2136 = vmatpush.bf16.msra.mxu0 %v2046_v63  ;;  %v6283_v63 = vor.u32 %v6787_v58, %v6282_v44  ;;  %v2041_v6 = vpack.c.bf16 %v1803_v1, %v1801_v34  ;;  %v6791_v1 = vld [vmem:[%s11735_s4 + $0x58] sm:$0xf0] }
 0x62d   : > { %2193 = vmatpush.bf16.msra.mxu3 %v2047_v57  ;;  %v1783_v39 = vpop.permute.xlu0 %1782  ;;  %v2040_v12 = vpack.c.bf16 %v1802_v61, %v1800_v28 }
 0x62e   : > { %v2013_v60 = vpop.permute.xlu1 %2012  ;;  %v1795_v33 = vsel %vm635_vm7, %v1783_v39, %v1791_v46  ;;  %v1799_v9 = vsel %vm635_vm7, %v1791_v46, %v1783_v39  ;;  %v8783_v46 = vpack.c.bf16 %v1907_v19, %v1905_v25  ;;  %v6290_v25 = vld [vmem:[%s11735_s4 + $0x38] sm:$0xf] }
 0x62f   : > { %v1806_v52 = vmul.f32 %v1799_v9, %v11978_v37  ;;  %v1807_v3 = vmul.f32 %v1795_v33, %v11979_v55  ;;  %v6291_v59 = vor.u32 %v6788_v23, %v6290_v25  ;;  %v11986_v25 = vld [vmem:[#allocation16_spill] sm:$0xff] }
 0x630   : > { %6877 = vmatpush.bf16.msrb.mxu1 %v8728_v53  ;;  %2137 = vmatpush.bf16.msra.mxu0 %v2044_v13  ;;  %v11983_v13 = vld [vmem:[#allocation4_spill] sm:$0xff] }
 0x631   : > { %2194 = vmatpush.bf16.msra.mxu3 %v2045_v50  ;;  %v2042_v11 = vpack.c.bf16 %v1806_v52, %v1804_v22  ;;  %v2043_v30 = vpack.c.bf16 %v1807_v3, %v1805_v27 }
 0x634   : > { %6878 = vmatpush.bf16.msrb.mxu1 %v8744_v10  ;;  %2138 = vmatpush.bf16.msra.mxu0 %v2042_v11  ;;  %v6294_v11 = vld [vmem:[%s11735_s4 + $0x48] sm:$0xf] }
 0x635   : > { %2195 = vmatpush.bf16.msra.mxu3 %v2043_v30  ;;  %v2021_v21 = vpop.permute.xlu0 %2020  ;;  %v6790_v30 = vld [vmem:[%s11735_s4 + $0x50] sm:$0xf0] }
 0x636   : > { %v2023_v57 = vpop.permute.xlu1 %2022  ;;  %v2026_v45 = vsel %vm755_vm1, %v2013_v60, %v2021_v21  ;;  %v2030_v20 = vsel %vm755_vm1, %v2021_v21, %v2013_v60  ;;  %v2019_v60 = vpop.permute.xlu2 %2018  ;;  %v6295_v61 = vor.u32 %v6790_v30, %v6294_v11 }
 0x637   : > { %v2027_v5 = vsel %vm755_vm1, %v2015_v18, %v2023_v57  ;;  %v2031_v47 = vsel %vm755_vm1, %v2023_v57, %v2015_v18  ;;  %v2036_v39 = vmul.f32 %v2026_v45, %v11982_v2  ;;  %v2037_v50 = vmul.f32 %v2030_v20, %v11983_v13 }
 0x638   : > { %6879 = vmatpush.bf16.msrb.mxu1 %v8783_v46  ;;  %v2038_v36 = vmul.f32 %v2027_v5, %v11982_v2  ;;  %v2039_v19 = vmul.f32 %v2031_v47, %v11983_v13  ;;  %2139 = vmatpush.bf16.msra.mxu0 %v2040_v12 }
 0x639   : > { %2196 = vmatpush.bf16.msra.mxu3 %v2041_v6 }
 0x63a   : > { %v2074_v22 = vpack.c.bf16 %v2038_v36, %v2036_v39  ;;  %v2075_v27 = vpack.c.bf16 %v2039_v19, %v2037_v50 }
 0x63b   : > { %2140 = vmatmul.bf16.vlgmr.msra.gmra.mxu0 %v6283_v63  ;;  %2221 = vmatmul.bf16.vlgmr.msrb.gmra.mxu1 %v8715_v49 }
 0x63c   : > { %2208 = vmatpush.bf16.msrb.mxu0 %v8579_v32  ;;  %2197 = vmatmul.bf16.vlgmr.msra.gmra.mxu3 %v6283_v63 }
 0x63d   : > { %2176 = vmatpush.bf16.msra.mxu2 %v2074_v22  ;;  %2233 = vmatpush.bf16.msra.mxu1 %v2075_v27  ;;  %v2011_v33 = vpop.permute.xlu0 %2010 }
 0x63e   : > { %v2017_v9 = vpop.permute.xlu1 %2016  ;;  %v2025_v40 = vsel %vm755_vm1, %v2011_v33, %v2019_v60  ;;  %v2029_v42 = vsel %vm755_vm1, %v2019_v60, %v2011_v33 }
 0x63f   : > { %v2024_v32 = vsel %vm755_vm1, %v8646_v15, %v2017_v9  ;;  %v2028_v49 = vsel %vm755_vm1, %v2017_v9, %v8646_v15  ;;  %v2034_v52 = vmul.f32 %v2025_v40, %v11982_v2 }
 0x640   : > { %2209 = vmatpush.bf16.msrb.mxu0 %v8609_v14  ;;  %v2035_v14 = vmul.f32 %v2029_v42, %v11983_v13  ;;  %v2032_v3 = vmul.f32 %v2024_v32, %v11982_v2  ;;  %v2033_v41 = vmul.f32 %v2028_v49, %v11983_v13 }
 0x642   : > { %v2072_v4 = vpack.c.bf16 %v2034_v52, %v2032_v3  ;;  %v2073_v15 = vpack.c.bf16 %v2035_v14, %v2033_v41  ;;  %v11984_v14 = vld [vmem:[#allocation17_spill] sm:$0xff] }
 0x644   : > { %2210 = vmatpush.bf16.msrb.mxu0 %v8652_v48  ;;  %2177 = vmatpush.bf16.msra.mxu2 %v2072_v4  ;;  %v6302_v48 = vld [vmem:[%s11735_s4 + $0x50] sm:$0xf] }
 0x645   : > { %2234 = vmatpush.bf16.msra.mxu1 %v2073_v15  ;;  %v2089_v12 = vpop.permute.xlu0 %2088 }
 0x646   : > { %v2094_v42 = vpop.permute.xlu1 %2093 }
 0x647   : > { %6304 = vmatmul.msk.bf16.vlgmr.msra.gmra.mxu2 %vm1435_vm15, %v6291_v59 }
 0x648   : > { %2211 = vmatpush.bf16.msrb.mxu0 %v8683_v16  ;;  %v6303_v16 = vor.u32 %v6791_v1, %v6302_v48 }
 0x64b   : > { %2145 = vmatmul.bf16.gmra.mxu0 %v6295_v61  ;;  %6306 = vmatmul.msk.bf16.vlgmr.msra.gmra.mxu1 %vm1435_vm15, %v6291_v59 }
 0x64c   : > { %2212 = vmatpush.bf16.msrb.mxu0 %v8713_v8  ;;  %2202 = vmatmul.bf16.gmra.mxu3 %v6295_v61 }
 0x64d   : > { %v2084_v9 = vpop.permute.xlu0 %2083 }
 0x650   : > { %2213 = vmatpush.bf16.msrb.mxu0 %v8728_v53 }
 0x654   : > { %2214 = vmatpush.bf16.msrb.mxu0 %v8744_v10 }
 0x657   : > { %6305 = vmatmul.msk.bf16.gmra.mxu2 %vm1435_vm15, %v6303_v16 }
 0x658   : > { %2215 = vmatpush.bf16.msrb.mxu0 %v8783_v46 }
 0x65b   : > { %2216 = vmatmul.bf16.vlgmr.msrb.gmra.mxu0 %v8583_v17  ;;  %6307 = vmatmul.msk.bf16.gmra.mxu1 %vm1435_vm15, %v6303_v16  ;;  %v2079_v17 = vpop.permute.xlu2 %2078 }
 0x698   : > { %v2160_v8 = vpop.f32.mrf.mxu1 }
 0x6a0   : > { %v2162_v53 = vpop.f32.mrf.mxu1 }
 0x6a8   : > { %v2165_v44 = vpop.f32.mrf.mxu1 }
 0x6b0   : > { %v2167_v58 = vpop.f32.mrf.mxu1 }
 0x6b8   : > { %v2141_v18 = vpop.f32.mrf.mxu0  ;;  %v2222_v28 = vpop.f32.mrf.mxu1 }
 0x6b9   : > { %v2142_v39 = vadd.f32 %v2141_v18, %v2079_v17 }
 0x6bb   : > { %v2161_v36 = vadd.f32 %v2160_v8, %v2142_v39 }
 0x6bf   : > { %v2198_v34 = vpop.f32.mrf.mxu3 }
 0x6c0   : > { %v2143_v21 = vpop.f32.mrf.mxu0  ;;  %v2224_v63 = vpop.f32.mrf.mxu1  ;;  %v2199_v50 = vadd.f32 %v2198_v34, %v2079_v17  ;;  %v11988_v17 = vld [vmem:[#allocation18_spill] sm:$0xff] }
 0x6c1   : > { %v2144_v32 = vadd.f32 %v2143_v21, %v2084_v9 }
 0x6c3   : > { %v2163_v15 = vadd.f32 %v2162_v53, %v2144_v32  ;;  %v11990_v53 = vld [vmem:[#allocation19_spill] sm:$0xff] }
 0x6c7   : > { %v2200_v57 = vpop.f32.mrf.mxu3 }
 0x6c8   : > { %v2146_v10 = vpop.f32.mrf.mxu0  ;;  %v2236_v45 = vpop.f32.mrf.mxu1  ;;  %v2201_v4 = vadd.f32 %v2200_v57, %v2084_v9 }
 0x6c9   : > { %v2147_v11 = vadd.f32 %v2146_v10, %v2089_v12  ;;  %v11992_v10 = vld [vmem:[#allocation23_spill] sm:$0xff]  ;;  %v8880_v9 = vpop.permute.xlu1 %2376 }
 0x6ca   : > { %v2179_v20 = vpop.f32.mrf.mxu2 }
 0x6cb   : > { %v2180_v22 = vadd.f32 %v2179_v20, %v2161_v36 }
 0x6cd   : > { %v8847_v3 = vadd.f32 %v2180_v22, %v11984_v14  ;;  %v11998_v22 = vld [vmem:[#allocation21_spill] sm:$0xff] }
 0x6cf   : > { %v2203_v46 = vpop.f32.mrf.mxu3  ;;  %11985 = vst [vmem:[#allocation11_spill] sm:$0xff] %v8847_v3 }
 0x6d0   : > { %v2148_v6 = vpop.f32.mrf.mxu0  ;;  %v2238_v5 = vpop.f32.mrf.mxu1  ;;  %v2204_v21 = vadd.f32 %v2203_v46, %v2089_v12 }
 0x6d1   : > { %v2149_v41 = vadd.f32 %v2148_v6, %v2094_v42  ;;  %v2166_v6 = vadd.f32 %v2165_v44, %v2147_v11 }
 0x6d2   : > { %v2181_v47 = vpop.f32.mrf.mxu2  ;;  %v2223_v36 = vadd.f32 %v2222_v28, %v2204_v21  ;;  %v8878_v28 = vpop.permute.xlu0 %2371 }
 0x6d3   : > { %v2182_v48 = vadd.f32 %v2181_v47, %v2163_v15  ;;  %v2168_v8 = vadd.f32 %v2167_v58, %v2149_v41  ;;  %v12000_v41 = vld [vmem:[#allocation24_spill] sm:$0xff] }
 0x6d5   : > { %v8855_v57 = vadd.f32 %v2182_v48, %v11988_v17 }
 0x6d7   : > { %v2205_v27 = vpop.f32.mrf.mxu3  ;;  %11989 = vst [vmem:[#allocation15_spill] sm:$0xff] %v8855_v57 }
 0x6d8   : > { %v2217_v19 = vpop.f32.mrf.mxu0  ;;  %v2241_v33 = vpop.f32.mrf.mxu1  ;;  %v2206_v52 = vadd.f32 %v2205_v27, %v2094_v42 }
 0x6d9   : > { %v2218_v60 = vadd.f32 %v2217_v19, %v2199_v50  ;;  %v2242_v12 = vadd.f32 %v2241_v33, %v2223_v36  ;;  %v8884_v42 = vpop.permute.xlu2 %2404  ;;  %v2362_v33 = vpop.permute.xlu1 %2361 }
 0x6da   : > { %v2184_v40 = vpop.f32.mrf.mxu2  ;;  %v2225_v61 = vadd.f32 %v2224_v63, %v2206_v52  ;;  %v11994_v63 = vld [vmem:[#allocation22_spill] sm:$0xff] }
 0x6db   : > { %v2237_v49 = vadd.f32 %v2236_v45, %v2218_v60  ;;  %v2185_v58 = vadd.f32 %v2184_v40, %v2166_v6  ;;  %v8874_v27 = vadd.f32 %v2242_v12, %v11998_v22  ;;  %v8882_v40 = vpop.permute.xlu0 %2409 }
 0x6dd   : > { %v8850_v23 = vadd.f32 %v2237_v49, %v11986_v25  ;;  %11999 = vst [vmem:[#allocation29_spill] sm:$0xff] %v8874_v27 }
 0x6df   : > { %11987 = vst [vmem:[#allocation12_spill] sm:$0xff] %v8850_v23  ;;  %v2254_v59 = vadd.f32 %v8850_v23, %v8847_v3 }
 0x6e0   : > { %v2219_v30 = vpop.f32.mrf.mxu0  ;;  %v2243_v16 = vpop.f32.mrf.mxu1 }
 0x6e1   : > { %v2220_v1 = vadd.f32 %v2219_v30, %v2201_v4  ;;  %2255 = vadd.xlane.f32.xlu0 %v2254_v59  ;;  %v2244_v18 = vadd.f32 %v2243_v16, %v2225_v61  ;;  %v2395_v49 = vpop.permute.xlu2 %2394  ;;  %v8888_v52 = vpop.permute.xlu1 %2399 }
 0x6e2   : > { %v2186_v34 = vpop.f32.mrf.mxu2 }
 0x6e3   : > { %v2239_v45 = vadd.f32 %v2238_v5, %v2220_v1  ;;  %v2187_v20 = vadd.f32 %v2186_v34, %v2168_v8  ;;  %v8861_v50 = vadd.f32 %v2244_v18, %v11992_v10  ;;  %v11996_v5 = vld [vmem:[#allocation20_spill] sm:$0xff]  ;;  %v8886_v32 = vpop.permute.xlu0 %2366 }
 0x6e4   : > { %v8871_v19 = vadd.f32 %v2185_v58, %v11996_v5 }
 0x6e5   : > { %v8858_v39 = vadd.f32 %v2239_v45, %v11990_v53  ;;  %11993 = vst [vmem:[#allocation26_spill] sm:$0xff] %v8861_v50  ;;  %v8864_v47 = vadd.f32 %v2187_v20, %v11994_v63 }
 0x6e6   : > { %11997 = vst [vmem:[#allocation28_spill] sm:$0xff] %v8871_v19  ;;  %v2260_v60 = vadd.f32 %v8874_v27, %v8871_v19 }
 0x6e7   : > { %11991 = vst [vmem:[#allocation31_spill] sm:$0xff] %v8858_v39  ;;  %v2263_v46 = vadd.f32 %v8861_v50, %v8864_v47  ;;  %v2257_v44 = vadd.f32 %v8858_v39, %v8855_v57 }
 0x6e8   : > { %11995 = vst [vmem:[#allocation33_spill] sm:$0xff] %v8864_v47 }
 0x6e9   : > { %2264 = vadd.xlane.f32.xlu2 %v2263_v46  ;;  %2258 = vadd.xlane.f32.xlu1 %v2257_v44 }
 0x6f1   : > { %2261 = vadd.xlane.f32.xlu1 %v2260_v60 }
 0x754   : > { %v2256_v14 = vpop.xlane.xlu0 %2255 }
 0x755   : > { %v2266_v25 = vmul.f32 %v2256_v14, %v12000_v41 }
 0x757   : > { %v2270_v4 = vsub.f32 %v8847_v3, %v2266_v25  ;;  %v2271_v15 = vsub.f32 %v8850_v23, %v2266_v25  ;;  %v6357_v23 = vld [vmem:[%s11736_s5 + $0x128] sm:$0xff] }
 0x759   : > { %v2278_v59 = vmul.f32 %v2270_v4, %v2270_v4  ;;  %v2279_v11 = vmul.f32 %v2271_v15, %v2271_v15 }
 0x75b   : > { %v2286_v30 = vadd.f32 %v2279_v11, %v2278_v59 }
 0x75c   : > { %v2265_v61 = vpop.xlane.xlu2 %2264  ;;  %v2259_v48 = vpop.xlane.xlu1 %2258 }
 0x75d   : > { %v2269_v1 = vmul.f32 %v2265_v61, %v12000_v41  ;;  %v2267_v16 = vmul.f32 %v2259_v48, %v12000_v41  ;;  %2287 = vadd.xlane.f32.xlu1 %v2286_v30 }
 0x75f   : > { %v8896_v8 = vsub.f32 %v8864_v47, %v2269_v1  ;;  %v8899_v18 = vsub.f32 %v8861_v50, %v2269_v1  ;;  %v8902_v34 = vsub.f32 %v8855_v57, %v2267_v16  ;;  %v8905_v21 = vsub.f32 %v8858_v39, %v2267_v16  ;;  %v6325_v50 = vld [vmem:[%s11736_s5 + $0x68] sm:$0xff]  ;;  %v6362_v39 = vld [vmem:[%s11736_s5 + $0x1b0] sm:$0xff]  ;;  %v6363_v57 = vld [vmem:[%s11736_s5 + $0x1b8] sm:$0xff] }
 0x760   : > { %v6358_v47 = vld [vmem:[%s11736_s5 + $0x130] sm:$0xff] }
 0x761   : > { %v2284_v45 = vmul.f32 %v8896_v8, %v8896_v8  ;;  %v2285_v20 = vmul.f32 %v8899_v18, %v8899_v18  ;;  %v2280_v6 = vmul.f32 %v8902_v34, %v8902_v34  ;;  %v2281_v17 = vmul.f32 %v8905_v21, %v8905_v21 }
 0x763   : > { %v2289_v53 = vadd.f32 %v2281_v17, %v2280_v6  ;;  %v2295_v10 = vadd.f32 %v2285_v20, %v2284_v45 }
 0x764   : > { %v2262_v63 = vpop.xlane.xlu1 %2261 }
 0x765   : > { %v2268_v36 = vmul.f32 %v2262_v63, %v12000_v41  ;;  %2290 = vadd.xlane.f32.xlu2 %v2289_v53  ;;  %2296 = vadd.xlane.f32.xlu0 %v2295_v10 }
 0x767   : > { %v8917_v58 = vsub.f32 %v8871_v19, %v2268_v36  ;;  %v8920_v46 = vsub.f32 %v8874_v27, %v2268_v36 }
 0x769   : > { %v2282_v44 = vmul.f32 %v8917_v58, %v8917_v58  ;;  %v2283_v12 = vmul.f32 %v8920_v46, %v8920_v46 }
 0x76b   : > { %v2292_v5 = vadd.f32 %v2283_v12, %v2282_v44 }
 0x76d   : > { %2293 = vadd.xlane.f32.xlu2 %v2292_v5 }
 0x7d0   : > { %v2288_v22 = vpop.xlane.xlu1 %2287 }
 0x7d1   : > { %v2298_v60 = vmul.f32 %v2288_v22, %v12000_v41 }
 0x7d3   : > { %v2302_v14 = vadd.f32 1e-05, %v2298_v60 }
 0x7d5   : > { %6969 = vrsqrt.f32 %v2302_v14  ;;  %vm2312_vm14 = vweird.f32 %v2302_v14 }
 0x7d8   : > { %v2291_v25 = vpop.xlane.xlu2 %2290 }
 0x7d9   : > { %v2299_v59 = vmul.f32 %v2291_v25, %v12000_v41 }
 0x7db   : > { %v6970_v11 = vpop.eup %6969  ;;  %v2303_v30 = vadd.f32 1e-05, %v2299_v59 }
 0x7dc   : > { %v2307_v61 = vmul.f32 %v6970_v11, %v2302_v14  ;;  %vm2313_vm13 = vweird.f32 %v6970_v11 }
 0x7dd   : > { %6971 = vrsqrt.f32 %v2303_v30  ;;  %vm2314_vm3 = vmor %vm2312_vm14, %vm2313_vm13  ;;  %vm2322_vm10 = vweird.f32 %v2303_v30 }
 0x7de   : > { %v2308_v48 = vmul.f32 %v6970_v11, %v2307_v61 }
 0x7e0   : > { %v2309_v1 = vmul.f32 0.5, %v2308_v48  ;;  %v2294_v61 = vpop.xlane.xlu2 %2293 }
 0x7e1   : > { %v2300_v48 = vmul.f32 %v2294_v61, %v12000_v41 }
 0x7e2   : > { %v2310_v16 = vsub.f32 1.5, %v2309_v1 }
 0x7e3   : > { %v6972_v45 = vpop.eup %6971 }
 0x7e4   : > { %v2311_v20 = vmul.f32 %v6970_v11, %v2310_v16  ;;  %v2317_v6 = vmul.f32 %v6972_v45, %v2303_v30  ;;  %vm2323_vm9 = vweird.f32 %v6972_v45 }
 0x7e5   : > { %vm2324_vm11 = vmor %vm2322_vm10, %vm2323_vm9 }
 0x7e6   : > { %v2315_v17 = vsel %vm2314_vm3, %v6970_v11, %v2311_v20  ;;  %v2318_v53 = vmul.f32 %v6972_v45, %v2317_v6  ;;  %v2304_v11 = vadd.f32 1e-05, %v2300_v48 }
 0x7e7   : > { %v2346_v10 = vmul.f32 %v2315_v17, %v2270_v4  ;;  %v2347_v63 = vmul.f32 %v2315_v17, %v2271_v15 }
 0x7e8   : > { %v2319_v12 = vmul.f32 0.5, %v2318_v53  ;;  %vm2332_vm13 = vweird.f32 %v2304_v11 }
 0x7e9   : > { %v2379_v36 = vmul.f32 %v2362_v33, %v2346_v10  ;;  %v2380_v44 = vmul.f32 %v2362_v33, %v2347_v63 }
 0x7ea   : > { %v2320_v59 = vsub.f32 1.5, %v2319_v12 }
 0x7eb   : > { %v2412_v5 = vadd.f32 %v2395_v49, %v2379_v36  ;;  %v2413_v22 = vadd.f32 %v2395_v49, %v2380_v44 }
 0x7ec   : > { %v2321_v14 = vmul.f32 %v6972_v45, %v2320_v59 }
 0x7ed   : > { %v2420_v60 = vmul.f32 0.5, %v2412_v5  ;;  %v2421_v25 = vmul.f32 0.5, %v2413_v22 }
 0x7ee   : > { %v2325_v15 = vsel %vm2324_vm11, %v6972_v45, %v2321_v14 }
 0x7ef   : > { %6973 = vtanh.f32 %v2420_v60  ;;  %v2348_v49 = vmul.f32 %v2325_v15, %v8902_v34  ;;  %v2349_v17 = vmul.f32 %v2325_v15, %v8905_v21  ;;  %v2297_v60 = vpop.xlane.xlu0 %2296 }
 0x7f0   : > { %6975 = vtanh.f32 %v2421_v25  ;;  %v2301_v59 = vmul.f32 %v2297_v60, %v12000_v41  ;;  %v6360_v41 = vld [vmem:[%s11736_s5 + $0x1a0] sm:$0xff] }
 0x7f1   : > { %6977 = vrsqrt.f32 %v2304_v11  ;;  %v2381_v30 = vmul.f32 %v8886_v32, %v2348_v49  ;;  %v2382_v45 = vmul.f32 %v8886_v32, %v2349_v17 }
 0x7f3   : > { %v2414_v21 = vadd.f32 %v8888_v52, %v2381_v30  ;;  %v2415_v63 = vadd.f32 %v8888_v52, %v2382_v45 }
 0x7f5   : > { %v6974_v4 = vpop.eup %6973  ;;  %v2422_v44 = vmul.f32 0.5, %v2414_v21  ;;  %v2423_v12 = vmul.f32 0.5, %v2415_v63 }
 0x7f6   : > { %v6976_v1 = vpop.eup %6975  ;;  %v2436_v33 = vadd.f32 1.0, %v6974_v4  ;;  %v2305_v4 = vadd.f32 1e-05, %v2301_v59 }
 0x7f7   : > { %v2437_v16 = vadd.f32 1.0, %v6976_v1  ;;  %v6978_v34 = vpop.eup %6977  ;;  %6979 = vtanh.f32 %v2422_v44 }
 0x7f8   : > { %v2444_v20 = vmul.f32 0.5, %v2436_v33  ;;  %v2327_v36 = vmul.f32 %v6978_v34, %v2304_v11  ;;  %6981 = vtanh.f32 %v2423_v12  ;;  %vm2333_vm12 = vweird.f32 %v6978_v34 }
 0x7f9   : > { %v2445_v6 = vmul.f32 0.5, %v2437_v16  ;;  %vm2334_vm14 = vmor %vm2332_vm13, %vm2333_vm12  ;;  %6983 = vrsqrt.f32 %v2305_v4  ;;  %vm2342_vm9 = vweird.f32 %v2305_v4 }
 0x7fa   : > { %v8931_v53 = vmul.f32 %v2444_v20, %v2412_v5  ;;  %v2328_v5 = vmul.f32 %v6978_v34, %v2327_v36 }
 0x7fb   : > { %v8933_v10 = vmul.f32 %v2445_v6, %v2413_v22 }
 0x7fc   : > { %2674 = vrot.lane.b32.xlu0 %v8931_v53, %s11954_s26  ;;  %2570 = vrot.lane.b32.xlu1 %v8931_v53, %s11955_s21  ;;  %v2329_v32 = vmul.f32 0.5, %v2328_v5 }
 0x7fd   : > { %12001 = vst [vmem:[#allocation30_spill] sm:$0xff] %v8933_v10  ;;  %2578 = vrot.lane.b32.xlu2 %v8933_v10, %s11955_s21  ;;  %v6980_v22 = vpop.eup %6979 }
 0x7fe   : > { %v2330_v52 = vsub.f32 1.5, %v2329_v32  ;;  %v6982_v25 = vpop.eup %6981  ;;  %v2438_v48 = vadd.f32 1.0, %v6980_v22 }
 0x7ff   : > { %v2439_v14 = vadd.f32 1.0, %v6982_v25 }
 0x800   : > { %v2331_v61 = vmul.f32 %v6978_v34, %v2330_v52  ;;  %v2446_v1 = vmul.f32 0.5, %v2438_v48 }
 0x801   : > { %v2447_v33 = vmul.f32 0.5, %v2439_v14 }
 0x802   : > { %v2335_v15 = vsel %vm2334_vm14, %v6978_v34, %v2331_v61  ;;  %v8966_v11 = vmul.f32 %v2446_v1, %v2414_v21 }
 0x803   : > { %v2350_v16 = vmul.f32 %v2335_v15, %v8917_v58  ;;  %v2351_v20 = vmul.f32 %v2335_v15, %v8920_v46  ;;  %v8968_v49 = vmul.f32 %v2447_v33, %v2415_v63  ;;  %v6984_v58 = vpop.eup %6983 }
 0x804   : > { %2538 = vrot.lane.b32.xlu0 %v8931_v53, %s11956_s0  ;;  %2682 = vrot.lane.b32.xlu1 %v8933_v10, %s11954_s26  ;;  %v2337_v45 = vmul.f32 %v6984_v58, %v2305_v4  ;;  %vm2343_vm3 = vweird.f32 %v6984_v58 }
 0x805   : > { %2642 = vrot.lane.b32.xlu2 %v8931_v53, %s11929_s23  ;;  %12002 = vst [vmem:[#allocation32_spill] sm:$0xff] %v8968_v49  ;;  %v2383_v6 = vmul.f32 %v8878_v28, %v2350_v16  ;;  %v2384_v17 = vmul.f32 %v8878_v28, %v2351_v20  ;;  %vm2344_vm10 = vmor %vm2342_vm9, %vm2343_vm3 }
 0x806   : > { %v2338_v28 = vmul.f32 %v6984_v58, %v2337_v45 }
 0x807   : > { %v2416_v46 = vadd.f32 %v8884_v42, %v2383_v6  ;;  %v2417_v30 = vadd.f32 %v8884_v42, %v2384_v17 }
 0x808   : > { %v2339_v63 = vmul.f32 0.5, %v2338_v28 }
 0x809   : > { %v2424_v34 = vmul.f32 0.5, %v2416_v46  ;;  %v2425_v21 = vmul.f32 0.5, %v2417_v30 }
 0x80a   : > { %v2340_v36 = vsub.f32 1.5, %v2339_v63 }
 0x80b   : > { %6985 = vtanh.f32 %v2424_v34 }
 0x80c   : > { %2650 = vrot.lane.b32.xlu0 %v8933_v10, %s11929_s23  ;;  %2546 = vrot.lane.b32.xlu1 %v8933_v10, %s11956_s0  ;;  %6987 = vtanh.f32 %v2425_v21  ;;  %v2341_v12 = vmul.f32 %v6984_v58, %v2340_v36 }
 0x80d   : > { %2506 = vrot.lane.b32.xlu2 %v8931_v53, %s11930_s1 }
 0x80e   : > { %v2345_v52 = vsel %vm2344_vm10, %v6984_v58, %v2341_v12 }
 0x80f   : > { %v2352_v25 = vmul.f32 %v2345_v52, %v8896_v8  ;;  %v2353_v14 = vmul.f32 %v2345_v52, %v8899_v18 }
 0x811   : > { %v6986_v42 = vpop.eup %6985  ;;  %v2385_v48 = vmul.f32 %v8880_v9, %v2352_v25  ;;  %v2386_v8 = vmul.f32 %v8880_v9, %v2353_v14 }
 0x812   : > { %v6988_v44 = vpop.eup %6987  ;;  %v2440_v5 = vadd.f32 1.0, %v6986_v42 }
 0x813   : > { %v2441_v32 = vadd.f32 1.0, %v6988_v44  ;;  %v2418_v4 = vadd.f32 %v8882_v40, %v2385_v48  ;;  %v2419_v1 = vadd.f32 %v8882_v40, %v2386_v8 }
 0x814   : > { %2514 = vrot.lane.b32.xlu0 %v8933_v10, %s11930_s1  ;;  %2610 = vrot.lane.b32.xlu1 %v8931_v53, %s11931_s22  ;;  %v2448_v22 = vmul.f32 0.5, %v2440_v5 }
 0x815   : > { %2618 = vrot.lane.b32.xlu2 %v8933_v10, %s11931_s22  ;;  %v2449_v60 = vmul.f32 0.5, %v2441_v32  ;;  %v2426_v15 = vmul.f32 0.5, %v2418_v4  ;;  %v2427_v18 = vmul.f32 0.5, %v2419_v1 }
 0x816   : > { %v8999_v59 = vmul.f32 %v2448_v22, %v2416_v46 }
 0x817   : > { %v9001_v61 = vmul.f32 %v2449_v60, %v2417_v30  ;;  %6989 = vtanh.f32 %v2426_v15 }
 0x818   : > { %6991 = vtanh.f32 %v2427_v18 }
 0x819   : > { %12003 = vst [vmem:[#allocation25_spill] sm:$0xff] %v9001_v61 }
 0x81c   : > { %2572 = vrot.lane.b32.xlu0 %v8966_v11, %s11955_s21  ;;  %2580 = vrot.lane.b32.xlu1 %v8968_v49, %s11955_s21 }
 0x81d   : > { %2676 = vrot.lane.b32.xlu2 %v8966_v11, %s11954_s26  ;;  %v6990_v33 = vpop.eup %6989 }
 0x81e   : > { %v2442_v9 = vadd.f32 1.0, %v6990_v33  ;;  %v6992_v16 = vpop.eup %6991  ;;  %v6327_v33 = vld [vmem:[%s11736_s5 + $0x78] sm:$0xff] }
 0x81f   : > { %v2443_v6 = vadd.f32 1.0, %v6992_v16 }
 0x820   : > { %v2450_v40 = vmul.f32 0.5, %v2442_v9  ;;  %v6326_v9 = vld [vmem:[%s11736_s5 + $0x70] sm:$0xff] }
 0x821   : > { %v2451_v58 = vmul.f32 0.5, %v2443_v6  ;;  %v6324_v6 = vld [vmem:[%s11736_s5 + $0x60] sm:$0xff] }
 0x822   : > { %v9034_v17 = vmul.f32 %v2450_v40, %v2418_v4 }
 0x823   : > { %v9044_v30 = vmul.f32 %v2451_v58, %v2419_v1  ;;  %v6359_v58 = vld [vmem:[%s11736_s5 + $0x138] sm:$0xff] }
 0x824   : > { %2684 = vrot.lane.b32.xlu0 %v8968_v49, %s11954_s26  ;;  %2644 = vrot.lane.b32.xlu1 %v8966_v11, %s11929_s23 }
 0x825   : > { %2540 = vrot.lane.b32.xlu2 %v8966_v11, %s11956_s0  ;;  %12004 = vst [vmem:[#allocation13_spill] sm:$0xff] %v9044_v30 }
 0x82c   : > { %2548 = vrot.lane.b32.xlu0 %v8968_v49, %s11956_s0  ;;  %2508 = vrot.lane.b32.xlu1 %v8966_v11, %s11930_s1 }
 0x82d   : > { %2652 = vrot.lane.b32.xlu2 %v8968_v49, %s11929_s23 }
 0x834   : > { %2612 = vrot.lane.b32.xlu0 %v8966_v11, %s11931_s22  ;;  %2620 = vrot.lane.b32.xlu1 %v8968_v49, %s11931_s22 }
 0x835   : > { %2516 = vrot.lane.b32.xlu2 %v8968_v49, %s11930_s1 }
 0x83c   : > { %2574 = vrot.lane.b32.xlu0 %v8999_v59, %s11955_s21  ;;  %2582 = vrot.lane.b32.xlu1 %v9001_v61, %s11955_s21 }
 0x83d   : > { %2678 = vrot.lane.b32.xlu2 %v8999_v59, %s11954_s26 }
 0x844   : > { %2686 = vrot.lane.b32.xlu0 %v9001_v61, %s11954_s26  ;;  %2646 = vrot.lane.b32.xlu1 %v8999_v59, %s11929_s23 }
 0x845   : > { %2542 = vrot.lane.b32.xlu2 %v8999_v59, %s11956_s0 }
 0x84c   : > { %2550 = vrot.lane.b32.xlu0 %v9001_v61, %s11956_s0  ;;  %2510 = vrot.lane.b32.xlu1 %v8999_v59, %s11930_s1 }
 0x84d   : > { %2654 = vrot.lane.b32.xlu2 %v9001_v61, %s11929_s23 }
 0x854   : > { %2614 = vrot.lane.b32.xlu0 %v8999_v59, %s11931_s22  ;;  %2622 = vrot.lane.b32.xlu1 %v9001_v61, %s11931_s22 }
 0x855   : > { %2518 = vrot.lane.b32.xlu2 %v9001_v61, %s11930_s1 }
 0x857   : > { %v9032_v20 = vpop.permute.xlu2 %2578 }
 0x85c   : > { %2478 = vrot.lane.b32.xlu0 %v8999_v59, %s11935_s3  ;;  %2680 = vrot.lane.b32.xlu1 %v9034_v17, %s11954_s26 }
 0x85d   : > { %2576 = vrot.lane.b32.xlu2 %v9034_v17, %s11955_s21 }
 0x85f   : > { %v9042_v46 = vpop.permute.xlu2 %2642 }
 0x864   : > { %2584 = vrot.lane.b32.xlu0 %v9044_v30, %s11955_s21  ;;  %2544 = vrot.lane.b32.xlu1 %v9034_v17, %s11956_s0 }
 0x865   : > { %2688 = vrot.lane.b32.xlu2 %v9044_v30, %s11954_s26 }
 0x867   : > { %v9052_v45 = vpop.permute.xlu2 %2506 }
 0x86c   : > { %2648 = vrot.lane.b32.xlu0 %v9034_v17, %s11929_s23  ;;  %2656 = vrot.lane.b32.xlu1 %v9044_v30, %s11929_s23 }
 0x86d   : > { %2552 = vrot.lane.b32.xlu2 %v9044_v30, %s11956_s0 }
 0x86e   : > { %v9060_v34 = vpop.permute.xlu1 %2570  ;;  %v9062_v21 = vpop.permute.xlu0 %2674 }
 0x86f   : > { %12005 = vst [vmem:[#allocation14_spill] sm:$0xff] %v9062_v21  ;;  %v9064_v28 = vpop.permute.xlu2 %2618 }
 0x874   : > { %2512 = vrot.lane.b32.xlu0 %v9034_v17, %s11930_s1  ;;  %2520 = vrot.lane.b32.xlu1 %v9044_v30, %s11930_s1 }
 0x875   : > { %2474 = vrot.lane.b32.xlu2 %v8931_v53, %s11935_s3 }
 0x876   : > { %v9072_v63 = vpop.permute.xlu1 %2682  ;;  %v9074_v42 = vpop.permute.xlu0 %2538 }
 0x877   : > { %12006 = vst [vmem:[#allocation27_spill] sm:$0xff] %v9072_v63  ;;  %v9076_v36 = vpop.permute.xlu2 %2676  ;;  %v2690_v29 = vsel %vm739_vm0, %v9062_v21, %v9072_v63 }
 0x878   : > { %12007 = vst [vmem:[#allocation34_spill] sm:$0xff] %v9076_v36 }
 0x87c   : > { %2624 = vrot.lane.b32.xlu0 %v9044_v30, %s11931_s22  ;;  %2486 = vrot.lane.b32.xlu1 %v9001_v61, %s11935_s3 }
 0x87d   : > { %2616 = vrot.lane.b32.xlu2 %v9034_v17, %s11931_s22 }
 0x87e   : > { %v9084_v44 = vpop.permute.xlu1 %2546  ;;  %v9086_v12 = vpop.permute.xlu0 %2650 }
 0x87f   : > { %v9088_v5 = vpop.permute.xlu2 %2540 }
 0x884   : > { %2488 = vrot.lane.b32.xlu0 %v9044_v30, %s11935_s3  ;;  %2476 = vrot.lane.b32.xlu1 %v8966_v11, %s11935_s3 }
 0x885   : > { %2480 = vrot.lane.b32.xlu2 %v9034_v17, %s11935_s3 }
 0x886   : > { %v9096_v32 = vpop.permute.xlu1 %2610  ;;  %v9098_v52 = vpop.permute.xlu0 %2514 }
 0x887   : > { %v9100_v22 = vpop.permute.xlu2 %2652 }
 0x88c   : > { %2482 = vrot.lane.b32.xlu0 %v8933_v10, %s11935_s3  ;;  %2710 = vrot.lane.b32.xlu1 %v8999_v59, %s11937_s28 }
 0x88d   : > { %2484 = vrot.lane.b32.xlu2 %v8968_v49, %s11935_s3 }
 0x88e   : > { %v9108_v60 = vpop.permute.xlu1 %2580  ;;  %v9110_v25 = vpop.permute.xlu0 %2572 }
 0x88f   : > { %v9112_v48 = vpop.permute.xlu2 %2516 }
 0x894   : > { %2706 = vrot.lane.b32.xlu0 %v8931_v53, %s11937_s28  ;;  %2720 = vrot.lane.b32.xlu1 %v9044_v30, %s11937_s28 }
 0x895   : > { %2718 = vrot.lane.b32.xlu2 %v9001_v61, %s11937_s28 }
 0x896   : > { %v9120_v14 = vpop.permute.xlu1 %2644  ;;  %v9122_v4 = vpop.permute.xlu0 %2684 }
 0x897   : > { %12008 = vst [vmem:[#allocation17_spill] sm:$0xff] %v9122_v4  ;;  %v9124_v8 = vpop.permute.xlu2 %2678 }
 0x898   : > { %12009 = vst [vmem:[#allocation16_spill] sm:$0xff] %v9124_v8 }
 0x89c   : > { %2712 = vrot.lane.b32.xlu0 %v9034_v17, %s11937_s28  ;;  %2714 = vrot.lane.b32.xlu1 %v8933_v10, %s11937_s28 }
 0x89d   : > { %2708 = vrot.lane.b32.xlu2 %v8966_v11, %s11937_s28 }
 0x89e   : > { %v9132_v15 = vpop.permute.xlu1 %2508  ;;  %v9134_v1 = vpop.permute.xlu0 %2548 }
 0x89f   : > { %v9136_v18 = vpop.permute.xlu2 %2542 }
 0x8a4   : > { %2716 = vrot.lane.b32.xlu0 %v8968_v49, %s11937_s28  ;;  %2791 = vperm.xlu1 %6906, %v6327_v33  }
 0x8a5   : > { %2786 = vperm.xlu2 %6907, %v6326_v9  }
 0x8a6   : > { %v9146_v40 = vpop.permute.xlu1 %2620  ;;  %v9148_v16 = vpop.permute.xlu0 %2612 }
 0x8a7   : > { %v9159_v27 = vpop.permute.xlu2 %2654 }
 0x8ac   : > { %2776 = vperm.xlu0 %6908, %v6324_v6   ;;  %3066 = vperm.xlu1 %6906, %v6359_v58   ;;  %v6356_v58 = vld [vmem:[%s11736_s5 + $0x120] sm:$0xff] }
 0x8ad   : > { %2781 = vperm.xlu2 %6907, %v6325_v50  }
 0x8ae   : > { %v2583_v33 = vpop.permute.xlu1 %2582  ;;  %v2575_v9 = vpop.permute.xlu0 %2574 }
 0x8af   : > { %v9170_v19 = vpop.permute.xlu2 %2518 }
 0x8b4   : > { %3094 = vperm.xlu0 %6908, %v6362_v39   ;;  %3056 = vperm.xlu1 %6906, %v6357_v23  }
 0x8b5   : > { %3061 = vperm.xlu2 %6907, %v6358_v47   ;;  %v6361_v47 = vld [vmem:[%s11736_s5 + $0x1a8] sm:$0xff] }
 0x8b6   : > { %v9172_v50 = vpop.permute.xlu1 %2646  ;;  %v9174_v6 = vpop.permute.xlu0 %2686 }
 0x8b7   : > { %12010 = vst [vmem:[#allocation18_spill] sm:$0xff] %v9174_v6  ;;  %v2577_v39 = vpop.permute.xlu2 %2576 }
 0x8bc   : > { %3051 = vperm.xlu0 %6908, %v6356_v58  }
 0x8bd   : > { %3099 = vperm.xlu2 %6907, %v6363_v57   ;;  %v2692_v57 = vsel %vm739_vm0, %v9124_v8, %v9174_v6  ;;  %v2698_v8 = vmul.f32 %v2690_v29, %v12011_v54  ;;  %v2590_v29 = vsel %vm682_vm5, %v9032_v20, %v9060_v34 }
 0x8be   : > { %v9182_v3 = vpop.permute.xlu1 %2510  ;;  %v2551_v23 = vpop.permute.xlu0 %2550  ;;  %v2702_v13 = vmul.f32 %v2692_v57, %v12011_v54  ;;  %v2592_v57 = vsel %vm682_vm5, %v2583_v33, %v2575_v9 }
 0x8bf   : > { %v9194_v58 = vpop.permute.xlu2 %2688 }
 0x8c4   : > { %3089 = vperm.xlu0 %6908, %v6361_v47  }
 0x8c5   : > { %3084 = vperm.xlu2 %6907, %v6360_v41   ;;  %v2691_v41 = vsel %vm739_vm0, %v9076_v36, %v9122_v4  ;;  %v2588_v4 = vsel %vm682_vm5, %v2575_v9, %v2583_v33  ;;  %v2598_v33 = vmul.f32 %v2592_v57, %v11966_v38 }
 0x8c6   : > { %v9190_v10 = vpop.permute.xlu1 %2622  ;;  %v9192_v49 = vpop.permute.xlu0 %2614  ;;  %v2700_v24 = vmul.f32 %v2691_v41, %v12011_v54 }
 0x8c7   : > { %v2553_v6 = vpop.permute.xlu2 %2552 }
 0x8c8   : > { %v2766_v21 = vpack.c.bf16 %v2700_v24, %v2698_v8  ;;  %v2599_v24 = vmul.f32 %v2588_v4, %v11967_v26 }
 0x8ce   : > { %v9200_v30 = vpop.permute.xlu1 %2680  ;;  %v9202_v61 = vpop.permute.xlu0 %2478 }
 0x8cf   : > { %v2693_v47 = vsel %vm739_vm0, %v9200_v30, %v9194_v58 }
 0x8d0   : > { %v2704_v2 = vmul.f32 %v2693_v47, %v12011_v54  ;;  %v2591_v47 = vsel %vm682_vm5, %v9108_v60, %v9110_v25 }
 0x8d2   : > { %v2768_v56 = vpack.c.bf16 %v2704_v2, %v2702_v13 }
 0x8d4   : > { %2849 = vmatpush.bf16.msrb.mxu3 %v2768_v56  ;;  %v2587_v56 = vsel %vm682_vm5, %v9110_v25, %v9108_v60  ;;  %v2586_v60 = vsel %vm682_vm5, %v9060_v34, %v9032_v20  ;;  %v2596_v25 = vmul.f32 %v2591_v47, %v11966_v38  ;;  %v2660_v20 = vsel %vm723_vm2, %v9172_v50, %v9159_v27  ;;  %v9263_v47 = vpop.permute.xlu2 %2474 }
 0x8d5   : > { %v2597_v41 = vmul.f32 %v2587_v56, %v11967_v26  ;;  %v2595_v57 = vmul.f32 %v2586_v60, %v11967_v26  ;;  %v2560_v34 = vsel %vm666_vm6, %v2551_v23, %v9136_v18  ;;  %v2659_v56 = vsel %vm723_vm2, %v9120_v14, %v9100_v22 }
 0x8d6   : > { %v2545_v36 = vpop.permute.xlu1 %2544  ;;  %v2585_v63 = vpop.permute.xlu0 %2584  ;;  %v2566_v60 = vmul.f32 %v2560_v34, %v7342_v62 }
 0x8d7   : > { %v2589_v2 = vsel %vm682_vm5, %v2577_v39, %v2585_v63  ;;  %v2593_v13 = vsel %vm682_vm5, %v2585_v63, %v2577_v39  ;;  %v2594_v39 = vmul.f32 %v2590_v29, %v11966_v38  ;;  %v2561_v4 = vsel %vm666_vm6, %v2553_v6, %v2545_v36 }
 0x8d8   : > { %v2600_v8 = vmul.f32 %v2593_v13, %v11966_v38  ;;  %v2601_v9 = vmul.f32 %v2589_v2, %v11967_v26  ;;  %2850 = vmatpush.bf16.msrb.mxu3 %v2766_v21  ;;  %v2557_v21 = vsel %vm666_vm6, %v2545_v36, %v2553_v6  ;;  %v2568_v36 = vmul.f32 %v2561_v4, %v7342_v62 }
 0x8d9   : > { %v2750_v29 = vpack.c.bf16 %v2596_v25, %v2594_v39  ;;  %v2751_v13 = vpack.c.bf16 %v2597_v41, %v2595_v57  ;;  %v2658_v41 = vsel %vm723_vm2, %v9042_v46, %v9086_v12 }
 0x8da   : > { %v2752_v54 = vpack.c.bf16 %v2600_v8, %v2598_v33  ;;  %v2753_v63 = vpack.c.bf16 %v2601_v9, %v2599_v24  ;;  %v2555_v33 = vsel %vm666_vm6, %v9088_v5, %v9134_v1  ;;  %v2559_v24 = vsel %vm666_vm6, %v9134_v1, %v9088_v5 }
 0x8db   : > { %v2569_v8 = vmul.f32 %v2557_v21, %v7346_v0  ;;  %v2554_v5 = vsel %vm666_vm6, %v9074_v42, %v9084_v44  ;;  %v2558_v1 = vsel %vm666_vm6, %v9084_v44, %v9074_v42  ;;  %v2564_v4 = vmul.f32 %v2559_v24, %v7342_v62 }
 0x8dc   : > { %2830 = vmatpush.bf16.msrb.mxu2 %v2752_v54  ;;  %2887 = vmatpush.bf16.msrb.mxu1 %v2753_v63  ;;  %v2556_v54 = vsel %vm666_vm6, %v9136_v18, %v2551_v23  ;;  %v12012_v23 = vld [vmem:[#allocation5_spill] sm:$0xff]  ;;  %v2748_v57 = vpack.c.bf16 %v2568_v36, %v2566_v60  ;;  %v2528_v44 = vsel %vm650_vm8, %v9170_v19, %v9182_v3 }
 0x8dd   : > { %v2670_v9 = vmul.f32 %v2660_v20, %v12012_v23  ;;  %v2567_v63 = vmul.f32 %v2556_v54, %v7346_v0  ;;  %v2668_v39 = vmul.f32 %v2659_v56, %v12012_v23  ;;  %v2565_v20 = vmul.f32 %v2555_v33, %v7346_v0 }
 0x8de   : > { %v9273_v6 = vpop.permute.xlu1 %2656  ;;  %v9275_v2 = vpop.permute.xlu0 %2648  ;;  %v2666_v42 = vmul.f32 %v2658_v41, %v12012_v23  ;;  %v2563_v56 = vmul.f32 %v2554_v5, %v7346_v0  ;;  %v2524_v54 = vsel %vm650_vm8, %v9182_v3, %v9170_v19  ;;  %v2523_v36 = vsel %vm650_vm8, %v9132_v15, %v9112_v48 }
 0x8df   : > { %v2661_v18 = vsel %vm723_vm2, %v9275_v2, %v9273_v6  ;;  %v2749_v34 = vpack.c.bf16 %v2569_v8, %v2567_v63  ;;  %v9334_v5 = vpop.permute.xlu2 %2616  ;;  %v2522_v41 = vsel %vm650_vm8, %v9052_v45, %v9098_v52 }
 0x8e0   : > { %v2672_v25 = vmul.f32 %v2661_v18, %v12012_v23  ;;  %2831 = vmatpush.bf16.msrb.mxu2 %v2750_v29  ;;  %2888 = vmatpush.bf16.msrb.mxu1 %v2751_v13  ;;  %v2562_v29 = vmul.f32 %v2558_v1, %v7342_v62  ;;  %v2527_v13 = vsel %vm650_vm8, %v9112_v48, %v9132_v15 }
 0x8e1   : > { %v2762_v18 = vpack.c.bf16 %v2668_v39, %v2666_v42  ;;  %v2747_v60 = vpack.c.bf16 %v2565_v20, %v2563_v56  ;;  %v2526_v15 = vsel %vm650_vm8, %v9098_v52, %v9052_v45  ;;  %v2532_v63 = vmul.f32 %v2527_v13, %v7384_v31 }
 0x8e2   : > { %v2764_v21 = vpack.c.bf16 %v2672_v25, %v2670_v9  ;;  %v2746_v8 = vpack.c.bf16 %v2564_v4, %v2562_v29  ;;  %v2534_v9 = vmul.f32 %v2528_v44, %v7384_v31  ;;  %v2535_v25 = vmul.f32 %v2524_v54, %v11968_v51 }
 0x8e3   : > { %v2531_v20 = vmul.f32 %v2522_v41, %v11968_v51  ;;  %v2627_v52 = vsel %vm707_vm4, %v9148_v16, %v9146_v40  ;;  %v2626_v13 = vsel %vm707_vm4, %v9096_v32, %v9064_v28  ;;  %v2608_v41 = vmul.f32 %v9034_v17, %v7306_v35 }
 0x8e4   : > { %2832 = vmatpush.bf16.msrb.mxu2 %v2748_v57  ;;  %2851 = vmatpush.bf16.msrb.mxu3 %v2764_v21  ;;  %v2533_v57 = vmul.f32 %v2523_v36, %v11968_v51  ;;  %v2530_v21 = vmul.f32 %v2526_v15, %v7384_v31  ;;  %v2697_v17 = vsel %vm739_vm0, %v9194_v58, %v9200_v30  ;;  %v12013_v58 = vld [vmem:[#allocation34_spill] sm:$0xff] }
 0x8e5   : > { %2889 = vmatpush.bf16.msrb.mxu1 %v2749_v34  ;;  %v2628_v34 = vsel %vm707_vm4, %v9192_v49, %v9190_v10 }
 0x8e6   : > { %v2521_v33 = vpop.permute.xlu1 %2520  ;;  %v2513_v24 = vpop.permute.xlu0 %2512  ;;  %v2742_v45 = vpack.c.bf16 %v2532_v63, %v2530_v21  ;;  %v2743_v56 = vpack.c.bf16 %v2533_v57, %v2531_v20  ;;  %v2638_v54 = vmul.f32 %v2628_v34, %v7314_v43  ;;  %v2604_v20 = vmul.f32 %v8966_v11, %v7306_v35 }
 0x8e7   : > { %v2525_v3 = vsel %vm650_vm8, %v2513_v24, %v2521_v33  ;;  %v2529_v19 = vsel %vm650_vm8, %v2521_v33, %v2513_v24  ;;  %v2636_v33 = vmul.f32 %v2627_v52, %v7314_v43  ;;  %v2481_v24 = vpop.permute.xlu2 %2480  ;;  %v6332_v52 = vld [vmem:[%s11735_s4 + $0x6c] sm:$0xf0] }
 0x8e8   : > { %v2536_v1 = vmul.f32 %v2529_v19, %v7384_v31  ;;  %v2537_v48 = vmul.f32 %v2525_v3, %v11968_v51  ;;  %2833 = vmatpush.bf16.msrb.mxu2 %v2746_v8  ;;  %2852 = vmatpush.bf16.msrb.mxu3 %v2762_v18  ;;  %v2634_v18 = vmul.f32 %v2626_v13, %v7314_v43 }
 0x8e9   : > { %2890 = vmatpush.bf16.msrb.mxu1 %v2747_v60 }
 0x8ea   : > { %v2744_v39 = vpack.c.bf16 %v2536_v1, %v2534_v9  ;;  %v2745_v4 = vpack.c.bf16 %v2537_v48, %v2535_v25  ;;  %v2758_v25 = vpack.c.bf16 %v2636_v33, %v2634_v18  ;;  %v2606_v1 = vmul.f32 %v8999_v59, %v7306_v35 }
 0x8ec   : > { %2834 = vmatpush.bf16.msrb.mxu2 %v2744_v39  ;;  %v2756_v59 = vpack.c.bf16 %v2608_v41, %v2606_v1  ;;  %v6793_v41 = vld [vmem:[%s11735_s4 + $0x68] sm:$0xf0] }
 0x8ed   : > { %2891 = vmatpush.bf16.msrb.mxu1 %v2745_v4 }
 0x8ee   : > { %v2487_v29 = vpop.permute.xlu1 %2486  ;;  %v9354_v42 = vpop.permute.xlu0 %2624 }
 0x8ef   : > { %v2629_v44 = vsel %vm707_vm4, %v9334_v5, %v9354_v42  ;;  %v2492_v9 = vsel %vm635_vm7, %v9202_v61, %v2487_v29  ;;  %v2496_v3 = vsel %vm635_vm7, %v2487_v29, %v9202_v61  ;;  %v2485_v34 = vpop.permute.xlu2 %2484  ;;  %v2602_v29 = vmul.f32 %v8931_v53, %v7306_v35 }
 0x8f0   : > { %v2640_v36 = vmul.f32 %v2629_v44, %v7314_v43  ;;  %2835 = vmatpush.bf16.msrb.mxu2 %v2742_v45  ;;  %v2502_v63 = vmul.f32 %v2496_v3, %v11978_v37  ;;  %v2503_v39 = vmul.f32 %v2492_v9, %v11979_v55  ;;  %v6792_v45 = vld [vmem:[%s11735_s4 + $0x64] sm:$0xf]  ;;  %v12014_v44 = vld [vmem:[#allocation17_spill] sm:$0xff] }
 0x8f1   : > { %2892 = vmatpush.bf16.msrb.mxu1 %v2743_v56  ;;  %v2695_v53 = vsel %vm739_vm0, %v12014_v44, %v12013_v58  ;;  %v12015_v56 = vld [vmem:[#allocation16_spill] sm:$0xff]  ;;  %v2662_v58 = vsel %vm723_vm2, %v9086_v12, %v9042_v46 }
 0x8f2   : > { %v2760_v8 = vpack.c.bf16 %v2640_v36, %v2638_v54  ;;  %v12016_v54 = vld [vmem:[#allocation18_spill] sm:$0xff]  ;;  %v6344_v46 = vld [vmem:[%s11735_s4 + $0x84] sm:$0xf0] }
 0x8f3   : > { %v2696_v36 = vsel %vm739_vm0, %v12016_v54, %v12015_v56  ;;  %v6795_v56 = vld [vmem:[%s11735_s4 + $0x7c] sm:$0xf] }
 0x8f4   : > { %2853 = vmatpush.bf16.msrb.mxu3 %v2760_v8  ;;  %v12017_v8 = vld [vmem:[#allocation8_spill] sm:$0xff] }
 0x8f5   : > { %v2705_v18 = vmul.f32 %v2697_v17, %v12017_v8  ;;  %v2665_v17 = vsel %vm723_vm2, %v9273_v6, %v9275_v2 }
 0x8f6   : > { %v2477_v19 = vpop.permute.xlu1 %2476  ;;  %v2489_v60 = vpop.permute.xlu0 %2488 }
 0x8f7   : > { %v2493_v48 = vsel %vm635_vm7, %v2481_v24, %v2489_v60  ;;  %v2497_v15 = vsel %vm635_vm7, %v2489_v60, %v2481_v24  ;;  %v2491_v11 = vsel %vm635_vm7, %v2477_v19, %v2485_v34  ;;  %v2495_v30 = vsel %vm635_vm7, %v2485_v34, %v2477_v19 }
 0x8f8   : > { %v2504_v61 = vmul.f32 %v2497_v15, %v11978_v37  ;;  %v2505_v4 = vmul.f32 %v2493_v48, %v11979_v55  ;;  %2854 = vmatpush.bf16.msrb.mxu3 %v2758_v25  ;;  %v2754_v24 = vpack.c.bf16 %v2604_v20, %v2602_v29  ;;  %v9423_v19 = vor.u32 %v6792_v45, %v6332_v52  ;;  %v6330_v15 = vld [vmem:[%s11735_s4 + $0x60] sm:$0xf] }
 0x8f9   : > { %v2500_v60 = vmul.f32 %v2495_v30, %v11978_v37  ;;  %v2501_v25 = vmul.f32 %v2491_v11, %v11979_v55  ;;  %v6331_v20 = vor.u32 %v6793_v41, %v6330_v15  ;;  %v2664_v29 = vsel %vm723_vm2, %v9159_v27, %v9172_v50  ;;  %v12020_v11 = vld [vmem:[#allocation7_spill] sm:$0xff] }
 0x8fa   : > { %v2740_v57 = vpack.c.bf16 %v2504_v61, %v2502_v63  ;;  %v2741_v21 = vpack.c.bf16 %v2505_v4, %v2503_v39  ;;  %v12018_v63 = vld [vmem:[#allocation14_spill] sm:$0xff]  ;;  %v12019_v39 = vld [vmem:[#allocation27_spill] sm:$0xff]  ;;  %v2663_v52 = vsel %vm723_vm2, %v9100_v22, %v9120_v14  ;;  %v2673_v30 = vmul.f32 %v2665_v17, %v12020_v11  ;;  %v2719_v22 = vpop.permute.xlu2 %2718  ;;  %v12024_v17 = vld [vmem:[#allocation9_spill] sm:$0xff] }
 0x8fb   : > { %v2694_v61 = vsel %vm739_vm0, %v12019_v39, %v12018_v63  ;;  %v2671_v44 = vmul.f32 %v2664_v29, %v12020_v11  ;;  %v2669_v27 = vmul.f32 %v2663_v52, %v12020_v11  ;;  %v2633_v14 = vsel %vm707_vm4, %v9354_v42, %v9334_v5 }
 0x8fc   : > { %2836 = vmatpush.bf16.msrb.mxu2 %v2740_v57  ;;  %2855 = vmatpush.bf16.msrb.mxu3 %v2756_v59  ;;  %v2701_v59 = vmul.f32 %v2695_v53, %v12017_v8  ;;  %v2699_v34 = vmul.f32 %v2694_v61, %v12017_v8  ;;  %v2667_v53 = vmul.f32 %v2662_v58, %v12020_v11 }
 0x8fd   : > { %2893 = vmatpush.bf16.msrb.mxu1 %v2741_v21  ;;  %v2765_v50 = vpack.c.bf16 %v2673_v30, %v2671_v44  ;;  %v2631_v5 = vsel %vm707_vm4, %v9146_v40, %v9148_v16  ;;  %v2632_v42 = vsel %vm707_vm4, %v9190_v10, %v9192_v49  ;;  %v6342_v10 = vld [vmem:[%s11735_s4 + $0x78] sm:$0xf]  ;;  %v6796_v49 = vld [vmem:[%s11735_s4 + $0x80] sm:$0xf0]  ;;  %v2630_v41 = vsel %vm707_vm4, %v9064_v28, %v9096_v32 }
 0x8fe   : > { %v2711_v13 = vpop.permute.xlu1 %2710  ;;  %v2483_v33 = vpop.permute.xlu0 %2482  ;;  %v2767_v6 = vpack.c.bf16 %v2701_v59, %v2699_v34  ;;  %v12025_v34 = vld [vmem:[#allocation25_spill] sm:$0xff] }
 0x8ff   : > { %v2490_v9 = vsel %vm635_vm7, %v9263_v47, %v2483_v33  ;;  %v2494_v3 = vsel %vm635_vm7, %v2483_v33, %v9263_v47  ;;  %v2703_v47 = vmul.f32 %v2696_v36, %v12017_v8  ;;  %v2724_v12 = vsel %vm755_vm1, %v2711_v13, %v2719_v22 }
 0x900   : > { %v2498_v1 = vmul.f32 %v2494_v3, %v11978_v37  ;;  %v2499_v48 = vmul.f32 %v2490_v9, %v11979_v55  ;;  %2856 = vmatpush.bf16.msrb.mxu3 %v2754_v24  ;;  %v2728_v54 = vsel %vm755_vm1, %v2719_v22, %v2711_v13  ;;  %v2763_v33 = vpack.c.bf16 %v2669_v27, %v2667_v53  ;;  %v12021_v24 = vld [vmem:[#allocation10_spill] sm:$0xff]  ;;  %v6338_v27 = vld [vmem:[%s11735_s4 + $0x68] sm:$0xf]  ;;  %v12026_v53 = vld [vmem:[#allocation13_spill] sm:$0xff] }
 0x901   : > { %v2769_v21 = vpack.c.bf16 %v2705_v18, %v2703_v47  ;;  %v2641_v18 = vmul.f32 %v2633_v14, %v12021_v24  ;;  %v6347_v3 = vor.u32 %v6795_v56, %v6344_v46  ;;  %v2639_v15 = vmul.f32 %v2632_v42, %v12021_v24  ;;  %v12028_v42 = vld [vmem:[#allocation30_spill] sm:$0xff] }
 0x902   : > { %v2738_v4 = vpack.c.bf16 %v2500_v60, %v2498_v1  ;;  %v2739_v57 = vpack.c.bf16 %v2501_v25, %v2499_v48  ;;  %v12022_v60 = vld [vmem:[#allocation3_spill] sm:$0xff]  ;;  %v12023_v1 = vld [vmem:[#allocation4_spill] sm:$0xff]  ;;  %v2637_v61 = vmul.f32 %v2631_v5, %v12021_v24  ;;  %v2635_v59 = vmul.f32 %v2630_v41, %v12021_v24  ;;  %v2709_v28 = vpop.permute.xlu2 %2708 }
 0x903   : > { %2857 = vmatmul.bf16.vlgmr.msrb.gmra.mxu3 %v9423_v19  ;;  %v2734_v25 = vmul.f32 %v2724_v12, %v12022_v60  ;;  %v2735_v40 = vmul.f32 %v2728_v54, %v12023_v1  ;;  %v2607_v29 = vmul.f32 %v12025_v34, %v12024_v17  ;;  %v2609_v22 = vmul.f32 %v12026_v53, %v12024_v17  ;;  %v12027_v54 = vld [vmem:[#allocation32_spill] sm:$0xff] }
 0x904   : > { %2837 = vmatpush.bf16.msrb.mxu2 %v2738_v4  ;;  %2894 = vmatpush.bf16.msrb.mxu1 %v2739_v57  ;;  %v2761_v4 = vpack.c.bf16 %v2641_v18, %v2639_v15  ;;  %v6343_v57 = vor.u32 %v6796_v49, %v6342_v10  ;;  %v2605_v5 = vmul.f32 %v12027_v54, %v12024_v17  ;;  %v6350_v18 = vld [vmem:[%s11735_s4 + $0x80] sm:$0xf] }
 0x905   : > { %v2757_v46 = vpack.c.bf16 %v2609_v22, %v2607_v29 }
 0x906   : > { %v2707_v45 = vpop.permute.xlu0 %2706  ;;  %v2721_v2 = vpop.permute.xlu1 %2720 }
 0x907   : > { %2838 = vmatmul.bf16.vlgmr.msrb.gmra.mxu2 %v6331_v20  ;;  %2895 = vmatmul.bf16.vlgmr.msrb.gmra.mxu1 %v6331_v20 }
 0x908   : > { %2906 = vmatpush.bf16.msra.mxu2 %v2769_v21 }
 0x90c   : > { %2907 = vmatpush.bf16.msra.mxu2 %v2767_v6  ;;  %v2759_v6 = vpack.c.bf16 %v2637_v61, %v2635_v59 }
 0x90e   : > { %v2713_v36 = vpop.permute.xlu0 %2712  ;;  %v2715_v47 = vpop.permute.xlu1 %2714 }
 0x90f   : > { %v2725_v9 = vsel %vm755_vm1, %v2713_v36, %v2721_v2  ;;  %v2729_v13 = vsel %vm755_vm1, %v2721_v2, %v2713_v36  ;;  %v2722_v21 = vsel %vm755_vm1, %v2707_v45, %v2715_v47  ;;  %v2726_v20 = vsel %vm755_vm1, %v2715_v47, %v2707_v45 }
 0x910   : > { %2908 = vmatpush.bf16.msra.mxu2 %v2765_v50  ;;  %v2736_v16 = vmul.f32 %v2725_v9, %v12022_v60  ;;  %v2737_v48 = vmul.f32 %v2729_v13, %v12023_v1  ;;  %v2730_v2 = vmul.f32 %v2722_v21, %v12022_v60  ;;  %v2731_v58 = vmul.f32 %v2726_v20, %v12023_v1  ;;  %v6794_v50 = vld [vmem:[%s11735_s4 + $0x70] sm:$0xf0]  ;;  %v6797_v9 = vld [vmem:[%s11735_s4 + $0x88] sm:$0xf0] }
 0x911   : > { %v6339_v12 = vor.u32 %v6794_v50, %v6338_v27  ;;  %v2603_v36 = vmul.f32 %v12028_v42, %v12024_v17  ;;  %v6351_v13 = vor.u32 %v6797_v9, %v6350_v18 }
 0x912   : > { %v2772_v63 = vpack.c.bf16 %v2736_v16, %v2734_v25  ;;  %v2773_v39 = vpack.c.bf16 %v2737_v48, %v2735_v40 }
 0x913   : > { %2862 = vmatmul.bf16.gmra.mxu3 %v6347_v3 }
 0x914   : > { %2909 = vmatpush.bf16.msra.mxu2 %v2763_v33  ;;  %2874 = vmatpush.bf16.msra.mxu0 %v2772_v63  ;;  %v2755_v33 = vpack.c.bf16 %v2605_v5, %v2603_v36  ;;  %v2787_v63 = vpop.permute.xlu2 %2786 }
 0x915   : > { %2931 = vmatpush.bf16.msra.mxu3 %v2773_v39 }
 0x916   : > { %v2717_v32 = vpop.permute.xlu0 %2716  ;;  %v2792_v18 = vpop.permute.xlu1 %2791 }
 0x917   : > { %v2723_v52 = vsel %vm755_vm1, %v2709_v28, %v2717_v32  ;;  %v2727_v30 = vsel %vm755_vm1, %v2717_v32, %v2709_v28  ;;  %2843 = vmatmul.bf16.gmra.mxu2 %v6343_v57  ;;  %2900 = vmatmul.bf16.gmra.mxu1 %v6343_v57 }
 0x918   : > { %2910 = vmatpush.bf16.msra.mxu2 %v2761_v4  ;;  %v2732_v45 = vmul.f32 %v2723_v52, %v12022_v60  ;;  %v2733_v44 = vmul.f32 %v2727_v30, %v12023_v1  ;;  %v12041_v1 = vld [vmem:[#allocation6_spill] sm:$0xff] }
 0x91a   : > { %v2770_v14 = vpack.c.bf16 %v2732_v45, %v2730_v2  ;;  %v2771_v56 = vpack.c.bf16 %v2733_v44, %v2731_v58 }
 0x91c   : > { %2911 = vmatpush.bf16.msra.mxu2 %v2759_v6  ;;  %2875 = vmatpush.bf16.msra.mxu0 %v2770_v14  ;;  %v2782_v29 = vpop.permute.xlu2 %2781 }
 0x91d   : > { %2932 = vmatpush.bf16.msra.mxu3 %v2771_v56 }
 0x91e   : > { %v2777_v39 = vpop.permute.xlu0 %2776 }
 0x91f   : > { %6352 = vmatmul.msk.bf16.vlgmr.msra.gmra.mxu0 %vm1435_vm15, %v6339_v12 }
 0x920   : > { %2912 = vmatpush.bf16.msra.mxu2 %v2757_v46 }
 0x923   : > { %6354 = vmatmul.msk.bf16.vlgmr.msra.gmra.mxu3 %vm1435_vm15, %v6339_v12 }
 0x924   : > { %2913 = vmatpush.bf16.msra.mxu2 %v2755_v33 }
 0x927   : > { %2914 = vmatmul.bf16.vlgmr.msra.gmra.mxu2 %v9423_v19 }
 0x92f   : > { %6353 = vmatmul.msk.bf16.gmra.mxu0 %vm1435_vm15, %v6351_v13 }
 0x933   : > { %6355 = vmatmul.msk.bf16.gmra.mxu3 %vm1435_vm15, %v6351_v13 }
 0x937   : > { %2919 = vmatmul.bf16.gmra.mxu2 %v6347_v3 }
 0x984   : > { %v2896_v15 = vpop.f32.mrf.mxu1 }
 0x985   : > { %v2897_v57 = vadd.f32 %v2896_v15, %v2777_v39 }
 0x986   : > { %v2858_v25 = vpop.f32.mrf.mxu3 }
 0x98a   : > { %v2839_v40 = vpop.f32.mrf.mxu2 }
 0x98b   : > { %v2840_v4 = vadd.f32 %v2839_v40, %v2777_v39 }
 0x98c   : > { %v2898_v59 = vpop.f32.mrf.mxu1 }
 0x98d   : > { %v2859_v20 = vadd.f32 %v2858_v25, %v2840_v4  ;;  %v2899_v2 = vadd.f32 %v2898_v59, %v2782_v29  ;;  %v9544_v4 = vpop.permute.xlu2 %3061 }
 0x98e   : > { %v2860_v16 = vpop.f32.mrf.mxu3 }
 0x992   : > { %v2841_v48 = vpop.f32.mrf.mxu2 }
 0x993   : > { %v2842_v52 = vadd.f32 %v2841_v48, %v2782_v29 }
 0x994   : > { %v2901_v27 = vpop.f32.mrf.mxu1 }
 0x995   : > { %v2861_v45 = vadd.f32 %v2860_v16, %v2842_v52  ;;  %v2902_v12 = vadd.f32 %v2901_v27, %v2787_v63 }
 0x996   : > { %v2863_v10 = vpop.f32.mrf.mxu3 }
 0x99a   : > { %v2844_v19 = vpop.f32.mrf.mxu2 }
 0x99b   : > { %v2845_v22 = vadd.f32 %v2844_v19, %v2787_v63 }
 0x99c   : > { %v2877_v47 = vpop.f32.mrf.mxu0  ;;  %v2903_v9 = vpop.f32.mrf.mxu1 }
 0x99d   : > { %v2878_v3 = vadd.f32 %v2877_v47, %v2859_v20  ;;  %v2864_v5 = vadd.f32 %v2863_v10, %v2845_v22  ;;  %v2904_v40 = vadd.f32 %v2903_v9, %v2792_v18  ;;  %v9546_v10 = vpop.permute.xlu2 %3099 }
 0x99e   : > { %v2865_v49 = vpop.f32.mrf.mxu3 }
 0x9a2   : > { %v2846_v41 = vpop.f32.mrf.mxu2 }
 0x9a3   : > { %v2847_v13 = vadd.f32 %v2846_v41, %v2792_v18  ;;  %v9552_v41 = vpop.permute.xlu0 %3094 }
 0x9a4   : > { %v2879_v32 = vpop.f32.mrf.mxu0 }
 0x9a5   : > { %v2880_v50 = vadd.f32 %v2879_v32, %v2861_v45  ;;  %v2866_v19 = vadd.f32 %v2865_v49, %v2847_v13  ;;  %v9550_v59 = vpop.permute.xlu2 %3084 }
 0x9a6   : > { %v2934_v61 = vpop.f32.mrf.mxu3 }
 0x9aa   : > { %v2915_v21 = vpop.f32.mrf.mxu2 }
 0x9ab   : > { %v2916_v28 = vadd.f32 %v2915_v21, %v2897_v57  ;;  %v9548_v57 = vpop.permute.xlu1 %3066 }
 0x9ac   : > { %v2882_v14 = vpop.f32.mrf.mxu0 }
 0x9ad   : > { %v2935_v34 = vadd.f32 %v2934_v61, %v2916_v28  ;;  %v2883_v36 = vadd.f32 %v2882_v14, %v2864_v5  ;;  %v12029_v28 = vld [vmem:[#allocation24_spill] sm:$0xff] }
 0x9ae   : > { %v2936_v6 = vpop.f32.mrf.mxu3 }
 0x9af   : > { %v2944_v30 = vadd.f32 %v2935_v34, %v2878_v3 }
 0x9b1   : > { %2945 = vadd.xlane.f32.xlu2 %v2944_v30 }
 0x9b2   : > { %v2917_v58 = vpop.f32.mrf.mxu2 }
 0x9b3   : > { %v2918_v44 = vadd.f32 %v2917_v58, %v2899_v2  ;;  %v9554_v21 = vpop.permute.xlu1 %3056 }
 0x9b4   : > { %v2884_v16 = vpop.f32.mrf.mxu0 }
 0x9b5   : > { %v2937_v53 = vadd.f32 %v2936_v6, %v2918_v44  ;;  %v2885_v39 = vadd.f32 %v2884_v16, %v2866_v19  ;;  %v3052_v6 = vpop.permute.xlu0 %3051 }
 0x9b6   : > { %v2939_v46 = vpop.f32.mrf.mxu3 }
 0x9b7   : > { %v2947_v56 = vadd.f32 %v2937_v53, %v2880_v50 }
 0x9b9   : > { %2948 = vadd.xlane.f32.xlu1 %v2947_v56 }
 0x9ba   : > { %v2920_v54 = vpop.f32.mrf.mxu2 }
 0x9bb   : > { %v2921_v42 = vadd.f32 %v2920_v54, %v2902_v12 }
 0x9bd   : > { %v2940_v33 = vadd.f32 %v2939_v46, %v2921_v42 }
 0x9be   : > { %v2941_v15 = vpop.f32.mrf.mxu3 }
 0x9bf   : > { %v2950_v25 = vadd.f32 %v2940_v33, %v2883_v36 }
 0x9c1   : > { %2951 = vadd.xlane.f32.xlu1 %v2950_v25 }
 0x9c2   : > { %v2922_v48 = vpop.f32.mrf.mxu2 }
 0x9c3   : > { %v2923_v47 = vadd.f32 %v2922_v48, %v2904_v40 }
 0x9c5   : > { %v2942_v61 = vadd.f32 %v2941_v15, %v2923_v47 }
 0x9c7   : > { %v2953_v63 = vadd.f32 %v2942_v61, %v2885_v39 }
 0x9c9   : > { %2954 = vadd.xlane.f32.xlu0 %v2953_v63 }
 0xa24   : > { %v2946_v20 = vpop.xlane.xlu2 %2945 }
 0xa25   : > { %v2956_v49 = vmul.f32 %v2946_v20, %v12029_v28 }
 0xa27   : > { %v2960_v32 = vsub.f32 %v2878_v3, %v2956_v49  ;;  %v2961_v29 = vsub.f32 %v2935_v34, %v2956_v49  ;;  %v9566_v34 = vpop.permute.xlu0 %3089 }
 0xa29   : > { %v2968_v52 = vmul.f32 %v2960_v32, %v2960_v32  ;;  %v2969_v30 = vmul.f32 %v2961_v29, %v2961_v29 }
 0xa2b   : > { %v2976_v2 = vadd.f32 %v2969_v30, %v2968_v52 }
 0xa2c   : > { %v2949_v58 = vpop.xlane.xlu1 %2948 }
 0xa2d   : > { %v2957_v45 = vmul.f32 %v2949_v58, %v12029_v28  ;;  %2977 = vadd.xlane.f32.xlu1 %v2976_v2 }
 0xa2f   : > { %v9558_v44 = vsub.f32 %v2880_v50, %v2957_v45  ;;  %v9560_v27 = vsub.f32 %v2937_v53, %v2957_v45 }
 0xa31   : > { %v2970_v22 = vmul.f32 %v9558_v44, %v9558_v44  ;;  %v2971_v14 = vmul.f32 %v9560_v27, %v9560_v27 }
 0xa33   : > { %v2979_v3 = vadd.f32 %v2971_v14, %v2970_v22 }
 0xa34   : > { %v2952_v56 = vpop.xlane.xlu1 %2951 }
 0xa35   : > { %v2958_v46 = vmul.f32 %v2952_v56, %v12029_v28  ;;  %2980 = vadd.xlane.f32.xlu0 %v2979_v3 }
 0xa37   : > { %v9569_v12 = vsub.f32 %v2883_v36, %v2958_v46  ;;  %v9571_v54 = vsub.f32 %v2940_v33, %v2958_v46 }
 0xa39   : > { %v2972_v50 = vmul.f32 %v9569_v12, %v9569_v12  ;;  %v2973_v53 = vmul.f32 %v9571_v54, %v9571_v54 }
 0xa3b   : > { %v2982_v5 = vadd.f32 %v2973_v53, %v2972_v50 }
 0xa3c   : > { %v2955_v42 = vpop.xlane.xlu0 %2954 }
 0xa3d   : > { %v2959_v18 = vmul.f32 %v2955_v42, %v12029_v28  ;;  %2983 = vadd.xlane.f32.xlu0 %v2982_v5 }
 0xa3f   : > { %v9578_v9 = vsub.f32 %v2885_v39, %v2959_v18  ;;  %v9580_v13 = vsub.f32 %v2942_v61, %v2959_v18 }
 0xa41   : > { %v2974_v36 = vmul.f32 %v9578_v9, %v9578_v9  ;;  %v2975_v33 = vmul.f32 %v9580_v13, %v9580_v13 }
 0xa43   : > { %v2985_v25 = vadd.f32 %v2975_v33, %v2974_v36 }
 0xa45   : > { %2986 = vadd.xlane.f32.xlu2 %v2985_v25 }
 0xaa0   : > { %v2978_v40 = vpop.xlane.xlu1 %2977 }
 0xaa1   : > { %v2988_v16 = vmul.f32 %v2978_v40, %v12029_v28 }
 0xaa3   : > { %v2992_v48 = vadd.f32 1e-05, %v2988_v16 }
 0xaa5   : > { %6993 = vrsqrt.f32 %v2992_v48  ;;  %vm3002_vm12 = vweird.f32 %v2992_v48 }
 0xaa8   : > { %v2981_v15 = vpop.xlane.xlu0 %2980 }
 0xaa9   : > { %v2989_v19 = vmul.f32 %v2981_v15, %v12029_v28 }
 0xaab   : > { %v6994_v47 = vpop.eup %6993  ;;  %v2993_v39 = vadd.f32 1e-05, %v2989_v19 }
 0xaac   : > { %v2997_v61 = vmul.f32 %v6994_v47, %v2992_v48  ;;  %vm3003_vm11 = vweird.f32 %v6994_v47 }
 0xaad   : > { %6995 = vrsqrt.f32 %v2993_v39  ;;  %vm3004_vm13 = vmor %vm3002_vm12, %vm3003_vm11  ;;  %vm3012_vm3 = vweird.f32 %v2993_v39 }
 0xaae   : > { %v2998_v63 = vmul.f32 %v6994_v47, %v2997_v61 }
 0xab0   : > { %v2999_v20 = vmul.f32 0.5, %v2998_v63  ;;  %v2984_v36 = vpop.xlane.xlu0 %2983 }
 0xab1   : > { %v2990_v33 = vmul.f32 %v2984_v36, %v12029_v28 }
 0xab2   : > { %v3000_v49 = vsub.f32 1.5, %v2999_v20 }
 0xab3   : > { %v6996_v52 = vpop.eup %6995 }
 0xab4   : > { %v3001_v30 = vmul.f32 %v6994_v47, %v3000_v49  ;;  %v3007_v2 = vmul.f32 %v6996_v52, %v2993_v39  ;;  %vm3013_vm14 = vweird.f32 %v6996_v52 }
 0xab5   : > { %vm3014_vm9 = vmor %vm3012_vm3, %vm3013_vm14 }
 0xab6   : > { %v3005_v58 = vsel %vm3004_vm13, %v6994_v47, %v3001_v30  ;;  %v3008_v45 = vmul.f32 %v6996_v52, %v3007_v2 }
 0xab7   : > { %v3036_v22 = vmul.f32 %v3005_v58, %v2960_v32  ;;  %v3037_v14 = vmul.f32 %v3005_v58, %v2961_v29  ;;  %v2994_v32 = vadd.f32 1e-05, %v2990_v33 }
 0xab8   : > { %v3009_v46 = vmul.f32 0.5, %v3008_v45 }
 0xab9   : > { %v3069_v3 = vmul.f32 %v3052_v6, %v3036_v22  ;;  %v3070_v56 = vmul.f32 %v3052_v6, %v3037_v14  ;;  %v2987_v22 = vpop.xlane.xlu2 %2986  ;;  %vm3022_vm11 = vweird.f32 %v2994_v32 }
 0xaba   : > { %v3010_v18 = vsub.f32 1.5, %v3009_v46 }
 0xabb   : > { %v3102_v50 = vadd.f32 %v9550_v59, %v3069_v3  ;;  %v3103_v53 = vadd.f32 %v9550_v59, %v3070_v56  ;;  %v2991_v56 = vmul.f32 %v2987_v22, %v12029_v28 }
 0xabc   : > { %v3011_v25 = vmul.f32 %v6996_v52, %v3010_v18 }
 0xabd   : > { %v3110_v5 = vmul.f32 0.5, %v3102_v50  ;;  %v3111_v42 = vmul.f32 0.5, %v3103_v53 }
 0xabe   : > { %v3015_v6 = vsel %vm3014_vm9, %v6996_v52, %v3011_v25 }
 0xabf   : > { %6997 = vtanh.f32 %v3110_v5  ;;  %v3038_v59 = vmul.f32 %v3015_v6, %v9558_v44  ;;  %v3039_v47 = vmul.f32 %v3015_v6, %v9560_v27  ;;  %v2995_v5 = vadd.f32 1e-05, %v2991_v56 }
 0xac0   : > { %6999 = vtanh.f32 %v3111_v42 }
 0xac1   : > { %7001 = vrsqrt.f32 %v2994_v32  ;;  %v3071_v39 = vmul.f32 %v9554_v21, %v3038_v59  ;;  %v3072_v20 = vmul.f32 %v9554_v21, %v3039_v47  ;;  %vm3032_vm14 = vweird.f32 %v2995_v5 }
 0xac3   : > { %v3104_v27 = vadd.f32 %v9566_v34, %v3071_v39  ;;  %v3105_v49 = vadd.f32 %v9566_v34, %v3072_v20 }
 0xac5   : > { %v6998_v29 = vpop.eup %6997  ;;  %v3112_v30 = vmul.f32 0.5, %v3104_v27  ;;  %v3113_v2 = vmul.f32 0.5, %v3105_v49 }
 0xac6   : > { %v7000_v40 = vpop.eup %6999  ;;  %v3126_v16 = vadd.f32 1.0, %v6998_v29 }
 0xac7   : > { %v3127_v48 = vadd.f32 1.0, %v7000_v40  ;;  %v7002_v44 = vpop.eup %7001  ;;  %7003 = vtanh.f32 %v3112_v30 }
 0xac8   : > { %v3134_v15 = vmul.f32 0.5, %v3126_v16  ;;  %v3017_v52 = vmul.f32 %v7002_v44, %v2994_v32  ;;  %7005 = vtanh.f32 %v3113_v2  ;;  %vm3023_vm10 = vweird.f32 %v7002_v44 }
 0xac9   : > { %v3135_v19 = vmul.f32 0.5, %v3127_v48  ;;  %vm3024_vm12 = vmor %vm3022_vm11, %vm3023_vm10  ;;  %7007 = vrsqrt.f32 %v2995_v5  ;;  %vm5011_vm11 = vcmask 521216  }
 0xaca   : > { %v9593_v61 = vmul.f32 %v3134_v15, %v3102_v50  ;;  %v3018_v58 = vmul.f32 %v7002_v44, %v3017_v52 }
 0xacb   : > { %v9595_v63 = vmul.f32 %v3135_v19, %v3103_v53 }
 0xacc   : > { %12030 = vst [vmem:[#allocation19_spill] sm:$0xff] %v9593_v61  ;;  %3364 = vrot.lane.b32.xlu1 %v9593_v61, %s11954_s26  ;;  %3260 = vrot.lane.b32.xlu0 %v9593_v61, %s11955_s21  ;;  %v3019_v21 = vmul.f32 0.5, %v3018_v58 }
 0xacd   : > { %12031 = vst [vmem:[#allocation23_spill] sm:$0xff] %v9595_v63  ;;  %3268 = vrot.lane.b32.xlu2 %v9595_v63, %s11955_s21  ;;  %v7004_v45 = vpop.eup %7003 }
 0xace   : > { %v3020_v34 = vsub.f32 1.5, %v3019_v21  ;;  %v7006_v14 = vpop.eup %7005  ;;  %v3128_v46 = vadd.f32 1.0, %v7004_v45 }
 0xacf   : > { %v3129_v50 = vadd.f32 1.0, %v7006_v14 }
 0xad0   : > { %v3021_v3 = vmul.f32 %v7002_v44, %v3020_v34  ;;  %v3136_v42 = vmul.f32 0.5, %v3128_v46 }
 0xad1   : > { %v3137_v18 = vmul.f32 0.5, %v3129_v50 }
 0xad2   : > { %v3025_v53 = vsel %vm3024_vm12, %v7002_v44, %v3021_v3  ;;  %v9628_v33 = vmul.f32 %v3136_v42, %v3104_v27 }
 0xad3   : > { %v3040_v36 = vmul.f32 %v3025_v53, %v9569_v12  ;;  %v3041_v28 = vmul.f32 %v3025_v53, %v9571_v54  ;;  %v9630_v25 = vmul.f32 %v3137_v18, %v3105_v49  ;;  %v7008_v12 = vpop.eup %7007 }
 0xad4   : > { %3228 = vrot.lane.b32.xlu1 %v9593_v61, %s11956_s0  ;;  %3372 = vrot.lane.b32.xlu0 %v9595_v63, %s11954_s26  ;;  %v3027_v40 = vmul.f32 %v7008_v12, %v2995_v5  ;;  %vm3033_vm13 = vweird.f32 %v7008_v12 }
 0xad5   : > { %3332 = vrot.lane.b32.xlu2 %v9593_v61, %s11929_s23  ;;  %12032 = vst [vmem:[#allocation22_spill] sm:$0xff] %v9630_v25  ;;  %v3073_v32 = vmul.f32 %v9544_v4, %v3040_v36  ;;  %v3074_v29 = vmul.f32 %v9544_v4, %v3041_v28  ;;  %vm3034_vm3 = vmor %vm3032_vm14, %vm3033_vm13 }
 0xad6   : > { %v3028_v4 = vmul.f32 %v7008_v12, %v3027_v40 }
 0xad7   : > { %v3106_v54 = vadd.f32 %v9552_v41, %v3073_v32  ;;  %v3107_v6 = vadd.f32 %v9552_v41, %v3074_v29 }
 0xad8   : > { %v3029_v15 = vmul.f32 0.5, %v3028_v4 }
 0xad9   : > { %v3114_v16 = vmul.f32 0.5, %v3106_v54  ;;  %v3115_v48 = vmul.f32 0.5, %v3107_v6 }
 0xada   : > { %v3030_v59 = vsub.f32 1.5, %v3029_v15 }
 0xadb   : > { %7009 = vtanh.f32 %v3114_v16 }
 0xadc   : > { %3340 = vrot.lane.b32.xlu1 %v9595_v63, %s11929_s23  ;;  %3236 = vrot.lane.b32.xlu0 %v9595_v63, %s11956_s0  ;;  %7011 = vtanh.f32 %v3115_v48  ;;  %v3031_v20 = vmul.f32 %v7008_v12, %v3030_v59 }
 0xadd   : > { %3196 = vrot.lane.b32.xlu2 %v9593_v61, %s11930_s1 }
 0xade   : > { %v3035_v49 = vsel %vm3034_vm3, %v7008_v12, %v3031_v20 }
 0xadf   : > { %v3042_v52 = vmul.f32 %v3035_v49, %v9578_v9  ;;  %v3043_v21 = vmul.f32 %v3035_v49, %v9580_v13 }
 0xae1   : > { %v7010_v41 = vpop.eup %7009  ;;  %v3075_v58 = vmul.f32 %v9548_v57, %v3042_v52  ;;  %v3076_v9 = vmul.f32 %v9548_v57, %v3043_v21  ;;  %v6375_v52 = vld [vmem:[%s11736_s5 + $0x98] sm:$0xff] }
 0xae2   : > { %v7012_v19 = vpop.eup %7011  ;;  %v3130_v47 = vadd.f32 1.0, %v7010_v41 }
 0xae3   : > { %v3131_v39 = vadd.f32 1.0, %v7012_v19  ;;  %v3108_v34 = vadd.f32 %v9546_v10, %v3075_v58  ;;  %v3109_v22 = vadd.f32 %v9546_v10, %v3076_v9  ;;  %v6374_v58 = vld [vmem:[%s11736_s5 + $0x90] sm:$0xff]  ;;  %v6372_v9 = vld [vmem:[%s11736_s5 + $0x80] sm:$0xff] }
 0xae4   : > { %3204 = vrot.lane.b32.xlu1 %v9595_v63, %s11930_s1  ;;  %3300 = vrot.lane.b32.xlu0 %v9593_v61, %s11931_s22  ;;  %v3138_v44 = vmul.f32 0.5, %v3130_v47 }
 0xae5   : > { %3308 = vrot.lane.b32.xlu2 %v9595_v63, %s11931_s22  ;;  %v3139_v27 = vmul.f32 0.5, %v3131_v39  ;;  %v3116_v45 = vmul.f32 0.5, %v3108_v34  ;;  %v3117_v13 = vmul.f32 0.5, %v3109_v22 }
 0xae6   : > { %v9661_v30 = vmul.f32 %v3138_v44, %v3106_v54 }
 0xae7   : > { %v9663_v2 = vmul.f32 %v3139_v27, %v3107_v6  ;;  %7013 = vtanh.f32 %v3116_v45  ;;  %v6373_v45 = vld [vmem:[%s11736_s5 + $0x88] sm:$0xff] }
 0xae8   : > { %7015 = vtanh.f32 %v3117_v13 }
 0xae9   : > { %12033 = vst [vmem:[#allocation20_spill] sm:$0xff] %v9663_v2 }
 0xaec   : > { %3270 = vrot.lane.b32.xlu0 %v9630_v25, %s11955_s21  ;;  %3262 = vrot.lane.b32.xlu1 %v9628_v33, %s11955_s21 }
 0xaed   : > { %3366 = vrot.lane.b32.xlu2 %v9628_v33, %s11954_s26  ;;  %v7014_v14 = vpop.eup %7013 }
 0xaee   : > { %v3132_v57 = vadd.f32 1.0, %v7014_v14  ;;  %v7016_v3 = vpop.eup %7015 }
 0xaef   : > { %v3133_v46 = vadd.f32 1.0, %v7016_v3 }
 0xaf0   : > { %v3140_v10 = vmul.f32 0.5, %v3132_v57 }
 0xaf1   : > { %v3141_v53 = vmul.f32 0.5, %v3133_v46 }
 0xaf2   : > { %v9696_v50 = vmul.f32 %v3140_v10, %v3108_v34 }
 0xaf3   : > { %v9706_v42 = vmul.f32 %v3141_v53, %v3109_v22 }
 0xaf4   : > { %3334 = vrot.lane.b32.xlu0 %v9628_v33, %s11929_s23  ;;  %3374 = vrot.lane.b32.xlu1 %v9630_v25, %s11954_s26 }
 0xaf5   : > { %3230 = vrot.lane.b32.xlu2 %v9628_v33, %s11956_s0  ;;  %12034 = vst [vmem:[#allocation21_spill] sm:$0xff] %v9706_v42 }
 0xafc   : > { %3198 = vrot.lane.b32.xlu0 %v9628_v33, %s11930_s1  ;;  %3238 = vrot.lane.b32.xlu1 %v9630_v25, %s11956_s0 }
 0xafd   : > { %3342 = vrot.lane.b32.xlu2 %v9630_v25, %s11929_s23 }
 0xb04   : > { %3310 = vrot.lane.b32.xlu0 %v9630_v25, %s11931_s22  ;;  %3302 = vrot.lane.b32.xlu1 %v9628_v33, %s11931_s22 }
 0xb05   : > { %3206 = vrot.lane.b32.xlu2 %v9630_v25, %s11930_s1 }
 0xb0c   : > { %3272 = vrot.lane.b32.xlu0 %v9663_v2, %s11955_s21  ;;  %3264 = vrot.lane.b32.xlu1 %v9661_v30, %s11955_s21 }
 0xb0d   : > { %3368 = vrot.lane.b32.xlu2 %v9661_v30, %s11954_s26 }
 0xb14   : > { %3336 = vrot.lane.b32.xlu0 %v9661_v30, %s11929_s23  ;;  %3376 = vrot.lane.b32.xlu1 %v9663_v2, %s11954_s26 }
 0xb15   : > { %3232 = vrot.lane.b32.xlu2 %v9661_v30, %s11956_s0 }
 0xb1c   : > { %3200 = vrot.lane.b32.xlu0 %v9661_v30, %s11930_s1  ;;  %3240 = vrot.lane.b32.xlu1 %v9663_v2, %s11956_s0 }
 0xb1d   : > { %3344 = vrot.lane.b32.xlu2 %v9663_v2, %s11929_s23 }
 0xb24   : > { %3312 = vrot.lane.b32.xlu0 %v9663_v2, %s11931_s22  ;;  %3304 = vrot.lane.b32.xlu1 %v9661_v30, %s11931_s22 }
 0xb25   : > { %3208 = vrot.lane.b32.xlu2 %v9663_v2, %s11930_s1 }
 0xb27   : > { %v9694_v56 = vpop.permute.xlu2 %3268 }
 0xb2c   : > { %3370 = vrot.lane.b32.xlu0 %v9696_v50, %s11954_s26  ;;  %3168 = vrot.lane.b32.xlu1 %v9661_v30, %s11935_s3 }
 0xb2d   : > { %3266 = vrot.lane.b32.xlu2 %v9696_v50, %s11955_s21 }
 0xb2f   : > { %v9704_v5 = vpop.permute.xlu2 %3332 }
 0xb34   : > { %3234 = vrot.lane.b32.xlu0 %v9696_v50, %s11956_s0  ;;  %3274 = vrot.lane.b32.xlu1 %v9706_v42, %s11955_s21 }
 0xb35   : > { %3378 = vrot.lane.b32.xlu2 %v9706_v42, %s11954_s26 }
 0xb37   : > { %v9714_v18 = vpop.permute.xlu2 %3196 }
 0xb3c   : > { %3346 = vrot.lane.b32.xlu0 %v9706_v42, %s11929_s23  ;;  %3338 = vrot.lane.b32.xlu1 %v9696_v50, %s11929_s23  ;;  %s12109_s23 = sld [smem:[#allocation36_spill]] }
 0xb3d   : > { %3242 = vrot.lane.b32.xlu2 %v9706_v42, %s11956_s0  ;;  %s7102_s0 = smov 64  }
 0xb3e   : > { %v9722_v36 = vpop.permute.xlu1 %3364  ;;  %v9724_v28 = vpop.permute.xlu0 %3260 }
 0xb3f   : > { %v9726_v32 = vpop.permute.xlu2 %3308 }
 0xb44   : > { %3210 = vrot.lane.b32.xlu0 %v9706_v42, %s11930_s1  ;;  %3202 = vrot.lane.b32.xlu1 %v9696_v50, %s11930_s1  ;;  %s613_s1 = scalar_lea.vmem %s12109_s23, %s6198_s24  ;;  %s12112_s23 = sld [smem:[#allocation41_spill]] }
 0xb45   : > { %3164 = vrot.lane.b32.xlu2 %v9593_v61, %s11935_s3 }
 0xb46   : > { %v9734_v29 = vpop.permute.xlu1 %3228  ;;  %v9736_v12 = vpop.permute.xlu0 %3372 }
 0xb47   : > { %v9738_v54 = vpop.permute.xlu2 %3366  ;;  %v3380_v11 = vsel %vm739_vm0, %v9722_v36, %v9736_v12 }
 0xb48   : > { %12035 = vst [vmem:[#allocation5_spill] sm:$0xff] %v9738_v54 }
 0xb4c   : > { %3176 = vrot.lane.b32.xlu0 %v9663_v2, %s11935_s3  ;;  %3314 = vrot.lane.b32.xlu1 %v9706_v42, %s11931_s22 }
 0xb4d   : > { %3306 = vrot.lane.b32.xlu2 %v9696_v50, %s11931_s22 }
 0xb4e   : > { %v9746_v6 = vpop.permute.xlu1 %3340  ;;  %v9748_v40 = vpop.permute.xlu0 %3236 }
 0xb4f   : > { %v9750_v16 = vpop.permute.xlu2 %3230 }
 0xb54   : > { %3166 = vrot.lane.b32.xlu0 %v9628_v33, %s11935_s3  ;;  %3178 = vrot.lane.b32.xlu1 %v9706_v42, %s11935_s3 }
 0xb55   : > { %3170 = vrot.lane.b32.xlu2 %v9696_v50, %s11935_s3 }
 0xb56   : > { %v9758_v48 = vpop.permute.xlu1 %3204  ;;  %v9760_v4 = vpop.permute.xlu0 %3300 }
 0xb57   : > { %v9762_v15 = vpop.permute.xlu2 %3342 }
 0xb5c   : > { %3400 = vrot.lane.b32.xlu0 %v9661_v30, %s11937_s28  ;;  %3172 = vrot.lane.b32.xlu1 %v9595_v63, %s11935_s3 }
 0xb5d   : > { %3174 = vrot.lane.b32.xlu2 %v9630_v25, %s11935_s3  ;;  %s12111_s3 = sld [smem:[#allocation39_spill]] }
 0xb5e   : > { %v3263_v41 = vpop.permute.xlu1 %3262  ;;  %v3271_v59 = vpop.permute.xlu0 %3270 }
 0xb5f   : > { %v9770_v19 = vpop.permute.xlu2 %3206 }
 0xb64   : > { %3410 = vrot.lane.b32.xlu0 %v9706_v42, %s11937_s28  ;;  %3396 = vrot.lane.b32.xlu1 %v9593_v61, %s11937_s28 }
 0xb65   : > { %3408 = vrot.lane.b32.xlu2 %v9663_v2, %s11937_s28 }
 0xb66   : > { %v9778_v47 = vpop.permute.xlu1 %3374  ;;  %v9780_v39 = vpop.permute.xlu0 %3334 }
 0xb67   : > { %12036 = vst [vmem:[#allocation34_spill] sm:$0xff] %v9778_v47  ;;  %v9782_v20 = vpop.permute.xlu2 %3368  ;;  %v3381_v42 = vsel %vm739_vm0, %v9738_v54, %v9778_v47  ;;  %v3388_v47 = vmul.f32 %v3380_v11, %v12041_v1  ;;  %v3277_v11 = vsel %vm682_vm5, %v3263_v41, %v3271_v59 }
 0xb68   : > { %12037 = vst [vmem:[#allocation17_spill] sm:$0xff] %v9782_v20  ;;  %v3390_v8 = vmul.f32 %v3381_v42, %v12041_v1 }
 0xb6c   : > { %3404 = vrot.lane.b32.xlu0 %v9595_v63, %s11937_s28  ;;  %3402 = vrot.lane.b32.xlu1 %v9696_v50, %s11937_s28 }
 0xb6d   : > { %3398 = vrot.lane.b32.xlu2 %v9628_v33, %s11937_s28 }
 0xb6e   : > { %v9790_v44 = vpop.permute.xlu1 %3238  ;;  %v9792_v27 = vpop.permute.xlu0 %3198 }
 0xb6f   : > { %v9794_v49 = vpop.permute.xlu2 %3232 }
 0xb74   : > { %3481 = vperm.xlu0 %6908, %v6375_v52   ;;  %3406 = vrot.lane.b32.xlu1 %v9630_v25, %s11937_s28 }
 0xb75   : > { %3476 = vperm.xlu2 %6907, %v6374_v58  }
 0xb76   : > { %v9804_v21 = vpop.permute.xlu1 %3302  ;;  %v9806_v34 = vpop.permute.xlu0 %3310 }
 0xb77   : > { %v9814_v22 = vpop.permute.xlu2 %3344 }
 0xb7c   : > { %3466 = vperm.xlu1 %6906, %v6372_v9  }
 0xb7d   : > { %3471 = vperm.xlu2 %6907, %v6373_v45  }
 0xb7e   : > { %v3265_v13 = vpop.permute.xlu1 %3264  ;;  %v3273_v14 = vpop.permute.xlu0 %3272 }
 0xb7f   : > { %v9816_v57 = vpop.permute.xlu2 %3208  ;;  %v3278_v54 = vsel %vm682_vm5, %v3265_v13, %v3273_v14 }
 0xb86   : > { %v9818_v10 = vpop.permute.xlu1 %3376  ;;  %v9820_v3 = vpop.permute.xlu0 %3336 }
 0xb87   : > { %12038 = vst [vmem:[#allocation16_spill] sm:$0xff] %v9818_v10  ;;  %v3267_v52 = vpop.permute.xlu2 %3266  ;;  %v3382_v9 = vsel %vm739_vm0, %v9782_v20, %v9818_v10 }
 0xb88   : > { %v3392_v60 = vmul.f32 %v3382_v9, %v12041_v1  ;;  %v3282_v9 = vsel %vm682_vm5, %v3273_v14, %v3265_v13  ;;  %v3289_v13 = vmul.f32 %v3278_v54, %v11967_v26  ;;  %v3287_v14 = vmul.f32 %v3277_v11, %v11967_v26 }
 0xb89   : > { %v3288_v42 = vmul.f32 %v3282_v9, %v11966_v38 }
 0xb8e   : > { %v3241_v46 = vpop.permute.xlu1 %3240  ;;  %v9822_v53 = vpop.permute.xlu0 %3200 }
 0xb8f   : > { %v9828_v25 = vpop.permute.xlu2 %3378 }
 0xb90   : > { %12039 = vst [vmem:[#allocation18_spill] sm:$0xff] %v9828_v25 }
 0xb96   : > { %v9824_v58 = vpop.permute.xlu1 %3304  ;;  %v9826_v63 = vpop.permute.xlu0 %3312 }
 0xb97   : > { %v3243_v20 = vpop.permute.xlu2 %3242 }
 0xb9e   : > { %v9834_v45 = vpop.permute.xlu1 %3168  ;;  %v9836_v2 = vpop.permute.xlu0 %3370 }
 0xb9f   : > { %12040 = vst [vmem:[#allocation14_spill] sm:$0xff] %v9836_v2  ;;  %v3383_v17 = vsel %vm739_vm0, %v9836_v2, %v9828_v25  ;;  %v3456_v2 = vpack.c.bf16 %v3390_v8, %v3388_v47 }
 0xba0   : > { %v3394_v24 = vmul.f32 %v3383_v17, %v12041_v1  ;;  %v3281_v17 = vsel %vm682_vm5, %v3271_v59, %v3263_v41  ;;  %v3276_v41 = vsel %vm682_vm5, %v9724_v28, %v9694_v56 }
 0xba1   : > { %v3286_v59 = vmul.f32 %v3281_v17, %v11966_v38  ;;  %v3285_v9 = vmul.f32 %v3276_v41, %v11967_v26  ;;  %v3248_v41 = vsel %vm666_vm6, %v9748_v40, %v9734_v29 }
 0xba2   : > { %v3458_v10 = vpack.c.bf16 %v3394_v24, %v3392_v60  ;;  %v3280_v24 = vsel %vm682_vm5, %v9694_v56, %v9724_v28  ;;  %v3350_v56 = vsel %vm723_vm2, %v9820_v3, %v9814_v22  ;;  %v3250_v28 = vsel %vm666_vm6, %v3241_v46, %v9794_v49 }
 0xba4   : > { %3539 = vmatpush.bf16.msra.mxu1 %v3458_v10 }
 0xba6   : > { %v3275_v61 = vpop.permute.xlu1 %3274  ;;  %v3235_v25 = vpop.permute.xlu0 %3234 }
 0xba7   : > { %v3279_v60 = vsel %vm682_vm5, %v3267_v52, %v3275_v61  ;;  %v3283_v1 = vsel %vm682_vm5, %v3275_v61, %v3267_v52  ;;  %v3284_v52 = vmul.f32 %v3280_v24, %v11966_v38  ;;  %v3251_v54 = vsel %vm666_vm6, %v3243_v20, %v3235_v25 }
 0xba8   : > { %v3290_v8 = vmul.f32 %v3283_v1, %v11966_v38  ;;  %v3291_v47 = vmul.f32 %v3279_v60, %v11967_v26  ;;  %3540 = vmatpush.bf16.msra.mxu1 %v3456_v2  ;;  %v3247_v2 = vsel %vm666_vm6, %v3235_v25, %v3243_v20  ;;  %v9893_v38 = vpop.permute.xlu2 %3164  ;;  %v3349_v26 = vsel %vm723_vm2, %v9780_v39, %v9762_v15 }
 0xba9   : > { %v3440_v17 = vpack.c.bf16 %v3286_v59, %v3284_v52  ;;  %v3246_v25 = vsel %vm666_vm6, %v9794_v49, %v3241_v46  ;;  %v3258_v20 = vmul.f32 %v3251_v54, %v7342_v62  ;;  %v3441_v60 = vpack.c.bf16 %v3287_v14, %v3285_v9 }
 0xbaa   : > { %v3442_v10 = vpack.c.bf16 %v3290_v8, %v3288_v42  ;;  %v3443_v61 = vpack.c.bf16 %v3291_v47, %v3289_v13  ;;  %v3245_v1 = vsel %vm666_vm6, %v9750_v16, %v9790_v44  ;;  %v3249_v42 = vsel %vm666_vm6, %v9790_v44, %v9750_v16 }
 0xbab   : > { %v3259_v13 = vmul.f32 %v3247_v2, %v7346_v0  ;;  %v3360_v46 = vmul.f32 %v3350_v56, %v12012_v23  ;;  %v3256_v8 = vmul.f32 %v3250_v28, %v7342_v62  ;;  %v3348_v16 = vsel %vm723_vm2, %v9704_v5, %v9746_v6 }
 0xbac   : > { %3520 = vmatpush.bf16.msrb.mxu0 %v3442_v10  ;;  %3577 = vmatpush.bf16.msrb.mxu3 %v3443_v61  ;;  %v3244_v44 = vsel %vm666_vm6, %v9734_v29, %v9748_v40  ;;  %v3257_v59 = vmul.f32 %v3246_v25, %v7346_v0  ;;  %v3358_v14 = vmul.f32 %v3349_v26, %v12012_v23  ;;  %vm3884_vm5 = vcmp.lt.s32.totalorder %v7256_v7, 96 }
 0xbad   : > { %v3254_v10 = vmul.f32 %v3249_v42, %v7342_v62  ;;  %v3438_v61 = vpack.c.bf16 %v3258_v20, %v3256_v8  ;;  %v3255_v54 = vmul.f32 %v3245_v1, %v7346_v0  ;;  %v3356_v2 = vmul.f32 %v3348_v16, %v12012_v23 }
 0xbae   : > { %v9903_v24 = vpop.permute.xlu1 %3338  ;;  %v9905_v11 = vpop.permute.xlu0 %3346  ;;  %v3439_v9 = vpack.c.bf16 %v3259_v13, %v3257_v59  ;;  %v3252_v56 = vmul.f32 %v3248_v41, %v7342_v62  ;;  %v3218_v29 = vsel %vm650_vm8, %v9816_v57, %v9822_v53  ;;  %v3253_v40 = vmul.f32 %v3244_v44, %v7346_v0 }
 0xbaf   : > { %v3351_v49 = vsel %vm723_vm2, %v9903_v24, %v9905_v11  ;;  %v3214_v28 = vsel %vm650_vm8, %v9822_v53, %v9816_v57  ;;  %v3213_v62 = vsel %vm650_vm8, %v9792_v27, %v9770_v19  ;;  %v3452_v0 = vpack.c.bf16 %v3358_v14, %v3356_v2 }
 0xbb0   : > { %v3362_v47 = vmul.f32 %v3351_v49, %v12012_v23  ;;  %3521 = vmatpush.bf16.msrb.mxu0 %v3440_v17  ;;  %3578 = vmatpush.bf16.msrb.mxu3 %v3441_v60  ;;  %v3217_v23 = vsel %vm650_vm8, %v9770_v19, %v9792_v27  ;;  %v3436_v25 = vpack.c.bf16 %v3254_v10, %v3252_v56  ;;  %v9964_v42 = vpop.permute.xlu2 %3306  ;;  %vm3844_vm6 = vcmp.lt.s32.totalorder %v7256_v7, 110 }
 0xbb1   : > { %v3224_v20 = vmul.f32 %v3218_v29, %v7384_v31  ;;  %v3437_v60 = vpack.c.bf16 %v3255_v54, %v3253_v40  ;;  %v3225_v1 = vmul.f32 %v3214_v28, %v11968_v51  ;;  %v3216_v27 = vsel %vm650_vm8, %v9758_v48, %v9714_v18 }
 0xbb2   : > { %v3454_v52 = vpack.c.bf16 %v3362_v47, %v3360_v46  ;;  %v3212_v49 = vsel %vm650_vm8, %v9714_v18, %v9758_v48  ;;  %v3222_v46 = vmul.f32 %v3217_v23, %v7384_v31  ;;  %v3223_v16 = vmul.f32 %v3213_v62, %v11968_v51 }
 0xbb3   : > { %v3220_v44 = vmul.f32 %v3216_v27, %v7384_v31  ;;  %v3221_v41 = vmul.f32 %v3212_v49, %v11968_v51  ;;  %v3318_v59 = vsel %vm707_vm4, %v9824_v58, %v9826_v63  ;;  %v3317_v10 = vsel %vm707_vm4, %v9804_v21, %v9806_v34  ;;  %v12043_v27 = vld [vmem:[#allocation18_spill] sm:$0xff] }
 0xbb4   : > { %3522 = vmatpush.bf16.msrb.mxu0 %v3438_v61  ;;  %3541 = vmatpush.bf16.msra.mxu1 %v3454_v52  ;;  %v3328_v61 = vmul.f32 %v3318_v59, %v7314_v43  ;;  %v3316_v54 = vsel %vm707_vm4, %v9760_v4, %v9726_v32  ;;  %v12046_v59 = vld [vmem:[#allocation34_spill] sm:$0xff] }
 0xbb5   : > { %3579 = vmatpush.bf16.msrb.mxu3 %v3439_v9  ;;  %v3432_v48 = vpack.c.bf16 %v3222_v46, %v3220_v44  ;;  %v3326_v9 = vmul.f32 %v3317_v10, %v7314_v43  ;;  %v3324_v29 = vmul.f32 %v3316_v54, %v7314_v43  ;;  %v12044_v46 = vld [vmem:[#allocation19_spill] sm:$0xff] }
 0xbb6   : > { %v3203_v17 = vpop.permute.xlu1 %3202  ;;  %v3211_v26 = vpop.permute.xlu0 %3210 }
 0xbb7   : > { %v3215_v57 = vsel %vm650_vm8, %v3203_v17, %v3211_v26  ;;  %v3219_v53 = vsel %vm650_vm8, %v3211_v26, %v3203_v17  ;;  %v3448_v17 = vpack.c.bf16 %v3326_v9, %v3324_v29  ;;  %v3298_v26 = vmul.f32 %v9696_v50, %v7306_v35 }
 0xbb8   : > { %v3226_v13 = vmul.f32 %v3219_v53, %v7384_v31  ;;  %v3227_v19 = vmul.f32 %v3215_v57, %v11968_v51  ;;  %3523 = vmatpush.bf16.msrb.mxu0 %v3436_v25  ;;  %3542 = vmatpush.bf16.msra.mxu1 %v3452_v0  ;;  %v3433_v51 = vpack.c.bf16 %v3223_v16, %v3221_v41  ;;  %v3171_v2 = vpop.permute.xlu2 %3170  ;;  %v6380_v16 = vld [vmem:[%s11735_s4 + $0x9c] sm:$0xf0]  ;;  %v12045_v41 = vld [vmem:[#allocation5_spill] sm:$0xff] }
 0xbb9   : > { %3580 = vmatpush.bf16.msrb.mxu3 %v3437_v60  ;;  %v3296_v0 = vmul.f32 %v9661_v30, %v7306_v35 }
 0xbba   : > { %v3434_v8 = vpack.c.bf16 %v3226_v13, %v3224_v20  ;;  %v3435_v47 = vpack.c.bf16 %v3227_v19, %v3225_v1  ;;  %v3294_v13 = vmul.f32 %v9628_v33, %v7306_v35  ;;  %v12042_v19 = vld [vmem:[#allocation14_spill] sm:$0xff] }
 0xbbb   : > { %v3446_v50 = vpack.c.bf16 %v3298_v26, %v3296_v0  ;;  %v3387_v30 = vsel %vm739_vm0, %v12043_v27, %v12042_v19  ;;  %v3384_v26 = vsel %vm739_vm0, %v9736_v12, %v9722_v36  ;;  %v3354_v36 = vsel %vm723_vm2, %v9814_v22, %v9820_v3  ;;  %v6801_v19 = vld [vmem:[%s11735_s4 + $0xac] sm:$0xf] }
 0xbbc   : > { %3524 = vmatpush.bf16.msrb.mxu0 %v3434_v8  ;;  %v3292_v8 = vmul.f32 %v12044_v46, %v7306_v35  ;;  %v3385_v35 = vsel %vm739_vm0, %v12046_v59, %v12045_v41  ;;  %v12051_v46 = vld [vmem:[#allocation10_spill] sm:$0xff]  ;;  %v12053_v59 = vld [vmem:[#allocation4_spill] sm:$0xff] }
 0xbbd   : > { %3581 = vmatpush.bf16.msrb.mxu3 %v3435_v47  ;;  %v6798_v47 = vld [vmem:[%s11735_s4 + $0x94] sm:$0xf] }
 0xbbe   : > { %v9984_v14 = vpop.permute.xlu1 %3314  ;;  %v3177_v18 = vpop.permute.xlu0 %3176 }
 0xbbf   : > { %v3319_v31 = vsel %vm707_vm4, %v9964_v42, %v9984_v14  ;;  %v3182_v40 = vsel %vm635_vm7, %v9834_v45, %v3177_v18  ;;  %v3186_v28 = vsel %vm635_vm7, %v3177_v18, %v9834_v45  ;;  %v12047_v18 = vld [vmem:[#allocation17_spill] sm:$0xff] }
 0xbc0   : > { %v3330_v52 = vmul.f32 %v3319_v31, %v7314_v43  ;;  %3525 = vmatpush.bf16.msrb.mxu0 %v3432_v48  ;;  %v3192_v20 = vmul.f32 %v3186_v28, %v11978_v37  ;;  %v3193_v57 = vmul.f32 %v3182_v40, %v11979_v55  ;;  %v3175_v49 = vpop.permute.xlu2 %3174  ;;  %v12048_v48 = vld [vmem:[#allocation16_spill] sm:$0xff] }
 0xbc1   : > { %3582 = vmatpush.bf16.msrb.mxu3 %v3433_v51  ;;  %v3386_v10 = vsel %vm739_vm0, %v12048_v48, %v12047_v18  ;;  %v3320_v48 = vsel %vm707_vm4, %v9726_v32, %v9760_v4 }
 0xbc2   : > { %v3450_v56 = vpack.c.bf16 %v3330_v52, %v3328_v61  ;;  %v3444_v61 = vpack.c.bf16 %v3294_v13, %v3292_v8  ;;  %v12049_v52 = vld [vmem:[#allocation8_spill] sm:$0xff] }
 0xbc3   : > { %v3395_v54 = vmul.f32 %v3387_v30, %v12049_v52 }
 0xbc4   : > { %3543 = vmatpush.bf16.msra.mxu1 %v3450_v56  ;;  %v10053_v56 = vor.u32 %v6798_v47, %v6380_v16 }
 0xbc6   : > { %v3179_v62 = vpop.permute.xlu1 %3178  ;;  %v3167_v23 = vpop.permute.xlu0 %3166 }
 0xbc7   : > { %v3183_v25 = vsel %vm635_vm7, %v3171_v2, %v3179_v62  ;;  %v3187_v43 = vsel %vm635_vm7, %v3179_v62, %v3171_v2  ;;  %v3181_v33 = vsel %vm635_vm7, %v3167_v23, %v3175_v49  ;;  %v3185_v44 = vsel %vm635_vm7, %v3175_v49, %v3167_v23  ;;  %v6378_v23 = vld [vmem:[%s11735_s4 + $0x90] sm:$0xf] }
 0xbc8   : > { %v3194_v45 = vmul.f32 %v3187_v43, %v11978_v37  ;;  %v3195_v53 = vmul.f32 %v3183_v25, %v11979_v55  ;;  %3544 = vmatpush.bf16.msra.mxu1 %v3448_v17  ;;  %v3190_v29 = vmul.f32 %v3185_v44, %v11978_v37  ;;  %v3191_v40 = vmul.f32 %v3181_v33, %v11979_v55  ;;  %v6799_v17 = vld [vmem:[%s11735_s4 + $0x98] sm:$0xf0]  ;;  %v12052_v44 = vld [vmem:[#allocation3_spill] sm:$0xff] }
 0xbc9   : > { %v6379_v0 = vor.u32 %v6799_v17, %v6378_v23 }
 0xbca   : > { %v3430_v60 = vpack.c.bf16 %v3194_v45, %v3192_v20  ;;  %v3431_v1 = vpack.c.bf16 %v3195_v53, %v3193_v57  ;;  %v3355_v20 = vsel %vm723_vm2, %v9905_v11, %v9903_v24  ;;  %v3389_v57 = vmul.f32 %v3384_v26, %v12049_v52  ;;  %v12050_v53 = vld [vmem:[#allocation7_spill] sm:$0xff] }
 0xbcb   : > { %v3353_v45 = vsel %vm723_vm2, %v9762_v15, %v9780_v39  ;;  %v3409_v15 = vpop.permute.xlu2 %3408  ;;  %v3323_v39 = vsel %vm707_vm4, %v9984_v14, %v9964_v42  ;;  %v3321_v42 = vsel %vm707_vm4, %v9806_v34, %v9804_v21  ;;  %v3322_v14 = vsel %vm707_vm4, %v9826_v63, %v9824_v58  ;;  %v6390_v63 = vld [vmem:[%s11735_s4 + $0xa8] sm:$0xf]  ;;  %v6802_v58 = vld [vmem:[%s11735_s4 + $0xb0] sm:$0xf0] }
 0xbcc   : > { %3526 = vmatpush.bf16.msrb.mxu0 %v3430_v60  ;;  %3545 = vmatpush.bf16.msra.mxu1 %v3446_v50  ;;  %v3363_v60 = vmul.f32 %v3355_v20, %v12050_v53  ;;  %v3352_v50 = vsel %vm723_vm2, %v9746_v6, %v9704_v5  ;;  %v3359_v22 = vmul.f32 %v3353_v45, %v12050_v53  ;;  %v6392_v5 = vld [vmem:[%s11735_s4 + $0xb4] sm:$0xf0]  ;;  %v12056_v20 = vld [vmem:[#allocation20_spill] sm:$0xff]  ;;  %vm3924_vm2 = vcmp.lt.s32.totalorder %v7256_v7, 95 }
 0xbcd   : > { %3583 = vmatpush.bf16.msrb.mxu3 %v3431_v1  ;;  %v3361_v1 = vmul.f32 %v3354_v36, %v12050_v53  ;;  %v3357_v13 = vmul.f32 %v3352_v50, %v12050_v53  ;;  %v3331_v8 = vmul.f32 %v3323_v39, %v12051_v46  ;;  %v6395_v33 = vor.u32 %v6801_v19, %v6392_v5 }
 0xbce   : > { %v3173_v31 = vpop.permute.xlu1 %3172  ;;  %v3401_v51 = vpop.permute.xlu0 %3400  ;;  %v3329_v18 = vmul.f32 %v3322_v14, %v12051_v46  ;;  %v12059_v14 = vld [vmem:[#allocation11_spill] sm:$0xff] }
 0xbcf   : > { %v3180_v9 = vsel %vm635_vm7, %v9893_v38, %v3173_v31  ;;  %v3184_v2 = vsel %vm635_vm7, %v3173_v31, %v9893_v38  ;;  %v3393_v38 = vmul.f32 %v3386_v10, %v12049_v52  ;;  %v3455_v3 = vpack.c.bf16 %v3363_v60, %v3361_v1  ;;  %v12057_v60 = vld [vmem:[#allocation22_spill] sm:$0xff] }
 0xbd0   : > { %v3188_v28 = vmul.f32 %v3184_v2, %v11978_v37  ;;  %v3189_v62 = vmul.f32 %v3180_v9, %v11979_v55  ;;  %3546 = vmatpush.bf16.msra.mxu1 %v3444_v61  ;;  %v3391_v55 = vmul.f32 %v3385_v35, %v12049_v52  ;;  %v3414_v6 = vsel %vm755_vm1, %v3401_v51, %v3409_v15 }
 0xbd1   : > { %v3459_v43 = vpack.c.bf16 %v3395_v54, %v3393_v38  ;;  %v3418_v27 = vsel %vm755_vm1, %v3409_v15, %v3401_v51  ;;  %v3453_v49 = vpack.c.bf16 %v3359_v22, %v3357_v13  ;;  %v3424_v41 = vmul.f32 %v3414_v6, %v12052_v44  ;;  %v6398_v22 = vld [vmem:[%s11735_s4 + $0xb0] sm:$0xf] }
 0xbd2   : > { %v3428_v25 = vpack.c.bf16 %v3190_v29, %v3188_v28  ;;  %v3429_v37 = vpack.c.bf16 %v3191_v40, %v3189_v62  ;;  %v3457_v24 = vpack.c.bf16 %v3391_v55, %v3389_v57  ;;  %v3425_v21 = vmul.f32 %v3418_v27, %v12053_v59  ;;  %v12054_v40 = vld [vmem:[#allocation9_spill] sm:$0xff] }
 0xbd3   : > { %3547 = vmatmul.bf16.vlgmr.msra.gmra.mxu1 %v10053_v56  ;;  %v3327_v61 = vmul.f32 %v3321_v42, %v12051_v46  ;;  %v3451_v52 = vpack.c.bf16 %v3331_v8, %v3329_v18  ;;  %v6391_v54 = vor.u32 %v6802_v58, %v6390_v63  ;;  %v3325_v9 = vmul.f32 %v3320_v48, %v12051_v46  ;;  %v3399_v32 = vpop.permute.xlu2 %3398  ;;  %v12055_v28 = vld [vmem:[#allocation21_spill] sm:$0xff]  ;;  %v12063_v48 = vld [vmem:[#allocation28_spill] sm:$0xff] }
 0xbd4   : > { %3527 = vmatpush.bf16.msrb.mxu0 %v3428_v25  ;;  %3584 = vmatpush.bf16.msrb.mxu3 %v3429_v37  ;;  %v3299_v62 = vmul.f32 %v12055_v28, %v12054_v40  ;;  %v3297_v57 = vmul.f32 %v12056_v20, %v12054_v40  ;;  %vm3726_vm7 = vcmp.lt.s32.totalorder %v7256_v7, 126 }
 0xbd5   : > { %v3449_v38 = vpack.c.bf16 %v3327_v61, %v3325_v9 }
 0xbd6   : > { %v3397_v12 = vpop.permute.xlu1 %3396  ;;  %v3411_v11 = vpop.permute.xlu0 %3410  ;;  %v3447_v45 = vpack.c.bf16 %v3299_v62, %v3297_v57  ;;  %v12068_v57 = vld [vmem:[#allocation31_spill] sm:$0xff] }
 0xbd7   : > { %3528 = vmatmul.bf16.vlgmr.msrb.gmra.mxu0 %v6379_v0  ;;  %3585 = vmatmul.bf16.vlgmr.msrb.gmra.mxu3 %v6379_v0  ;;  %v6800_v0 = vld [vmem:[%s11735_s4 + $0xa0] sm:$0xf0] }
 0xbd8   : > { %3596 = vmatpush.bf16.msra.mxu0 %v3459_v43  ;;  %v6386_v43 = vld [vmem:[%s11735_s4 + $0x98] sm:$0xf] }
 0xbd9   : > { %v6387_v53 = vor.u32 %v6800_v0, %v6386_v43 }
 0xbdb   : > { %v10174_v6 = vpop.permute.xlu2 %3476 }
 0xbdc   : > { %3597 = vmatpush.bf16.msra.mxu0 %v3457_v24  ;;  %v3295_v24 = vmul.f32 %v12057_v60, %v12054_v40 }
 0xbde   : > { %v3403_v30 = vpop.permute.xlu1 %3402  ;;  %v3405_v51 = vpop.permute.xlu0 %3404 }
 0xbdf   : > { %v3415_v47 = vsel %vm755_vm1, %v3403_v30, %v3411_v11  ;;  %v3419_v16 = vsel %vm755_vm1, %v3411_v11, %v3403_v30  ;;  %v3412_v2 = vsel %vm755_vm1, %v3397_v12, %v3405_v51  ;;  %v3416_v29 = vsel %vm755_vm1, %v3405_v51, %v3397_v12  ;;  %v12058_v11 = vld [vmem:[#allocation23_spill] sm:$0xff] }
 0xbe0   : > { %3598 = vmatpush.bf16.msra.mxu0 %v3455_v3  ;;  %v3426_v34 = vmul.f32 %v3415_v47, %v12052_v44  ;;  %v3427_v35 = vmul.f32 %v3419_v16, %v12053_v59  ;;  %v3420_v26 = vmul.f32 %v3412_v2, %v12052_v44  ;;  %v3421_v25 = vmul.f32 %v3416_v29, %v12053_v59  ;;  %v6803_v3 = vld [vmem:[%s11735_s4 + $0xb8] sm:$0xf0]  ;;  %v12065_v29 = vld [vmem:[#allocation33_spill] sm:$0xff] }
 0xbe1   : > { %v3293_v50 = vmul.f32 %v12058_v11, %v12054_v40  ;;  %v6399_v13 = vor.u32 %v6803_v3, %v6398_v22 }
 0xbe2   : > { %v3462_v10 = vpack.c.bf16 %v3426_v34, %v3424_v41  ;;  %v3463_v31 = vpack.c.bf16 %v3427_v35, %v3425_v21  ;;  %v12061_v41 = vld [vmem:[#allocation15_spill] sm:$0xff] }
 0xbe3   : > { %3552 = vmatmul.bf16.gmra.mxu1 %v6395_v33  ;;  %v3445_v1 = vpack.c.bf16 %v3295_v24, %v3293_v50  ;;  %v3472_v46 = vpop.permute.xlu2 %3471 }
 0xbe4   : > { %3599 = vmatpush.bf16.msra.mxu0 %v3453_v49  ;;  %3564 = vmatpush.bf16.msrb.mxu2 %v3462_v10 }
 0xbe5   : > { %3621 = vmatpush.bf16.msrb.mxu1 %v3463_v31 }
 0xbe6   : > { %v3407_v4 = vpop.permute.xlu1 %3406  ;;  %v3482_v51 = vpop.permute.xlu0 %3481 }
 0xbe7   : > { %v3413_v23 = vsel %vm755_vm1, %v3399_v32, %v3407_v4  ;;  %v3417_v17 = vsel %vm755_vm1, %v3407_v4, %v3399_v32  ;;  %3533 = vmatmul.bf16.gmra.mxu0 %v6391_v54  ;;  %3590 = vmatmul.bf16.gmra.mxu3 %v6391_v54 }
 0xbe8   : > { %3600 = vmatpush.bf16.msra.mxu0 %v3451_v52  ;;  %v3422_v37 = vmul.f32 %v3413_v23, %v12052_v44  ;;  %v3423_v55 = vmul.f32 %v3417_v17, %v12053_v59 }
 0xbea   : > { %v3460_v36 = vpack.c.bf16 %v3422_v37, %v3420_v26  ;;  %v3461_v12 = vpack.c.bf16 %v3423_v55, %v3421_v25 }
 0xbec   : > { %3601 = vmatpush.bf16.msra.mxu0 %v3449_v38  ;;  %3565 = vmatpush.bf16.msrb.mxu2 %v3460_v36  ;;  %v12066_v38 = vld [vmem:[#allocation12_spill] sm:$0xff] }
 0xbed   : > { %3622 = vmatpush.bf16.msrb.mxu1 %v3461_v12 }
 0xbee   : > { %v3467_v39 = vpop.permute.xlu1 %3466 }
 0xbef   : > { %6400 = vmatmul.msk.bf16.vlgmr.msrb.gmra.mxu2 %vm1435_vm15, %v6387_v53 }
 0xbf0   : > { %3602 = vmatpush.bf16.msra.mxu0 %v3447_v45 }
 0xbf3   : > { %6402 = vmatmul.msk.bf16.vlgmr.msrb.gmra.mxu1 %vm1435_vm15, %v6387_v53 }
 0xbf4   : > { %3603 = vmatpush.bf16.msra.mxu0 %v3445_v1  ;;  %v12070_v1 = vld [vmem:[#allocation29_spill] sm:$0xff] }
 0xbf7   : > { %3604 = vmatmul.bf16.vlgmr.msra.gmra.mxu0 %v10053_v56 }
 0xbff   : > { %6401 = vmatmul.msk.bf16.gmra.mxu2 %vm1435_vm15, %v6399_v13 }
 0xc03   : > { %6403 = vmatmul.msk.bf16.gmra.mxu1 %vm1435_vm15, %v6399_v13 }
 0xc07   : > { %3609 = vmatmul.bf16.gmra.mxu0 %v6395_v33 }
 0xc50   : > { %v3548_v5 = vpop.f32.mrf.mxu1 }
 0xc54   : > { %v3529_v15 = vpop.f32.mrf.mxu0 }
 0xc55   : > { %v3530_v19 = vadd.f32 %v3529_v15, %v3467_v39 }
 0xc57   : > { %v3549_v56 = vadd.f32 %v3548_v5, %v3530_v19 }
 0xc58   : > { %v3550_v47 = vpop.f32.mrf.mxu1 }
 0xc5a   : > { %v3586_v4 = vpop.f32.mrf.mxu3 }
 0xc5b   : > { %v3587_v28 = vadd.f32 %v3586_v4, %v3467_v39 }
 0xc5c   : > { %v3531_v49 = vpop.f32.mrf.mxu0 }
 0xc5d   : > { %v3532_v8 = vadd.f32 %v3531_v49, %v3472_v46 }
 0xc5f   : > { %v3551_v33 = vadd.f32 %v3550_v47, %v3532_v8 }
 0xc60   : > { %v3553_v35 = vpop.f32.mrf.mxu1 }
 0xc62   : > { %v3588_v25 = vpop.f32.mrf.mxu3 }
 0xc63   : > { %v3589_v55 = vadd.f32 %v3588_v25, %v3472_v46 }
 0xc64   : > { %v3534_v21 = vpop.f32.mrf.mxu0 }
 0xc65   : > { %v3535_v34 = vadd.f32 %v3534_v21, %v10174_v6 }
 0xc67   : > { %v3554_v58 = vadd.f32 %v3553_v35, %v3535_v34 }
 0xc68   : > { %v3555_v52 = vpop.f32.mrf.mxu1 }
 0xc6a   : > { %v3591_v12 = vpop.f32.mrf.mxu3 }
 0xc6b   : > { %v3592_v53 = vadd.f32 %v3591_v12, %v10174_v6  ;;  %v6524_v12 = vld [vmem:[%s11736_s5 + $0x1f8] sm:$0xff] }
 0xc6c   : > { %v3536_v31 = vpop.f32.mrf.mxu0 }
 0xc6d   : > { %v3537_v61 = vadd.f32 %v3536_v31, %v3482_v51 }
 0xc6f   : > { %v3556_v9 = vadd.f32 %v3555_v52, %v3537_v61 }
 0xc70   : > { %v3624_v23 = vpop.f32.mrf.mxu1 }
 0xc72   : > { %v3567_v27 = vpop.f32.mrf.mxu2  ;;  %v3593_v3 = vpop.f32.mrf.mxu3 }
 0xc73   : > { %v3568_v42 = vadd.f32 %v3567_v27, %v3549_v56  ;;  %v3594_v39 = vadd.f32 %v3593_v3, %v3482_v51  ;;  %v12072_v27 = vld [vmem:[#allocation26_spill] sm:$0xff] }
 0xc74   : > { %v3605_v40 = vpop.f32.mrf.mxu0  ;;  %v10445_v3 = vld [vmem:[%s11903_s2 + $0x1e] sm:$0x3] }
 0xc75   : > { %v10177_v30 = vadd.f32 %v3568_v42, %v12059_v14  ;;  %v3606_v62 = vadd.f32 %v3605_v40, %v3587_v28 }
 0xc77   : > { %12060 = vst [vmem:[#allocation27_spill] sm:$0xff] %v10177_v30  ;;  %3868 = vrot.lane.b32.xlu1 %v10177_v30, %s7095_s29  ;;  %3908 = vrot.lane.b32.xlu0 %v10177_v30, %s7096_s10  ;;  %v3625_v17 = vadd.f32 %v3624_v23, %v3606_v62  ;;  %v6414_v62 = vld [vmem:[%s11736_s5 + $0xb0] sm:$0xff]  ;;  %v6415_v23 = vld [vmem:[%s11736_s5 + $0xb8] sm:$0xff] }
 0xc78   : > { %3750 = vrot.lane.b32.xlu2 %v10177_v30, %s11954_s26  ;;  %v3626_v0 = vpop.f32.mrf.mxu1 }
 0xc79   : > { %v10238_v26 = vadd.f32 %v3625_v17, %v12066_v38  ;;  %v6519_v17 = vld [vmem:[%s11736_s5 + $0x1d0] sm:$0xff] }
 0xc7a   : > { %v3569_v16 = vpop.f32.mrf.mxu2 }
 0xc7b   : > { %v3570_v44 = vadd.f32 %v3569_v16, %v3551_v33  ;;  %12067 = vst [vmem:[#allocation32_spill] sm:$0xff] %v10238_v26 }
 0xc7c   : > { %v3607_v37 = vpop.f32.mrf.mxu0 }
 0xc7d   : > { %v10192_v59 = vadd.f32 %v3570_v44, %v12061_v41  ;;  %v3608_v43 = vadd.f32 %v3607_v37, %v3589_v55 }
 0xc7f   : > { %3671 = vrot.lane.b32.xlu1 %v10177_v30, %s11931_s22  ;;  %3710 = vrot.lane.b32.xlu0 %v10177_v30, %s7097_s19  ;;  %12062 = vst [vmem:[#allocation25_spill] sm:$0xff] %v10192_v59  ;;  %v3627_v20 = vadd.f32 %v3626_v0, %v3608_v43  ;;  %v10414_v0 = vld [vmem:[%s11903_s2 + $0x1c] sm:$0x3] }
 0xc80   : > { %3828 = vrot.lane.b32.xlu2 %v10177_v30, %s7098_s20  ;;  %v3629_v24 = vpop.f32.mrf.mxu1 }
 0xc81   : > { %v10253_v36 = vadd.f32 %v3627_v20, %v12068_v57  ;;  %v6520_v20 = vld [vmem:[%s11736_s5 + $0x1d8] sm:$0xff]  ;;  %v6523_v57 = vld [vmem:[%s11736_s5 + $0x1f0] sm:$0xff] }
 0xc82   : > { %v3572_v63 = vpop.f32.mrf.mxu2 }
 0xc83   : > { %v3573_v18 = vadd.f32 %v3572_v63, %v3554_v58  ;;  %12069 = vst [vmem:[#allocation30_spill] sm:$0xff] %v10253_v36 }
 0xc84   : > { %v3610_v45 = vpop.f32.mrf.mxu0 }
 0xc85   : > { %v10208_v10 = vadd.f32 %v3573_v18, %v12063_v48  ;;  %v3611_v60 = vadd.f32 %v3610_v45, %v3592_v53  ;;  %v10426_v45 = vperm.slane %v10414_v0, 1 }
 0xc87   : > { %3910 = vrot.lane.b32.xlu1 %v10192_v59, %s7096_s10  ;;  %3752 = vrot.lane.b32.xlu0 %v10192_v59, %s11954_s26  ;;  %12064 = vst [vmem:[#allocation13_spill] sm:$0xff] %v10208_v10  ;;  %v3630_v11 = vadd.f32 %v3629_v24, %v3611_v60 }
 0xc88   : > { %3870 = vrot.lane.b32.xlu2 %v10192_v59, %s7095_s29  ;;  %v3631_v5 = vpop.f32.mrf.mxu1  ;;  %12074 = vst [vmem:[#allocation14_spill] sm:$0xff] %v10426_v45 }
 0xc89   : > { %v10271_v22 = vadd.f32 %v3630_v11, %v12070_v1 }
 0xc8a   : > { %v3574_v54 = vpop.f32.mrf.mxu2 }
 0xc8b   : > { %v3575_v2 = vadd.f32 %v3574_v54, %v3556_v9  ;;  %12071 = vst [vmem:[#allocation24_spill] sm:$0xff] %v10271_v22 }
 0xc8c   : > { %v3612_v13 = vpop.f32.mrf.mxu0 }
 0xc8d   : > { %v10223_v32 = vadd.f32 %v3575_v2, %v12065_v29  ;;  %v3613_v19 = vadd.f32 %v3612_v13, %v3594_v39  ;;  %v6412_v2 = vld [vmem:[%s11736_s5 + $0xa0] sm:$0xff]  ;;  %v6413_v29 = vld [vmem:[%s11736_s5 + $0xa8] sm:$0xff] }
 0xc8e   : > { %v6517_v13 = vld [vmem:[%s11736_s5 + $0x1c0] sm:$0xff]  ;;  %v6518_v39 = vld [vmem:[%s11736_s5 + $0x1c8] sm:$0xff] }
 0xc8f   : > { %3712 = vrot.lane.b32.xlu1 %v10192_v59, %s7097_s19  ;;  %3830 = vrot.lane.b32.xlu0 %v10192_v59, %s7098_s20  ;;  %v3632_v6 = vadd.f32 %v3631_v5, %v3613_v19  ;;  %v6423_v19 = vld [vmem:[%s11903_s2 + $0x20] sm:$0x3] }
 0xc90   : > { %3673 = vrot.lane.b32.xlu2 %v10192_v59, %s11931_s22  ;;  %v6521_v5 = vld [vmem:[%s11736_s5 + $0x1e0] sm:$0xff] }
 0xc91   : > { %v10290_v42 = vadd.f32 %v3632_v6, %v12072_v27  ;;  %v10462_v27 = vperm.slane %v10445_v3, 1 }
 0xc93   : > { %12077 = vst [vmem:[#allocation5_spill] sm:$0xff] %v10462_v27 }
 0xc97   : > { %3912 = vrot.lane.b32.xlu1 %v10208_v10, %s7096_s10  ;;  %3754 = vrot.lane.b32.xlu0 %v10208_v10, %s11954_s26 }
 0xc98   : > { %3872 = vrot.lane.b32.xlu2 %v10208_v10, %s7095_s29 }
 0xc9f   : > { %3714 = vrot.lane.b32.xlu1 %v10208_v10, %s7097_s19  ;;  %3832 = vrot.lane.b32.xlu0 %v10208_v10, %s7098_s20 }
 0xca0   : > { %3675 = vrot.lane.b32.xlu2 %v10208_v10, %s11931_s22 }
 0xca7   : > { %3874 = vrot.lane.b32.xlu0 %v10223_v32, %s7095_s29  ;;  %3756 = vrot.lane.b32.xlu1 %v10223_v32, %s11954_s26 }
 0xca8   : > { %3914 = vrot.lane.b32.xlu2 %v10223_v32, %s7096_s10 }
 0xcaf   : > { %3677 = vrot.lane.b32.xlu0 %v10223_v32, %s11931_s22  ;;  %3834 = vrot.lane.b32.xlu1 %v10223_v32, %s7098_s20 }
 0xcb0   : > { %3716 = vrot.lane.b32.xlu2 %v10223_v32, %s7097_s19 }
 0xcb7   : > { %3876 = vrot.lane.b32.xlu0 %v10238_v26, %s7095_s29  ;;  %3758 = vrot.lane.b32.xlu1 %v10238_v26, %s11954_s26 }
 0xcb8   : > { %3916 = vrot.lane.b32.xlu2 %v10238_v26, %s7096_s10 }
 0xcbf   : > { %3679 = vrot.lane.b32.xlu0 %v10238_v26, %s11931_s22  ;;  %3836 = vrot.lane.b32.xlu1 %v10238_v26, %s7098_s20 }
 0xcc0   : > { %3718 = vrot.lane.b32.xlu2 %v10238_v26, %s7097_s19 }
 0xcc7   : > { %3918 = vrot.lane.b32.xlu0 %v10253_v36, %s7096_s10  ;;  %3878 = vrot.lane.b32.xlu1 %v10253_v36, %s7095_s29 }
 0xcc8   : > { %3760 = vrot.lane.b32.xlu2 %v10253_v36, %s11954_s26 }
 0xccf   : > { %3720 = vrot.lane.b32.xlu0 %v10253_v36, %s7097_s19  ;;  %3681 = vrot.lane.b32.xlu1 %v10253_v36, %s11931_s22 }
 0xcd0   : > { %3838 = vrot.lane.b32.xlu2 %v10253_v36, %s7098_s20 }
 0xcd2   : > { %v10268_v50 = vpop.permute.xlu2 %3750 }
 0xcd7   : > { %3920 = vrot.lane.b32.xlu0 %v10271_v22, %s7096_s10  ;;  %3880 = vrot.lane.b32.xlu1 %v10271_v22, %s7095_s29 }
 0xcd8   : > { %3762 = vrot.lane.b32.xlu2 %v10271_v22, %s11954_s26 }
 0xcda   : > { %v10279_v15 = vpop.permute.xlu2 %3828 }
 0xcdf   : > { %3722 = vrot.lane.b32.xlu0 %v10271_v22, %s7097_s19  ;;  %3683 = vrot.lane.b32.xlu1 %v10271_v22, %s11931_s22 }
 0xce0   : > { %3840 = vrot.lane.b32.xlu2 %v10271_v22, %s7098_s20 }
 0xce2   : > { %v10287_v56 = vpop.permute.xlu2 %3870 }
 0xce7   : > { %3764 = vrot.lane.b32.xlu0 %v10290_v42, %s11954_s26  ;;  %3922 = vrot.lane.b32.xlu1 %v10290_v42, %s7096_s10 }
 0xce8   : > { %3882 = vrot.lane.b32.xlu2 %v10290_v42, %s7095_s29 }
 0xce9   : > { %v10298_v14 = vpop.permute.xlu1 %3868  ;;  %v10300_v49 = vpop.permute.xlu0 %3908 }
 0xcea   : > { %v10302_v46 = vpop.permute.xlu2 %3673 }
 0xcef   : > { %3793 = vrot.lane.b32.xlu0 %v10208_v10, %s11937_s28  ;;  %3724 = vrot.lane.b32.xlu1 %v10290_v42, %s7097_s19 }
 0xcf0   : > { %3685 = vrot.lane.b32.xlu2 %v10290_v42, %s11931_s22  ;;  %s7099_s22 = smov 94  }
 0xcf1   : > { %v10310_v8 = vpop.permute.xlu1 %3671  ;;  %v10312_v47 = vpop.permute.xlu0 %3710 }
 0xcf2   : > { %v10314_v16 = vpop.permute.xlu2 %3872 }
 0xcf7   : > { %3842 = vrot.lane.b32.xlu0 %v10290_v42, %s7098_s20  ;;  %3795 = vrot.lane.b32.xlu1 %v10223_v32, %s11937_s28 }
 0xcf8   : > { %3801 = vrot.lane.b32.xlu2 %v10271_v22, %s11937_s28 }
 0xcf9   : > { %v10322_v33 = vpop.permute.xlu1 %3910  ;;  %v10324_v44 = vpop.permute.xlu0 %3752 }
 0xcfa   : > { %v10326_v41 = vpop.permute.xlu2 %3675 }
 0xcff   : > { %3803 = vrot.lane.b32.xlu0 %v10290_v42, %s11937_s28  ;;  %3789 = vrot.lane.b32.xlu1 %v10177_v30, %s11937_s28 }
 0xd00   : > { %3791 = vrot.lane.b32.xlu2 %v10192_v59, %s11937_s28 }
 0xd01   : > { %v10334_v21 = vpop.permute.xlu1 %3712  ;;  %v10336_v34 = vpop.permute.xlu0 %3830 }
 0xd02   : > { %v10338_v35 = vpop.permute.xlu2 %3914 }
 0xd07   : > { %3797 = vrot.lane.b32.xlu0 %v10238_v26, %s11937_s28  ;;  %3799 = vrot.lane.b32.xlu1 %v10253_v36, %s11937_s28  ;;  %s12110_s28 = sld [smem:[#allocation40_spill]] }
 0xd08   : > { %3952 = vrot.lane.b32.xlu2 %v10208_v10, %s7099_s22 }
 0xd09   : > { %v10345_v63 = vpop.permute.xlu1 %3912  ;;  %v10347_v58 = vpop.permute.xlu0 %3754 }
 0xd0a   : > { %12073 = vst [vmem:[#allocation6_spill] sm:$0xff] %v10345_v63  ;;  %v10349_v18 = vpop.permute.xlu2 %3716 }
 0xd0f   : > { %3954 = vrot.lane.b32.xlu0 %v10223_v32, %s7099_s22  ;;  %3960 = vrot.lane.b32.xlu1 %v10271_v22, %s7099_s22 }
 0xd10   : > { %3962 = vrot.lane.b32.xlu2 %v10290_v42, %s7099_s22 }
 0xd11   : > { %v10355_v48 = vpop.permute.xlu1 %3714  ;;  %v10357_v31 = vpop.permute.xlu0 %3832 }
 0xd12   : > { %v3917_v51 = vpop.permute.xlu2 %3916 }
 0xd13   : > { %v10362_v61 = vsel %vm3924_vm2, %v3917_v51, %v10300_v49 }
 0xd17   : > { %3948 = vrot.lane.b32.xlu0 %v10177_v30, %s7099_s22  ;;  %3950 = vrot.lane.b32.xlu1 %v10192_v59, %s7099_s22 }
 0xd18   : > { %3956 = vrot.lane.b32.xlu2 %v10238_v26, %s7099_s22 }
 0xd19   : > { %v10367_v52 = vpop.permute.xlu1 %3756  ;;  %v10369_v54 = vpop.permute.xlu0 %3874 }
 0xd1a   : > { %v10371_v9 = vpop.permute.xlu2 %3718 }
 0xd1b   : > { %v3727_v6 = vsel %vm3726_vm7, %v10312_v47, %v10371_v9 }
 0xd1f   : > { %3958 = vrot.lane.b32.xlu0 %v10253_v36, %s7099_s22  ;;  %4026 = vperm.xlu1 %6906, %v6412_v2   ;;  %v10464_v2 = vperm.slane %v6423_v19, 0 }
 0xd20   : > { %4031 = vperm.xlu2 %6907, %v6413_v29   ;;  %v10466_v29 = vperm.slane %v6423_v19, 1 }
 0xd21   : > { %v10380_v4 = vpop.permute.xlu1 %3834  ;;  %v10382_v40 = vpop.permute.xlu0 %3677 }
 0xd22   : > { %v10384_v28 = vpop.permute.xlu2 %3760  ;;  %12078 = vst [vmem:[#allocation34_spill] sm:$0xff] %v10466_v29 }
 0xd27   : > { %4036 = vperm.xlu0 %6908, %v6414_v62   ;;  %4041 = vperm.xlu1 %6906, %v6415_v23   ;;  %v3925_v62 = vsel %vm3924_vm2, %v10300_v49, %v3917_v51 }
 0xd28   : > { %4449 = vperm.xlu2 %6907, %v6519_v17   ;;  %v10490_v51 = vmul.f32 %v10464_v2, %v3925_v62  ;;  %v3731_v62 = vsel %vm3726_vm7, %v10371_v9, %v10312_v47 }
 0xd29   : > { %v10397_v38 = vpop.permute.xlu1 %3758  ;;  %v10399_v25 = vpop.permute.xlu0 %3876 }
 0xd2a   : > { %v10401_v37 = vpop.permute.xlu2 %3838  ;;  %v3889_v55 = vsel %vm3884_vm5, %v10399_v25, %v10298_v14 }
 0xd2b   : > { %v3850_v43 = vsel %vm3844_vm6, %v10401_v37, %v10336_v34 }
 0xd2c   : > { %v10437_v11 = vmul.f32 %v10426_v45, %v3850_v43 }
 0xd2e   : > { %12075 = vst [vmem:[#allocation18_spill] sm:$0xff] %v10437_v11  ;;  %v6525_v11 = vld [vmem:[%s11736_s5 + $0x200] sm:$0xff] }
 0xd2f   : > { %4454 = vperm.xlu0 %6908, %v6520_v20   ;;  %4473 = vperm.xlu1 %6906, %v6523_v57  }
 0xd30   : > { %4478 = vperm.xlu2 %6907, %v6524_v12  }
 0xd31   : > { %v10428_v53 = vpop.permute.xlu1 %3836  ;;  %v10430_v60 = vpop.permute.xlu0 %3679 }
 0xd32   : > { %v3849_v24 = vsel %vm3844_vm6, %v10428_v53, %v10279_v15  ;;  %v3763_v43 = vpop.permute.xlu2 %3762 }
 0xd33   : > { %v10440_v1 = vmul.f32 %v10426_v45, %v3849_v24  ;;  %v10484_v24 = vmul.f32 %v10462_v27, %v3889_v55  ;;  %v6527_v55 = vld [vmem:[%s11736_s5 + $0x210] sm:$0xff]  ;;  %v4569_v45 = vld [vmem:[%s11737_s6 + $0x20] sm:$0xff] }
 0xd35   : > { %12076 = vst [vmem:[#allocation19_spill] sm:$0xff] %v10440_v1 }
 0xd36   : > { %12079 = vst [vmem:[#allocation17_spill] sm:$0xff] %v10484_v24  ;;  %v4566_v24 = vld [vmem:[%s11737_s6 + $0x8] sm:$0xff] }
 0xd37   : > { %4439 = vperm.xlu0 %6908, %v6517_v13   ;;  %4444 = vperm.xlu1 %6906, %v6518_v39   ;;  %v10494_v13 = vmul.f32 %v10466_v29, %v10362_v61  ;;  %v6528_v61 = vld [vmem:[%s11736_s5 + $0x218] sm:$0xff] }
 0xd38   : > { %4463 = vperm.xlu2 %6907, %v6521_v5   ;;  %v6418_v5 = vld [vmem:[%s11903_s2 + $0x16] sm:$0x3] }
 0xd39   : > { %v10471_v23 = vpop.permute.xlu1 %3878  ;;  %v3919_v17 = vpop.permute.xlu0 %3918  ;;  %12081 = vst [vmem:[#allocation8_spill] sm:$0xff] %v10494_v13  ;;  %v4570_v13 = vld [vmem:[%s11737_s6 + $0x28] sm:$0xff] }
 0xd3a   : > { %v3890_v20 = vsel %vm3884_vm5, %v10471_v23, %v10287_v56  ;;  %v3926_v57 = vsel %vm3924_vm2, %v10322_v33, %v3919_v17  ;;  %v3930_v12 = vsel %vm3924_vm2, %v3919_v17, %v10322_v33  ;;  %v6522_v33 = vld [vmem:[%s11736_s5 + $0x1e8] sm:$0xff]  ;;  %v10547_v1 = vpop.permute.xlu2 %3840 }
 0xd3b   : > { %v10487_v49 = vmul.f32 %v10462_v27, %v3890_v20  ;;  %v10497_v39 = vmul.f32 %v10464_v2, %v3926_v57  ;;  %v10500_v19 = vmul.f32 %v10466_v29, %v3930_v12  ;;  %v10521_v57 = vperm.slane %v6418_v5, 0 }
 0xd3c   : > { %v10523_v12 = vperm.slane %v6418_v5, 1  ;;  %v3766_v29 = vsel %vm739_vm0, %v10268_v50, %v10397_v38 }
 0xd3d   : > { %12080 = vst [vmem:[#allocation16_spill] sm:$0xff] %v10487_v49  ;;  %v10542_v5 = vmul.f32 %v10521_v57, %v3727_v6  ;;  %v4565_v6 = vld [vmem:[%s11737_s6] sm:$0xff]  ;;  %v4567_v49 = vld [vmem:[%s11737_s6 + $0x10] sm:$0xff] }
 0xd3e   : > { %12082 = vst [vmem:[#allocation7_spill] sm:$0xff] %v10500_v19  ;;  %v3772_v19 = vsel %vm739_vm0, %v3763_v43, %v10347_v58 }
 0xd3f   : > { %4468 = vperm.xlu0 %6908, %v6522_v33   ;;  %4508 = vperm.xlu1 %6906, %v6527_v55  }
 0xd40   : > { %4513 = vperm.xlu2 %6907, %v6528_v61   ;;  %v10545_v61 = vmul.f32 %v10523_v12, %v3731_v62  ;;  %v4568_v62 = vld [vmem:[%s11737_s6 + $0x18] sm:$0xff] }
 0xd41   : > { %v10533_v17 = vpop.permute.xlu1 %3681  ;;  %v3721_v20 = vpop.permute.xlu0 %3720 }
 0xd42   : > { %v3728_v33 = vsel %vm3726_vm7, %v10334_v21, %v3721_v20  ;;  %v3732_v55 = vsel %vm3726_vm7, %v3721_v20, %v10334_v21  ;;  %v6526_v21 = vld [vmem:[%s11736_s5 + $0x208] sm:$0xff]  ;;  %v10581_v20 = vpop.permute.xlu2 %3882 }
 0xd43   : > { %v10550_v47 = vmul.f32 %v10521_v57, %v3728_v33  ;;  %v10553_v9 = vmul.f32 %v10523_v12, %v3732_v55 }
 0xd47   : > { %4498 = vperm.xlu0 %6908, %v6525_v11   ;;  %4503 = vperm.xlu1 %6906, %v6526_v21  }
 0xd48   : > { %4575 = vperm.xlu2 %6907, %v4565_v6   ;;  %v6419_v6 = vld [vmem:[%s11903_s2 + $0x18] sm:$0x3] }
 0xd49   : > { %v10568_v33 = vpop.permute.xlu1 %3880  ;;  %v10570_v55 = vpop.permute.xlu0 %3920  ;;  %v3778_v27 = vperm.slane %v6419_v6, 1 }
 0xd4a   : > { %12083 = vst [vmem:[#allocation10_spill] sm:$0xff] %v10570_v55  ;;  %v10603_v26 = vpop.permute.xlu2 %3685  ;;  %v3927_v30 = vsel %vm3924_vm2, %v10345_v63, %v10570_v55  ;;  %v3771_v63 = vsel %vm739_vm0, %v10384_v28, %v10324_v44 }
 0xd4f   : > { %4580 = vperm.xlu0 %6908, %v4566_v24   ;;  %4585 = vperm.xlu1 %6906, %v4567_v49   ;;  %v4571_v24 = vld [vmem:[%s11737_s6 + $0x30] sm:$0xff]  ;;  %v3768_v49 = vsel %vm739_vm0, %v10347_v58, %v3763_v43  ;;  %v3770_v58 = vsel %vm739_vm0, %v10397_v38, %v10268_v50  ;;  %v3944_v50 = vmul.f32 %v10464_v2, %v3927_v30 }
 0xd50   : > { %4590 = vperm.xlu2 %6907, %v4568_v62   ;;  %v3777_v62 = vperm.slane %v6419_v6, 0  ;;  %v3786_v6 = vmul.f32 %v3778_v27, %v3772_v19  ;;  %v3767_v19 = vsel %vm739_vm0, %v10324_v44, %v10384_v28  ;;  %v6565_v30 = vld [vmem:[%s11737_s6 + $0x70] sm:$0xff]  ;;  %v3887_v44 = vsel %vm3884_vm5, %v10314_v16, %v10568_v33 }
 0xd51   : > { %v10583_v11 = vpop.permute.xlu1 %3683  ;;  %v3723_v21 = vpop.permute.xlu0 %3722  ;;  %v3896_v28 = vperm.slane %v10445_v3, 0  ;;  %v3888_v3 = vsel %vm3884_vm5, %v10369_v54, %v10581_v20 }
 0xd52   : > { %v3781_v22 = vmul.f32 %v3777_v62, %v3766_v29  ;;  %v3783_v10 = vmul.f32 %v3777_v62, %v3767_v19  ;;  %v3729_v29 = vsel %vm3726_vm7, %v10355_v48, %v3723_v21 }
 0xd53   : > { %v3906_v19 = vmul.f32 %v3896_v28, %v3888_v3 }
 0xd57   : > { %4595 = vperm.xlu0 %6908, %v4569_v45   ;;  %4600 = vperm.xlu1 %6906, %v4570_v13   ;;  %v3785_v45 = vmul.f32 %v3777_v62, %v3768_v49 }
 0xd58   : > { %4605 = vperm.xlu2 %6907, %v4571_v24  }
 0xd59   : > { %v10617_v43 = vpop.permute.xlu1 %3922  ;;  %v3765_v13 = vpop.permute.xlu0 %3764 }
 0xd5a   : > { %12084 = vst [vmem:[#allocation3_spill] sm:$0xff] %v10617_v43  ;;  %v3928_v24 = vsel %vm3924_vm2, %v10338_v35, %v10617_v43  ;;  %v3769_v36 = vsel %vm739_vm0, %v10367_v52, %v3765_v13  ;;  %v3773_v59 = vsel %vm739_vm0, %v3765_v13, %v10367_v52  ;;  %v4572_v52 = vld [vmem:[%s11737_s6 + $0x38] sm:$0xff]  ;;  %v3784_v43 = vmul.f32 %v3778_v27, %v3771_v63 }
 0xd5b   : > { %v3946_v38 = vmul.f32 %v10464_v2, %v3928_v24  ;;  %v3787_v49 = vmul.f32 %v3777_v62, %v3769_v36  ;;  %v3788_v55 = vmul.f32 %v3778_v27, %v3773_v59  ;;  %v3782_v59 = vmul.f32 %v3778_v27, %v3770_v58  ;;  %v6566_v24 = vld [vmem:[%s11737_s6 + $0x78] sm:$0xff] }
 0xd5c   : > { %v4000_v62 = vpack.c.bf16 %v3783_v10, %v3781_v22  ;;  %vm3964_vm0 = vcmp.lt.s32.totalorder %v7256_v7, 94 }
 0xd5d   : > { %v4018_v36 = vpack.c.bf16 %v3946_v38, %v3944_v50  ;;  %v4002_v2 = vpack.c.bf16 %v3787_v49, %v3785_v45  ;;  %v4003_v13 = vpack.c.bf16 %v3788_v55, %v3786_v6  ;;  %v3733_v55 = vsel %vm3726_vm7, %v3723_v21, %v10355_v48  ;;  %v10665_v6 = vpop.permute.xlu2 %3801  ;;  %v6573_v49 = vld [vmem:[%s11737_s6 + $0xb0] sm:$0xff] }
 0xd5e   : > { %v4001_v58 = vpack.c.bf16 %v3784_v43, %v3782_v59  ;;  %v3904_v45 = vmul.f32 %v3896_v28, %v3887_v44  ;;  %v3746_v50 = vmul.f32 %v10521_v57, %v3729_v29  ;;  %v3747_v10 = vmul.f32 %v10523_v12, %v3733_v55 }
 0xd5f   : > { %4610 = vperm.xlu0 %6908, %v4572_v52   ;;  %4810 = vperm.xlu1 %6906, %v6565_v30   ;;  %v3886_v38 = vsel %vm3884_vm5, %v10287_v56, %v10471_v23  ;;  %v6563_v56 = vld [vmem:[%s11737_s6 + $0x60] sm:$0xff]  ;;  %v3885_v30 = vsel %vm3884_vm5, %v10298_v14, %v10399_v25  ;;  %v3847_v59 = vsel %vm3844_vm6, %v10357_v31, %v10547_v1 }
 0xd60   : > { %4815 = vperm.xlu2 %6907, %v6566_v24   ;;  %4080 = vmatpush.bf16.msra.mxu2 %v4002_v2  ;;  %v3856_v2 = vperm.slane %v10414_v0, 0  ;;  %v3693_v14 = vsel %vm707_vm4, %v10583_v11, %v10326_v41  ;;  %v3900_v25 = vmul.f32 %v3896_v28, %v3885_v30  ;;  %v3690_v44 = vsel %vm707_vm4, %v10382_v40, %v10603_v26 }
 0xd61   : > { %4099 = vmatpush.bf16.msra.mxu3 %v4018_v36  ;;  %4137 = vmatpush.bf16.msra.mxu1 %v4003_v13  ;;  %v3725_v63 = vpop.permute.xlu1 %3724  ;;  %v10659_v27 = vpop.permute.xlu0 %3793  ;;  %v3902_v36 = vmul.f32 %v3896_v28, %v3886_v38 }
 0xd62   : > { %v3730_v48 = vsel %vm3726_vm7, %v10349_v18, %v3725_v63  ;;  %v3734_v21 = vsel %vm3726_vm7, %v3725_v63, %v10349_v18  ;;  %v6574_v18 = vld [vmem:[%s11737_s6 + $0xb8] sm:$0xff]  ;;  %v3864_v55 = vmul.f32 %v3856_v2, %v3847_v59  ;;  %v3688_v63 = vsel %vm707_vm4, %v10302_v46, %v10533_v17 }
 0xd63   : > { %v3748_v22 = vmul.f32 %v10521_v57, %v3730_v48  ;;  %v3749_v43 = vmul.f32 %v10523_v12, %v3734_v21  ;;  %v6417_v57 = vld [vmem:[%s11903_s2 + $0x14] sm:$0x3]  ;;  %v12085_v12 = vpack.c.bf16 %v10497_v39, %v10490_v51  ;;  %v3689_v51 = vsel %vm707_vm4, %v10326_v41, %v10583_v11  ;;  %v10746_v21 = vld [vmem:[%s11903_s2 + $0x1a] sm:$0x3] }
 0xd64   : > { %4081 = vmatpush.bf16.msra.mxu2 %v4000_v62  ;;  %v4014_v39 = vpack.c.bf16 %v3906_v19, %v3904_v45  ;;  %v3698_v13 = vperm.slane %v6417_v57, 0  ;;  %v3699_v24 = vperm.slane %v6417_v57, 1  ;;  %v3694_v41 = vsel %vm707_vm4, %v10603_v26, %v10382_v40 }
 0xd65   : > { %4100 = vmatpush.bf16.msra.mxu3 %v12085_v12  ;;  %4138 = vmatpush.bf16.msra.mxu1 %v4001_v58  ;;  %v3998_v23 = vpack.c.bf16 %v3748_v22, %v3746_v50  ;;  %v3999_v52 = vpack.c.bf16 %v3749_v43, %v3747_v10  ;;  %v4012_v3 = vpack.c.bf16 %v3902_v36, %v3900_v25  ;;  %v10741_v48 = vpop.permute.xlu2 %3791  ;;  %v6416_v22 = vld [vmem:[%s11903_s2 + $0x12] sm:$0x3]  ;;  %v3816_v57 = vperm.slane %v10746_v21, 0  ;;  %v12088_v25 = vld [vmem:[#allocation3_spill] sm:$0xff] }
 0xd66   : > { %v3706_v11 = vmul.f32 %v3698_v13, %v3689_v51  ;;  %v3707_v62 = vmul.f32 %v3699_v24, %v3693_v14  ;;  %v3845_v45 = vsel %vm3844_vm6, %v10279_v15, %v10428_v53  ;;  %v3692_v26 = vsel %vm707_vm4, %v10533_v17, %v10302_v46  ;;  %v6564_v15 = vld [vmem:[%s11737_s6 + $0x68] sm:$0xff]  ;;  %v6571_v46 = vld [vmem:[%s11737_s6 + $0xa0] sm:$0xff] }
 0xd67   : > { %4858 = vperm.xlu0 %6908, %v6573_v49   ;;  %4863 = vperm.xlu1 %6906, %v6574_v18   ;;  %v3708_v40 = vmul.f32 %v3698_v13, %v3690_v44  ;;  %v12086_v50 = vpack.c.bf16 %v10550_v47, %v10542_v5  ;;  %v3687_v53 = vsel %vm707_vm4, %v10310_v8, %v10430_v60  ;;  %v6572_v5 = vld [vmem:[%s11737_s6 + $0xa8] sm:$0xff]  ;;  %v6561_v44 = vld [vmem:[%s11737_s6 + $0x50] sm:$0xff] }
 0xd68   : > { %4800 = vperm.xlu2 %6907, %v6563_v56   ;;  %4082 = vmatpush.bf16.msra.mxu2 %v3998_v23  ;;  %v3709_v17 = vmul.f32 %v3699_v24, %v3694_v41  ;;  %v12087_v10 = vpack.c.bf16 %v10553_v9, %v10545_v61  ;;  %v3846_v43 = vsel %vm3844_vm6, %v10336_v34, %v10401_v37  ;;  %v3659_v37 = vperm.slane %v6416_v22, 0  ;;  %v6569_v41 = vld [vmem:[%s11737_s6 + $0x90] sm:$0xff] }
 0xd69   : > { %4101 = vmatpush.bf16.msra.mxu3 %v4014_v39  ;;  %4139 = vmatpush.bf16.msra.mxu1 %v3999_v52  ;;  %v10717_v29 = vpop.permute.xlu1 %3795  ;;  %v10719_v0 = vpop.permute.xlu0 %3842  ;;  %v3691_v61 = vsel %vm707_vm4, %v10430_v60, %v10310_v8  ;;  %v3704_v9 = vmul.f32 %v3698_v13, %v3688_v63  ;;  %v3994_v38 = vpack.c.bf16 %v3708_v40, %v3706_v11  ;;  %v3660_v56 = vperm.slane %v6416_v22, 1  ;;  %v12091_v63 = vld [vmem:[#allocation6_spill] sm:$0xff] }
 0xd6a   : > { %v3848_v28 = vsel %vm3844_vm6, %v10380_v4, %v10719_v0  ;;  %v3860_v49 = vmul.f32 %v3856_v2, %v3845_v45  ;;  %v3705_v18 = vmul.f32 %v3699_v24, %v3692_v26  ;;  %v3995_v19 = vpack.c.bf16 %v3709_v17, %v3707_v62  ;;  %v12092_v62 = vld [vmem:[#allocation10_spill] sm:$0xff]  ;;  %v12093_v26 = vld [vmem:[#allocation25_spill] sm:$0xff] }
 0xd6b   : > { %v3866_v58 = vmul.f32 %v3856_v2, %v3848_v28  ;;  %v3702_v12 = vmul.f32 %v3698_v13, %v3687_v53  ;;  %v3807_v34 = vsel %vm755_vm1, %v10659_v27, %v10665_v6  ;;  %v3862_v8 = vmul.f32 %v3856_v2, %v3846_v43  ;;  %v12090_v28 = vld [vmem:[#allocation24_spill] sm:$0xff]  ;;  %v6427_v43 = vld [vmem:[%s11735_s4 + $0xc0] sm:$0xf] }
 0xd6c   : > { %4083 = vmatpush.bf16.msra.mxu2 %v12086_v50  ;;  %v3703_v60 = vmul.f32 %v3699_v24, %v3691_v61  ;;  %v3669_v36 = vmul.f32 %v3659_v37, %v10223_v32  ;;  %v3670_v51 = vmul.f32 %v3660_v56, %v10290_v42  ;;  %v3824_v39 = vmul.f32 %v3816_v57, %v3807_v34  ;;  %v6562_v32 = vld [vmem:[%s11737_s6 + $0x58] sm:$0xff]  ;;  %v6805_v61 = vld [vmem:[%s11735_s4 + $0xc8] sm:$0xf0] }
 0xd6d   : > { %4102 = vmatpush.bf16.msra.mxu3 %v4012_v3  ;;  %4140 = vmatpush.bf16.msra.mxu1 %v12087_v10  ;;  %v4010_v47 = vpack.c.bf16 %v3866_v58, %v3864_v55  ;;  %v3992_v59 = vpack.c.bf16 %v3704_v9, %v3702_v12  ;;  %v4008_v2 = vpack.c.bf16 %v3862_v8, %v3860_v49  ;;  %v12089_v55 = vld [vmem:[#allocation13_spill] sm:$0xff]  ;;  %v3953_v3 = vpop.permute.xlu2 %3952  ;;  %v12094_v50 = vld [vmem:[#allocation30_spill] sm:$0xff]  ;;  %v12096_v10 = vld [vmem:[#allocation27_spill] sm:$0xff] }
 0xd6e   : > { %v3993_v14 = vpack.c.bf16 %v3705_v18, %v3703_v60  ;;  %v3932_v24 = vsel %vm3924_vm2, %v12088_v25, %v10338_v35  ;;  %v3667_v42 = vmul.f32 %v3659_v37, %v12089_v55  ;;  %v3668_v35 = vmul.f32 %v3660_v56, %v12090_v28  ;;  %v12098_v25 = vld [vmem:[#allocation5_spill] sm:$0xff] }
 0xd6f   : > { %4805 = vperm.xlu0 %6908, %v6564_v15   ;;  %4848 = vperm.xlu1 %6906, %v6571_v46   ;;  %v3931_v58 = vsel %vm3924_vm2, %v12092_v62, %v12091_v63  ;;  %v3665_v40 = vmul.f32 %v3659_v37, %v12093_v26  ;;  %v3666_v15 = vmul.f32 %v3660_v56, %v12094_v50  ;;  %v12095_v46 = vld [vmem:[#allocation34_spill] sm:$0xff] }
 0xd70   : > { %4853 = vperm.xlu2 %6907, %v6572_v5   ;;  %4084 = vmatpush.bf16.msra.mxu2 %v3994_v38  ;;  %v3990_v45 = vpack.c.bf16 %v3669_v36, %v3667_v42  ;;  %v3947_v53 = vmul.f32 %v12095_v46, %v3932_v24  ;;  %v3991_v17 = vpack.c.bf16 %v3670_v51, %v3668_v35  ;;  %v12099_v42 = vld [vmem:[#allocation7_spill] sm:$0xff] }
 0xd71   : > { %4103 = vmatpush.bf16.msra.mxu3 %v4010_v47  ;;  %4141 = vmatpush.bf16.msra.mxu1 %v3995_v19  ;;  %v10783_v23 = vpop.permute.xlu1 %3789  ;;  %v10785_v52 = vpop.permute.xlu0 %3803  ;;  %v3663_v5 = vmul.f32 %v3659_v37, %v12096_v10  ;;  %v12097_v47 = vld [vmem:[#allocation32_spill] sm:$0xff]  ;;  %v3945_v9 = vmul.f32 %v12095_v46, %v3931_v58  ;;  %v6428_v60 = vor.u32 %v6805_v61, %v6427_v43 }
 0xd72   : > { %v3808_v30 = vsel %vm755_vm1, %v10717_v29, %v10785_v52  ;;  %v3664_v22 = vmul.f32 %v3660_v56, %v12097_v47  ;;  %v3891_v36 = vsel %vm3884_vm5, %v10568_v33, %v10314_v16  ;;  %v3892_v16 = vsel %vm3884_vm5, %v10581_v20, %v10369_v54  ;;  %v6559_v33 = vld [vmem:[%s11737_s6 + $0x40] sm:$0xff]  ;;  %v12103_v61 = vld [vmem:[#allocation16_spill] sm:$0xff] }
 0xd73   : > { %v3826_v13 = vmul.f32 %v3816_v57, %v3808_v30  ;;  %v3988_v12 = vpack.c.bf16 %v3665_v40, %v3663_v5  ;;  %v4019_v37 = vpack.c.bf16 %v3947_v53, %v3945_v9  ;;  %v6570_v30 = vld [vmem:[%s11737_s6 + $0x98] sm:$0xff]  ;;  %v3905_v24 = vmul.f32 %v12098_v25, %v3891_v36  ;;  %v12104_v9 = vld [vmem:[#allocation17_spill] sm:$0xff] }
 0xd74   : > { %4085 = vmatpush.bf16.msra.mxu2 %v3992_v59  ;;  %v3989_v34 = vpack.c.bf16 %v3666_v15, %v3664_v22  ;;  %v6424_v59 = vld [vmem:[%s11903_s2 + $0x22] sm:$0x3]  ;;  %v3907_v54 = vmul.f32 %v12098_v25, %v3892_v16  ;;  %v3852_v15 = vsel %vm3844_vm6, %v10719_v0, %v10380_v4  ;;  %v3851_v10 = vsel %vm3844_vm6, %v10547_v1, %v10357_v31  ;;  %v12102_v5 = vld [vmem:[#allocation14_spill] sm:$0xff]  ;;  %v6808_v0 = vld [vmem:[%s11735_s4 + $0xe0] sm:$0xf0] }
 0xd75   : > { %4104 = vmatpush.bf16.msra.mxu3 %v4008_v2  ;;  %4142 = vmatpush.bf16.msra.mxu1 %v3993_v14  ;;  %v4006_v11 = vpack.c.bf16 %v3826_v13, %v3824_v39  ;;  %v6804_v39 = vld [vmem:[%s11735_s4 + $0xc4] sm:$0xf]  ;;  %v6429_v13 = vld [vmem:[%s11735_s4 + $0xcc] sm:$0xf0]  ;;  %v10863_v2 = vperm.slane %v6424_v59, 0  ;;  %v10865_v14 = vperm.slane %v6424_v59, 1  ;;  %v3867_v47 = vmul.f32 %v12102_v5, %v3852_v15 }
 0xd76   : > { %v4015_v50 = vpack.c.bf16 %v3907_v54, %v3905_v24  ;;  %v6439_v4 = vld [vmem:[%s11735_s4 + $0xd8] sm:$0xf]  ;;  %v3865_v43 = vmul.f32 %v12102_v5, %v3851_v10  ;;  %v12105_v31 = vpack.c.bf16 %v12103_v61, %v12104_v9  ;;  %v6806_v25 = vld [vmem:[%s11735_s4 + $0xd0] sm:$0xf0]  ;;  %v6810_v15 = vld [vmem:[%s11738_s7] sm:$0xff] }
 0xd77   : > { %4790 = vperm.xlu0 %6908, %v6561_v44   ;;  %4795 = vperm.xlu1 %6906, %v6562_v32   ;;  %v3963_v44 = vpop.permute.xlu2 %3962  ;;  %v10868_v32 = vor.u32 %v6804_v39, %v6429_v13  ;;  %v6440_v1 = vor.u32 %v6808_v0, %v6439_v4  ;;  %v6819_v5 = vld [vmem:[%s11738_s7 + $0x48] sm:$0xff]  ;;  %v6818_v4 = vld [vmem:[%s11738_s7 + $0x40] sm:$0xff] }
 0xd78   : > { %4838 = vperm.xlu2 %6907, %v6569_v41   ;;  %4086 = vmatpush.bf16.msra.mxu2 %v3990_v45  ;;  %v12100_v41 = vld [vmem:[#allocation8_spill] sm:$0xff] }
 0xd79   : > { %4105 = vmatpush.bf16.msra.mxu3 %v4006_v11  ;;  %4143 = vmatpush.bf16.msra.mxu1 %v3991_v17  ;;  %v10824_v38 = vpop.permute.xlu1 %3799  ;;  %v10826_v49 = vpop.permute.xlu0 %3797  ;;  %v12101_v11 = vpack.c.bf16 %v12099_v42, %v12100_v41  ;;  %v6568_v17 = vld [vmem:[%s11737_s6 + $0x88] sm:$0xff] }
 0xd7a   : > { %v3806_v18 = vsel %vm755_vm1, %v10741_v48, %v10824_v38  ;;  %v3805_v19 = vsel %vm755_vm1, %v10783_v23, %v10826_v49  ;;  %v6809_v42 = vld [vmem:[%s11735_s4 + $0xe8] sm:$0xf0] }
 0xd7b   : > { %v3822_v56 = vmul.f32 %v3816_v57, %v3806_v18  ;;  %v3820_v8 = vmul.f32 %v3816_v57, %v3805_v19  ;;  %v6560_v57 = vld [vmem:[%s11737_s6 + $0x48] sm:$0xff]  ;;  %v4011_v18 = vpack.c.bf16 %v3867_v47, %v3865_v43  ;;  %v3812_v19 = vsel %vm755_vm1, %v10785_v52, %v10717_v29 }
 0xd7c   : > { %4087 = vmatpush.bf16.msra.mxu2 %v3988_v12  ;;  %v6807_v12 = vld [vmem:[%s11735_s4 + $0xdc] sm:$0xf] }
 0xd7d   : > { %4144 = vmatpush.bf16.msra.mxu1 %v3989_v34  ;;  %v4004_v51 = vpack.c.bf16 %v3822_v56, %v3820_v8  ;;  %v6441_v34 = vld [vmem:[%s11735_s4 + $0xe4] sm:$0xf0]  ;;  %v3811_v56 = vsel %vm755_vm1, %v10665_v6, %v10659_v27  ;;  %v3809_v27 = vsel %vm755_vm1, %v10826_v49, %v10783_v23 }
 0xd7e   : > { %v6435_v49 = vld [vmem:[%s11735_s4 + $0xc8] sm:$0xf] }
 0xd7f   : > { %4088 = vmatmul.bf16.vlgmr.msra.gmra.mxu2 %v6428_v60  ;;  %4843 = vperm.xlu0 %6908, %v6570_v30   ;;  %v3957_v8 = vpop.permute.xlu2 %3956  ;;  %v6444_v30 = vor.u32 %v6807_v12, %v6441_v34 }
 0xd80   : > { %4156 = vmatpush.bf16.msrb.mxu2 %v4019_v37  ;;  %4145 = vmatmul.bf16.vlgmr.msra.gmra.mxu1 %v6428_v60  ;;  %v3817_v37 = vperm.slane %v10746_v21, 1  ;;  %v3810_v21 = vsel %vm755_vm1, %v10824_v38, %v10741_v48  ;;  %vm4378_vm1 = vcmask 523264  }
 0xd81   : > { %4785 = vperm.xlu2 %6907, %v6560_v57   ;;  %4780 = vperm.xlu1 %6906, %v6559_v33   ;;  %v3961_v20 = vpop.permute.xlu1 %3960  ;;  %v3955_v55 = vpop.permute.xlu0 %3954  ;;  %v12106_v57 = vld [vmem:[#allocation18_spill] sm:$0xff] }
 0xd82   : > { %4106 = vmatpush.bf16.msra.mxu3 %v4004_v51  ;;  %v3967_v28 = vsel %vm3964_vm0, %v3953_v3, %v3961_v20  ;;  %v3971_v35 = vsel %vm3964_vm0, %v3961_v20, %v3953_v3  ;;  %v3968_v63 = vsel %vm3964_vm0, %v3955_v55, %v3963_v44  ;;  %v3972_v62 = vsel %vm3964_vm0, %v3963_v44, %v3955_v55  ;;  %v6567_v3 = vld [vmem:[%s11737_s6 + $0x80] sm:$0xff] }
 0xd83   : > { %v3984_v58 = vmul.f32 %v10863_v2, %v3967_v28  ;;  %v3985_v45 = vmul.f32 %v10865_v14, %v3971_v35  ;;  %v3986_v26 = vmul.f32 %v10863_v2, %v3968_v63  ;;  %v3987_v40 = vmul.f32 %v10865_v14, %v3972_v62  ;;  %v12107_v51 = vld [vmem:[#allocation19_spill] sm:$0xff]  ;;  %v6815_v28 = vld [vmem:[%s11738_s7 + $0x28] sm:$0xff]  ;;  %v6825_v63 = vld [vmem:[%s11738_s7 + $0x78] sm:$0xff] }
 0xd84   : > { %4157 = vmatpush.bf16.msrb.mxu2 %v12101_v11  ;;  %v3827_v60 = vmul.f32 %v3817_v37, %v3812_v19  ;;  %v3825_v36 = vmul.f32 %v3817_v37, %v3811_v56  ;;  %v12108_v39 = vpack.c.bf16 %v12106_v57, %v12107_v51  ;;  %v3823_v24 = vmul.f32 %v3817_v37, %v3810_v21  ;;  %v6816_v11 = vld [vmem:[%s11738_s7 + $0x30] sm:$0xff]  ;;  %v6814_v35 = vld [vmem:[%s11738_s7 + $0x20] sm:$0xff]  ;;  %v6813_v62 = vld [vmem:[%s11738_s7 + $0x18] sm:$0xff] }
 0xd85   : > { %4107 = vmatmul.bf16.vlgmr.msra.gmra.mxu3 %v10868_v32  ;;  %v4022_v46 = vpack.c.bf16 %v3986_v26, %v3984_v58  ;;  %v4023_v53 = vpack.c.bf16 %v3987_v40, %v3985_v45  ;;  %v3821_v44 = vmul.f32 %v3817_v37, %v3809_v27  ;;  %v6436_v55 = vor.u32 %v6806_v25, %v6435_v49  ;;  %v6824_v58 = vld [vmem:[%s11738_s7 + $0x70] sm:$0xff]  ;;  %v6823_v26 = vld [vmem:[%s11738_s7 + $0x68] sm:$0xff] }
 0xd86   : > { %v4007_v7 = vpack.c.bf16 %v3827_v60, %v3825_v36  ;;  %4349 = vmatpush.bf16.msrb.mxu1 %v6825_v63  ;;  %v6812_v45 = vld [vmem:[%s11738_s7 + $0x10] sm:$0xff]  ;;  %v6811_v40 = vld [vmem:[%s11738_s7 + $0x8] sm:$0xff] }
 0xd87   : > { %4828 = vperm.xlu0 %6908, %v6567_v3   ;;  %4124 = vmatpush.bf16.msrb.mxu0 %v4022_v46  ;;  %v6821_v46 = vld [vmem:[%s11738_s7 + $0x58] sm:$0xff] }
 0xd88   : > { %4158 = vmatpush.bf16.msrb.mxu2 %v4015_v50  ;;  %4181 = vmatpush.bf16.msrb.mxu3 %v4023_v53  ;;  %v6822_v50 = vld [vmem:[%s11738_s7 + $0x60] sm:$0xff] }
 0xd89   : > { %4833 = vperm.xlu1 %6906, %v6568_v17   ;;  %v3949_v22 = vpop.permute.xlu0 %3948  ;;  %v3951_v6 = vpop.permute.xlu1 %3950  ;;  %v6820_v17 = vld [vmem:[%s11738_s7 + $0x50] sm:$0xff] }
 0xd8a   : > { %v3965_v29 = vsel %vm3964_vm0, %v3949_v22, %v3957_v8  ;;  %v3969_v52 = vsel %vm3964_vm0, %v3957_v8, %v3949_v22  ;;  %4350 = vmatpush.bf16.msrb.mxu1 %v6824_v58 }
 0xd8b   : > { %v3980_v48 = vmul.f32 %v10863_v2, %v3965_v29  ;;  %v3981_v38 = vmul.f32 %v10865_v14, %v3969_v52 }
 0xd8c   : > { %4159 = vmatpush.bf16.msrb.mxu2 %v12105_v31  ;;  %v4032_v31 = vpop.permute.xlu2 %4031 }
 0xd8e   : > { %4351 = vmatpush.bf16.msrb.mxu1 %v6823_v26 }
 0xd8f   : > { %4093 = vmatmul.bf16.gmra.mxu2 %v6440_v1 }
 0xd90   : > { %4160 = vmatpush.bf16.msrb.mxu2 %v4011_v18  ;;  %4150 = vmatmul.bf16.gmra.mxu1 %v6440_v1 }
 0xd91   : > { %v3959_v59 = vpop.permute.xlu0 %3958  ;;  %v4027_v1 = vpop.permute.xlu1 %4026 }
 0xd92   : > { %v3966_v13 = vsel %vm3964_vm0, %v3951_v6, %v3959_v59  ;;  %v3970_v16 = vsel %vm3964_vm0, %v3959_v59, %v3951_v6  ;;  %4352 = vmatpush.bf16.msrb.mxu1 %v6822_v50 }
 0xd93   : > { %v3982_v33 = vmul.f32 %v10863_v2, %v3966_v13  ;;  %v3983_v23 = vmul.f32 %v10865_v14, %v3970_v16  ;;  %v4005_v2 = vpack.c.bf16 %v3823_v24, %v3821_v44  ;;  %v6447_v14 = vld [vmem:[%s11735_s4 + $0xe0] sm:$0xf] }
 0xd94   : > { %4161 = vmatpush.bf16.msrb.mxu2 %v12108_v39  ;;  %v6448_v41 = vor.u32 %v6809_v42, %v6447_v14 }
 0xd95   : > { %4112 = vmatmul.bf16.gmra.mxu3 %v6444_v30  ;;  %v4020_v54 = vpack.c.bf16 %v3982_v33, %v3980_v48  ;;  %v4021_v20 = vpack.c.bf16 %v3983_v23, %v3981_v38 }
 0xd96   : > { %4353 = vmatpush.bf16.msrb.mxu1 %v6821_v46  ;;  %v4231_v46 = vld [vmem:[%s11739_s8 + $0x8] sm:$0xff] }
 0xd97   : > { %4125 = vmatpush.bf16.msrb.mxu0 %v4020_v54  ;;  %4182 = vmatpush.bf16.msrb.mxu3 %v4021_v20 }
 0xd98   : > { %4162 = vmatpush.bf16.msrb.mxu2 %v4007_v7 }
 0xd99   : > { %v4042_v59 = vpop.permute.xlu1 %4041  ;;  %v4037_v36 = vpop.permute.xlu0 %4036 }
 0xd9a   : > { %6449 = vmatmul.msk.bf16.vlgmr.msrb.gmra.mxu0 %vm1435_vm15, %v6436_v55  ;;  %4354 = vmatpush.bf16.msrb.mxu1 %v6820_v17  ;;  %v4232_v17 = vld [vmem:[%s11739_s8 + $0x10] sm:$0xff] }
 0xd9c   : > { %4163 = vmatpush.bf16.msrb.mxu2 %v4005_v2 }
 0xd9e   : > { %4355 = vmatpush.bf16.msrb.mxu1 %v6819_v5 }
 0xd9f   : > { %4164 = vmatmul.bf16.vlgmr.msrb.gmra.mxu2 %v10868_v32  ;;  %v6817_v32 = vld [vmem:[%s11738_s7 + $0x38] sm:$0xff] }
 0xda0   : > { %4330 = vmatpush.bf16.msra.mxu0 %v6817_v32 }
 0xda2   : > { %4356 = vmatpush.bf16.msrb.mxu1 %v6818_v4 }
 0xda4   : > { %4331 = vmatpush.bf16.msra.mxu0 %v6816_v11 }
 0xda5   : > { %6451 = vmatmul.msk.bf16.vlgmr.msrb.gmra.mxu3 %vm1435_vm15, %v6436_v55 }
 0xda8   : > { %4332 = vmatpush.bf16.msra.mxu0 %v6815_v28 }
 0xdaa   : > { %6450 = vmatmul.msk.bf16.gmra.mxu0 %vm1435_vm15, %v6448_v41 }
 0xdac   : > { %4333 = vmatpush.bf16.msra.mxu0 %v6814_v35 }
 0xdaf   : > { %4169 = vmatmul.bf16.gmra.mxu2 %v6444_v30 }
 0xdb0   : > { %4334 = vmatpush.bf16.msra.mxu0 %v6813_v62 }
 0xdb4   : > { %4335 = vmatpush.bf16.msra.mxu0 %v6812_v45 }
 0xdb5   : > { %6452 = vmatmul.msk.bf16.gmra.mxu3 %vm1435_vm15, %v6448_v41 }
 0xdb8   : > { %4336 = vmatpush.bf16.msra.mxu0 %v6811_v40 }
 0xdbc   : > { %4337 = vmatpush.bf16.msra.mxu0 %v6810_v15 }
 0xdfd   : > { %v4146_v61 = vpop.f32.mrf.mxu1 }
 0xdfe   : > { %v4147_v57 = vadd.f32 %v4146_v61, %v4027_v1 }
 0xe02   : > { %v4089_v3 = vpop.f32.mrf.mxu2 }
 0xe03   : > { %v4090_v18 = vadd.f32 %v4089_v3, %v4027_v1 }
 0xe05   : > { %v4148_v30 = vpop.f32.mrf.mxu1 }
 0xe06   : > { %v4149_v51 = vadd.f32 %v4148_v30, %v4032_v31 }
 0xe08   : > { %v4108_v53 = vpop.f32.mrf.mxu3 }
 0xe09   : > { %v4109_v12 = vadd.f32 %v4108_v53, %v4090_v18  ;;  %v4230_v53 = vld [vmem:[%s11739_s8] sm:$0xff] }
 0xe0a   : > { %v4091_v10 = vpop.f32.mrf.mxu2 }
 0xe0b   : > { %v4092_v19 = vadd.f32 %v4091_v10, %v4032_v31  ;;  %v7100_v10 = vmov 32.0   ;;  %v4233_v31 = vld [vmem:[%s11739_s8 + $0x18] sm:$0xff] }
 0xe0c   : > { %7017 = vrcp.f32 %v7100_v10 }
 0xe0d   : > { %v4151_v16 = vpop.f32.mrf.mxu1 }
 0xe0e   : > { %v4152_v32 = vadd.f32 %v4151_v16, %v4037_v36 }
 0xe10   : > { %v4110_v47 = vpop.f32.mrf.mxu3 }
 0xe11   : > { %v4111_v34 = vadd.f32 %v4110_v47, %v4092_v19 }
 0xe12   : > { %v4094_v0 = vpop.f32.mrf.mxu2 }
 0xe13   : > { %v4095_v39 = vadd.f32 %v4094_v0, %v4037_v36 }
 0xe15   : > { %v4153_v42 = vpop.f32.mrf.mxu1 }
 0xe16   : > { %v4154_v11 = vadd.f32 %v4153_v42, %v4042_v59 }
 0xe17   : > { %v4127_v43 = vpop.f32.mrf.mxu0 }
 0xe18   : > { %v4113_v22 = vpop.f32.mrf.mxu3  ;;  %v4128_v8 = vadd.f32 %v4127_v43, %v4109_v12 }
 0xe19   : > { %v4114_v48 = vadd.f32 %v4113_v22, %v4095_v39 }
 0xe1a   : > { %v4096_v9 = vpop.f32.mrf.mxu2 }
 0xe1b   : > { %v4097_v13 = vadd.f32 %v4096_v9, %v4042_v59  ;;  %v7018_v9 = vpop.eup %7017 }
 0xe1c   : > { %vm4397_vm4 = vweird.f32 %v7018_v9 }
 0xe1f   : > { %v4129_v56 = vpop.f32.mrf.mxu0 }
 0xe20   : > { %v4115_v37 = vpop.f32.mrf.mxu3  ;;  %v4130_v60 = vadd.f32 %v4129_v56, %v4111_v34 }
 0xe21   : > { %v4116_v38 = vadd.f32 %v4115_v37, %v4097_v13  ;;  %v4393_v37 = vmul.f32 32.0, %v7018_v9 }
 0xe22   : > { %v4226_v29 = vpack.c.bf16 %v4130_v60, %v4128_v8  ;;  %v4165_v52 = vpop.f32.mrf.mxu2 }
 0xe23   : > { %v4166_v33 = vadd.f32 %v4165_v52, %v4147_v57  ;;  %v4394_v30 = vsub.f32 1.0, %v4393_v37 }
 0xe24   : > { %4338 = vmatmul.bf16.vlgmr.msra.gmra.mxu0 %v4226_v29 }
 0xe27   : > { %v4132_v27 = vpop.f32.mrf.mxu0 }
 0xe28   : > { %v4184_v21 = vpop.f32.mrf.mxu3  ;;  %v4133_v44 = vadd.f32 %v4132_v27, %v4114_v48 }
 0xe29   : > { %v4185_v24 = vadd.f32 %v4184_v21, %v4166_v33 }
 0xe2a   : > { %v4167_v6 = vpop.f32.mrf.mxu2 }
 0xe2b   : > { %v4168_v23 = vadd.f32 %v4167_v6, %v4149_v51  ;;  %v4395_v6 = vmul.f32 %v7018_v9, %v4394_v30 }
 0xe2d   : > { %v4396_v57 = vadd.f32 %v7018_v9, %v4395_v6  ;;  %v6827_v6 = vld [vmem:[%s11742_s11 + $0x8] sm:$0xff] }
 0xe2f   : > { %v4134_v25 = vpop.f32.mrf.mxu0  ;;  %v4398_v13 = vsel %vm4397_vm4, %v7018_v9, %v4396_v57 }
 0xe30   : > { %v4186_v49 = vpop.f32.mrf.mxu3  ;;  %v4135_v54 = vadd.f32 %v4134_v25, %v4116_v38 }
 0xe31   : > { %v4187_v7 = vadd.f32 %v4186_v49, %v4168_v23 }
 0xe32   : > { %v4228_v55 = vpack.c.bf16 %v4135_v54, %v4133_v44  ;;  %v4170_v2 = vpop.f32.mrf.mxu2 }
 0xe33   : > { %v4227_v20 = vpack.c.bf16 %v4187_v7, %v4185_v24  ;;  %v4171_v28 = vadd.f32 %v4170_v2, %v4152_v32 }
 0xe34   : > { %4343 = vmatmul.bf16.gmra.mxu0 %v4228_v55 }
 0xe35   : > { %4357 = vmatmul.bf16.vlgmr.msrb.gmra.mxu1 %v4227_v20 }
 0xe38   : > { %v4189_v14 = vpop.f32.mrf.mxu3 }
 0xe39   : > { %v4190_v62 = vadd.f32 %v4189_v14, %v4171_v28 }
 0xe3a   : > { %v4172_v41 = vpop.f32.mrf.mxu2 }
 0xe3b   : > { %v4173_v35 = vadd.f32 %v4172_v41, %v4154_v11 }
 0xe40   : > { %v4191_v63 = vpop.f32.mrf.mxu3 }
 0xe41   : > { %v4192_v58 = vadd.f32 %v4191_v63, %v4173_v35 }
 0xe43   : > { %v4229_v45 = vpack.c.bf16 %v4192_v58, %v4190_v62 }
 0xe45   : > { %4362 = vmatmul.bf16.gmra.mxu1 %v4229_v45 }
 0xea1   : > { %v4339_v26 = vpop.f32.mrf.mxu0 }
 0xea2   : > { %v4340_v4 = vadd.f32 %v4339_v26, %v4230_v53  ;;  %v4450_v26 = vpop.permute.xlu2 %4449 }
 0xea9   : > { %v4341_v40 = vpop.f32.mrf.mxu0 }
 0xeaa   : > { %v4342_v5 = vadd.f32 %v4341_v40, %v4231_v46  ;;  %v4455_v40 = vpop.permute.xlu0 %4454 }
 0xeb1   : > { %v4344_v15 = vpop.f32.mrf.mxu0 }
 0xeb2   : > { %v4358_v50 = vpop.f32.mrf.mxu1  ;;  %v4345_v0 = vadd.f32 %v4344_v15, %v4232_v17  ;;  %v4474_v15 = vpop.permute.xlu1 %4473 }
 0xeb3   : > { %v4359_v43 = vadd.f32 %v4358_v50, %v4340_v4  ;;  %v4479_v17 = vpop.permute.xlu2 %4478  ;;  %v4440_v10 = vpop.permute.xlu0 %4439 }
 0xeb5   : > { %v4379_v19 = vsel %vm4378_vm1, %v4359_v43, 0.0 }
 0xeb9   : > { %v4346_v1 = vpop.f32.mrf.mxu0 }
 0xeba   : > { %v4360_v3 = vpop.f32.mrf.mxu1  ;;  %v4347_v12 = vadd.f32 %v4346_v1, %v4233_v31  ;;  %v4445_v31 = vpop.permute.xlu1 %4444 }
 0xebb   : > { %v4361_v22 = vadd.f32 %v4360_v3, %v4342_v5 }
 0xebd   : > { %v4380_v18 = vsel %vm4378_vm1, %v4361_v22, 0.0 }
 0xebe   : > { %v4381_v56 = vadd.f32 %v4380_v18, %v4379_v19 }
 0xec2   : > { %v4363_v47 = vpop.f32.mrf.mxu1 }
 0xec3   : > { %v4364_v61 = vadd.f32 %v4363_v47, %v4345_v0  ;;  %v11041_v0 = vld [vmem:[%s613_s1] sm:$0x3f]  ;;  %s617_s1 = scalar_lea.vmem %s12112_s23, %s6198_s24 }
 0xec4   : > { %v5012_v1 = vsel %vm5011_vm11, %v11041_v0, 0.0 }
 0xec5   : > { %v4382_v34 = vsel %vm4378_vm1, %v4364_v61, 0.0  ;;  %5013 = vadd.xlane.f32.xlu2 %v5012_v1 }
 0xec6   : > { %v4383_v29 = vadd.f32 %v4382_v34, %v4381_v56 }
 0xeca   : > { %v4365_v8 = vpop.f32.mrf.mxu1 }
 0xecb   : > { %v4366_v60 = vadd.f32 %v4365_v8, %v4347_v12  ;;  %v4464_v8 = vpop.permute.xlu2 %4463 }
 0xecd   : > { %v4384_v52 = vsel %vm4378_vm1, %v4366_v60, 0.0 }
 0xece   : > { %v4385_v21 = vadd.f32 %v4384_v52, %v4383_v29 }
 0xed0   : > { %v4386_v27 = vrot.slane %v4385_v21, 4 }
 0xed2   : > { %v4387_v59 = vadd.f32 %v4386_v27, %v4385_v21  ;;  %v6826_v27 = vld [vmem:[%s11742_s11] sm:$0xff] }
 0xed4   : > { %v4388_v36 = vrot.slane %v4387_v59, 2 }
 0xed6   : > { %v4389_v51 = vadd.f32 %v4388_v36, %v4387_v59  ;;  %v4514_v59 = vpop.permute.xlu2 %4513 }
 0xed8   : > { %v4390_v39 = vrot.slane %v4389_v51, 1 }
 0xeda   : > { %v4391_v16 = vadd.f32 %v4390_v39, %v4389_v51 }
 0xedc   : > { %v4399_v48 = vmul.f32 %v4398_v13, %v4391_v16 }
 0xede   : > { %v4400_v38 = vsub.f32 %v4359_v43, %v4399_v48  ;;  %v4401_v33 = vsub.f32 %v4361_v22, %v4399_v48  ;;  %v4402_v23 = vsub.f32 %v4364_v61, %v4399_v48  ;;  %v4403_v49 = vsub.f32 %v4366_v60, %v4399_v48  ;;  %v4469_v60 = vpop.permute.xlu0 %4468  ;;  %v11053_v36 = vpop.permute.xlu2 %4575 }
 0xedf   : > { %v4509_v48 = vpop.permute.xlu1 %4508 }
 0xee0   : > { %v4404_v25 = vmul.f32 %v4400_v38, %v4400_v38  ;;  %v4405_v24 = vmul.f32 %v4401_v33, %v4401_v33  ;;  %v4406_v44 = vmul.f32 %v4402_v23, %v4402_v23  ;;  %v4407_v7 = vmul.f32 %v4403_v49, %v4403_v49 }
 0xee2   : > { %v4408_v54 = vsel %vm4378_vm1, %v4404_v25, 0.0  ;;  %v4409_v20 = vsel %vm4378_vm1, %v4405_v24, 0.0  ;;  %v4411_v2 = vsel %vm4378_vm1, %v4406_v44, 0.0  ;;  %v4413_v42 = vsel %vm4378_vm1, %v4407_v7, 0.0 }
 0xee3   : > { %v4410_v55 = vadd.f32 %v4409_v20, %v4408_v54 }
 0xee5   : > { %v4412_v14 = vadd.f32 %v4411_v2, %v4410_v55 }
 0xee6   : > { %v11055_v57 = vpop.permute.xlu2 %4590  ;;  %v4499_v7 = vpop.permute.xlu0 %4498 }
 0xee7   : > { %v4414_v41 = vadd.f32 %v4413_v42, %v4412_v14 }
 0xee9   : > { %v4415_v32 = vrot.slane %v4414_v41, 4 }
 0xeeb   : > { %v4416_v11 = vadd.f32 %v4415_v32, %v4414_v41 }
 0xeed   : > { %v4417_v28 = vrot.slane %v4416_v11, 2 }
 0xeee   : > { %v11057_v51 = vpop.permute.xlu2 %4605 }
 0xeef   : > { %v4418_v35 = vadd.f32 %v4417_v28, %v4416_v11  ;;  %v6828_v11 = vld [vmem:[%s11743_s12] sm:$0xff] }
 0xef1   : > { %v4419_v63 = vrot.slane %v4418_v35, 1 }
 0xef3   : > { %v4420_v62 = vadd.f32 %v4419_v63, %v4418_v35  ;;  %v7101_v35 = vmov 64.0  }
 0xef5   : > { %v4421_v58 = vmul.f32 %v4420_v62, %v4398_v13 }
 0xef6   : > { %v11059_v13 = vpop.permute.xlu2 %4815 }
 0xef7   : > { %v4422_v45 = vadd.f32 1e-05, %v4421_v58  ;;  %v6829_v58 = vld [vmem:[%s11743_s12 + $0x8] sm:$0xff] }
 0xef9   : > { %7019 = vrsqrt.f32 %v4422_v45  ;;  %vm4429_vm9 = vweird.f32 %v4422_v45 }
 0xefa   : > { %7021 = vrcp.f32 %v7101_v35 }
 0xeff   : > { %v7020_v50 = vpop.eup %7019 }
 0xf00   : > { %v4424_v3 = vmul.f32 %v7020_v50, %v4422_v45  ;;  %vm4430_vm8 = vweird.f32 %v7020_v50  ;;  %v7022_v62 = vpop.eup %7021 }
 0xf01   : > { %vm4431_vm10 = vmor %vm4429_vm9, %vm4430_vm8  ;;  %v4714_v45 = vmul.f32 64.0, %v7022_v62  ;;  %vm4718_vm12 = vweird.f32 %v7022_v62 }
 0xf02   : > { %v4425_v46 = vmul.f32 %v7020_v50, %v4424_v3 }
 0xf04   : > { %v4426_v53 = vmul.f32 0.5, %v4425_v46 }
 0xf06   : > { %v4427_v5 = vsub.f32 1.5, %v4426_v53 }
 0xf08   : > { %v4428_v47 = vmul.f32 %v7020_v50, %v4427_v5  ;;  %v6830_v5 = vld [vmem:[%s11743_s12 + $0x10] sm:$0xff] }
 0xf0a   : > { %v4432_v4 = vsel %vm4431_vm10, %v7020_v50, %v4428_v47  ;;  %v6831_v47 = vld [vmem:[%s11743_s12 + $0x18] sm:$0xff] }
 0xf0b   : > { %v4435_v22 = vmul.f32 %v4432_v4, %v4402_v23  ;;  %v4436_v43 = vmul.f32 %v4432_v4, %v4403_v49  ;;  %v4433_v61 = vmul.f32 %v4432_v4, %v4400_v38  ;;  %v4434_v9 = vmul.f32 %v4432_v4, %v4401_v33  ;;  %v11061_v33 = vpop.permute.xlu2 %4800  ;;  %v4504_v49 = vpop.permute.xlu1 %4503 }
 0xf0c   : > { %v4581_v4 = vpop.permute.xlu0 %4580 }
 0xf0d   : > { %v4460_v18 = vmul.f32 %v4455_v40, %v4436_v43  ;;  %v4459_v19 = vmul.f32 %v4450_v26, %v4435_v22  ;;  %v4457_v12 = vmul.f32 %v4440_v10, %v4433_v61  ;;  %v4458_v34 = vmul.f32 %v4445_v31, %v4434_v9 }
 0xf0e   : > { %v4715_v26 = vsub.f32 1.0, %v4714_v45 }
 0xf0f   : > { %v4484_v37 = vadd.f32 %v4479_v17, %v4460_v18  ;;  %v4483_v56 = vadd.f32 %v4474_v15, %v4459_v19  ;;  %v4481_v52 = vadd.f32 %v4464_v8, %v4457_v12  ;;  %v4482_v30 = vadd.f32 %v4469_v60, %v4458_v34 }
 0xf10   : > { %v4716_v40 = vmul.f32 %v7022_v62, %v4715_v26 }
 0xf11   : > { %v4490_v29 = vpack.c.bf16 %v4484_v37, %v4483_v56  ;;  %v4489_v21 = vpack.c.bf16 %v4482_v30, %v4481_v52 }
 0xf12   : > { %v4717_v50 = vadd.f32 %v7022_v62, %v4716_v40 }
 0xf13   : > { %4538 = vmatpush.bf16.msra.mxu2 %v4490_v29  ;;  %v11063_v2 = vpop.permute.xlu2 %4853 }
 0xf14   : > { %v11077_v15 = vsel %vm4718_vm12, %v7022_v62, %v4717_v50  ;;  %v4596_v22 = vpop.permute.xlu0 %4595 }
 0xf17   : > { %4539 = vmatpush.bf16.msra.mxu2 %v4489_v21  ;;  %v11106_v21 = vld [vmem:[%s11744_s13 + $0x18] sm:$0xff] }
 0xf18   : > { %5082 = vmatpush.bf16.msra.mxu1 %v11106_v21 }
 0xf1a   : > { %6537 = vmatmul.msk.bf16.vlgmr.msra.gmra.mxu2 %vm1435_vm15, %v6826_v27 }
 0xf1b   : > { %v11068_v28 = vpop.permute.xlu2 %4838 }
 0xf1c   : > { %v11090_v43 = vpop.permute.xlu0 %4610 }
 0xf23   : > { %v11071_v63 = vpop.permute.xlu2 %4785 }
 0xf24   : > { %v11092_v61 = vpop.permute.xlu0 %4858 }
 0xf2a   : > { %6538 = vmatmul.msk.bf16.gmra.mxu2 %vm1435_vm15, %v6827_v6 }
 0xf2c   : > { %v11094_v9 = vpop.permute.xlu0 %4805 }
 0xf34   : > { %v11096_v31 = vpop.permute.xlu0 %4790 }
 0xf38   : > { %v5014_v3 = vpop.xlane.xlu2 %5013 }
 0xf39   : > { %v5015_v46 = vmul.f32 %v5014_v3, %v11077_v15 }
 0xf3b   : > { %v5016_v53 = vsub.f32 %v11041_v0, %v5015_v46 }
 0xf3c   : > { %v11098_v1 = vpop.permute.xlu0 %4843 }
 0xf3d   : > { %v5017_v17 = vmul.f32 %v5016_v53, %v5016_v53 }
 0xf3f   : > { %v5018_v10 = vsel %vm5011_vm11, %v5017_v17, 0.0 }
 0xf40   : > { %5019 = vadd.xlane.f32.xlu0 %v5018_v10 }
 0xf44   : > { %v11100_v19 = vpop.permute.xlu0 %4828 }
 0xf9d   : > { %v4541_v39 = vpop.f32.mrf.mxu2 }
 0xf9e   : > { %v4542_v54 = vadd.f32 %v4541_v39, %v4499_v7  ;;  %v11135_v7 = vld [vmem:[%s11744_s13] sm:$0xff] }
 0xfa0   : > { %v4551_v41 = vmax.f32 %v4542_v54, 0.0 }
 0xfa5   : > { %v4543_v16 = vpop.f32.mrf.mxu2 }
 0xfa6   : > { %v4544_v24 = vadd.f32 %v4543_v16, %v4504_v49 }
 0xfa8   : > { %v4552_v14 = vmax.f32 %v4544_v24, 0.0  ;;  %v11129_v24 = vld [vmem:[%s11740_s9 + $0x1] ss:$0 sm:$0xff] }
 0xfaa   : > { %v4563_v32 = vpack.c.bf16 %v4552_v14, %v4551_v41 }
 0xfad   : > { %v4546_v38 = vpop.f32.mrf.mxu2 }
 0xfae   : > { %v4547_v23 = vadd.f32 %v4546_v38, %v4509_v48  ;;  %v11118_v38 = vld [vmem:[%s11744_s13 + $0x8] sm:$0xff] }
 0xfb0   : > { %v4553_v20 = vmax.f32 %v4547_v23, 0.0  ;;  %v11123_v23 = vld [vmem:[%s11740_s9] ss:$0 sm:$0xff] }
 0xfb3   : > { %v5020_v34 = vpop.xlane.xlu0 %5019 }
 0xfb4   : > { %v5021_v37 = vmul.f32 %v5020_v34, %v11077_v15 }
 0xfb5   : > { %v4548_v25 = vpop.f32.mrf.mxu2 }
 0xfb6   : > { %v4549_v44 = vadd.f32 %v4548_v25, %v4514_v59  ;;  %v5022_v8 = vadd.f32 1e-05, %v5021_v37  ;;  %v11112_v59 = vld [vmem:[%s11744_s13 + $0x10] sm:$0xff]  ;;  %v4586_v25 = vpop.permute.xlu1 %4585 }
 0xfb7   : > { %5083 = vmatpush.bf16.msra.mxu1 %v11112_v59 }
 0xfb8   : > { %v4554_v55 = vmax.f32 %v4549_v44, 0.0  ;;  %7023 = vrsqrt.f32 %v5022_v8 }
 0xfba   : > { %v4564_v42 = vpack.c.bf16 %v4554_v55, %v4553_v20 }
 0xfbb   : > { %5084 = vmatpush.bf16.msra.mxu1 %v11118_v38 }
 0xfbc   : > { %4651 = vmatpush.bf16.msra.mxu3 %v4564_v42 }
 0xfbe   : > { %v7024_v60 = vpop.eup %7023  ;;  %v4601_v45 = vpop.permute.xlu1 %4600 }
 0xfbf   : > { %v5024_v52 = vmul.f32 %v7024_v60, %v5022_v8  ;;  %vm5030_vm13 = vweird.f32 %v7024_v60  ;;  %5085 = vmatpush.bf16.msra.mxu1 %v11135_v7 }
 0xfc0   : > { %4652 = vmatpush.bf16.msra.mxu3 %v4563_v32 }
 0xfc1   : > { %v5025_v30 = vmul.f32 %v7024_v60, %v5024_v52 }
 0xfc3   : > { %6555 = vmatmul.msk.bf16.vlgmr.msra.gmra.mxu3 %vm1435_vm15, %v6828_v11  ;;  %v5026_v27 = vmul.f32 0.5, %v5025_v30 }
 0xfc5   : > { %v5027_v6 = vsub.f32 1.5, %v5026_v27 }
 0xfc7   : > { %v5028_v16 = vmul.f32 %v7024_v60, %v5027_v6 }
 0xfd3   : > { %6556 = vmatmul.msk.bf16.gmra.mxu3 %vm1435_vm15, %v6829_v58 }
 0xfe3   : > { %6557 = vmatmul.msk.bf16.gmra.mxu3 %vm1435_vm15, %v6830_v5 }
 0xff3   : > { %6558 = vmatmul.msk.bf16.gmra.mxu3 %vm1435_vm15, %v6831_v47  ;;  %vm5029_vm15 = vweird.f32 %v5022_v8 }
 0xff4   : > { %vm5031_vm14 = vmor %vm5029_vm15, %vm5030_vm13 }
 0xff5   : > { %v5032_v48 = vsel %vm5031_vm14, %v7024_v60, %v5028_v16 }
 0xff6   : > { %v5033_v49 = vmul.f32 %v5032_v48, %v5016_v53 }
 0xff8   : > { %v5037_v44 = vmul.f32 %v11123_v23, %v5033_v49 }
 0xffa   : > { %v5041_v20 = vadd.f32 %v11129_v24, %v5037_v44 }
 0xffc   : > { %v5050_v14 = vpack.c.bf16 %v5041_v20, %v5041_v20 }
 0xffe   : > { %6632 = vmatmul.msk.bf16.vlgmr.msra.gmra.mxu1 %vm4378_vm1, %v5050_v14 }
0x1046   : > { %v4654_v18 = vpop.f32.mrf.mxu3 }
0x1047   : > { %v4655_v42 = vadd.f32 %v4654_v18, %v11053_v36 }
0x1049   : > { %v4692_v35 = vsel %vm4378_vm1, %v4655_v42, 0.0 }
0x104e   : > { %v4656_v12 = vpop.f32.mrf.mxu3 }
0x104f   : > { %v4657_v55 = vadd.f32 %v4656_v12, %v4581_v4 }
0x1051   : > { %v4693_v32 = vsel %vm4378_vm1, %v4657_v55, 0.0 }
0x1052   : > { %v4694_v26 = vadd.f32 %v4693_v32, %v4692_v35 }
0x1056   : > { %v4659_v56 = vpop.f32.mrf.mxu3 }
0x1057   : > { %v4660_v41 = vadd.f32 %v4659_v56, %v4586_v25 }
0x1059   : > { %v4695_v62 = vsel %vm4378_vm1, %v4660_v41, 0.0 }
0x105a   : > { %v4696_v46 = vadd.f32 %v4695_v62, %v4694_v26 }
0x105e   : > { %v4661_v29 = vpop.f32.mrf.mxu3 }
0x105f   : > { %v4662_v11 = vadd.f32 %v4661_v29, %v11055_v57 }
0x1061   : > { %v4697_v50 = vsel %vm4378_vm1, %v4662_v11, 0.0 }
0x1062   : > { %v4698_v17 = vadd.f32 %v4697_v50, %v4696_v46 }
0x1066   : > { %v4664_v39 = vpop.f32.mrf.mxu3 }
0x1067   : > { %v4665_v58 = vadd.f32 %v4664_v39, %v4596_v22 }
0x1069   : > { %v4699_v36 = vsel %vm4378_vm1, %v4665_v58, 0.0 }
0x106a   : > { %v4700_v57 = vadd.f32 %v4699_v36, %v4698_v17 }
0x106e   : > { %v4666_v54 = vpop.f32.mrf.mxu3 }
0x106f   : > { %v4667_v3 = vadd.f32 %v4666_v54, %v4601_v45  ;;  %v4811_v45 = vpop.permute.xlu1 %4810 }
0x1071   : > { %v4701_v10 = vsel %vm4378_vm1, %v4667_v3, 0.0 }
0x1072   : > { %v4702_v47 = vadd.f32 %v4701_v10, %v4700_v57 }
0x1076   : > { %v4669_v40 = vpop.f32.mrf.mxu3 }
0x1077   : > { %v4670_v53 = vadd.f32 %v4669_v40, %v11057_v51  ;;  %v4864_v57 = vpop.permute.xlu1 %4863 }
0x1079   : > { %v4703_v5 = vsel %vm4378_vm1, %v4670_v53, 0.0 }
0x107a   : > { %v4704_v18 = vadd.f32 %v4703_v5, %v4702_v47 }
0x107e   : > { %v4671_v4 = vpop.f32.mrf.mxu3 }
0x107f   : > { %v4672_v22 = vadd.f32 %v4671_v4, %v11090_v43 }
0x1081   : > { %v4705_v12 = vsel %vm4378_vm1, %v4672_v22, 0.0 }
0x1082   : > { %v4706_v34 = vadd.f32 %v4705_v12, %v4704_v18  ;;  %v4849_v12 = vpop.permute.xlu1 %4848 }
0x1084   : > { %v4707_v37 = vrot.slane %v4706_v34, 4 }
0x1086   : > { %v4708_v56 = vadd.f32 %v4707_v37, %v4706_v34 }
0x1088   : > { %v4709_v8 = vrot.slane %v4708_v56, 2 }
0x108a   : > { %v4710_v60 = vadd.f32 %v4709_v8, %v4708_v56 }
0x108c   : > { %v4711_v29 = vrot.slane %v4710_v60, 1 }
0x108e   : > { %v4712_v51 = vadd.f32 %v4711_v29, %v4710_v60  ;;  %v4796_v60 = vpop.permute.xlu1 %4795 }
0x1090   : > { %v4720_v52 = vmul.f32 %v11077_v15, %v4712_v51 }
0x1092   : > { %v4721_v30 = vsub.f32 %v4655_v42, %v4720_v52  ;;  %v4722_v27 = vsub.f32 %v4657_v55, %v4720_v52  ;;  %v4723_v6 = vsub.f32 %v4660_v41, %v4720_v52  ;;  %v4724_v39 = vsub.f32 %v4662_v11, %v4720_v52 }
0x1093   : > { %v4725_v16 = vsub.f32 %v4665_v58, %v4720_v52  ;;  %v4726_v25 = vsub.f32 %v4667_v3, %v4720_v52  ;;  %v4727_v32 = vsub.f32 %v4670_v53, %v4720_v52  ;;  %v4728_v55 = vsub.f32 %v4672_v22, %v4720_v52 }
0x1094   : > { %v4729_v48 = vmul.f32 %v4721_v30, %v4721_v30  ;;  %v4730_v49 = vmul.f32 %v4722_v27, %v4722_v27  ;;  %v4731_v43 = vmul.f32 %v4723_v6, %v4723_v6  ;;  %v4732_v44 = vmul.f32 %v4724_v39, %v4724_v39 }
0x1095   : > { %v4733_v35 = vmul.f32 %v4725_v16, %v4725_v16  ;;  %v4734_v41 = vmul.f32 %v4726_v25, %v4726_v25  ;;  %v4735_v26 = vmul.f32 %v4727_v32, %v4727_v32  ;;  %v4736_v3 = vmul.f32 %v4728_v55, %v4728_v55 }
0x1096   : > { %v4737_v54 = vsel %vm4378_vm1, %v4729_v48, 0.0  ;;  %v4738_v20 = vsel %vm4378_vm1, %v4730_v49, 0.0  ;;  %v4740_v62 = vsel %vm4378_vm1, %v4731_v43, 0.0  ;;  %v4742_v11 = vsel %vm4378_vm1, %v4732_v44, 0.0  ;;  %v4781_v49 = vpop.permute.xlu1 %4780 }
0x1097   : > { %v4739_v14 = vadd.f32 %v4738_v20, %v4737_v54  ;;  %v4744_v40 = vsel %vm4378_vm1, %v4733_v35, 0.0  ;;  %v4746_v46 = vsel %vm4378_vm1, %v4734_v41, 0.0  ;;  %v4748_v53 = vsel %vm4378_vm1, %v4735_v26, 0.0 }
0x1098   : > { %v4750_v10 = vsel %vm4378_vm1, %v4736_v3, 0.0 }
0x1099   : > { %v4741_v42 = vadd.f32 %v4740_v62, %v4739_v14 }
0x109b   : > { %v4743_v58 = vadd.f32 %v4742_v11, %v4741_v42 }
0x109d   : > { %v4745_v50 = vadd.f32 %v4744_v40, %v4743_v58 }
0x109f   : > { %v4747_v36 = vadd.f32 %v4746_v46, %v4745_v50 }
0x10a1   : > { %v4749_v17 = vadd.f32 %v4748_v53, %v4747_v36  ;;  %v4834_v53 = vpop.permute.xlu1 %4833 }
0x10a3   : > { %v4751_v5 = vadd.f32 %v4750_v10, %v4749_v17 }
0x10a5   : > { %v4752_v47 = vrot.slane %v4751_v5, 4 }
0x10a7   : > { %v4753_v4 = vadd.f32 %v4752_v47, %v4751_v5 }
0x10a9   : > { %v4754_v22 = vrot.slane %v4753_v4, 2 }
0x10ab   : > { %v4755_v18 = vadd.f32 %v4754_v22, %v4753_v4 }
0x10ad   : > { %v4756_v34 = vrot.slane %v4755_v18, 1 }
0x10af   : > { %v4757_v37 = vadd.f32 %v4756_v34, %v4755_v18  ;;  %v6836_v18 = vld [vmem:[%s11745_s14 + $0x20] sm:$0xff] }
0x10b1   : > { %v4758_v56 = vmul.f32 %v4757_v37, %v11077_v15  ;;  %v6837_v37 = vld [vmem:[%s11745_s14 + $0x28] sm:$0xff] }
0x10b3   : > { %v4759_v8 = vadd.f32 1e-05, %v4758_v56 }
0x10b5   : > { %7025 = vrsqrt.f32 %v4759_v8  ;;  %vm4766_vm2 = vweird.f32 %v4759_v8 }
0x10bb   : > { %v7026_v29 = vpop.eup %7025 }
0x10bc   : > { %v4761_v51 = vmul.f32 %v7026_v29, %v4759_v8  ;;  %vm4767_vm3 = vweird.f32 %v7026_v29 }
0x10bd   : > { %vm4768_vm5 = vmor %vm4766_vm2, %vm4767_vm3 }
0x10be   : > { %v4762_v52 = vmul.f32 %v7026_v29, %v4761_v51 }
0x10c0   : > { %v4763_v48 = vmul.f32 0.5, %v4762_v52  ;;  %v6838_v52 = vld [vmem:[%s11745_s14 + $0x30] sm:$0xff] }
0x10c2   : > { %v4764_v43 = vsub.f32 1.5, %v4763_v48  ;;  %v6839_v48 = vld [vmem:[%s11745_s14 + $0x38] sm:$0xff] }
0x10c4   : > { %v4765_v44 = vmul.f32 %v7026_v29, %v4764_v43 }
0x10c6   : > { %v4769_v54 = vsel %vm4768_vm5, %v7026_v29, %v4765_v44 }
0x10c7   : > { %v4777_v20 = vmul.f32 %v4769_v54, %v4728_v55  ;;  %v4776_v14 = vmul.f32 %v4769_v54, %v4727_v32  ;;  %v4774_v35 = vmul.f32 %v4769_v54, %v4725_v16  ;;  %v4775_v62 = vmul.f32 %v4769_v54, %v4726_v25 }
0x10c8   : > { %v4772_v42 = vmul.f32 %v4769_v54, %v4723_v6  ;;  %v4773_v41 = vmul.f32 %v4769_v54, %v4724_v39  ;;  %v4770_v11 = vmul.f32 %v4769_v54, %v4721_v30  ;;  %v4771_v58 = vmul.f32 %v4769_v54, %v4722_v27 }
0x10c9   : > { %v4825_v26 = vmul.f32 %v11059_v13, %v4777_v20  ;;  %v4824_v40 = vmul.f32 %v4811_v45, %v4776_v14  ;;  %v4822_v50 = vmul.f32 %v11061_v33, %v4774_v35  ;;  %v4823_v3 = vmul.f32 %v11094_v9, %v4775_v62 }
0x10ca   : > { %v4818_v46 = vmul.f32 %v4781_v49, %v4770_v11  ;;  %v4819_v36 = vmul.f32 %v11071_v63, %v4771_v58  ;;  %v4820_v16 = vmul.f32 %v11096_v31, %v4772_v42  ;;  %v4821_v25 = vmul.f32 %v4796_v60, %v4773_v41  ;;  %v5087_v31 = vpop.f32.mrf.mxu1 }
0x10cb   : > { %v4873_v17 = vadd.f32 %v4864_v57, %v4825_v26  ;;  %v4872_v32 = vadd.f32 %v11092_v61, %v4824_v40  ;;  %v4870_v39 = vadd.f32 %v4849_v12, %v4822_v50  ;;  %v4871_v13 = vadd.f32 %v11063_v2, %v4823_v3  ;;  %v6832_v61 = vld [vmem:[%s11745_s14] sm:$0xff]  ;;  %v6833_v2 = vld [vmem:[%s11745_s14 + $0x8] sm:$0xff] }
0x10cc   : > { %v4866_v6 = vadd.f32 %v11100_v19, %v4818_v46  ;;  %v4867_v30 = vadd.f32 %v4834_v53, %v4819_v36  ;;  %v4868_v45 = vadd.f32 %v11068_v28, %v4820_v16  ;;  %v4869_v63 = vadd.f32 %v11098_v1, %v4821_v25  ;;  %v6834_v1 = vld [vmem:[%s11745_s14 + $0x10] sm:$0xff]  ;;  %v6835_v19 = vld [vmem:[%s11745_s14 + $0x18] sm:$0xff] }
0x10cd   : > { %v4893_v27 = vpack.c.bf16 %v4873_v17, %v4872_v32  ;;  %v4892_v9 = vpack.c.bf16 %v4871_v13, %v4870_v39  ;;  %v5091_v51 = vpack.c.bf16 %v5087_v31, %v5087_v31 }
0x10ce   : > { %v4890_v33 = vpack.c.bf16 %v4867_v30, %v4866_v6  ;;  %v4891_v55 = vpack.c.bf16 %v4869_v63, %v4868_v45 }
0x10cf   : > { %4962 = vmatpush.bf16.msrb.mxu0 %v4893_v27 }
0x10d2   : > { %v5089_v28 = vpop.f32.mrf.mxu1 }
0x10d3   : > { %4963 = vmatpush.bf16.msrb.mxu0 %v4892_v9 }
0x10d7   : > { %4964 = vmatpush.bf16.msrb.mxu0 %v4891_v55 }
0x10db   : > { %4965 = vmatpush.bf16.msrb.mxu0 %v4890_v33 }
0x10de   : > { %6607 = vmatmul.msk.bf16.vlgmr.msrb.gmra.mxu0 %vm4378_vm1, %v6832_v61 }
0x10ee   : > { %6608 = vmatmul.msk.bf16.gmra.mxu0 %vm4378_vm1, %v6833_v2 }
0x10fe   : > { %6609 = vmatmul.msk.bf16.gmra.mxu0 %vm4378_vm1, %v6834_v1 }
0x110e   : > { %6610 = vmatmul.msk.bf16.gmra.mxu0 %vm4378_vm1, %v6835_v19 }
0x111e   : > { %6611 = vmatmul.msk.bf16.gmra.mxu0 %vm4378_vm1, %v6836_v18 }
0x112e   : > { %6612 = vmatmul.msk.bf16.gmra.mxu0 %vm4378_vm1, %v6837_v37 }
0x113e   : > { %6613 = vmatmul.msk.bf16.gmra.mxu0 %vm4378_vm1, %v6838_v52  ;;  %v6673_v52 = vld [vmem:[%s11747_s16 + $0x8] sm:$0xf0] }
0x114e   : > { %6614 = vmatmul.msk.bf16.gmra.mxu0 %vm4378_vm1, %v6839_v48 }
0x115b   : > { %v4967_v10 = vpop.f32.mrf.mxu0 }
0x1163   : > { %v4969_v57 = vpop.f32.mrf.mxu0 }
0x1164   : > { %v11205_v29 = vpack.c.bf16 %v4969_v57, %v4967_v10  ;;  %v6858_v57 = vld [vmem:[%s11747_s16 + $0x34] sm:$0xf] }
0x116b   : > { %v4972_v5 = vpop.f32.mrf.mxu0 }
0x1173   : > { %v4974_v47 = vpop.f32.mrf.mxu0 }
0x1174   : > { %v11202_v60 = vpack.c.bf16 %v4974_v47, %v4972_v5  ;;  %v6697_v5 = vld [vmem:[%s11747_s16 + $0x38] sm:$0xf0] }
0x1175   : > { %v11242_v47 = vor.u32 %v6858_v57, %v6697_v5  ;;  %v11398_v5 = vld [vmem:[%s11748_s17 + $0x18] sm:$0xff] }
0x117b   : > { %v4977_v4 = vpop.f32.mrf.mxu0 }
0x1183   : > { %v4979_v22 = vpop.f32.mrf.mxu0 }
0x1184   : > { %v11199_v8 = vpack.c.bf16 %v4979_v22, %v4977_v4  ;;  %v6856_v4 = vld [vmem:[%s11747_s16 + $0x24] sm:$0xf]  ;;  %v6689_v22 = vld [vmem:[%s11747_s16 + $0x28] sm:$0xf0] }
0x1185   : > { %v11251_v18 = vor.u32 %v6856_v4, %v6689_v22  ;;  %v6911_v4 = vld [vmem:[%s11740_s9 + $0x5] ss:$0 sm:$0xff] }
0x1186   : > { %5342 = vrot.lane.b32.xlu2 %v6911_v4, %s7102_s0 }
0x118b   : > { %v4982_v12 = vpop.f32.mrf.mxu0 }
0x1193   : > { %v4984_v34 = vpop.f32.mrf.mxu0 }
0x1194   : > { %v11195_v56 = vpack.c.bf16 %v4984_v34, %v4982_v12  ;;  %v6854_v12 = vld [vmem:[%s11747_s16 + $0x14] sm:$0xf]  ;;  %v6681_v34 = vld [vmem:[%s11747_s16 + $0x18] sm:$0xf0] }
0x1195   : > { %v11260_v37 = vor.u32 %v6854_v12, %v6681_v34  ;;  %v11409_v12 = vld [vmem:[%s11748_s17 + $0x10] sm:$0xff] }
0x1196   : > { %5103 = vmatpush.bf16.msrb.mxu2 %v11195_v56 }
0x119a   : > { %5104 = vmatpush.bf16.msrb.mxu2 %v11199_v8 }
0x119b   : > { %v4987_v49 = vpop.f32.mrf.mxu0 }
0x119e   : > { %5105 = vmatpush.bf16.msrb.mxu2 %v11202_v60 }
0x11a2   : > { %5106 = vmatpush.bf16.msrb.mxu2 %v11205_v29 }
0x11a3   : > { %v4989_v43 = vpop.f32.mrf.mxu0 }
0x11a4   : > { %v5139_v14 = vpack.c.bf16 %v4989_v43, %v4987_v49 }
0x11a5   : > { %6633 = vmatmul.msk.bf16.vlgmr.msrb.gmra.mxu2 %vm4378_vm1, %v5091_v51  ;;  %v6852_v51 = vld [vmem:[%s11747_s16 + $0x4] sm:$0xf] }
0x11a6   : > { %v11233_v10 = vsel %vm4378_vm1, %v5139_v14, 0  ;;  %v11269_v48 = vor.u32 %v6852_v51, %v6673_v52  ;;  %v6859_v14 = vld [vmem:[%s11747_s16 + $0x34] sm:$0xf0]  ;;  %v11415_v51 = vld [vmem:[%s11748_s17 + $0x8] sm:$0xff]  ;;  %v11421_v52 = vld [vmem:[%s11748_s17] sm:$0xff] }
0x11ab   : > { %v4992_v44 = vpop.f32.mrf.mxu0 }
0x11b3   : > { %v4994_v35 = vpop.f32.mrf.mxu0 }
0x11b4   : > { %v5140_v31 = vpack.c.bf16 %v4994_v35, %v4992_v44  ;;  %v6661_v35 = vld [vmem:[%s11746_s15 + $0x30] sm:$0xf] }
0x11b6   : > { %v11229_v19 = vsel %vm4378_vm1, %v5140_v31, 0  ;;  %v6844_v31 = vld [vmem:[%s11746_s15 + $0x4] sm:$0xf] }
0x11bb   : > { %v4997_v40 = vpop.f32.mrf.mxu0 }
0x11c3   : > { %v4999_v53 = vpop.f32.mrf.mxu0 }
0x11c4   : > { %v5141_v63 = vpack.c.bf16 %v4999_v53, %v4997_v40 }
0x11c6   : > { %v11224_v55 = vsel %vm4378_vm1, %v5141_v63, 0 }
0x11cb   : > { %v5002_v32 = vpop.f32.mrf.mxu0 }
0x11d3   : > { %v5004_v13 = vpop.f32.mrf.mxu0 }
0x11d4   : > { %v5142_v25 = vpack.c.bf16 %v5004_v13, %v5002_v32  ;;  %v6845_v32 = vld [vmem:[%s11746_s15 + $0x4] sm:$0xf0]  ;;  %v6655_v13 = vld [vmem:[%s11746_s15 + $0x28] sm:$0xf0] }
0x11d6   : > { %v11220_v9 = vsel %vm4378_vm1, %v5142_v25, 0 }
0x11d7   : > { %5162 = vmatpush.bf16.xpose.msrb.mxu1 %v11220_v9 }
0x11df   : > { %5163 = vmatpush.bf16.xpose.msrb.mxu1 %v11224_v55 }
0x11e7   : > { %5164 = vmatpush.bf16.xpose.msrb.mxu1 %v11229_v19 }
0x11ef   : > { %5165 = vmatpush.bf16.xpose.msrb.mxu1 %v11233_v10 }
0x11f7   : > { %5318 = vmatpush.bf16.msra.mxu1 %v11242_v47 }
0x11fb   : > { %5319 = vmatpush.bf16.msra.mxu1 %v11251_v18 }
0x11ff   : > { %5320 = vmatpush.bf16.msra.mxu1 %v11260_v37 }
0x1203   : > { %5321 = vmatpush.bf16.msra.mxu1 %v11269_v48 }
0x1228   : > { %v5108_v54 = vpop.f32.mrf.mxu2 }
0x1229   : > { %v5112_v20 = vmul.f32 0.125, %v5108_v54 }
0x122b   : > { %v5113_v62 = vsel %vm5011_vm11, %v5112_v20, -inf }
0x122c   : > { %v5114_v42 = vrot.slane %v5113_v62, 4 }
0x122e   : > { %v5115_v41 = vmax.f32 %v5113_v62, %v5114_v42 }
0x1230   : > { %v5116_v11 = vrot.slane %v5115_v41, 2  ;;  %v5110_v58 = vpop.f32.mrf.mxu2 }
0x1231   : > { %v5257_v58 = vpack.c.bf16 %v11041_v0, %v11041_v0 }
0x1232   : > { %v5117_v26 = vmax.f32 %v5115_v41, %v5116_v11  ;;  %v6653_v41 = vld [vmem:[%s11746_s15 + $0x20] sm:$0xf]  ;;  %v6849_v11 = vld [vmem:[%s11746_s15 + $0x24] sm:$0xf0] }
0x1233   : > { %v11311_v40 = vor.u32 %v6849_v11, %v6653_v41  ;;  %v11438_v41 = vld [vmem:[%s11740_s9 + $0x7] ss:$0 sm:$0xff] }
0x1234   : > { %v5118_v50 = vrot.slane %v5117_v26, 1 }
0x1236   : > { %v5119_v3 = vmax.f32 %v5117_v26, %v5118_v50  ;;  %v6679_v50 = vld [vmem:[%s11747_s16 + $0x10] sm:$0xf] }
0x1238   : > { %v5120_v46 = vsub.f32 %v5112_v20, %v5119_v3  ;;  %v6695_v20 = vld [vmem:[%s11747_s16 + $0x30] sm:$0xf] }
0x1239   : > { %v11285_v62 = vor.u32 %v6859_v14, %v6695_v20  ;;  %v6645_v3 = vld [vmem:[%s11746_s15 + $0x10] sm:$0xf]  ;;  %v11432_v20 = vld [vmem:[%s11740_s9 + $0x4] ss:$0 sm:$0xff] }
0x123a   : > { %v5121_v36 = vmul.f32 1.442695, %v5120_v46  ;;  %v6847_v46 = vld [vmem:[%s11746_s15 + $0x14] sm:$0xf0] }
0x123b   : > { %5305 = vmatpush.bf16.msrb.mxu3 %v11285_v62  ;;  %v11331_v53 = vor.u32 %v6847_v46, %v6645_v3 }
0x123c   : > { %7027 = vpow2.f32 %v5121_v36 }
0x1242   : > { %v7028_v17 = vpop.eup %7027 }
0x1243   : > { %v5123_v16 = vsel %vm5011_vm11, %v7028_v17, 0.0 }
0x1244   : > { %v5124_v6 = vrot.slane %v5123_v16, 4 }
0x1246   : > { %v5125_v30 = vadd.f32 %v5124_v6, %v5123_v16  ;;  %v6850_v16 = vld [vmem:[%s11746_s15 + $0x34] sm:$0xf]  ;;  %v6663_v6 = vld [vmem:[%s11746_s15 + $0x38] sm:$0xf0] }
0x1248   : > { %v5126_v27 = vrot.slane %v5125_v30, 2 }
0x124a   : > { %v5127_v39 = vadd.f32 %v5126_v27, %v5125_v30  ;;  %v11349_v27 = vor.u32 %v6850_v16, %v6663_v6 }
0x124c   : > { %v5128_v33 = vrot.slane %v5127_v39, 1 }
0x124e   : > { %v5129_v45 = vadd.f32 %v5128_v33, %v5127_v39  ;;  %v6848_v39 = vld [vmem:[%s11746_s15 + $0x24] sm:$0xf]  ;;  %v6671_v33 = vld [vmem:[%s11747_s16] sm:$0xf] }
0x124f   : > { %v11360_v25 = vor.u32 %v6848_v39, %v6655_v13  ;;  %v11448_v13 = vpop.permute.xlu2 %5342 }
0x1250   : > { %7029 = vrcp.f32 %v5129_v45  ;;  %v6853_v45 = vld [vmem:[%s11747_s16 + $0x4] sm:$0xf0] }
0x1251   : > { %v11373_v63 = vor.u32 %v6853_v45, %v6671_v33 }
0x1256   : > { %v7030_v61 = vpop.eup %7029 }
0x1257   : > { %v5131_v2 = vmul.f32 %v7030_v61, %v7028_v17  ;;  %v6637_v17 = vld [vmem:[%s11746_s15] sm:$0xf]  ;;  %v6647_v61 = vld [vmem:[%s11746_s15 + $0x18] sm:$0xf0] }
0x1258   : > { %v11347_v30 = vor.u32 %v6845_v32, %v6637_v17 }
0x1259   : > { %v5132_v28 = vadd.f32 1e-08, %v5131_v2 }
0x125b   : > { %v5133_v1 = vsel %vm5011_vm11, %v5132_v28, 0.0 }
0x125c   : > { %5134 = vadd.xlane.f32.xlu1 %v5133_v1 }
0x1275   : > { %5372 = vrot.lane.b32.xlu1 %v11041_v0, %s7102_s0  ;;  %v6846_v0 = vld [vmem:[%s11746_s15 + $0x14] sm:$0xf] }
0x1276   : > { %v11383_v2 = vor.u32 %v6846_v0, %v6647_v61 }
0x12cf   : > { %v5135_v49 = vpop.xlane.xlu1 %5134 }
0x12d0   : > { %7031 = vrcp.f32 %v5135_v49 }
0x12d6   : > { %v7032_v43 = vpop.eup %7031 }
0x12d7   : > { %v5137_v44 = vmul.f32 %v7032_v43, %v5132_v28  ;;  %v6639_v28 = vld [vmem:[%s11746_s15 + $0x8] sm:$0xf0] }
0x12d8   : > { %v11392_v1 = vor.u32 %v6844_v31, %v6639_v28 }
0x12d9   : > { %v5138_v54 = vpack.c.bf16 %v5137_v44, %v5137_v44 }
0x12db   : > { %6634 = vmatmul.msk.bf16.vlgmr.msrb.gmra.mxu1 %vm4378_vm1, %v5138_v54 }
0x12dc   : > { %5620 = vmatpush.bf16.msrb.mxu1 %v11106_v21  ;;  %v6851_v21 = vld [vmem:[%s11746_s15 + $0x34] sm:$0xf0] }
0x12dd   : > { %v11296_v42 = vor.u32 %v6851_v21, %v6661_v35 }
0x12df   : > { %5227 = vmatpush.bf16.msra.mxu2 %v11296_v42 }
0x12e0   : > { %5621 = vmatpush.bf16.msrb.mxu1 %v11112_v59  ;;  %v6687_v59 = vld [vmem:[%s11747_s16 + $0x20] sm:$0xf] }
0x12e3   : > { %5228 = vmatpush.bf16.msra.mxu2 %v11311_v40 }
0x12e4   : > { %5622 = vmatpush.bf16.msrb.mxu1 %v11118_v38  ;;  %v6857_v38 = vld [vmem:[%s11747_s16 + $0x24] sm:$0xf0] }
0x12e5   : > { %v11307_v26 = vor.u32 %v6857_v38, %v6687_v59 }
0x12e7   : > { %5306 = vmatpush.bf16.msrb.mxu3 %v11307_v26  ;;  %5229 = vmatpush.bf16.msra.mxu2 %v11331_v53  ;;  %v5373_v28 = vpop.permute.xlu1 %5372 }
0x12e8   : > { %5623 = vmatpush.bf16.msrb.mxu1 %v11135_v7  ;;  %v6855_v7 = vld [vmem:[%s11747_s16 + $0x14] sm:$0xf0] }
0x12e9   : > { %v11327_v36 = vor.u32 %v6855_v7, %v6679_v50 }
0x12eb   : > { %6702 = vmatmul.msk.bf16.vlgmr.msra.gmra.mxu1 %vm4378_vm1, %v5257_v58  ;;  %5307 = vmatpush.bf16.msrb.mxu3 %v11327_v36 }
0x12ec   : > { %5680 = vmatpush.bf16.xpose.msra.mxu1 %v11220_v9  ;;  %5230 = vmatpush.bf16.msra.mxu2 %v11347_v30 }
0x12ef   : > { %5308 = vmatpush.bf16.msrb.mxu3 %v11373_v63 }
0x12f0   : > { %5240 = vmatpush.bf16.msrb.mxu2 %v11349_v27 }
0x12f2   : > { %6701 = vmatmul.msk.bf16.vlgmr.msrb.gmra.mxu3 %vm4378_vm1, %v5257_v58  ;;  %v11443_v58 = vld [vmem:[%s11740_s9 + $0x6] ss:$0 sm:$0xff] }
0x12f4   : > { %5681 = vmatpush.bf16.xpose.msra.mxu1 %v11224_v55  ;;  %5241 = vmatpush.bf16.msrb.mxu2 %v11360_v25 }
0x12f8   : > { %5242 = vmatpush.bf16.msrb.mxu2 %v11383_v2 }
0x12fc   : > { %5682 = vmatpush.bf16.xpose.msra.mxu1 %v11229_v19  ;;  %5243 = vmatpush.bf16.msrb.mxu2 %v11392_v1 }
0x1304   : > { %5683 = vmatpush.bf16.xpose.msra.mxu1 %v11233_v10 }
0x1358   : > { %v5167_v57 = vpop.f32.mrf.mxu1 }
0x1359   : > { %v5179_v22 = vpack.c.bf16 %v5167_v57, %v5167_v57 }
0x135b   : > { %6667 = vmatmul.msk.bf16.vlgmr.msra.gmra.mxu2 %vm4378_vm1, %v5179_v22 }
0x135c   : > { %5470 = vmatpush.bf16.msra.mxu2 %v11398_v5 }
0x1360   : > { %v5169_v34 = vpop.f32.mrf.mxu1  ;;  %5471 = vmatpush.bf16.msra.mxu2 %v11409_v12 }
0x1364   : > { %5472 = vmatpush.bf16.msra.mxu2 %v11415_v51 }
0x1368   : > { %5473 = vmatpush.bf16.msra.mxu2 %v11421_v52  ;;  %v5323_v44 = vpop.f32.mrf.mxu1 }
0x1369   : > { %v5361_v3 = vadd.f32 %v11438_v41, %v5323_v44 }
0x136b   : > { %6668 = vmatmul.msk.bf16.vlgmr.msrb.gmra.mxu2 %vm4378_vm1, %v5179_v22 }
0x136c   : > { %5637 = vmatpush.bf16.msrb.mxu2 %v11195_v56 }
0x1370   : > { %5638 = vmatpush.bf16.msrb.mxu2 %v11199_v8  ;;  %v5325_v54 = vpop.f32.mrf.mxu1 }
0x1374   : > { %5639 = vmatpush.bf16.msrb.mxu2 %v11202_v60 }
0x1375   : > { %v5310_v49 = vpop.f32.mrf.mxu3 }
0x1378   : > { %5640 = vmatpush.bf16.msrb.mxu2 %v11205_v29 }
0x137d   : > { %v5312_v43 = vpop.f32.mrf.mxu3 }
0x13de   : > { %v5232_v14 = vpop.f32.mrf.mxu2 }
0x13df   : > { %v5327_v35 = vadd.f32 %v5310_v49, %v5232_v14 }
0x13e1   : > { %v5333_v21 = vadd.f32 %v11432_v20, %v5327_v35  ;;  %v5345_v33 = vadd.f32 %v11448_v13, %v5327_v35 }
0x13e3   : > { %v5334_v59 = vmul.f32 0.5, %v5333_v21  ;;  %v5346_v45 = vmul.f32 0.5, %v5345_v33 }
0x13e5   : > { %7033 = vtanh.f32 %v5334_v59  ;;  %v6915_v59 = vld [vmem:[%s11740_s9 + $0x2] ss:$0 sm:$0xff] }
0x13e6   : > { %v5234_v38 = vpop.f32.mrf.mxu2 }
0x13e7   : > { %v6916_v38 = vld [vmem:[%s11740_s9 + $0x3] ss:$0 sm:$0xff] }
0x13eb   : > { %v7034_v11 = vpop.eup %7033 }
0x13ec   : > { %v5336_v50 = vadd.f32 1.0, %v7034_v11 }
0x13ee   : > { %v5337_v46 = vmul.f32 0.5, %v5336_v50  ;;  %v5245_v7 = vpop.f32.mrf.mxu2 }
0x13ef   : > { %v5355_v17 = vadd.f32 %v11443_v58, %v5245_v7 }
0x13f0   : > { %v5362_v32 = vmul.f32 %v5361_v3, %v5337_v46 }
0x13f2   : > { %v5363_v16 = vadd.f32 %v5362_v32, %v5355_v17 }
0x13f4   : > { %7035 = vtanh.f32 %v5363_v16 }
0x13f5   : > { %7037 = vtanh.f32 %v5346_v45 }
0x13f6   : > { %v5247_v6 = vpop.f32.mrf.mxu2 }
0x13fa   : > { %v7036_v39 = vpop.eup %7035 }
0x13fb   : > { %5367 = vrot.lane.b32.xlu0 %v7036_v39, %s7102_s0  ;;  %v7038_v0 = vpop.eup %7037 }
0x13fc   : > { %v5348_v61 = vadd.f32 1.0, %v7038_v0 }
0x13fe   : > { %v5349_v31 = vmul.f32 0.5, %v5348_v61 }
0x1400   : > { %v5365_v57 = vsub.f32 1.0, %v5349_v31  ;;  %v5375_v22 = vmul.f32 %v5373_v28, %v5349_v31 }
0x146d   : > { %v5368_v4 = vpop.permute.xlu0 %5367 }
0x146e   : > { %v5370_v34 = vmul.f32 %v5368_v4, %v5365_v57 }
0x1470   : > { %v11451_v49 = vadd.f32 %v5375_v22, %v5370_v34  ;;  %v11479_v22 = vld [vmem:[%s12110_s28 + $0x38] sm:$0xff]  ;;  %v11485_v34 = vld [vmem:[%s12110_s28 + $0x30] sm:$0xff] }
0x1471   : > { %5545 = vmatpush.bf16.msra.mxu3 %v11479_v22  ;;  %5830 = vmatpush.bf16.msra.mxu0 %v11479_v22 }
0x1472   : > { %5382 = vrot.lane.b32.xlu2 %v11451_v49, %s7102_s0 }
0x1475   : > { %5546 = vmatpush.bf16.msra.mxu3 %v11485_v34  ;;  %5831 = vmatpush.bf16.msra.mxu0 %v11485_v34 }
0x14cc   : > { %v5383_v43 = vpop.permute.xlu2 %5382 }
0x14cd   : > { %v5385_v44 = vsel %vm5011_vm11, %v5383_v43, 0.0  ;;  %v11492_v43 = vld [vmem:[%s12110_s28 + $0x28] sm:$0xff] }
0x14ce   : > { %5386 = vadd.xlane.f32.xlu0 %v5385_v44  ;;  %5547 = vmatpush.bf16.msra.mxu3 %v11492_v43  ;;  %v11499_v44 = vld [vmem:[%s12110_s28 + $0x20] sm:$0xff] }
0x14cf   : > { %5832 = vmatpush.bf16.msra.mxu0 %v11492_v43 }
0x14d2   : > { %5548 = vmatpush.bf16.msra.mxu3 %v11499_v44 }
0x14d3   : > { %5833 = vmatpush.bf16.msra.mxu0 %v11499_v44 }
0x1541   : > { %v5387_v54 = vpop.xlane.xlu0 %5386 }
0x1542   : > { %v5388_v14 = vmul.f32 %v5387_v54, %v11077_v15  ;;  %v11506_v54 = vld [vmem:[%s12110_s28 + $0x18] sm:$0xff] }
0x1543   : > { %5549 = vmatpush.bf16.msra.mxu3 %v11506_v54  ;;  %5834 = vmatpush.bf16.msra.mxu0 %v11506_v54 }
0x1544   : > { %v5389_v35 = vsub.f32 %v11451_v49, %v5388_v14  ;;  %v11513_v14 = vld [vmem:[%s12110_s28 + $0x10] sm:$0xff] }
0x1546   : > { %v5390_v21 = vmul.f32 %v5389_v35, %v5389_v35 }
0x1547   : > { %5550 = vmatpush.bf16.msra.mxu3 %v11513_v14  ;;  %5835 = vmatpush.bf16.msra.mxu0 %v11513_v14 }
0x1548   : > { %5392 = vrot.lane.b32.xlu2 %v5390_v21, %s7102_s0  ;;  %v11526_v21 = vld [vmem:[%s12110_s28 + $0x8] sm:$0xff] }
0x154b   : > { %5551 = vmatpush.bf16.msra.mxu3 %v11526_v21  ;;  %5836 = vmatpush.bf16.msra.mxu0 %v11526_v21 }
0x1550   : > { %5413 = vrot.lane.b32.xlu2 %v6915_v59, %s7102_s0  ;;  %v11533_v59 = vld [vmem:[%s12110_s28] sm:$0xff] }
0x1551   : > { %5552 = vmatpush.bf16.msra.mxu3 %v11533_v59  ;;  %5837 = vmatpush.bf16.msra.mxu0 %v11533_v59 }
0x1555   : > { %5710 = vmatpush.bf16.msrb.mxu3 %v11349_v27  ;;  %6002 = vmatpush.bf16.msrb.mxu0 %v11285_v62 }
0x1558   : > { %5419 = vrot.lane.b32.xlu2 %v6916_v38, %s7102_s0  ;;  %v6918_v38 = vld [vmem:[%s11740_s9 + $0x8] ss:$0 sm:$0xff] }
0x1559   : > { %5567 = vrot.lane.b32.xlu0 %v6918_v38, %s7102_s0  ;;  %5711 = vmatpush.bf16.msrb.mxu3 %v11360_v25 }
0x155a   : > { %6003 = vmatpush.bf16.msrb.mxu0 %v11307_v26 }
0x155d   : > { %5712 = vmatpush.bf16.msrb.mxu3 %v11383_v2 }
0x155e   : > { %6004 = vmatpush.bf16.msrb.mxu0 %v11327_v36 }
0x1561   : > { %5601 = vrot.lane.b32.xlu0 %v11123_v23, %s7102_s0  ;;  %5713 = vmatpush.bf16.msrb.mxu3 %v11392_v1 }
0x1562   : > { %6005 = vmatpush.bf16.msrb.mxu0 %v11373_v63 }
0x15a2   : > { %v5393_v11 = vpop.permute.xlu2 %5392 }
0x15a3   : > { %v5395_v50 = vsel %vm5011_vm11, %v5393_v11, 0.0  ;;  %v11554_v11 = vld [vmem:[%s12111_s3] ss:$0 sm:$0xff] }
0x15a4   : > { %5396 = vadd.xlane.f32.xlu1 %v5395_v50 }
0x15aa   : > { %v11469_v6 = vpop.permute.xlu2 %5413 }
0x15b2   : > { %v11471_v31 = vpop.permute.xlu2 %5419 }
0x1617   : > { %v5397_v3 = vpop.xlane.xlu1 %5396 }
0x1618   : > { %v5398_v46 = vmul.f32 %v5397_v3, %v11077_v15 }
0x161a   : > { %v5399_v7 = vadd.f32 1e-05, %v5398_v46 }
0x161c   : > { %7039 = vrsqrt.f32 %v5399_v7  ;;  %vm5406_vm7 = vweird.f32 %v5399_v7 }
0x1622   : > { %v7040_v17 = vpop.eup %7039 }
0x1623   : > { %v5401_v32 = vmul.f32 %v7040_v17, %v5399_v7  ;;  %vm5407_vm6 = vweird.f32 %v7040_v17 }
0x1624   : > { %vm5408_vm0 = vmor %vm5406_vm7, %vm5407_vm6 }
0x1625   : > { %v5402_v16 = vmul.f32 %v7040_v17, %v5401_v32 }
0x1627   : > { %v5403_v39 = vmul.f32 0.5, %v5402_v16 }
0x1629   : > { %v5404_v33 = vsub.f32 1.5, %v5403_v39  ;;  %v11562_v39 = vpop.permute.xlu0 %5567 }
0x162b   : > { %v5405_v45 = vmul.f32 %v7040_v17, %v5404_v33 }
0x162d   : > { %v5409_v0 = vsel %vm5408_vm0, %v7040_v17, %v5405_v45 }
0x162e   : > { %v5410_v61 = vmul.f32 %v5409_v0, %v5389_v35 }
0x1630   : > { %v5416_v28 = vmul.f32 %v11469_v6, %v5410_v61 }
0x1632   : > { %v5422_v57 = vadd.f32 %v11471_v31, %v5416_v28 }
0x1634   : > { %v5431_v4 = vpack.c.bf16 %v5422_v57, %v5422_v57 }
0x1636   : > { %5437 = vrot.lane.b32.xlu2 %v5431_v4, %s7102_s0 }
0x1690   : > { %v5438_v35 = vpop.permute.xlu2 %5437 }
0x1691   : > { %6725 = vmatmul.msk.bf16.vlgmr.msra.gmra.mxu2 %vm4378_vm1, %v5438_v35 }
0x1692   : > { %5697 = vmatpush.bf16.msra.mxu2 %v11296_v42 }
0x1696   : > { %5698 = vmatpush.bf16.msra.mxu2 %v11311_v40 }
0x169a   : > { %5699 = vmatpush.bf16.msra.mxu2 %v11331_v53 }
0x169e   : > { %5700 = vmatpush.bf16.msra.mxu2 %v11347_v30 }
0x1714   : > { %v5475_v50 = vpop.f32.mrf.mxu2 }
0x1715   : > { %v5476_v3 = vadd.f32 %v11554_v11, %v5475_v50 }
0x1717   : > { %v5479_v46 = vmax.f32 %v5476_v3, 0.0 }
0x1719   : > { %v5496_v7 = vpack.c.bf16 %v5479_v46, %v5479_v46 }
0x171b   : > { %5553 = vmatmul.bf16.vlgmr.msra.gmra.mxu3 %v5496_v7 }
0x171c   : > { %v5477_v17 = vpop.f32.mrf.mxu2  ;;  %5743 = vmatpush.bf16.msra.mxu3 %v11242_v47 }
0x1720   : > { %5744 = vmatpush.bf16.msra.mxu3 %v11251_v18 }
0x1724   : > { %5745 = vmatpush.bf16.msra.mxu3 %v11260_v37 }
0x1728   : > { %5746 = vmatpush.bf16.msra.mxu3 %v11269_v48 }
0x179e   : > { %v5554_v23 = vpop.f32.mrf.mxu3 }
0x179f   : > { %5559 = vrot.lane.b32.xlu2 %v5554_v23, %s7102_s0 }
0x17a6   : > { %v5556_v32 = vpop.f32.mrf.mxu3 }
0x17f9   : > { %v5560_v16 = vpop.permute.xlu2 %5559 }
0x17fa   : > { %v5562_v33 = vadd.f32 %v5560_v16, %v11451_v49 }
0x17fc   : > { %v11566_v45 = vadd.f32 %v11562_v39, %v5562_v33 }
0x17fe   : > { %5572 = vrot.lane.b32.xlu2 %v11566_v45, %s7102_s0  ;;  %v5719_v49 = vpack.c.bf16 %v11566_v45, %v11566_v45 }
0x1858   : > { %v5573_v0 = vpop.permute.xlu2 %5572 }
0x1859   : > { %v5575_v61 = vsel %vm5011_vm11, %v5573_v0, 0.0 }
0x185a   : > { %5576 = vadd.xlane.f32.xlu1 %v5575_v61  ;;  %v11581_v61 = vpop.permute.xlu0 %5601 }
0x18cd   : > { %v5577_v28 = vpop.xlane.xlu1 %5576 }
0x18ce   : > { %v5578_v57 = vmul.f32 %v5577_v28, %v11077_v15 }
0x18d0   : > { %v5579_v4 = vsub.f32 %v11566_v45, %v5578_v57 }
0x18d2   : > { %v5580_v35 = vmul.f32 %v5579_v4, %v5579_v4 }
0x18d4   : > { %5582 = vrot.lane.b32.xlu2 %v5580_v35, %s7102_s0 }
0x18dc   : > { %5605 = vrot.lane.b32.xlu2 %v11129_v24, %s7102_s0 }
0x18e4   : > { %5721 = vrot.lane.b32.xlu2 %v5719_v49, %s7102_s0 }
0x192e   : > { %v5583_v38 = vpop.permute.xlu2 %5582 }
0x192f   : > { %v5585_v50 = vsel %vm5011_vm11, %v5583_v38, 0.0 }
0x1930   : > { %5586 = vadd.xlane.f32.xlu1 %v5585_v50 }
0x1936   : > { %v11584_v35 = vpop.permute.xlu2 %5605 }
0x19a3   : > { %v5587_v3 = vpop.xlane.xlu1 %5586 }
0x19a4   : > { %v5588_v46 = vmul.f32 %v5587_v3, %v11077_v15 }
0x19a6   : > { %v5589_v7 = vadd.f32 1e-05, %v5588_v46 }
0x19a8   : > { %7041 = vrsqrt.f32 %v5589_v7  ;;  %vm5596_vm8 = vweird.f32 %v5589_v7 }
0x19ae   : > { %v7042_v17 = vpop.eup %7041 }
0x19af   : > { %v5591_v23 = vmul.f32 %v7042_v17, %v5589_v7  ;;  %vm5597_vm4 = vweird.f32 %v7042_v17 }
0x19b0   : > { %vm5598_vm9 = vmor %vm5596_vm8, %vm5597_vm4 }
0x19b1   : > { %v5592_v32 = vmul.f32 %v7042_v17, %v5591_v23 }
0x19b3   : > { %v5593_v16 = vmul.f32 0.5, %v5592_v32 }
0x19b5   : > { %v5594_v33 = vsub.f32 1.5, %v5593_v16 }
0x19b7   : > { %v5595_v24 = vmul.f32 %v7042_v17, %v5594_v33 }
0x19b9   : > { %v5599_v0 = vsel %vm5598_vm9, %v7042_v17, %v5595_v24 }
0x19ba   : > { %v5600_v28 = vmul.f32 %v5599_v0, %v5579_v4 }
0x19bc   : > { %v5604_v57 = vmul.f32 %v11581_v61, %v5600_v28 }
0x19be   : > { %v5608_v49 = vadd.f32 %v11584_v35, %v5604_v57 }
0x19c0   : > { %v5609_v38 = vpack.c.bf16 %v5608_v49, %v5608_v49 }
0x19c2   : > { %5611 = vrot.lane.b32.xlu1 %v5609_v38, %s7102_s0 }
0x1a34   : > { %v5612_v50 = vpop.permute.xlu1 %5611 }
0x1a35   : > { %6759 = vmatmul.msk.bf16.vlgmr.msrb.gmra.mxu1 %vm4378_vm1, %v5612_v50 }
0x1a36   : > { %5819 = vmatpush.bf16.msrb.mxu1 %v11398_v5 }
0x1a3a   : > { %5820 = vmatpush.bf16.msrb.mxu1 %v11409_v12 }
0x1a3e   : > { %5821 = vmatpush.bf16.msrb.mxu1 %v11415_v51 }
0x1a42   : > { %5822 = vmatpush.bf16.msrb.mxu1 %v11421_v52 }
0x1ab2   : > { %v5625_v4 = vpop.f32.mrf.mxu1 }
0x1ab3   : > { %v5629_v3 = vpack.c.bf16 %v5625_v4, %v5625_v4 }
0x1ab5   : > { %6760 = vmatmul.msk.bf16.vlgmr.msrb.gmra.mxu2 %vm4378_vm1, %v5629_v3 }
0x1ab6   : > { %5730 = vmatpush.bf16.msrb.mxu2 %v11285_v62 }
0x1aba   : > { %v5627_v46 = vpop.f32.mrf.mxu1  ;;  %5731 = vmatpush.bf16.msrb.mxu2 %v11307_v26 }
0x1abe   : > { %5732 = vmatpush.bf16.msrb.mxu2 %v11327_v36 }
0x1ac2   : > { %5733 = vmatpush.bf16.msrb.mxu2 %v11373_v63 }
0x1b38   : > { %v5642_v7 = vpop.f32.mrf.mxu2 }
0x1b39   : > { %v5646_v17 = vmul.f32 0.125, %v5642_v7 }
0x1b3b   : > { %v5647_v23 = vsel %vm5011_vm11, %v5646_v17, -inf }
0x1b3c   : > { %v5648_v32 = vrot.slane %v5647_v23, 4 }
0x1b3e   : > { %v5649_v16 = vmax.f32 %v5647_v23, %v5648_v32 }
0x1b40   : > { %v5650_v33 = vrot.slane %v5649_v16, 2  ;;  %v5644_v24 = vpop.f32.mrf.mxu2 }
0x1b42   : > { %v5651_v0 = vmax.f32 %v5649_v16, %v5650_v33 }
0x1b44   : > { %v5652_v28 = vrot.slane %v5651_v0, 1 }
0x1b46   : > { %v5653_v57 = vmax.f32 %v5651_v0, %v5652_v28 }
0x1b48   : > { %v5654_v49 = vsub.f32 %v5646_v17, %v5653_v57 }
0x1b4a   : > { %v5655_v62 = vmul.f32 1.442695, %v5654_v49  ;;  %v7073_v49 = vld [vmem:[%s11744_s13 + $0x18] sm:$0xff] }
0x1b4c   : > { %7043 = vpow2.f32 %v5655_v62 }
0x1b52   : > { %v7044_v38 = vpop.eup %7043 }
0x1b53   : > { %v5657_v26 = vsel %vm5011_vm11, %v7044_v38, 0.0 }
0x1b54   : > { %v5658_v36 = vrot.slane %v5657_v26, 4 }
0x1b56   : > { %v5659_v50 = vadd.f32 %v5658_v36, %v5657_v26 }
0x1b58   : > { %v5660_v63 = vrot.slane %v5659_v50, 2 }
0x1b5a   : > { %v5661_v4 = vadd.f32 %v5660_v63, %v5659_v50 }
0x1b5c   : > { %v5662_v3 = vrot.slane %v5661_v4, 1 }
0x1b5e   : > { %v5663_v46 = vadd.f32 %v5662_v3, %v5661_v4 }
0x1b60   : > { %7045 = vrcp.f32 %v5663_v46 }
0x1b66   : > { %v7046_v7 = vpop.eup %7045 }
0x1b67   : > { %v5665_v23 = vmul.f32 %v7046_v7, %v7044_v38 }
0x1b69   : > { %v5666_v32 = vadd.f32 1e-08, %v5665_v23 }
0x1b6b   : > { %v5667_v16 = vsel %vm5011_vm11, %v5666_v32, 0.0 }
0x1b6c   : > { %5668 = vadd.xlane.f32.xlu0 %v5667_v16 }
0x1bdf   : > { %v5669_v33 = vpop.xlane.xlu0 %5668 }
0x1be0   : > { %7047 = vrcp.f32 %v5669_v33 }
0x1be6   : > { %v7048_v17 = vpop.eup %7047 }
0x1be7   : > { %v5671_v24 = vmul.f32 %v7048_v17, %v5666_v32 }
0x1be9   : > { %v5672_v0 = vpack.c.bf16 %v5671_v24, %v5671_v24 }
0x1beb   : > { %6761 = vmatmul.msk.bf16.vlgmr.msra.gmra.mxu1 %vm4378_vm1, %v5672_v0 }
0x1bec   : > { %5952 = vmatpush.bf16.xpose.msra.mxu1 %v11220_v9 }
0x1bf4   : > { %5953 = vmatpush.bf16.xpose.msra.mxu1 %v11224_v55  ;;  %v7074_v55 = vld [vmem:[%s11744_s13 + $0x10] sm:$0xff] }
0x1bfc   : > { %5954 = vmatpush.bf16.xpose.msra.mxu1 %v11229_v19  ;;  %v7075_v19 = vld [vmem:[%s11744_s13 + $0x8] sm:$0xff] }
0x1c04   : > { %5955 = vmatpush.bf16.xpose.msra.mxu1 %v11233_v10 }
0x1c68   : > { %v5685_v28 = vpop.f32.mrf.mxu1 }
0x1c69   : > { %v5689_v57 = vpack.c.bf16 %v5685_v28, %v5685_v28 }
0x1c6b   : > { %6762 = vmatmul.msk.bf16.vlgmr.msra.gmra.mxu2 %vm4378_vm1, %v5689_v57  ;;  %6763 = vmatmul.msk.bf16.vlgmr.msrb.gmra.mxu3 %vm4378_vm1, %v5689_v57 }
0x1c6c   : > { %5909 = vmatpush.bf16.msrb.mxu3 %v11195_v56  ;;  %5892 = vmatpush.bf16.msra.mxu2 %v7073_v49  ;;  %v7076_v56 = vld [vmem:[%s11744_s13] sm:$0xff] }
0x1c70   : > { %5910 = vmatpush.bf16.msrb.mxu3 %v11199_v8  ;;  %v5687_v9 = vpop.f32.mrf.mxu1  ;;  %5893 = vmatpush.bf16.msra.mxu2 %v7074_v55  ;;  %v5722_v8 = vpop.permute.xlu2 %5721 }
0x1c74   : > { %5911 = vmatpush.bf16.msrb.mxu3 %v11202_v60  ;;  %5894 = vmatpush.bf16.msra.mxu2 %v7075_v19 }
0x1c78   : > { %5912 = vmatpush.bf16.msrb.mxu3 %v11205_v29  ;;  %5895 = vmatpush.bf16.msra.mxu2 %v7076_v56 }
0x1c7b   : > { %6764 = vmatmul.msk.bf16.vlgmr.msrb.gmra.mxu2 %vm4378_vm1, %v5722_v8  ;;  %6765 = vmatmul.msk.bf16.vlgmr.msra.gmra.mxu3 %vm4378_vm1, %v5722_v8 }
0x1c7c   : > { %5969 = vmatpush.bf16.msrb.mxu2 %v11296_v42  ;;  %5982 = vmatpush.bf16.msra.mxu3 %v11349_v27 }
0x1c80   : > { %5970 = vmatpush.bf16.msrb.mxu2 %v11311_v40  ;;  %5983 = vmatpush.bf16.msra.mxu3 %v11360_v25 }
0x1c84   : > { %5971 = vmatpush.bf16.msrb.mxu2 %v11331_v53  ;;  %5984 = vmatpush.bf16.msra.mxu3 %v11383_v2 }
0x1c88   : > { %5972 = vmatpush.bf16.msrb.mxu2 %v11347_v30  ;;  %5985 = vmatpush.bf16.msra.mxu3 %v11392_v1 }
0x1cee   : > { %v5702_v60 = vpop.f32.mrf.mxu2  ;;  %v5715_v29 = vpop.f32.mrf.mxu3 }
0x1cef   : > { %v5763_v1 = vadd.f32 %v11443_v58, %v5715_v29 }
0x1cf6   : > { %v5704_v10 = vpop.f32.mrf.mxu2  ;;  %v5717_v62 = vpop.f32.mrf.mxu3 }
0x1cfe   : > { %v5735_v38 = vpop.f32.mrf.mxu2  ;;  %v5748_v42 = vpop.f32.mrf.mxu3 }
0x1cff   : > { %v5752_v26 = vadd.f32 %v5735_v38, %v5702_v60  ;;  %v5764_v30 = vadd.f32 %v11438_v41, %v5748_v42 }
0x1d01   : > { %v5753_v27 = vadd.f32 %v11432_v20, %v5752_v26  ;;  %v5758_v46 = vadd.f32 %v5752_v26, %v11448_v13 }
0x1d03   : > { %v5754_v40 = vmul.f32 0.5, %v5753_v27  ;;  %v5759_v7 = vmul.f32 0.5, %v5758_v46 }
0x1d05   : > { %7049 = vtanh.f32 %v5754_v40 }
0x1d06   : > { %v5737_v25 = vpop.f32.mrf.mxu2  ;;  %v5750_v36 = vpop.f32.mrf.mxu3 }
0x1d0b   : > { %v7050_v53 = vpop.eup %7049 }
0x1d0c   : > { %v5756_v50 = vadd.f32 1.0, %v7050_v53 }
0x1d0e   : > { %v5757_v2 = vmul.f32 0.5, %v5756_v50 }
0x1d10   : > { %v5765_v63 = vmul.f32 %v5764_v30, %v5757_v2 }
0x1d12   : > { %v5766_v4 = vadd.f32 %v5765_v63, %v5763_v1 }
0x1d14   : > { %7051 = vtanh.f32 %v5766_v4 }
0x1d15   : > { %7053 = vtanh.f32 %v5759_v7 }
0x1d1a   : > { %v7052_v3 = vpop.eup %7051 }
0x1d1b   : > { %5770 = vrot.lane.b32.xlu2 %v7052_v3, %s7102_s0  ;;  %v7054_v23 = vpop.eup %7053 }
0x1d1c   : > { %v5761_v32 = vadd.f32 1.0, %v7054_v23 }
0x1d1e   : > { %v5762_v16 = vmul.f32 0.5, %v5761_v32 }
0x1d20   : > { %v5768_v33 = vsub.f32 1.0, %v5762_v16  ;;  %v5774_v24 = vmul.f32 %v5762_v16, %v11566_v45 }
0x1d75   : > { %v5771_v17 = vpop.permute.xlu2 %5770 }
0x1d76   : > { %v5773_v0 = vmul.f32 %v5771_v17, %v5768_v33 }
0x1d78   : > { %v5775_v28 = vadd.f32 %v5774_v24, %v5773_v0 }
0x1d7a   : > { %5777 = vrot.lane.b32.xlu2 %v5775_v28, %s7102_s0 }
0x1dd4   : > { %v5778_v57 = vpop.permute.xlu2 %5777 }
0x1dd5   : > { %v5780_v49 = vsel %vm5011_vm11, %v5778_v57, 0.0 }
0x1dd6   : > { %5781 = vadd.xlane.f32.xlu1 %v5780_v49 }
0x1e49   : > { %v5782_v9 = vpop.xlane.xlu1 %5781 }
0x1e4a   : > { %v5783_v55 = vmul.f32 %v5782_v9, %v11077_v15 }
0x1e4c   : > { %v5784_v19 = vsub.f32 %v5775_v28, %v5783_v55 }
0x1e4e   : > { %v5785_v56 = vmul.f32 %v5784_v19, %v5784_v19 }
0x1e50   : > { %5787 = vrot.lane.b32.xlu2 %v5785_v56, %s7102_s0 }
0x1eaa   : > { %v5788_v8 = vpop.permute.xlu2 %5787 }
0x1eab   : > { %v5790_v60 = vsel %vm5011_vm11, %v5788_v8, 0.0 }
0x1eac   : > { %5791 = vadd.xlane.f32.xlu2 %v5790_v60 }
0x1f1f   : > { %v5792_v45 = vpop.xlane.xlu2 %5791 }
0x1f20   : > { %v5793_v29 = vmul.f32 %v5792_v45, %v11077_v15 }
0x1f22   : > { %v5794_v10 = vadd.f32 1e-05, %v5793_v29 }
0x1f24   : > { %7055 = vrsqrt.f32 %v5794_v10  ;;  %vm5801_vm12 = vweird.f32 %v5794_v10 }
0x1f2a   : > { %v7056_v62 = vpop.eup %7055 }
0x1f2b   : > { %v5796_v38 = vmul.f32 %v7056_v62, %v5794_v10  ;;  %vm5802_vm10 = vweird.f32 %v7056_v62 }
0x1f2c   : > { %vm5803_vm15 = vmor %vm5801_vm12, %vm5802_vm10 }
0x1f2d   : > { %v5797_v42 = vmul.f32 %v7056_v62, %v5796_v38 }
0x1f2f   : > { %v5798_v26 = vmul.f32 0.5, %v5797_v42 }
0x1f31   : > { %v5799_v27 = vsub.f32 1.5, %v5798_v26 }
0x1f33   : > { %v5800_v40 = vmul.f32 %v7056_v62, %v5799_v27 }
0x1f35   : > { %v5804_v25 = vsel %vm5803_vm15, %v7056_v62, %v5800_v40 }
0x1f36   : > { %v5805_v36 = vmul.f32 %v5804_v25, %v5784_v19 }
0x1f38   : > { %v5806_v53 = vmul.f32 %v5805_v36, %v11469_v6 }
0x1f3a   : > { %v5807_v50 = vadd.f32 %v5806_v53, %v11471_v31 }
0x1f3c   : > { %v5808_v2 = vpack.c.bf16 %v5807_v50, %v5807_v50 }
0x1f3e   : > { %5810 = vrot.lane.b32.xlu0 %v5808_v2, %s7102_s0 }
0x1fb0   : > { %v5811_v30 = vpop.permute.xlu0 %5810 }
0x1fb1   : > { %6766 = vmatmul.msk.bf16.vlgmr.msrb.gmra.mxu1 %vm4378_vm1, %v5811_v30 }
0x202e   : > { %v5824_v1 = vpop.f32.mrf.mxu1 }
0x202f   : > { %v5825_v63 = vadd.f32 %v11554_v11, %v5824_v1 }
0x2031   : > { %v5828_v4 = vmax.f32 %v5825_v63, 0.0 }
0x2033   : > { %v5829_v3 = vpack.c.bf16 %v5828_v4, %v5828_v4 }
0x2035   : > { %5838 = vmatmul.bf16.vlgmr.msra.gmra.mxu0 %v5829_v3 }
0x2036   : > { %v5826_v46 = vpop.f32.mrf.mxu1  ;;  %6102 = vmatpush.bf16.msra.mxu0 %v11479_v22 }
0x203a   : > { %6103 = vmatpush.bf16.msra.mxu0 %v11485_v34 }
0x203e   : > { %6104 = vmatpush.bf16.msra.mxu0 %v11492_v43 }
0x2042   : > { %6105 = vmatpush.bf16.msra.mxu0 %v11499_v44 }
0x2046   : > { %6106 = vmatpush.bf16.msra.mxu0 %v11506_v54 }
0x204a   : > { %6107 = vmatpush.bf16.msra.mxu0 %v11513_v14 }
0x204e   : > { %6108 = vmatpush.bf16.msra.mxu0 %v11526_v21 }
0x2052   : > { %6109 = vmatpush.bf16.msra.mxu0 %v11533_v59 }
0x20b2   : > { %v5839_v7 = vpop.f32.mrf.mxu0 }
0x20b3   : > { %5844 = vrot.lane.b32.xlu0 %v5839_v7, %s7102_s0 }
0x20ba   : > { %v5841_v23 = vpop.f32.mrf.mxu0 }
0x2125   : > { %v5845_v32 = vpop.permute.xlu0 %5844 }
0x2126   : > { %v5847_v22 = vadd.f32 %v5845_v32, %v5775_v28 }
0x2128   : > { %v11661_v34 = vadd.f32 %v5847_v22, %v11562_v39 }
0x212a   : > { %5850 = vrot.lane.b32.xlu1 %v11661_v34, %s7102_s0  ;;  %v5991_v54 = vpack.c.bf16 %v11661_v34, %v11661_v34 }
0x219c   : > { %v5851_v43 = vpop.permute.xlu1 %5850 }
0x219d   : > { %v5853_v44 = vsel %vm5011_vm11, %v5851_v43, 0.0 }
0x219e   : > { %5854 = vadd.xlane.f32.xlu0 %v5853_v44 }
0x21b2   : > { %5993 = vrot.lane.b32.xlu0 %v5991_v54, %s7102_s0 }
0x2211   : > { %v5855_v14 = vpop.xlane.xlu0 %5854 }
0x2212   : > { %v5856_v21 = vmul.f32 %v5855_v14, %v11077_v15 }
0x2214   : > { %v5857_v59 = vsub.f32 %v11661_v34, %v5856_v21 }
0x2216   : > { %v5858_v16 = vmul.f32 %v5857_v59, %v5857_v59 }
0x2218   : > { %5860 = vrot.lane.b32.xlu2 %v5858_v16, %s7102_s0 }
0x2224   : > { %v11672_v33 = vpop.permute.xlu0 %5993 }
0x2225   : > { %6772 = vmatmul.msk.bf16.vlgmr.msrb.gmra.mxu0 %vm4378_vm1, %v11672_v33 }
0x2272   : > { %v5861_v17 = vpop.permute.xlu2 %5860 }
0x2273   : > { %v5863_v24 = vsel %vm5011_vm11, %v5861_v17, 0.0 }
0x2274   : > { %5864 = vadd.xlane.f32.xlu1 %v5863_v24 }
0x22a2   : > { %v11677_v0 = vpop.f32.mrf.mxu0 }
0x22aa   : > { %v6009_v28 = vpop.f32.mrf.mxu0 }
0x22e7   : > { %v5865_v57 = vpop.xlane.xlu1 %5864 }
0x22e8   : > { %v5866_v49 = vmul.f32 %v5865_v57, %v11077_v15 }
0x22ea   : > { %v5867_v9 = vadd.f32 1e-05, %v5866_v49 }
0x22ec   : > { %7057 = vrsqrt.f32 %v5867_v9  ;;  %vm5874_vm14 = vweird.f32 %v5867_v9 }
0x22f2   : > { %v7058_v55 = vpop.eup %7057 }
0x22f3   : > { %v5869_v19 = vmul.f32 %v7058_v55, %v5867_v9  ;;  %vm5875_vm13 = vweird.f32 %v7058_v55 }
0x22f4   : > { %vm5876_vm3 = vmor %vm5874_vm14, %vm5875_vm13 }
0x22f5   : > { %v5870_v56 = vmul.f32 %v7058_v55, %v5869_v19 }
0x22f7   : > { %v5871_v8 = vmul.f32 0.5, %v5870_v56 }
0x22f9   : > { %v5872_v60 = vsub.f32 1.5, %v5871_v8 }
0x22fb   : > { %v5873_v45 = vmul.f32 %v7058_v55, %v5872_v60 }
0x22fd   : > { %v5877_v29 = vsel %vm5876_vm3, %v7058_v55, %v5873_v45 }
0x22fe   : > { %v5878_v10 = vmul.f32 %v5877_v29, %v5857_v59 }
0x2300   : > { %v5879_v62 = vmul.f32 %v5878_v10, %v11581_v61 }
0x2302   : > { %v5880_v38 = vadd.f32 %v5879_v62, %v11584_v35 }
0x2304   : > { %v5881_v42 = vpack.c.bf16 %v5880_v38, %v5880_v38 }
0x2306   : > { %5883 = vrot.lane.b32.xlu2 %v5881_v42, %s7102_s0 }
0x2360   : > { %v5884_v26 = vpop.permute.xlu2 %5883 }
0x2361   : > { %6767 = vmatmul.msk.bf16.vlgmr.msra.gmra.mxu2 %vm4378_vm1, %v5884_v26 }
0x2362   : > { %6015 = vmatpush.bf16.msra.mxu2 %v11242_v47 }
0x2366   : > { %6016 = vmatpush.bf16.msra.mxu2 %v11251_v18 }
0x236a   : > { %6017 = vmatpush.bf16.msra.mxu2 %v11260_v37 }
0x236e   : > { %6018 = vmatpush.bf16.msra.mxu2 %v11269_v48 }
0x23e4   : > { %v5897_v27 = vpop.f32.mrf.mxu2 }
0x23e5   : > { %v5901_v40 = vpack.c.bf16 %v5897_v27, %v5897_v27 }
0x23e7   : > { %6768 = vmatmul.msk.bf16.vlgmr.msrb.gmra.mxu3 %vm4378_vm1, %v5901_v40 }
0x23e8   : > { %6091 = vmatpush.bf16.msrb.mxu3 %v11398_v5 }
0x23ec   : > { %v5899_v61 = vpop.f32.mrf.mxu2  ;;  %6092 = vmatpush.bf16.msrb.mxu3 %v11409_v12 }
0x23f0   : > { %6093 = vmatpush.bf16.msrb.mxu3 %v11415_v51 }
0x23f4   : > { %6094 = vmatpush.bf16.msrb.mxu3 %v11421_v52 }
0x246a   : > { %v5914_v47 = vpop.f32.mrf.mxu3 }
0x246b   : > { %v5918_v35 = vmul.f32 0.125, %v5914_v47 }
0x246d   : > { %v5919_v18 = vsel %vm5011_vm11, %v5918_v35, -inf }
0x246e   : > { %v5920_v37 = vrot.slane %v5919_v18, 4 }
0x2470   : > { %v5921_v25 = vmax.f32 %v5919_v18, %v5920_v37 }
0x2472   : > { %v5922_v48 = vrot.slane %v5921_v25, 2  ;;  %v5916_v36 = vpop.f32.mrf.mxu3 }
0x2474   : > { %v5923_v53 = vmax.f32 %v5921_v25, %v5922_v48 }
0x2476   : > { %v5924_v50 = vrot.slane %v5923_v53, 1 }
0x2478   : > { %v5925_v2 = vmax.f32 %v5923_v53, %v5924_v50 }
0x247a   : > { %v5926_v30 = vsub.f32 %v5918_v35, %v5925_v2 }
0x247c   : > { %v5927_v5 = vmul.f32 1.442695, %v5926_v30 }
0x247e   : > { %7059 = vpow2.f32 %v5927_v5 }
0x2484   : > { %v7060_v1 = vpop.eup %7059 }
0x2485   : > { %v5929_v12 = vsel %vm5011_vm11, %v7060_v1, 0.0 }
0x2486   : > { %v5930_v51 = vrot.slane %v5929_v12, 4 }
0x2488   : > { %v5931_v63 = vadd.f32 %v5930_v51, %v5929_v12 }
0x248a   : > { %v5932_v52 = vrot.slane %v5931_v63, 2 }
0x248c   : > { %v5933_v4 = vadd.f32 %v5932_v52, %v5931_v63 }
0x248e   : > { %v5934_v3 = vrot.slane %v5933_v4, 1 }
0x2490   : > { %v5935_v46 = vadd.f32 %v5934_v3, %v5933_v4 }
0x2492   : > { %7061 = vrcp.f32 %v5935_v46 }
0x2498   : > { %v7062_v7 = vpop.eup %7061 }
0x2499   : > { %v5937_v23 = vmul.f32 %v7062_v7, %v7060_v1 }
0x249b   : > { %v5938_v32 = vadd.f32 1e-08, %v5937_v23 }
0x249d   : > { %v5939_v22 = vsel %vm5011_vm11, %v5938_v32, 0.0 }
0x249e   : > { %5940 = vadd.xlane.f32.xlu2 %v5939_v22 }
0x2511   : > { %v5941_v43 = vpop.xlane.xlu2 %5940 }
0x2512   : > { %7063 = vrcp.f32 %v5941_v43 }
0x2518   : > { %v7064_v44 = vpop.eup %7063 }
0x2519   : > { %v5943_v54 = vmul.f32 %v7064_v44, %v5938_v32 }
0x251b   : > { %v5944_v14 = vpack.c.bf16 %v5943_v54, %v5943_v54 }
0x251d   : > { %6769 = vmatmul.msk.bf16.vlgmr.msra.gmra.mxu1 %vm4378_vm1, %v5944_v14 }
0x259a   : > { %v5957_v21 = vpop.f32.mrf.mxu1 }
0x259b   : > { %v5961_v59 = vpack.c.bf16 %v5957_v21, %v5957_v21 }
0x259d   : > { %6770 = vmatmul.msk.bf16.vlgmr.msrb.gmra.mxu2 %vm4378_vm1, %v5961_v59  ;;  %6771 = vmatmul.msk.bf16.vlgmr.msra.gmra.mxu3 %vm4378_vm1, %v5961_v59 }
0x25a2   : > { %v5959_v16 = vpop.f32.mrf.mxu1 }
0x25ad   : > { %6773 = vmatmul.msk.bf16.vlgmr.msra.gmra.mxu2 %vm4378_vm1, %v11672_v33 }
0x2620   : > { %v5974_v17 = vpop.f32.mrf.mxu2  ;;  %v5987_v24 = vpop.f32.mrf.mxu3 }
0x2621   : > { %v6024_v28 = vadd.f32 %v11677_v0, %v5974_v17  ;;  %v6035_v29 = vadd.f32 %v11443_v58, %v5987_v24 }
0x2623   : > { %v6025_v57 = vadd.f32 %v11432_v20, %v6024_v28  ;;  %v6030_v20 = vadd.f32 %v6024_v28, %v11448_v13 }
0x2625   : > { %v6026_v49 = vmul.f32 0.5, %v6025_v57  ;;  %v6031_v0 = vmul.f32 0.5, %v6030_v20 }
0x2627   : > { %7065 = vtanh.f32 %v6026_v49 }
0x2628   : > { %v5976_v9 = vpop.f32.mrf.mxu2  ;;  %v5989_v55 = vpop.f32.mrf.mxu3 }
0x262d   : > { %v7066_v19 = vpop.eup %7065 }
0x262e   : > { %v6028_v56 = vadd.f32 1.0, %v7066_v19 }
0x2630   : > { %v6020_v8 = vpop.f32.mrf.mxu2  ;;  %v6029_v60 = vmul.f32 0.5, %v6028_v56 }
0x2631   : > { %v6036_v45 = vadd.f32 %v11438_v41, %v6020_v8 }
0x2633   : > { %v6037_v10 = vmul.f32 %v6036_v45, %v6029_v60 }
0x2635   : > { %v6038_v33 = vadd.f32 %v6037_v10, %v6035_v29 }
0x2637   : > { %7067 = vtanh.f32 %v6038_v33 }
0x2638   : > { %v6022_v62 = vpop.f32.mrf.mxu2  ;;  %7069 = vtanh.f32 %v6031_v0 }
0x263d   : > { %v7068_v38 = vpop.eup %7067 }
0x263e   : > { %6042 = vrot.lane.b32.xlu1 %v7068_v38, %s7102_s0  ;;  %v7070_v42 = vpop.eup %7069 }
0x263f   : > { %v6033_v26 = vadd.f32 1.0, %v7070_v42 }
0x2641   : > { %v6034_v27 = vmul.f32 0.5, %v6033_v26 }
0x2643   : > { %v6040_v40 = vsub.f32 1.0, %v6034_v27  ;;  %v6046_v41 = vmul.f32 %v6034_v27, %v11661_v34 }
0x26b0   : > { %v6043_v61 = vpop.permute.xlu1 %6042 }
0x26b1   : > { %v6045_v47 = vmul.f32 %v6043_v61, %v6040_v40 }
0x26b3   : > { %v6047_v58 = vadd.f32 %v6046_v41, %v6045_v47 }
0x26b5   : > { %6049 = vrot.lane.b32.xlu0 %v6047_v58, %s7102_s0 }
0x2727   : > { %v6050_v35 = vpop.permute.xlu0 %6049 }
0x2728   : > { %v6052_v18 = vsel %vm5011_vm11, %v6050_v35, 0.0 }
0x2729   : > { %6053 = vadd.xlane.f32.xlu0 %v6052_v18 }
0x279c   : > { %v6054_v37 = vpop.xlane.xlu0 %6053 }
0x279d   : > { %v6055_v13 = vmul.f32 %v6054_v37, %v11077_v15 }
0x279f   : > { %v6056_v25 = vsub.f32 %v6047_v58, %v6055_v13 }
0x27a1   : > { %v6057_v48 = vmul.f32 %v6056_v25, %v6056_v25 }
0x27a3   : > { %6059 = vrot.lane.b32.xlu2 %v6057_v48, %s7102_s0 }
0x27fd   : > { %v6060_v36 = vpop.permute.xlu2 %6059 }
0x27fe   : > { %v6062_v53 = vsel %vm5011_vm11, %v6060_v36, 0.0 }
0x27ff   : > { %6063 = vadd.xlane.f32.xlu1 %v6062_v53 }
0x2872   : > { %v6064_v34 = vpop.xlane.xlu1 %6063 }
0x2873   : > { %v6065_v50 = vmul.f32 %v6064_v34, %v11077_v15 }
0x2875   : > { %v6066_v2 = vadd.f32 1e-05, %v6065_v50 }
0x2877   : > { %7071 = vrsqrt.f32 %v6066_v2  ;;  %vm6073_vm5 = vweird.f32 %v6066_v2 }
0x287d   : > { %v7072_v30 = vpop.eup %7071 }
0x287e   : > { %v6068_v5 = vmul.f32 %v7072_v30, %v6066_v2  ;;  %vm6074_vm2 = vweird.f32 %v7072_v30 }
0x287f   : > { %vm6075_vm6 = vmor %vm6073_vm5, %vm6074_vm2 }
0x2880   : > { %v6069_v1 = vmul.f32 %v7072_v30, %v6068_v5 }
0x2882   : > { %v6070_v12 = vmul.f32 0.5, %v6069_v1 }
0x2884   : > { %v6071_v51 = vsub.f32 1.5, %v6070_v12 }
0x2886   : > { %v6072_v63 = vmul.f32 %v7072_v30, %v6071_v51 }
0x2888   : > { %v6076_v52 = vsel %vm6075_vm6, %v7072_v30, %v6072_v63 }
0x2889   : > { %v6077_v4 = vmul.f32 %v6076_v52, %v6056_v25 }
0x288b   : > { %v6078_v3 = vmul.f32 %v6077_v4, %v11469_v6 }
0x288d   : > { %v6079_v46 = vadd.f32 %v6078_v3, %v11471_v31 }
0x288f   : > { %v6080_v7 = vpack.c.bf16 %v6079_v46, %v6079_v46 }
0x2891   : > { %6082 = vrot.lane.b32.xlu2 %v6080_v7, %s7102_s0 }
0x28eb   : > { %v6083_v15 = vpop.permute.xlu2 %6082 }
0x28ec   : > { %6774 = vmatmul.msk.bf16.vlgmr.msrb.gmra.mxu3 %vm4378_vm1, %v6083_v15 }
0x296f   : > { %v6096_v23 = vpop.f32.mrf.mxu3 }
0x2970   : > { %v6097_v32 = vadd.f32 %v11554_v11, %v6096_v23 }
0x2972   : > { %v6100_v22 = vmax.f32 %v6097_v32, 0.0 }
0x2974   : > { %v6101_v43 = vpack.c.bf16 %v6100_v22, %v6100_v22 }
0x2976   : > { %6110 = vmatmul.bf16.vlgmr.msra.gmra.mxu0 %v6101_v43 }
0x2977   : > { %v6098_v44 = vpop.f32.mrf.mxu3 }
0x29f3   : > { %v6111_v54 = vpop.f32.mrf.mxu0 }
0x29f4   : > { %6116 = vrot.lane.b32.xlu2 %v6111_v54, %s7102_s0 }
0x29fb   : > { %v6113_v6 = vpop.f32.mrf.mxu0 }
0x2a4e   : > { %v6117_v14 = vpop.permute.xlu2 %6116 }
0x2a4f   : > { %v6119_v31 = vadd.f32 %v6117_v14, %v6047_v58 }
0x2a51   : > { %v6120_v21 = vadd.f32 %v6119_v31, %v11562_v39 }
0x2a53   : > { %6122 = vrot.lane.b32.xlu0 %v6120_v21, %s7102_s0 }
0x2ac5   : > { %v6123_v11 = vpop.permute.xlu0 %6122 }
0x2ac6   : > { %6125 = vst.msk [vmem:[%s617_s1] sm:$0x3f] %vm5011_vm11, %v6123_v11 }
0x2ac7 PF: > { %s12113_s3 = sld [smem:[#allocation2_spill]] }
0x2acd   : > { %s29_s0 = sadd.s32 1, %s12113_s3  }
0x2ace   : > { %p26_p4 = scmp.ge.s32.totalorder %s29_s0, 4  }
0x2ad0   :  { %28 = sbr.rel (!%p26_p4) target bundleno = 8 (0x8), region = 176 }

</bundles_post_ra>
